<compile_context>
chip_gen: v5e
topology: v5e:2x2
jax: 0.10.0
libtpu: 0.0.40
codegen_flags: <defaults>
</compile_context>

<pallas_src>
import functools

import jax
import jax.numpy as jnp
from jax.experimental import pallas as pl
from jax.experimental.pallas import tpu as pltpu

IN_FEATURES = 3 * 64 * 64   # 12288
HIDDEN = 100
OUT_FEATURES = 2
OUT_PAD = 128               # lane-dense padded output width


def _round_up(x, m):
    return ((x + m - 1) // m) * m


def _mlp_kernel(x_ref, w_ref, b_ref, o_ref):
    # x: (bm, 12288) bf16, w: (12288, 128) bf16, b: (1, 128) f32, o: (bm, 128) f32
    acc = jnp.dot(x_ref[...], w_ref[...], preferred_element_type=jnp.float32)
    o_ref[...] = jax.nn.sigmoid(acc + b_ref[...])


def fold_params(params):
    """Fold the three bias-only Linear layers into one (12288, 2) layer,
    zero-pad the output dim to 128 lanes, and store the weight in bf16
    (bias kept f32).  Exact same math as the module forward up to rounding."""
    w1, b1, w2, b2, w3, b3 = params
    w_eff = (w1 @ w2) @ w3                      # (12288, 2)
    b_eff = (b1 @ w2) @ w3 + b2 @ w3 + b3       # (1, 2)
    w_pad = jnp.zeros((IN_FEATURES, OUT_PAD), jnp.float32).at[:, :OUT_FEATURES].set(w_eff)
    b_pad = jnp.zeros((1, OUT_PAD), jnp.float32).at[:, :OUT_FEATURES].set(b_eff)
    return w_pad.astype(jnp.bfloat16), b_pad


def _pick_tiling():
    """Chip-generation-aware batch-tile cap + VMEM limit.
    v5e/v6e (128 MiB VMEM): 768-row tiles, 96 MiB limit  (~42 MiB footprint).
    v7x     (64 MiB VMEM):  512-row tiles, 48 MiB limit  (~29 MiB footprint).
    (bf16 x tiles: 768 rows = 2x18.9 MiB double-buffered, 512 = 2x12.6 MiB.)"""
    try:
        vmem = int(pltpu.get_tpu_info().vmem_capacity_bytes)
    except Exception:
        vmem = 64 << 20  # conservative: assume v7x-sized VMEM
    if vmem >= (100 << 20):
        return 768, 96 << 20
    return 512, 48 << 20


@functools.partial(jax.jit, static_argnames=("bm", "vmem_limit", "single_buffer_weights"))
def _mlp_forward_impl(x_nchw, w_pad, b_pad, *, bm, vmem_limit, single_buffer_weights):
    n = x_nchw.shape[0]
    # nn.Flatten on a contiguous NCHW tensor == row-major reshape.  Cast to
    # bf16 inside the jit so the kernel streams half the HBM bytes for x.
    x_flat = x_nchw.reshape(n, -1).astype(jnp.bfloat16)

    # Pad the batch to a multiple of 8 so the sublane dim of every block is
    # valid even for tiny batches; padded rows are sliced off below.
    n_pad = _round_up(max(n, 8), 8)
    if n_pad != n:
        x_flat = jnp.pad(x_flat, ((0, n_pad - n), (0, 0)))

    grid = (pl.cdiv(n_pad, bm),)

    # Weights/bias have a constant index_map -> keep them resident with a
    # single buffer; double-buffering them only wastes VMEM + DMA bookkeeping.
    resident = {"pipeline_mode": pl.Buffered(1)} if single_buffer_weights else {}

    cost = pl.CostEstimate(
        flops=2 * n_pad * IN_FEATURES * OUT_PAD,
        transcendentals=n_pad * OUT_PAD,
        bytes_accessed=(n_pad * IN_FEATURES * 2          # x (bf16)
                        + IN_FEATURES * OUT_PAD * 2      # W_eff (bf16)
                        + OUT_PAD * 4                    # bias (f32)
                        + n_pad * OUT_PAD * 4),          # out (f32)
    )

    out_padded = pl.pallas_call(
        _mlp_kernel,
        out_shape=jax.ShapeDtypeStruct((n_pad, OUT_PAD), jnp.float32),
        grid=grid,
        in_specs=[
            pl.BlockSpec((bm, IN_FEATURES), lambda i: (i, 0)),                   # x tile (streamed)
            pl.BlockSpec((IN_FEATURES, OUT_PAD), lambda i: (0, 0), **resident),  # W_eff resident
            pl.BlockSpec((1, OUT_PAD), lambda i: (0, 0), **resident),            # b_eff resident
        ],
        out_specs=pl.BlockSpec((bm, OUT_PAD), lambda i: (i, 0)),
        compiler_params=pltpu.CompilerParams(
            dimension_semantics=("parallel",),
            vmem_limit_bytes=vmem_limit,
        ),
        cost_estimate=cost,
    )(x_flat, w_pad, b_pad)

    # Drop padded rows and the zero-padded output lanes (sigmoid(0)=0.5 there,
    # never used).
    return out_padded[:n, :OUT_FEATURES]


def mlp_forward(x_nchw, w_pad, b_pad, *, block_m=None):
    n = x_nchw.shape[0]
    cap, vmem_limit = _pick_tiling()
    if block_m is not None:
        cap = block_m
    # Ensure >=2 grid steps when the batch permits so v7x's second TensorCore
    # gets work under dimension_semantics=("parallel",); harmless on v5e/v6e.
    bm = min(cap, _round_up(max(1, pl.cdiv(n, 2)), 8))
    try:
        return _mlp_forward_impl(x_nchw, w_pad, b_pad, bm=bm,
                                 vmem_limit=vmem_limit, single_buffer_weights=True)
    except Exception:
        # pl.Buffered(1) unsupported on this JAX build: fall back to default
        # (double) buffering of the resident weights; everything else identical.
        return _mlp_forward_impl(x_nchw, w_pad, b_pad, bm=bm,
                                 vmem_limit=vmem_limit, single_buffer_weights=False)


def init_params(key):
    """Deterministic init mimicking nn.Linear default: U(-1/sqrt(fan_in), 1/sqrt(fan_in)).
    Weights stored as (in_features, out_features)."""
    def linear(k, fan_in, fan_out):
        kw, kb = jax.random.split(k)
        bound = 1.0 / jnp.sqrt(float(fan_in))
        w = jax.random.uniform(kw, (fan_in, fan_out), jnp.float32, -bound, bound)
        b = jax.random.uniform(kb, (1, fan_out), jnp.float32, -bound, bound)
        return w, b

    k1, k2, k3 = jax.random.split(key, 3)
    w1, b1 = linear(k1, IN_FEATURES, HIDDEN)
    w2, b2 = linear(k2, HIDDEN, HIDDEN)
    w3, b3 = linear(k3, HIDDEN, OUT_FEATURES)
    return (w1, b1, w2, b2, w3, b3)


if __name__ == "__main__":
    key = jax.random.PRNGKey(0)
    kx, kp = jax.random.split(key)

    batch = 2
    x = jax.random.normal(kx, (batch, 3, 64, 64), dtype=jnp.float32)
    params = init_params(kp)
    w_pad, b_pad = fold_params(params)

    out = mlp_forward(x, w_pad, b_pad)
    out = jax.block_until_ready(out)

    # Reference: the original unfused three-Linear chain + sigmoid, in f32.
    w1, b1, w2, b2, w3, b3 = params
    xf = x.reshape(batch, -1)
    ref = jax.nn.sigmoid(((xf @ w1 + b1) @ w2 + b2) @ w3 + b3)
    assert out.shape == (batch, OUT_FEATURES)
    # bf16 x/W quantization over K=12288 + folding re-association: post-sigmoid
    # error is ~1e-3 in practice, so the tolerance is relaxed accordingly.
    assert jnp.allclose(out, ref, atol=2e-2, rtol=2e-2), float(jnp.max(jnp.abs(out - ref)))

    print("KERNEL_OK")
</pallas_src>

<mosaic_0001>
module attributes {stable_mosaic.version = 11 : i64} {
  func.func @_mlp_kernel(%arg0: i32, %arg1: memref<8x12288xbf16, #tpu.memory_space<vmem>>, %arg2: memref<12288x128xbf16, #tpu.memory_space<vmem>>, %arg3: memref<1x128xf32, #tpu.memory_space<vmem>>, %arg4: memref<8x128xf32, #tpu.memory_space<vmem>>) attributes {dimension_semantics = [#tpu.dimension_semantics<parallel>], iteration_bounds = array<i64: 1>, scalar_prefetch = 0 : i64, scratch_operands = 0 : i64, tpu.core_type = #tpu.core_type<tc>, window_params = [{transform_indices = @transform_0, window_bounds = array<i64: 8, 12288>}, {pipeline_mode = #tpu.pipeline_mode<synchronous>, transform_indices = @transform_1, window_bounds = array<i64: 12288, 128>}, {pipeline_mode = #tpu.pipeline_mode<synchronous>, transform_indices = @transform_2, window_bounds = array<i64: 1, 128>}, {transform_indices = @transform_3, window_bounds = array<i64: 8, 128>}]} {
    %c0 = arith.constant 0 : index
    %c0_0 = arith.constant 0 : index
    %0 = vector.load %arg1[%c0, %c0_0] : memref<8x12288xbf16, #tpu.memory_space<vmem>>, vector<8x12288xbf16>
    %c0_1 = arith.constant 0 : index
    %c0_2 = arith.constant 0 : index
    %1 = vector.load %arg2[%c0_1, %c0_2] : memref<12288x128xbf16, #tpu.memory_space<vmem>>, vector<12288x128xbf16>
    %cst = arith.constant dense<0.000000e+00> : vector<8x128xf32>
    %2 = tpu.matmul %0, %1, %cst {dimension_numbers = #tpu.dot_dimension_numbers<[1], [0], [0], [1], [0, 0, 1, 1], [], []>} : vector<8x12288xbf16>, vector<12288x128xbf16>, vector<8x128xf32> -> vector<8x128xf32>
    %c0_3 = arith.constant 0 : index
    %c0_4 = arith.constant 0 : index
    %3 = vector.load %arg3[%c0_3, %c0_4] : memref<1x128xf32, #tpu.memory_space<vmem>>, vector<1x128xf32>
    %4 = vector.broadcast %3 : vector<1x128xf32> to vector<8x128xf32>
    %5 = arith.addf %2, %4 : vector<8x128xf32>
    %6 = arith.negf %5 : vector<8x128xf32>
    %7 = math.exp %6 : vector<8x128xf32>
    %cst_5 = arith.constant 1.000000e+00 : f32
    %8 = vector.broadcast %cst_5 : f32 to vector<8x128xf32>
    %9 = arith.addf %8, %7 : vector<8x128xf32>
    %10 = arith.divf %8, %9 : vector<8x128xf32>
    %c0_6 = arith.constant 0 : index
    %c0_7 = arith.constant 0 : index
    %11 = vector.load %arg4[%c0_6, %c0_7] : memref<8x128xf32, #tpu.memory_space<vmem>>, vector<8x128xf32>
    tpu.vector_store %arg4[%c0_6, %c0_7], %10 {strides = array<i32>} : memref<8x128xf32, #tpu.memory_space<vmem>>, vector<8x128xf32>,
    return
  }
  func.func @transform_0(%arg0: i32) -> (i32, i32) {
    %c0_i32 = arith.constant 0 : i32
    %c0_i32_0 = arith.constant 0 : i32
    return %arg0, %c0_i32 : i32, i32
  }
  func.func @transform_1(%arg0: i32) -> (i32, i32) {
    %c0_i32 = arith.constant 0 : i32
    %c0_i32_0 = arith.constant 0 : i32
    %c0_i32_1 = arith.constant 0 : i32
    return %c0_i32, %c0_i32_0 : i32, i32
  }
  func.func @transform_2(%arg0: i32) -> (i32, i32) {
    %c0_i32 = arith.constant 0 : i32
    %c0_i32_0 = arith.constant 0 : i32
    %c0_i32_1 = arith.constant 0 : i32
    return %c0_i32, %c0_i32_0 : i32, i32
  }
  func.func @transform_3(%arg0: i32) -> (i32, i32) {
    %c0_i32 = arith.constant 0 : i32
    %c0_i32_0 = arith.constant 0 : i32
    return %arg0, %c0_i32 : i32, i32
  }
}

module attributes {stable_mosaic.version = 11 : i64} {
  func.func @_mlp_kernel(%arg0: i32, %arg1: memref<8x12288xbf16, #tpu.memory_space<vmem>>, %arg2: memref<12288x128xbf16, #tpu.memory_space<vmem>>, %arg3: memref<1x128xf32, #tpu.memory_space<vmem>>, %arg4: memref<8x128xf32, #tpu.memory_space<vmem>>) attributes {dimension_semantics = [#tpu.dimension_semantics<parallel>], iteration_bounds = array<i64: 1>, scalar_prefetch = 0 : i64, scratch_operands = 0 : i64, tpu.core_type = #tpu.core_type<tc>, window_params = [{transform_indices = @transform_0, window_bounds = array<i64: 8, 12288>}, {pipeline_mode = #tpu.pipeline_mode<synchronous>, transform_indices = @transform_1, window_bounds = array<i64: 12288, 128>}, {pipeline_mode = #tpu.pipeline_mode<synchronous>, transform_indices = @transform_2, window_bounds = array<i64: 1, 128>}, {transform_indices = @transform_3, window_bounds = array<i64: 8, 128>}]} {
    %c0 = arith.constant 0 : index
    %c0_0 = arith.constant 0 : index
    %0 = vector.load %arg1[%c0, %c0_0] : memref<8x12288xbf16, #tpu.memory_space<vmem>>, vector<8x12288xbf16>
    %c0_1 = arith.constant 0 : index
    %c0_2 = arith.constant 0 : index
    %1 = vector.load %arg2[%c0_1, %c0_2] : memref<12288x128xbf16, #tpu.memory_space<vmem>>, vector<12288x128xbf16>
    %cst = arith.constant dense<0.000000e+00> : vector<8x128xf32>
    %2 = tpu.matmul %0, %1, %cst {dimension_numbers = #tpu.dot_dimension_numbers<[1], [0], [0], [1], [0, 0, 1, 1], [], []>} : vector<8x12288xbf16>, vector<12288x128xbf16>, vector<8x128xf32> -> vector<8x128xf32>
    %c0_3 = arith.constant 0 : index
    %c0_4 = arith.constant 0 : index
    %3 = vector.load %arg3[%c0_3, %c0_4] : memref<1x128xf32, #tpu.memory_space<vmem>>, vector<1x128xf32>
    %4 = vector.broadcast %3 : vector<1x128xf32> to vector<8x128xf32>
    %5 = arith.addf %2, %4 : vector<8x128xf32>
    %6 = arith.negf %5 : vector<8x128xf32>
    %7 = math.exp %6 : vector<8x128xf32>
    %cst_5 = arith.constant 1.000000e+00 : f32
    %8 = vector.broadcast %cst_5 : f32 to vector<8x128xf32>
    %9 = arith.addf %8, %7 : vector<8x128xf32>
    %10 = arith.divf %8, %9 : vector<8x128xf32>
    %c0_6 = arith.constant 0 : index
    %c0_7 = arith.constant 0 : index
    %11 = vector.load %arg4[%c0_6, %c0_7] : memref<8x128xf32, #tpu.memory_space<vmem>>, vector<8x128xf32>
    tpu.vector_store %arg4[%c0_6, %c0_7], %10 {strides = array<i32>} : memref<8x128xf32, #tpu.memory_space<vmem>>, vector<8x128xf32>,
    return
  }
  func.func @transform_0(%arg0: i32) -> (i32, i32) {
    %c0_i32 = arith.constant 0 : i32
    %c0_i32_0 = arith.constant 0 : i32
    return %arg0, %c0_i32 : i32, i32
  }
  func.func @transform_1(%arg0: i32) -> (i32, i32) {
    %c0_i32 = arith.constant 0 : i32
    %c0_i32_0 = arith.constant 0 : i32
    %c0_i32_1 = arith.constant 0 : i32
    return %c0_i32, %c0_i32_0 : i32, i32
  }
  func.func @transform_2(%arg0: i32) -> (i32, i32) {
    %c0_i32 = arith.constant 0 : i32
    %c0_i32_0 = arith.constant 0 : i32
    %c0_i32_1 = arith.constant 0 : i32
    return %c0_i32, %c0_i32_0 : i32, i32
  }
  func.func @transform_3(%arg0: i32) -> (i32, i32) {
    %c0_i32 = arith.constant 0 : i32
    %c0_i32_0 = arith.constant 0 : i32
    return %arg0, %c0_i32 : i32, i32
  }
}

</mosaic_0001>

<bundles_post_ra>
// kernel: _mlp_forward_impl.1
= control target key start
LH: loop header
LB: loop body
LE: loop exit
PB: predicated region body
PF: predicated region fallthrough
CT: control target
= control target key end

     0   :  { %8 = vsyncpa [#allocation3], 0  ;;  %s11983_s0 = inlined_call_operand.vmem [shape: bf16[8,12288], index: 0, kind: input, shape index: {}]   ;;  %s11984_s1 = inlined_call_operand.hbm [shape: bf16[12288,128], index: 1, kind: input, shape index: {}]   ;;  %s11985_s2 = inlined_call_operand.hbm [shape: f32[1,128], index: 2, kind: input, shape index: {}]   ;;  %s11986_s3 = inlined_call_operand.vmem [shape: f32[8,128], index: 3, kind: output, shape index: {}]  }
   0x1   :  { %s16_s14 = sshll.u32 %s11984_s1, 4  ;;  %s17_s14 = int_to_ptr.hbm [resolvable:$true] %s16_s14 }
   0x2   :  { %9 = vsyncpa [#allocation5], 0  ;;  %s11752_s15 = smov [#allocation2]   ;;  %s30_s19 = sshll.u32 %s11985_s2, 4  ;;  %s31_s19 = int_to_ptr.hbm [resolvable:$true] %s30_s19 }
   0x3   :  { %s18_s16 = sshll.u32 %s11752_s15, 4  ;;  %s11753_s20 = smov 64   ;;  %s19_s16 = int_to_ptr.vmem [resolvable:$true] %s18_s16 }
   0x4   :  { %s11754_s21 = smov 4   ;;  %s11755_s22 = smov [#allocation4]  }
   0x5   :  { %24 = dma.hbm_to_vmem [thread:$0]  %s17_s14, 98304, %s19_s16, [#allocation3], %s11753_s20, %s11753_s20, %s11754_s21  }
   0x6   :  { %s32_s23 = sshll.u32 %s11755_s22, 4  ;;  %s33_s23 = int_to_ptr.vmem [resolvable:$true] %s32_s23 }
   0x7   :  { %35 = dma.hbm_to_vmem [thread:$0]  %s31_s19, 16, %s33_s23, [#allocation5]  }
   0x8   :  { %11748 = dma.done.wait [#allocation3], 98304  }
   0x9   :  { %11749 = vsyncadd [#allocation3], 4294868992 }
   0xa   :  { %11750 = dma.done.wait [#allocation5], 16  }
   0xb   :  { %11751 = vsyncadd [#allocation5], 4294967280  ;;  %v10930_v0 = vld [vmem:[#allocation2 + $0x38] sm:$0xff]  ;;  %v10929_v4 = vld [vmem:[#allocation2 + $0x30] sm:$0xff] }
   0xc   :  { %v10938_v1 = vld [vmem:[#allocation2 + $0x78] sm:$0xff]  ;;  %6576 = vmatpush.bf16.msra.mxu0 %v10930_v0  ;;  %v10937_v5 = vld [vmem:[#allocation2 + $0x70] sm:$0xff]  ;;  %v10928_v8 = vld [vmem:[#allocation2 + $0x28] sm:$0xff] }
   0xd   :  { %v10946_v2 = vld [vmem:[#allocation2 + $0xb8] sm:$0xff]  ;;  %6589 = vmatpush.bf16.msra.mxu1 %v10938_v1  ;;  %v10945_v6 = vld [vmem:[#allocation2 + $0xb0] sm:$0xff]  ;;  %v10936_v9 = vld [vmem:[#allocation2 + $0x68] sm:$0xff] }
   0xe   :  { %v10954_v3 = vld [vmem:[#allocation2 + $0xf8] sm:$0xff]  ;;  %6602 = vmatpush.bf16.msra.mxu2 %v10946_v2  ;;  %v10953_v7 = vld [vmem:[#allocation2 + $0xf0] sm:$0xff]  ;;  %v10944_v10 = vld [vmem:[#allocation2 + $0xa8] sm:$0xff] }
   0xf   :  { %6615 = vmatpush.bf16.msra.mxu3 %v10954_v3  ;;  %v10952_v11 = vld [vmem:[#allocation2 + $0xe8] sm:$0xff]  ;;  %v10927_v12 = vld [vmem:[#allocation2 + $0x20] sm:$0xff]  ;;  %v10926_v16 = vld [vmem:[#allocation2 + $0x18] sm:$0xff] }
  0x10   :  { %6577 = vmatpush.bf16.msra.mxu0 %v10929_v4  ;;  %v10935_v13 = vld [vmem:[#allocation2 + $0x60] sm:$0xff]  ;;  %v10934_v17 = vld [vmem:[#allocation2 + $0x58] sm:$0xff]  ;;  %v10925_v20 = vld [vmem:[#allocation2 + $0x10] sm:$0xff] }
  0x11   :  { %6590 = vmatpush.bf16.msra.mxu1 %v10937_v5  ;;  %v10943_v14 = vld [vmem:[#allocation2 + $0xa0] sm:$0xff]  ;;  %v10942_v18 = vld [vmem:[#allocation2 + $0x98] sm:$0xff]  ;;  %v10933_v21 = vld [vmem:[#allocation2 + $0x50] sm:$0xff] }
  0x12   :  { %6603 = vmatpush.bf16.msra.mxu2 %v10945_v6  ;;  %v10951_v15 = vld [vmem:[#allocation2 + $0xe0] sm:$0xff]  ;;  %v10950_v19 = vld [vmem:[#allocation2 + $0xd8] sm:$0xff]  ;;  %v10941_v22 = vld [vmem:[#allocation2 + $0x90] sm:$0xff] }
  0x13   :  { %6616 = vmatpush.bf16.msra.mxu3 %v10953_v7  ;;  %v10949_v23 = vld [vmem:[#allocation2 + $0xd0] sm:$0xff]  ;;  %v10924_v24 = vld [vmem:[#allocation2 + $0x8] sm:$0xff]  ;;  %v44_v29 = vld [vmem:[%s11983_s0] sm:$0xff] }
  0x14   :  { %6578 = vmatpush.bf16.msra.mxu0 %v10928_v8  ;;  %v10932_v25 = vld [vmem:[#allocation2 + $0x48] sm:$0xff]  ;;  %v10923_v30 = vld [vmem:[#allocation2] sm:$0xff]  ;;  %v1680_v33 = vunpack.c.l.b16 %v44_v29  ;;  %v1681_v37 = vunpack.c.h.b16 %v44_v29  ;;  %v10962_v38 = vld [vmem:[#allocation2 + $0x138] sm:$0xff] }
  0x15   :  { %6591 = vmatpush.bf16.msra.mxu1 %v10936_v9  ;;  %v10940_v26 = vld [vmem:[#allocation2 + $0x88] sm:$0xff]  ;;  %v10931_v31 = vld [vmem:[#allocation2 + $0x40] sm:$0xff]  ;;  %v10970_v39 = vld [vmem:[#allocation2 + $0x178] sm:$0xff] }
  0x16   :  { %6604 = vmatpush.bf16.msra.mxu2 %v10944_v10  ;;  %v10948_v27 = vld [vmem:[#allocation2 + $0xc8] sm:$0xff]  ;;  %v10939_v34 = vld [vmem:[#allocation2 + $0x80] sm:$0xff]  ;;  %v10978_v40 = vld [vmem:[#allocation2 + $0x1b8] sm:$0xff]  ;;  %v1776_v43 = vpack.c.b16 %v1680_v33, %v1680_v33  ;;  %v1777_v45 = vpack.c.b16 %v1681_v37, %v1681_v37 }
  0x17   :  { %6617 = vmatpush.bf16.msra.mxu3 %v10952_v11  ;;  %v45_v28 = vld [vmem:[%s11983_s0 + $0x8] sm:$0xff]  ;;  %v10947_v35 = vld [vmem:[#allocation2 + $0xc0] sm:$0xff]  ;;  %v10986_v41 = vld [vmem:[#allocation2 + $0x1f8] sm:$0xff] }
  0x18   :  { %6579 = vmatpush.bf16.msra.mxu0 %v10927_v12  ;;  %v1682_v32 = vunpack.c.l.b16 %v45_v28  ;;  %v1683_v36 = vunpack.c.h.b16 %v45_v28  ;;  %v10961_v46 = vld [vmem:[#allocation2 + $0x130] sm:$0xff]  ;;  %v10960_v50 = vld [vmem:[#allocation2 + $0x128] sm:$0xff]  ;;  %v10959_v54 = vld [vmem:[#allocation2 + $0x120] sm:$0xff] }
  0x19   :  { %6592 = vmatpush.bf16.msra.mxu1 %v10935_v13  ;;  %v10969_v47 = vld [vmem:[#allocation2 + $0x170] sm:$0xff]  ;;  %v10968_v51 = vld [vmem:[#allocation2 + $0x168] sm:$0xff]  ;;  %v10967_v55 = vld [vmem:[#allocation2 + $0x160] sm:$0xff] }
  0x1a   :  { %6605 = vmatpush.bf16.msra.mxu2 %v10943_v14  ;;  %v1778_v42 = vpack.c.b16 %v1682_v32, %v1682_v32  ;;  %v1779_v44 = vpack.c.b16 %v1683_v36, %v1683_v36  ;;  %v10977_v48 = vld [vmem:[#allocation2 + $0x1b0] sm:$0xff]  ;;  %v10976_v52 = vld [vmem:[#allocation2 + $0x1a8] sm:$0xff]  ;;  %v10975_v56 = vld [vmem:[#allocation2 + $0x1a0] sm:$0xff] }
  0x1b   :  { %6618 = vmatpush.bf16.msra.mxu3 %v10951_v15  ;;  %v10985_v49 = vld [vmem:[#allocation2 + $0x1f0] sm:$0xff]  ;;  %v10984_v53 = vld [vmem:[#allocation2 + $0x1e8] sm:$0xff]  ;;  %v10983_v57 = vld [vmem:[#allocation2 + $0x1e0] sm:$0xff] }
  0x1c   :  { %6580 = vmatpush.bf16.msra.mxu0 %v10926_v16  ;;  %v10958_v58 = vld [vmem:[#allocation2 + $0x118] sm:$0xff]  ;;  %v10957_v62 = vld [vmem:[#allocation2 + $0x110] sm:$0xff]  ;;  %v10956_v2 = vld [vmem:[#allocation2 + $0x108] sm:$0xff] }
  0x1d   :  { %6593 = vmatpush.bf16.msra.mxu1 %v10934_v17  ;;  %v10966_v59 = vld [vmem:[#allocation2 + $0x158] sm:$0xff]  ;;  %v10965_v63 = vld [vmem:[#allocation2 + $0x150] sm:$0xff]  ;;  %v10964_v3 = vld [vmem:[#allocation2 + $0x148] sm:$0xff] }
  0x1e   :  { %6606 = vmatpush.bf16.msra.mxu2 %v10942_v18  ;;  %v10974_v60 = vld [vmem:[#allocation2 + $0x198] sm:$0xff]  ;;  %v10973_v0 = vld [vmem:[#allocation2 + $0x190] sm:$0xff]  ;;  %v10972_v4 = vld [vmem:[#allocation2 + $0x188] sm:$0xff] }
  0x1f   :  { %6619 = vmatpush.bf16.msra.mxu3 %v10950_v19  ;;  %v10982_v61 = vld [vmem:[#allocation2 + $0x1d8] sm:$0xff]  ;;  %v10981_v1 = vld [vmem:[#allocation2 + $0x1d0] sm:$0xff]  ;;  %v10980_v5 = vld [vmem:[#allocation2 + $0x1c8] sm:$0xff] }
  0x20   :  { %6581 = vmatpush.bf16.msra.mxu0 %v10925_v20  ;;  %v47_v6 = vld [vmem:[%s11983_s0 + $0x18] sm:$0xff]  ;;  %v46_v7 = vld [vmem:[%s11983_s0 + $0x10] sm:$0xff]  ;;  %v10955_v8 = vld [vmem:[#allocation2 + $0x100] sm:$0xff] }
  0x21   :  { %6594 = vmatpush.bf16.msra.mxu1 %v10933_v21  ;;  %v10963_v9 = vld [vmem:[#allocation2 + $0x140] sm:$0xff]  ;;  %v1686_v10 = vunpack.c.l.b16 %v47_v6  ;;  %v1684_v11 = vunpack.c.l.b16 %v46_v7  ;;  %v1687_v14 = vunpack.c.h.b16 %v47_v6  ;;  %v1685_v15 = vunpack.c.h.b16 %v46_v7  ;;  %v10994_v16 = vld [vmem:[#allocation2 + $0x238] sm:$0xff]  ;;  %v10992_v28 = vld [vmem:[#allocation2 + $0x228] sm:$0xff] }
  0x22   :  { %6607 = vmatpush.bf16.msra.mxu2 %v10941_v22  ;;  %v10971_v12 = vld [vmem:[#allocation2 + $0x180] sm:$0xff]  ;;  %v11002_v17 = vld [vmem:[#allocation2 + $0x278] sm:$0xff]  ;;  %v11000_v29 = vld [vmem:[#allocation2 + $0x268] sm:$0xff] }
  0x23   :  { %6620 = vmatpush.bf16.msra.mxu3 %v10949_v23  ;;  %v10979_v13 = vld [vmem:[#allocation2 + $0x1c0] sm:$0xff]  ;;  %v11010_v18 = vld [vmem:[#allocation2 + $0x2b8] sm:$0xff]  ;;  %v1782_v20 = vpack.c.b16 %v1686_v10, %v1686_v10  ;;  %v1780_v21 = vpack.c.b16 %v1684_v11, %v1684_v11  ;;  %v1783_v22 = vpack.c.b16 %v1687_v14, %v1687_v14  ;;  %v1781_v23 = vpack.c.b16 %v1685_v15, %v1685_v15  ;;  %v11024_v6 = vld [vmem:[#allocation2 + $0x328] sm:$0xff] }
  0x24   :  { %6582 = vmatpush.bf16.msra.mxu0 %v10924_v24  ;;  %v11018_v19 = vld [vmem:[#allocation2 + $0x2f8] sm:$0xff]  ;;  %v10993_v24 = vld [vmem:[#allocation2 + $0x230] sm:$0xff]  ;;  %v10991_v32 = vld [vmem:[#allocation2 + $0x220] sm:$0xff] }
  0x25   :  { %6595 = vmatpush.bf16.msra.mxu1 %v10932_v25  ;;  %v11001_v25 = vld [vmem:[#allocation2 + $0x270] sm:$0xff]  ;;  %v10999_v33 = vld [vmem:[#allocation2 + $0x260] sm:$0xff]  ;;  %v10990_v36 = vld [vmem:[#allocation2 + $0x218] sm:$0xff] }
  0x26   :  { %6608 = vmatpush.bf16.msra.mxu2 %v10940_v26  ;;  %v11009_v26 = vld [vmem:[#allocation2 + $0x2b0] sm:$0xff]  ;;  %v10998_v37 = vld [vmem:[#allocation2 + $0x258] sm:$0xff]  ;;  %v11032_v7 = vld [vmem:[#allocation2 + $0x368] sm:$0xff] }
  0x27   :  { %6621 = vmatpush.bf16.msra.mxu3 %v10948_v27  ;;  %v11017_v27 = vld [vmem:[#allocation2 + $0x2f0] sm:$0xff]  ;;  %v11023_v10 = vld [vmem:[#allocation2 + $0x320] sm:$0xff]  ;;  %v11022_v14 = vld [vmem:[#allocation2 + $0x318] sm:$0xff] }
  0x28   :  { %6583 = vmatpush.bf16.msra.mxu0 %v10923_v30  ;;  %v11008_v30 = vld [vmem:[#allocation2 + $0x2a8] sm:$0xff]  ;;  %v11031_v11 = vld [vmem:[#allocation2 + $0x360] sm:$0xff]  ;;  %v11030_v15 = vld [vmem:[#allocation2 + $0x358] sm:$0xff] }
  0x29   :  { %6596 = vmatpush.bf16.msra.mxu1 %v10931_v31  ;;  %v11016_v31 = vld [vmem:[#allocation2 + $0x2e8] sm:$0xff] }
  0x2a   :  { %6609 = vmatpush.bf16.msra.mxu2 %v10939_v34  ;;  %v11007_v34 = vld [vmem:[#allocation2 + $0x2a0] sm:$0xff] }
  0x2b   :  { %6622 = vmatpush.bf16.msra.mxu3 %v10947_v35  ;;  %6584 = vmatmul.bf16.vlgmr.msra.gmra.mxu0 %v1776_v43  ;;  %v11015_v35 = vld [vmem:[#allocation2 + $0x2e0] sm:$0xff]  ;;  %v11013_v43 = vld [vmem:[#allocation2 + $0x2d0] sm:$0xff] }
  0x2c   :  { %6628 = vmatpush.bf16.msrb.mxu0 %v10962_v38  ;;  %6597 = vmatmul.bf16.vlgmr.msra.gmra.mxu1 %v1777_v45  ;;  %v11006_v38 = vld [vmem:[#allocation2 + $0x298] sm:$0xff]  ;;  %v10996_v45 = vld [vmem:[#allocation2 + $0x248] sm:$0xff] }
  0x2d   :  { %6641 = vmatpush.bf16.msrb.mxu1 %v10970_v39  ;;  %6610 = vmatmul.bf16.vlgmr.msra.gmra.mxu2 %v1778_v42  ;;  %v11014_v39 = vld [vmem:[#allocation2 + $0x2d8] sm:$0xff]  ;;  %v11005_v42 = vld [vmem:[#allocation2 + $0x290] sm:$0xff] }
  0x2e   :  { %6654 = vmatpush.bf16.msrb.mxu2 %v10978_v40  ;;  %6623 = vmatmul.bf16.vlgmr.msra.gmra.mxu3 %v1779_v44  ;;  %v10989_v40 = vld [vmem:[#allocation2 + $0x210] sm:$0xff]  ;;  %v10988_v44 = vld [vmem:[#allocation2 + $0x208] sm:$0xff] }
  0x2f   :  { %6667 = vmatpush.bf16.msrb.mxu3 %v10986_v41  ;;  %v10997_v41 = vld [vmem:[#allocation2 + $0x250] sm:$0xff] }
  0x30   :  { %6629 = vmatpush.bf16.msrb.mxu0 %v10961_v46  ;;  %v11004_v46 = vld [vmem:[#allocation2 + $0x288] sm:$0xff] }
  0x31   :  { %6642 = vmatpush.bf16.msrb.mxu1 %v10969_v47  ;;  %v11012_v47 = vld [vmem:[#allocation2 + $0x2c8] sm:$0xff] }
  0x32   :  { %6655 = vmatpush.bf16.msrb.mxu2 %v10977_v48  ;;  %v48_v48 = vld [vmem:[%s11983_s0 + $0x20] sm:$0xff] }
  0x33   :  { %6668 = vmatpush.bf16.msrb.mxu3 %v10985_v49  ;;  %v49_v49 = vld [vmem:[%s11983_s0 + $0x28] sm:$0xff] }
  0x34   :  { %6630 = vmatpush.bf16.msrb.mxu0 %v10960_v50  ;;  %v10987_v50 = vld [vmem:[#allocation2 + $0x200] sm:$0xff] }
  0x35   :  { %6643 = vmatpush.bf16.msrb.mxu1 %v10968_v51  ;;  %v10995_v51 = vld [vmem:[#allocation2 + $0x240] sm:$0xff] }
  0x36   :  { %6656 = vmatpush.bf16.msrb.mxu2 %v10976_v52  ;;  %v1688_v52 = vunpack.c.l.b16 %v48_v48 }
  0x37   :  { %6669 = vmatpush.bf16.msrb.mxu3 %v10984_v53  ;;  %v1690_v53 = vunpack.c.l.b16 %v49_v49 }
  0x38   :  { %6631 = vmatpush.bf16.msrb.mxu0 %v10959_v54  ;;  %v11003_v54 = vld [vmem:[#allocation2 + $0x280] sm:$0xff] }
  0x39   :  { %6644 = vmatpush.bf16.msrb.mxu1 %v10967_v55  ;;  %v11011_v55 = vld [vmem:[#allocation2 + $0x2c0] sm:$0xff] }
  0x3a   :  { %6657 = vmatpush.bf16.msrb.mxu2 %v10975_v56  ;;  %v1689_v56 = vunpack.c.h.b16 %v48_v48  ;;  %v11056_v48 = vld [vmem:[#allocation2 + $0x428] sm:$0xff] }
  0x3b   :  { %6670 = vmatpush.bf16.msrb.mxu3 %v10983_v57  ;;  %v1691_v57 = vunpack.c.h.b16 %v49_v49  ;;  %v11064_v49 = vld [vmem:[#allocation2 + $0x468] sm:$0xff] }
  0x3c   :  { %6632 = vmatpush.bf16.msrb.mxu0 %v10958_v58  ;;  %v11026_v58 = vld [vmem:[#allocation2 + $0x338] sm:$0xff] }
  0x3d   :  { %6645 = vmatpush.bf16.msrb.mxu1 %v10966_v59  ;;  %v11034_v59 = vld [vmem:[#allocation2 + $0x378] sm:$0xff] }
  0x3e   :  { %6658 = vmatpush.bf16.msrb.mxu2 %v10974_v60  ;;  %v11042_v60 = vld [vmem:[#allocation2 + $0x3b8] sm:$0xff] }
  0x3f   :  { %6671 = vmatpush.bf16.msrb.mxu3 %v10982_v61  ;;  %v11050_v61 = vld [vmem:[#allocation2 + $0x3f8] sm:$0xff] }
  0x40   :  { %6633 = vmatpush.bf16.msrb.mxu0 %v10957_v62  ;;  %v1784_v62 = vpack.c.b16 %v1688_v52, %v1688_v52  ;;  %v11055_v52 = vld [vmem:[#allocation2 + $0x420] sm:$0xff] }
  0x41   :  { %6646 = vmatpush.bf16.msrb.mxu1 %v10965_v63  ;;  %v1786_v63 = vpack.c.b16 %v1690_v53, %v1690_v53  ;;  %v11063_v53 = vld [vmem:[#allocation2 + $0x460] sm:$0xff] }
  0x42   :  { %6659 = vmatpush.bf16.msrb.mxu2 %v10973_v0  ;;  %v1785_v0 = vpack.c.b16 %v1689_v56, %v1689_v56  ;;  %v11054_v56 = vld [vmem:[#allocation2 + $0x418] sm:$0xff] }
  0x43   :  { %6672 = vmatpush.bf16.msrb.mxu3 %v10981_v1  ;;  %v1787_v1 = vpack.c.b16 %v1691_v57, %v1691_v57  ;;  %v11062_v57 = vld [vmem:[#allocation2 + $0x458] sm:$0xff] }
  0x44   :  { %6634 = vmatpush.bf16.msrb.mxu0 %v10956_v2  ;;  %v11025_v2 = vld [vmem:[#allocation2 + $0x330] sm:$0xff] }
  0x45   :  { %6647 = vmatpush.bf16.msrb.mxu1 %v10964_v3  ;;  %v11033_v3 = vld [vmem:[#allocation2 + $0x370] sm:$0xff] }
  0x46   :  { %6660 = vmatpush.bf16.msrb.mxu2 %v10972_v4  ;;  %v11041_v4 = vld [vmem:[#allocation2 + $0x3b0] sm:$0xff] }
  0x47   :  { %6673 = vmatpush.bf16.msrb.mxu3 %v10980_v5  ;;  %v11049_v5 = vld [vmem:[#allocation2 + $0x3f0] sm:$0xff] }
  0x48   :  { %6635 = vmatpush.bf16.msrb.mxu0 %v10955_v8  ;;  %v11040_v8 = vld [vmem:[#allocation2 + $0x3a8] sm:$0xff] }
  0x49   :  { %6648 = vmatpush.bf16.msrb.mxu1 %v10963_v9  ;;  %v11048_v9 = vld [vmem:[#allocation2 + $0x3e8] sm:$0xff] }
  0x4a   :  { %6661 = vmatpush.bf16.msrb.mxu2 %v10971_v12  ;;  %v11039_v12 = vld [vmem:[#allocation2 + $0x3a0] sm:$0xff] }
  0x4b   :  { %6674 = vmatpush.bf16.msrb.mxu3 %v10979_v13  ;;  %6636 = vmatmul.bf16.vlgmr.msrb.gmra.mxu0 %v1780_v21  ;;  %v11047_v13 = vld [vmem:[#allocation2 + $0x3e0] sm:$0xff]  ;;  %v11045_v21 = vld [vmem:[#allocation2 + $0x3d0] sm:$0xff] }
  0x4c   :  { %6680 = vmatpush.bf16.msra.mxu0 %v10994_v16  ;;  %6649 = vmatmul.bf16.vlgmr.msrb.gmra.mxu1 %v1781_v23  ;;  %v11038_v16 = vld [vmem:[#allocation2 + $0x398] sm:$0xff]  ;;  %v11028_v23 = vld [vmem:[#allocation2 + $0x348] sm:$0xff] }
  0x4d   :  { %6693 = vmatpush.bf16.msra.mxu1 %v11002_v17  ;;  %6662 = vmatmul.bf16.vlgmr.msrb.gmra.mxu2 %v1782_v20  ;;  %v11046_v17 = vld [vmem:[#allocation2 + $0x3d8] sm:$0xff]  ;;  %v11037_v20 = vld [vmem:[#allocation2 + $0x390] sm:$0xff] }
  0x4e   :  { %6706 = vmatpush.bf16.msra.mxu2 %v11010_v18  ;;  %6675 = vmatmul.bf16.vlgmr.msrb.gmra.mxu3 %v1783_v22  ;;  %v11021_v18 = vld [vmem:[#allocation2 + $0x310] sm:$0xff]  ;;  %v11020_v22 = vld [vmem:[#allocation2 + $0x308] sm:$0xff] }
  0x4f   :  { %6719 = vmatpush.bf16.msra.mxu3 %v11018_v19  ;;  %v11029_v19 = vld [vmem:[#allocation2 + $0x350] sm:$0xff] }
  0x50   :  { %6681 = vmatpush.bf16.msra.mxu0 %v10993_v24  ;;  %v11036_v24 = vld [vmem:[#allocation2 + $0x388] sm:$0xff] }
  0x51   :  { %6694 = vmatpush.bf16.msra.mxu1 %v11001_v25  ;;  %v11044_v25 = vld [vmem:[#allocation2 + $0x3c8] sm:$0xff] }
  0x52   :  { %6707 = vmatpush.bf16.msra.mxu2 %v11009_v26  ;;  %v50_v26 = vld [vmem:[%s11983_s0 + $0x30] sm:$0xff] }
  0x53   :  { %6720 = vmatpush.bf16.msra.mxu3 %v11017_v27  ;;  %v51_v27 = vld [vmem:[%s11983_s0 + $0x38] sm:$0xff] }
  0x54   :  { %6682 = vmatpush.bf16.msra.mxu0 %v10992_v28  ;;  %v11019_v28 = vld [vmem:[#allocation2 + $0x300] sm:$0xff] }
  0x55   :  { %6695 = vmatpush.bf16.msra.mxu1 %v11000_v29  ;;  %v11027_v29 = vld [vmem:[#allocation2 + $0x340] sm:$0xff] }
  0x56   :  { %6708 = vmatpush.bf16.msra.mxu2 %v11008_v30  ;;  %v1692_v30 = vunpack.c.l.b16 %v50_v26 }
  0x57   :  { %6721 = vmatpush.bf16.msra.mxu3 %v11016_v31  ;;  %v1694_v31 = vunpack.c.l.b16 %v51_v27 }
  0x58   :  { %6683 = vmatpush.bf16.msra.mxu0 %v10991_v32  ;;  %v11035_v32 = vld [vmem:[#allocation2 + $0x380] sm:$0xff] }
  0x59   :  { %6696 = vmatpush.bf16.msra.mxu1 %v10999_v33  ;;  %v11043_v33 = vld [vmem:[#allocation2 + $0x3c0] sm:$0xff] }
  0x5a   :  { %6709 = vmatpush.bf16.msra.mxu2 %v11007_v34  ;;  %v1693_v34 = vunpack.c.h.b16 %v50_v26  ;;  %v11088_v26 = vld [vmem:[#allocation2 + $0x528] sm:$0xff] }
  0x5b   :  { %6722 = vmatpush.bf16.msra.mxu3 %v11015_v35  ;;  %v1695_v35 = vunpack.c.h.b16 %v51_v27  ;;  %v11096_v27 = vld [vmem:[#allocation2 + $0x568] sm:$0xff] }
  0x5c   :  { %6684 = vmatpush.bf16.msra.mxu0 %v10990_v36  ;;  %v11058_v36 = vld [vmem:[#allocation2 + $0x438] sm:$0xff] }
  0x5d   :  { %6697 = vmatpush.bf16.msra.mxu1 %v10998_v37  ;;  %v11066_v37 = vld [vmem:[#allocation2 + $0x478] sm:$0xff] }
  0x5e   :  { %6710 = vmatpush.bf16.msra.mxu2 %v11006_v38  ;;  %v11074_v38 = vld [vmem:[#allocation2 + $0x4b8] sm:$0xff] }
  0x5f   :  { %6723 = vmatpush.bf16.msra.mxu3 %v11014_v39  ;;  %v11082_v39 = vld [vmem:[#allocation2 + $0x4f8] sm:$0xff] }
  0x60   :  { %6685 = vmatpush.bf16.msra.mxu0 %v10989_v40  ;;  %v1788_v40 = vpack.c.b16 %v1692_v30, %v1692_v30  ;;  %v11112_v30 = vld [vmem:[#allocation2 + $0x5e8] sm:$0xff] }
  0x61   :  { %6698 = vmatpush.bf16.msra.mxu1 %v10997_v41  ;;  %v1790_v41 = vpack.c.b16 %v1694_v31, %v1694_v31 }
  0x62   :  { %6711 = vmatpush.bf16.msra.mxu2 %v11005_v42  ;;  %v1789_v42 = vpack.c.b16 %v1693_v34, %v1693_v34 }
  0x63   :  { %6724 = vmatpush.bf16.msra.mxu3 %v11013_v43  ;;  %v1791_v43 = vpack.c.b16 %v1695_v35, %v1695_v35 }
  0x64   :  { %6686 = vmatpush.bf16.msra.mxu0 %v10988_v44  ;;  %v11057_v44 = vld [vmem:[#allocation2 + $0x430] sm:$0xff] }
  0x65   :  { %6699 = vmatpush.bf16.msra.mxu1 %v10996_v45  ;;  %v11065_v45 = vld [vmem:[#allocation2 + $0x470] sm:$0xff] }
  0x66   :  { %6712 = vmatpush.bf16.msra.mxu2 %v11004_v46  ;;  %v11073_v46 = vld [vmem:[#allocation2 + $0x4b0] sm:$0xff] }
  0x67   :  { %6725 = vmatpush.bf16.msra.mxu3 %v11012_v47  ;;  %v11081_v47 = vld [vmem:[#allocation2 + $0x4f0] sm:$0xff] }
  0x68   :  { %6687 = vmatpush.bf16.msra.mxu0 %v10987_v50  ;;  %v11072_v50 = vld [vmem:[#allocation2 + $0x4a8] sm:$0xff] }
  0x69   :  { %6700 = vmatpush.bf16.msra.mxu1 %v10995_v51  ;;  %v11080_v51 = vld [vmem:[#allocation2 + $0x4e8] sm:$0xff] }
  0x6a   :  { %6713 = vmatpush.bf16.msra.mxu2 %v11003_v54  ;;  %v11071_v54 = vld [vmem:[#allocation2 + $0x4a0] sm:$0xff] }
  0x6b   :  { %6726 = vmatpush.bf16.msra.mxu3 %v11011_v55  ;;  %6688 = vmatmul.bf16.vlgmr.msra.gmra.mxu0 %v1784_v62  ;;  %v11079_v55 = vld [vmem:[#allocation2 + $0x4e0] sm:$0xff]  ;;  %v11069_v62 = vld [vmem:[#allocation2 + $0x490] sm:$0xff] }
  0x6c   :  { %6732 = vmatpush.bf16.msrb.mxu0 %v11026_v58  ;;  %6701 = vmatmul.bf16.vlgmr.msra.gmra.mxu1 %v1785_v0  ;;  %v11070_v58 = vld [vmem:[#allocation2 + $0x498] sm:$0xff]  ;;  %v11052_v0 = vld [vmem:[#allocation2 + $0x408] sm:$0xff] }
  0x6d   :  { %6745 = vmatpush.bf16.msrb.mxu1 %v11034_v59  ;;  %6714 = vmatmul.bf16.vlgmr.msra.gmra.mxu2 %v1786_v63  ;;  %v11078_v59 = vld [vmem:[#allocation2 + $0x4d8] sm:$0xff]  ;;  %v11077_v63 = vld [vmem:[#allocation2 + $0x4d0] sm:$0xff] }
  0x6e   :  { %6758 = vmatpush.bf16.msrb.mxu2 %v11042_v60  ;;  %6727 = vmatmul.bf16.vlgmr.msra.gmra.mxu3 %v1787_v1  ;;  %v11053_v60 = vld [vmem:[#allocation2 + $0x410] sm:$0xff]  ;;  %v11060_v1 = vld [vmem:[#allocation2 + $0x448] sm:$0xff] }
  0x6f   :  { %6771 = vmatpush.bf16.msrb.mxu3 %v11050_v61  ;;  %v11061_v61 = vld [vmem:[#allocation2 + $0x450] sm:$0xff] }
  0x70   :  { %6733 = vmatpush.bf16.msrb.mxu0 %v11025_v2  ;;  %v11068_v2 = vld [vmem:[#allocation2 + $0x488] sm:$0xff] }
  0x71   :  { %6746 = vmatpush.bf16.msrb.mxu1 %v11033_v3  ;;  %v11076_v3 = vld [vmem:[#allocation2 + $0x4c8] sm:$0xff] }
  0x72   :  { %6759 = vmatpush.bf16.msrb.mxu2 %v11041_v4  ;;  %v52_v4 = vld [vmem:[%s11983_s0 + $0x40] sm:$0xff] }
  0x73   :  { %6772 = vmatpush.bf16.msrb.mxu3 %v11049_v5  ;;  %v53_v5 = vld [vmem:[%s11983_s0 + $0x48] sm:$0xff] }
  0x74   :  { %6734 = vmatpush.bf16.msrb.mxu0 %v11024_v6  ;;  %v11051_v6 = vld [vmem:[#allocation2 + $0x400] sm:$0xff] }
  0x75   :  { %6747 = vmatpush.bf16.msrb.mxu1 %v11032_v7  ;;  %v11059_v7 = vld [vmem:[#allocation2 + $0x440] sm:$0xff] }
  0x76   :  { %6760 = vmatpush.bf16.msrb.mxu2 %v11040_v8  ;;  %v1696_v8 = vunpack.c.l.b16 %v52_v4 }
  0x77   :  { %6773 = vmatpush.bf16.msrb.mxu3 %v11048_v9  ;;  %v1698_v9 = vunpack.c.l.b16 %v53_v5 }
  0x78   :  { %6735 = vmatpush.bf16.msrb.mxu0 %v11023_v10  ;;  %v11067_v10 = vld [vmem:[#allocation2 + $0x480] sm:$0xff] }
  0x79   :  { %6748 = vmatpush.bf16.msrb.mxu1 %v11031_v11  ;;  %v11075_v11 = vld [vmem:[#allocation2 + $0x4c0] sm:$0xff] }
  0x7a   :  { %6761 = vmatpush.bf16.msrb.mxu2 %v11039_v12  ;;  %v1697_v12 = vunpack.c.h.b16 %v52_v4 }
  0x7b   :  { %6774 = vmatpush.bf16.msrb.mxu3 %v11047_v13  ;;  %v1699_v13 = vunpack.c.h.b16 %v53_v5  ;;  %v11122_v5 = vld [vmem:[#allocation2 + $0x638] sm:$0xff] }
  0x7c   :  { %6736 = vmatpush.bf16.msrb.mxu0 %v11022_v14  ;;  %v11090_v14 = vld [vmem:[#allocation2 + $0x538] sm:$0xff] }
  0x7d   :  { %6749 = vmatpush.bf16.msrb.mxu1 %v11030_v15  ;;  %v11098_v15 = vld [vmem:[#allocation2 + $0x578] sm:$0xff] }
  0x7e   :  { %6762 = vmatpush.bf16.msrb.mxu2 %v11038_v16  ;;  %v11106_v16 = vld [vmem:[#allocation2 + $0x5b8] sm:$0xff] }
  0x7f   :  { %6775 = vmatpush.bf16.msrb.mxu3 %v11046_v17  ;;  %v11114_v17 = vld [vmem:[#allocation2 + $0x5f8] sm:$0xff] }
  0x80   :  { %6737 = vmatpush.bf16.msrb.mxu0 %v11021_v18  ;;  %v1792_v18 = vpack.c.b16 %v1696_v8, %v1696_v8  ;;  %v11146_v8 = vld [vmem:[#allocation2 + $0x6f8] sm:$0xff] }
  0x81   :  { %6750 = vmatpush.bf16.msrb.mxu1 %v11029_v19  ;;  %v1794_v19 = vpack.c.b16 %v1698_v9, %v1698_v9 }
  0x82   :  { %6763 = vmatpush.bf16.msrb.mxu2 %v11037_v20  ;;  %v1793_v20 = vpack.c.b16 %v1697_v12, %v1697_v12 }
  0x83   :  { %6776 = vmatpush.bf16.msrb.mxu3 %v11045_v21  ;;  %v1795_v21 = vpack.c.b16 %v1699_v13, %v1699_v13  ;;  %v11121_v13 = vld [vmem:[#allocation2 + $0x630] sm:$0xff] }
  0x84   :  { %6738 = vmatpush.bf16.msrb.mxu0 %v11020_v22  ;;  %v11089_v22 = vld [vmem:[#allocation2 + $0x530] sm:$0xff] }
  0x85   :  { %6751 = vmatpush.bf16.msrb.mxu1 %v11028_v23  ;;  %v11097_v23 = vld [vmem:[#allocation2 + $0x570] sm:$0xff] }
  0x86   :  { %6764 = vmatpush.bf16.msrb.mxu2 %v11036_v24  ;;  %v11105_v24 = vld [vmem:[#allocation2 + $0x5b0] sm:$0xff] }
  0x87   :  { %6777 = vmatpush.bf16.msrb.mxu3 %v11044_v25  ;;  %v11113_v25 = vld [vmem:[#allocation2 + $0x5f0] sm:$0xff] }
  0x88   :  { %6739 = vmatpush.bf16.msrb.mxu0 %v11019_v28  ;;  %v11695_v28 = vld [vmem:[#allocation4] ss:$0 sm:$0xff] }
  0x89   :  { %6752 = vmatpush.bf16.msrb.mxu1 %v11027_v29  ;;  %v11104_v29 = vld [vmem:[#allocation2 + $0x5a8] sm:$0xff] }
  0x8a   :  { %6765 = vmatpush.bf16.msrb.mxu2 %v11035_v32  ;;  %v11087_v32 = vld [vmem:[#allocation2 + $0x520] sm:$0xff] }
  0x8b   :  { %6778 = vmatpush.bf16.msrb.mxu3 %v11043_v33  ;;  %6740 = vmatmul.bf16.vlgmr.msrb.gmra.mxu0 %v1788_v40  ;;  %v11095_v33 = vld [vmem:[#allocation2 + $0x560] sm:$0xff]  ;;  %v11094_v40 = vld [vmem:[#allocation2 + $0x558] sm:$0xff] }
  0x8c   :  { %6784 = vmatpush.bf16.msra.mxu0 %v11058_v36  ;;  %6753 = vmatmul.bf16.vlgmr.msrb.gmra.mxu1 %v1789_v42  ;;  %v11103_v36 = vld [vmem:[#allocation2 + $0x5a0] sm:$0xff]  ;;  %v11110_v42 = vld [vmem:[#allocation2 + $0x5d8] sm:$0xff] }
  0x8d   :  { %6797 = vmatpush.bf16.msra.mxu1 %v11066_v37  ;;  %6766 = vmatmul.bf16.vlgmr.msrb.gmra.mxu2 %v1790_v41  ;;  %v11111_v37 = vld [vmem:[#allocation2 + $0x5e0] sm:$0xff]  ;;  %v11102_v41 = vld [vmem:[#allocation2 + $0x598] sm:$0xff] }
  0x8e   :  { %6810 = vmatpush.bf16.msra.mxu2 %v11074_v38  ;;  %6779 = vmatmul.bf16.vlgmr.msrb.gmra.mxu3 %v1791_v43 }
  0x8f   :  { %6823 = vmatpush.bf16.msra.mxu3 %v11082_v39  ;;  %v11086_v39 = vld [vmem:[#allocation2 + $0x518] sm:$0xff] }
  0x90   :  { %6785 = vmatpush.bf16.msra.mxu0 %v11057_v44 }
  0x91   :  { %6798 = vmatpush.bf16.msra.mxu1 %v11065_v45 }
  0x92   :  { %6811 = vmatpush.bf16.msra.mxu2 %v11073_v46 }
  0x93   :  { %6824 = vmatpush.bf16.msra.mxu3 %v11081_v47  ;;  %v11085_v47 = vld [vmem:[#allocation2 + $0x510] sm:$0xff] }
  0x94   :  { %6786 = vmatpush.bf16.msra.mxu0 %v11056_v48  ;;  %v11093_v48 = vld [vmem:[#allocation2 + $0x550] sm:$0xff] }
  0x95   :  { %6799 = vmatpush.bf16.msra.mxu1 %v11064_v49 }
  0x96   :  { %6812 = vmatpush.bf16.msra.mxu2 %v11072_v50 }
  0x97   :  { %6825 = vmatpush.bf16.msra.mxu3 %v11080_v51  ;;  %v11101_v51 = vld [vmem:[#allocation2 + $0x590] sm:$0xff] }
  0x98   :  { %6787 = vmatpush.bf16.msra.mxu0 %v11055_v52  ;;  %v11109_v52 = vld [vmem:[#allocation2 + $0x5d0] sm:$0xff] }
  0x99   :  { %6800 = vmatpush.bf16.msra.mxu1 %v11063_v53  ;;  %v11084_v53 = vld [vmem:[#allocation2 + $0x508] sm:$0xff] }
  0x9a   :  { %6813 = vmatpush.bf16.msra.mxu2 %v11071_v54  ;;  %v11092_v54 = vld [vmem:[#allocation2 + $0x548] sm:$0xff] }
  0x9b   :  { %6826 = vmatpush.bf16.msra.mxu3 %v11079_v55  ;;  %v11100_v55 = vld [vmem:[#allocation2 + $0x588] sm:$0xff] }
  0x9c   :  { %6788 = vmatpush.bf16.msra.mxu0 %v11054_v56  ;;  %v11108_v56 = vld [vmem:[#allocation2 + $0x5c8] sm:$0xff] }
  0x9d   :  { %6801 = vmatpush.bf16.msra.mxu1 %v11062_v57  ;;  %v54_v57 = vld [vmem:[%s11983_s0 + $0x50] sm:$0xff] }
  0x9e   :  { %6814 = vmatpush.bf16.msra.mxu2 %v11070_v58  ;;  %v55_v58 = vld [vmem:[%s11983_s0 + $0x58] sm:$0xff] }
  0x9f   :  { %6827 = vmatpush.bf16.msra.mxu3 %v11078_v59  ;;  %v1703_v4 = vunpack.c.h.b16 %v55_v58 }
  0xa0   :  { %6789 = vmatpush.bf16.msra.mxu0 %v11053_v60 }
  0xa1   :  { %6802 = vmatpush.bf16.msra.mxu1 %v11061_v61  ;;  %v11083_v61 = vld [vmem:[#allocation2 + $0x500] sm:$0xff]  ;;  %v1799_v12 = vpack.c.b16 %v1703_v4, %v1703_v4  ;;  %v11161_v4 = vld [vmem:[#allocation2 + $0x770] sm:$0xff] }
  0xa2   :  { %6815 = vmatpush.bf16.msra.mxu2 %v11069_v62  ;;  %v11091_v62 = vld [vmem:[#allocation2 + $0x540] sm:$0xff] }
  0xa3   :  { %6828 = vmatpush.bf16.msra.mxu3 %v11077_v63  ;;  %v1700_v63 = vunpack.c.l.b16 %v54_v57 }
  0xa4   :  { %6790 = vmatpush.bf16.msra.mxu0 %v11052_v0  ;;  %v1702_v0 = vunpack.c.l.b16 %v55_v58 }
  0xa5   :  { %6803 = vmatpush.bf16.msra.mxu1 %v11060_v1  ;;  %v11099_v1 = vld [vmem:[#allocation2 + $0x580] sm:$0xff]  ;;  %v1796_v9 = vpack.c.b16 %v1700_v63, %v1700_v63 }
  0xa6   :  { %6816 = vmatpush.bf16.msra.mxu2 %v11068_v2  ;;  %v11107_v2 = vld [vmem:[#allocation2 + $0x5c0] sm:$0xff] }
  0xa7   :  { %6829 = vmatpush.bf16.msra.mxu3 %v11076_v3  ;;  %v1701_v3 = vunpack.c.h.b16 %v54_v57 }
  0xa8   :  { %6791 = vmatpush.bf16.msra.mxu0 %v11051_v6  ;;  %v6585_v31 = vpop.f32.mrf.mxu0  ;;  %v11130_v6 = vld [vmem:[#allocation2 + $0x678] sm:$0xff] }
  0xa9   :  { %6804 = vmatpush.bf16.msra.mxu1 %v11059_v7  ;;  %v6586_v34 = vadd.f32 %v11695_v28, %v6585_v31  ;;  %v6598_v35 = vpop.f32.mrf.mxu1  ;;  %v11138_v7 = vld [vmem:[#allocation2 + $0x6b8] sm:$0xff] }
  0xaa   :  { %6817 = vmatpush.bf16.msra.mxu2 %v11067_v10  ;;  %v1798_v10 = vpack.c.b16 %v1702_v0, %v1702_v0  ;;  %v11134_v31 = vld [vmem:[#allocation2 + $0x698] sm:$0xff] }
  0xab   :  { %6830 = vmatpush.bf16.msra.mxu3 %v11075_v11  ;;  %6792 = vmatmul.bf16.vlgmr.msra.gmra.mxu0 %v1792_v18  ;;  %v6599_v38 = vadd.f32 %v6598_v35, %v6586_v34  ;;  %v1797_v11 = vpack.c.b16 %v1701_v3, %v1701_v3  ;;  %v11128_v18 = vld [vmem:[#allocation2 + $0x668] sm:$0xff]  ;;  %v11153_v3 = vld [vmem:[#allocation2 + $0x730] sm:$0xff] }
  0xac   :  { %6836 = vmatpush.bf16.msrb.mxu0 %v11090_v14  ;;  %6805 = vmatmul.bf16.vlgmr.msra.gmra.mxu1 %v1793_v20  ;;  %v11129_v14 = vld [vmem:[#allocation2 + $0x670] sm:$0xff]  ;;  %v11144_v20 = vld [vmem:[#allocation2 + $0x6e8] sm:$0xff] }
  0xad   :  { %6849 = vmatpush.bf16.msrb.mxu1 %v11098_v15  ;;  %6818 = vmatmul.bf16.vlgmr.msra.gmra.mxu2 %v1794_v19  ;;  %v11137_v15 = vld [vmem:[#allocation2 + $0x6b0] sm:$0xff]  ;;  %v11136_v19 = vld [vmem:[#allocation2 + $0x6a8] sm:$0xff] }
  0xae   :  { %6862 = vmatpush.bf16.msrb.mxu2 %v11106_v16  ;;  %6831 = vmatmul.bf16.vlgmr.msra.gmra.mxu3 %v1795_v21  ;;  %v11145_v16 = vld [vmem:[#allocation2 + $0x6f0] sm:$0xff] }
  0xaf   :  { %6875 = vmatpush.bf16.msrb.mxu3 %v11114_v17  ;;  %v11120_v17 = vld [vmem:[#allocation2 + $0x628] sm:$0xff] }
  0xb0   :  { %6837 = vmatpush.bf16.msrb.mxu0 %v11089_v22  ;;  %v6611_v43 = vpop.f32.mrf.mxu2  ;;  %v6587_v46 = vpop.f32.mrf.mxu0  ;;  %v11119_v22 = vld [vmem:[#allocation2 + $0x620] sm:$0xff] }
  0xb1   :  { %6850 = vmatpush.bf16.msrb.mxu1 %v11097_v23  ;;  %v6612_v44 = vadd.f32 %v6611_v43, %v6599_v38  ;;  %v6624_v45 = vpop.f32.mrf.mxu3  ;;  %v6600_v50 = vpop.f32.mrf.mxu1  ;;  %v11127_v23 = vld [vmem:[#allocation2 + $0x660] sm:$0xff]  ;;  %v11125_v38 = vld [vmem:[#allocation2 + $0x650] sm:$0xff]  ;;  %v11116_v43 = vld [vmem:[#allocation2 + $0x608] sm:$0xff] }
  0xb2   :  { %6863 = vmatpush.bf16.msrb.mxu2 %v11105_v24  ;;  %v11140_v46 = vld [vmem:[#allocation2 + $0x6c8] sm:$0xff] }
  0xb3   :  { %6876 = vmatpush.bf16.msrb.mxu3 %v11113_v25  ;;  %v11812_v49 = vadd.f32 %v6624_v45, %v6612_v44  ;;  %v11124_v44 = vld [vmem:[#allocation2 + $0x648] sm:$0xff] }
  0xb4   :  { %6838 = vmatpush.bf16.msrb.mxu0 %v11088_v26  ;;  %v11135_v26 = vld [vmem:[#allocation2 + $0x6a0] sm:$0xff]  ;;  %v11132_v45 = vld [vmem:[#allocation2 + $0x688] sm:$0xff] }
  0xb5   :  { %6851 = vmatpush.bf16.msrb.mxu1 %v11096_v27  ;;  %v11143_v27 = vld [vmem:[#allocation2 + $0x6e0] sm:$0xff] }
  0xb6   :  { %6864 = vmatpush.bf16.msrb.mxu2 %v11104_v29  ;;  %v11118_v29 = vld [vmem:[#allocation2 + $0x618] sm:$0xff] }
  0xb7   :  { %6877 = vmatpush.bf16.msrb.mxu3 %v11112_v30  ;;  %v11126_v30 = vld [vmem:[#allocation2 + $0x658] sm:$0xff] }
  0xb8   :  { %6839 = vmatpush.bf16.msrb.mxu0 %v11087_v32  ;;  %v6613_v59 = vpop.f32.mrf.mxu2  ;;  %v11142_v32 = vld [vmem:[#allocation2 + $0x6d8] sm:$0xff] }
  0xb9   :  { %6852 = vmatpush.bf16.msrb.mxu1 %v11095_v33  ;;  %v6626_v60 = vpop.f32.mrf.mxu3  ;;  %v11154_v59 = vld [vmem:[#allocation2 + $0x738] sm:$0xff] }
  0xba   :  { %6865 = vmatpush.bf16.msrb.mxu2 %v11103_v36  ;;  %v11162_v60 = vld [vmem:[#allocation2 + $0x778] sm:$0xff] }
  0xbb   :  { %6878 = vmatpush.bf16.msrb.mxu3 %v11111_v37  ;;  %v11117_v37 = vld [vmem:[#allocation2 + $0x610] sm:$0xff] }
  0xbc   :  { %6840 = vmatpush.bf16.msrb.mxu0 %v11086_v39 }
  0xbd   :  { %6853 = vmatpush.bf16.msrb.mxu1 %v11094_v40 }
  0xbe   :  { %6866 = vmatpush.bf16.msrb.mxu2 %v11102_v41  ;;  %v11133_v41 = vld [vmem:[#allocation2 + $0x690] sm:$0xff] }
  0xbf   :  { %6879 = vmatpush.bf16.msrb.mxu3 %v11110_v42  ;;  %v11141_v42 = vld [vmem:[#allocation2 + $0x6d0] sm:$0xff] }
  0xc0   :  { %6841 = vmatpush.bf16.msrb.mxu0 %v11085_v47  ;;  %v56_v47 = vld [vmem:[%s11983_s0 + $0x60] sm:$0xff] }
  0xc1   :  { %6854 = vmatpush.bf16.msrb.mxu1 %v11093_v48  ;;  %v57_v48 = vld [vmem:[%s11983_s0 + $0x68] sm:$0xff]  ;;  %v1705_v57 = vunpack.c.h.b16 %v56_v47 }
  0xc2   :  { %6867 = vmatpush.bf16.msrb.mxu2 %v11101_v51  ;;  %v11115_v51 = vld [vmem:[#allocation2 + $0x600] sm:$0xff]  ;;  %v1707_v58 = vunpack.c.h.b16 %v57_v48 }
  0xc3   :  { %6880 = vmatpush.bf16.msrb.mxu3 %v11109_v52  ;;  %v11123_v52 = vld [vmem:[#allocation2 + $0x640] sm:$0xff] }
  0xc4   :  { %6842 = vmatpush.bf16.msrb.mxu0 %v11084_v53  ;;  %v1704_v53 = vunpack.c.l.b16 %v56_v47 }
  0xc5   :  { %6855 = vmatpush.bf16.msrb.mxu1 %v11092_v54  ;;  %v1706_v54 = vunpack.c.l.b16 %v57_v48 }
  0xc6   :  { %6868 = vmatpush.bf16.msrb.mxu2 %v11100_v55  ;;  %v11131_v55 = vld [vmem:[#allocation2 + $0x680] sm:$0xff]  ;;  %v1800_v63 = vpack.c.b16 %v1704_v53, %v1704_v53 }
  0xc7   :  { %6881 = vmatpush.bf16.msrb.mxu3 %v11108_v56  ;;  %v11139_v56 = vld [vmem:[#allocation2 + $0x6c0] sm:$0xff]  ;;  %v1802_v0 = vpack.c.b16 %v1706_v54, %v1706_v54 }
  0xc8   :  { %6843 = vmatpush.bf16.msrb.mxu0 %v11083_v61  ;;  %v6637_v21 = vpop.f32.mrf.mxu0  ;;  %v11170_v61 = vld [vmem:[#allocation2 + $0x7b8] sm:$0xff] }
  0xc9   :  { %6856 = vmatpush.bf16.msrb.mxu1 %v11091_v62  ;;  %v6638_v24 = vadd.f32 %v6637_v21, %v11812_v49  ;;  %v6650_v25 = vpop.f32.mrf.mxu1  ;;  %v11178_v62 = vld [vmem:[#allocation2 + $0x7f8] sm:$0xff] }
  0xca   :  { %6869 = vmatpush.bf16.msrb.mxu2 %v11099_v1  ;;  %v1801_v1 = vpack.c.b16 %v1705_v57, %v1705_v57  ;;  %v11166_v21 = vld [vmem:[#allocation2 + $0x798] sm:$0xff]  ;;  %v11185_v57 = vld [vmem:[#allocation2 + $0x830] sm:$0xff] }
  0xcb   :  { %6882 = vmatpush.bf16.msrb.mxu3 %v11107_v2  ;;  %6844 = vmatmul.bf16.vlgmr.msrb.gmra.mxu0 %v1796_v9  ;;  %v6651_v28 = vadd.f32 %v6650_v25, %v6638_v24  ;;  %v1803_v2 = vpack.c.b16 %v1707_v58, %v1707_v58  ;;  %v11168_v9 = vld [vmem:[#allocation2 + $0x7a8] sm:$0xff]  ;;  %v11193_v58 = vld [vmem:[#allocation2 + $0x870] sm:$0xff] }
  0xcc   :  { %6888 = vmatpush.bf16.msra.mxu0 %v11122_v5  ;;  %6857 = vmatmul.bf16.vlgmr.msrb.gmra.mxu1 %v1797_v11  ;;  %v11169_v5 = vld [vmem:[#allocation2 + $0x7b0] sm:$0xff] }
  0xcd   :  { %6901 = vmatpush.bf16.msra.mxu1 %v11130_v6  ;;  %6870 = vmatmul.bf16.vlgmr.msrb.gmra.mxu2 %v1798_v10  ;;  %v11177_v6 = vld [vmem:[#allocation2 + $0x7f0] sm:$0xff]  ;;  %v11176_v10 = vld [vmem:[#allocation2 + $0x7e8] sm:$0xff] }
  0xce   :  { %6914 = vmatpush.bf16.msra.mxu2 %v11138_v7  ;;  %6883 = vmatmul.bf16.vlgmr.msrb.gmra.mxu3 %v1799_v12  ;;  %v11152_v7 = vld [vmem:[#allocation2 + $0x728] sm:$0xff] }
  0xcf   :  { %6927 = vmatpush.bf16.msra.mxu3 %v11146_v8  ;;  %v11160_v8 = vld [vmem:[#allocation2 + $0x768] sm:$0xff] }
  0xd0   :  { %6889 = vmatpush.bf16.msra.mxu0 %v11121_v13  ;;  %v6663_v33 = vpop.f32.mrf.mxu2  ;;  %v6639_v36 = vpop.f32.mrf.mxu0  ;;  %v11151_v13 = vld [vmem:[#allocation2 + $0x720] sm:$0xff] }
  0xd1   :  { %6902 = vmatpush.bf16.msra.mxu1 %v11129_v14  ;;  %v6664_v34 = vadd.f32 %v6663_v33, %v6651_v28  ;;  %v6676_v35 = vpop.f32.mrf.mxu3  ;;  %v6652_v40 = vpop.f32.mrf.mxu1  ;;  %v11159_v14 = vld [vmem:[#allocation2 + $0x760] sm:$0xff]  ;;  %v11149_v28 = vld [vmem:[#allocation2 + $0x710] sm:$0xff]  ;;  %v11148_v33 = vld [vmem:[#allocation2 + $0x708] sm:$0xff] }
  0xd2   :  { %6915 = vmatpush.bf16.msra.mxu2 %v11137_v15  ;;  %v11172_v36 = vld [vmem:[#allocation2 + $0x7c8] sm:$0xff] }
  0xd3   :  { %6928 = vmatpush.bf16.msra.mxu3 %v11145_v16  ;;  %v11821_v39 = vadd.f32 %v6676_v35, %v6664_v34  ;;  %v11167_v16 = vld [vmem:[#allocation2 + $0x7a0] sm:$0xff]  ;;  %v11156_v34 = vld [vmem:[#allocation2 + $0x748] sm:$0xff] }
  0xd4   :  { %6890 = vmatpush.bf16.msra.mxu0 %v11120_v17  ;;  %v11175_v17 = vld [vmem:[#allocation2 + $0x7e0] sm:$0xff]  ;;  %v11164_v35 = vld [vmem:[#allocation2 + $0x788] sm:$0xff] }
  0xd5   :  { %6903 = vmatpush.bf16.msra.mxu1 %v11128_v18 }
  0xd6   :  { %6916 = vmatpush.bf16.msra.mxu2 %v11136_v19  ;;  %v11150_v19 = vld [vmem:[#allocation2 + $0x718] sm:$0xff] }
  0xd7   :  { %6929 = vmatpush.bf16.msra.mxu3 %v11144_v20  ;;  %v11158_v20 = vld [vmem:[#allocation2 + $0x758] sm:$0xff] }
  0xd8   :  { %6891 = vmatpush.bf16.msra.mxu0 %v11119_v22  ;;  %v6665_v49 = vpop.f32.mrf.mxu2  ;;  %v11174_v22 = vld [vmem:[#allocation2 + $0x7d8] sm:$0xff] }
  0xd9   :  { %6904 = vmatpush.bf16.msra.mxu1 %v11127_v23  ;;  %v6678_v50 = vpop.f32.mrf.mxu3  ;;  %v11186_v49 = vld [vmem:[#allocation2 + $0x838] sm:$0xff] }
  0xda   :  { %6917 = vmatpush.bf16.msra.mxu2 %v11135_v26  ;;  %v11194_v50 = vld [vmem:[#allocation2 + $0x878] sm:$0xff] }
  0xdb   :  { %6930 = vmatpush.bf16.msra.mxu3 %v11143_v27 }
  0xdc   :  { %6892 = vmatpush.bf16.msra.mxu0 %v11118_v29  ;;  %v11157_v29 = vld [vmem:[#allocation2 + $0x750] sm:$0xff] }
  0xdd   :  { %6905 = vmatpush.bf16.msra.mxu1 %v11126_v30 }
  0xde   :  { %6918 = vmatpush.bf16.msra.mxu2 %v11134_v31  ;;  %v11165_v31 = vld [vmem:[#allocation2 + $0x790] sm:$0xff] }
  0xdf   :  { %6931 = vmatpush.bf16.msra.mxu3 %v11142_v32  ;;  %v11173_v32 = vld [vmem:[#allocation2 + $0x7d0] sm:$0xff] }
  0xe0   :  { %6893 = vmatpush.bf16.msra.mxu0 %v11117_v37  ;;  %v58_v37 = vld [vmem:[%s11983_s0 + $0x70] sm:$0xff] }
  0xe1   :  { %6906 = vmatpush.bf16.msra.mxu1 %v11125_v38  ;;  %v59_v38 = vld [vmem:[%s11983_s0 + $0x78] sm:$0xff]  ;;  %v1709_v47 = vunpack.c.h.b16 %v58_v37 }
  0xe2   :  { %6919 = vmatpush.bf16.msra.mxu2 %v11133_v41  ;;  %v11147_v41 = vld [vmem:[#allocation2 + $0x700] sm:$0xff]  ;;  %v1711_v48 = vunpack.c.h.b16 %v59_v38 }
  0xe3   :  { %6932 = vmatpush.bf16.msra.mxu3 %v11141_v42  ;;  %v11155_v42 = vld [vmem:[#allocation2 + $0x740] sm:$0xff] }
  0xe4   :  { %6894 = vmatpush.bf16.msra.mxu0 %v11116_v43  ;;  %v1708_v43 = vunpack.c.l.b16 %v58_v37 }
  0xe5   :  { %6907 = vmatpush.bf16.msra.mxu1 %v11124_v44  ;;  %v1710_v44 = vunpack.c.l.b16 %v59_v38 }
  0xe6   :  { %6920 = vmatpush.bf16.msra.mxu2 %v11132_v45  ;;  %v11163_v45 = vld [vmem:[#allocation2 + $0x780] sm:$0xff]  ;;  %v1804_v53 = vpack.c.b16 %v1708_v43, %v1708_v43 }
  0xe7   :  { %6933 = vmatpush.bf16.msra.mxu3 %v11140_v46  ;;  %v11171_v46 = vld [vmem:[#allocation2 + $0x7c0] sm:$0xff]  ;;  %v1806_v54 = vpack.c.b16 %v1710_v44, %v1710_v44 }
  0xe8   :  { %6895 = vmatpush.bf16.msra.mxu0 %v11115_v51  ;;  %v6689_v11 = vpop.f32.mrf.mxu0  ;;  %v11202_v51 = vld [vmem:[#allocation2 + $0x8b8] sm:$0xff] }
  0xe9   :  { %6908 = vmatpush.bf16.msra.mxu1 %v11123_v52  ;;  %v6690_v12 = vadd.f32 %v6689_v11, %v11821_v39  ;;  %v6702_v15 = vpop.f32.mrf.mxu1  ;;  %v11210_v52 = vld [vmem:[#allocation2 + $0x8f8] sm:$0xff] }
  0xea   :  { %6921 = vmatpush.bf16.msra.mxu2 %v11131_v55  ;;  %v1805_v55 = vpack.c.b16 %v1709_v47, %v1709_v47  ;;  %v11198_v11 = vld [vmem:[#allocation2 + $0x898] sm:$0xff]  ;;  %v11217_v47 = vld [vmem:[#allocation2 + $0x930] sm:$0xff] }
  0xeb   :  { %6934 = vmatpush.bf16.msra.mxu3 %v11139_v56  ;;  %6896 = vmatmul.bf16.vlgmr.msra.gmra.mxu0 %v1800_v63  ;;  %v6703_v18 = vadd.f32 %v6702_v15, %v6690_v12  ;;  %v1807_v56 = vpack.c.b16 %v1711_v48, %v1711_v48  ;;  %v11200_v63 = vld [vmem:[#allocation2 + $0x8a8] sm:$0xff]  ;;  %v11206_v12 = vld [vmem:[#allocation2 + $0x8d8] sm:$0xff]  ;;  %v11225_v48 = vld [vmem:[#allocation2 + $0x970] sm:$0xff] }
  0xec   :  { %6940 = vmatpush.bf16.msrb.mxu0 %v11154_v59  ;;  %6909 = vmatmul.bf16.vlgmr.msra.gmra.mxu1 %v1801_v1  ;;  %v11201_v59 = vld [vmem:[#allocation2 + $0x8b0] sm:$0xff] }
  0xed   :  { %6953 = vmatpush.bf16.msrb.mxu1 %v11162_v60  ;;  %6922 = vmatmul.bf16.vlgmr.msra.gmra.mxu2 %v1802_v0  ;;  %v11209_v60 = vld [vmem:[#allocation2 + $0x8f0] sm:$0xff]  ;;  %v11208_v0 = vld [vmem:[#allocation2 + $0x8e8] sm:$0xff] }
  0xee   :  { %6966 = vmatpush.bf16.msrb.mxu2 %v11170_v61  ;;  %6935 = vmatmul.bf16.vlgmr.msra.gmra.mxu3 %v1803_v2  ;;  %v11184_v61 = vld [vmem:[#allocation2 + $0x828] sm:$0xff] }
  0xef   :  { %6979 = vmatpush.bf16.msrb.mxu3 %v11178_v62  ;;  %v11192_v62 = vld [vmem:[#allocation2 + $0x868] sm:$0xff] }
  0xf0   :  { %6941 = vmatpush.bf16.msrb.mxu0 %v11153_v3  ;;  %v6715_v23 = vpop.f32.mrf.mxu2  ;;  %v6691_v26 = vpop.f32.mrf.mxu0  ;;  %v11183_v3 = vld [vmem:[#allocation2 + $0x820] sm:$0xff] }
  0xf1   :  { %6954 = vmatpush.bf16.msrb.mxu1 %v11161_v4  ;;  %v6716_v24 = vadd.f32 %v6715_v23, %v6703_v18  ;;  %v6728_v25 = vpop.f32.mrf.mxu3  ;;  %v6704_v30 = vpop.f32.mrf.mxu1  ;;  %v11191_v4 = vld [vmem:[#allocation2 + $0x860] sm:$0xff]  ;;  %v11181_v18 = vld [vmem:[#allocation2 + $0x810] sm:$0xff]  ;;  %v11180_v23 = vld [vmem:[#allocation2 + $0x808] sm:$0xff] }
  0xf2   :  { %6967 = vmatpush.bf16.msrb.mxu2 %v11169_v5  ;;  %v11204_v26 = vld [vmem:[#allocation2 + $0x8c8] sm:$0xff] }
  0xf3   :  { %6980 = vmatpush.bf16.msrb.mxu3 %v11177_v6  ;;  %v11830_v27 = vadd.f32 %v6728_v25, %v6716_v24  ;;  %v11199_v6 = vld [vmem:[#allocation2 + $0x8a0] sm:$0xff]  ;;  %v11188_v24 = vld [vmem:[#allocation2 + $0x848] sm:$0xff] }
  0xf4   :  { %6942 = vmatpush.bf16.msrb.mxu0 %v11152_v7  ;;  %v11207_v7 = vld [vmem:[#allocation2 + $0x8e0] sm:$0xff]  ;;  %v11196_v25 = vld [vmem:[#allocation2 + $0x888] sm:$0xff] }
  0xf5   :  { %6955 = vmatpush.bf16.msrb.mxu1 %v11160_v8 }
  0xf6   :  { %6968 = vmatpush.bf16.msrb.mxu2 %v11168_v9  ;;  %v11182_v9 = vld [vmem:[#allocation2 + $0x818] sm:$0xff] }
  0xf7   :  { %6981 = vmatpush.bf16.msrb.mxu3 %v11176_v10  ;;  %v11190_v10 = vld [vmem:[#allocation2 + $0x858] sm:$0xff] }
  0xf8   :  { %6943 = vmatpush.bf16.msrb.mxu0 %v11151_v13  ;;  %v6717_v39 = vpop.f32.mrf.mxu2 }
  0xf9   :  { %6956 = vmatpush.bf16.msrb.mxu1 %v11159_v14  ;;  %v6730_v40 = vpop.f32.mrf.mxu3  ;;  %v11218_v39 = vld [vmem:[#allocation2 + $0x938] sm:$0xff] }
  0xfa   :  { %6969 = vmatpush.bf16.msrb.mxu2 %v11167_v16  ;;  %v11226_v40 = vld [vmem:[#allocation2 + $0x978] sm:$0xff] }
  0xfb   :  { %6982 = vmatpush.bf16.msrb.mxu3 %v11175_v17 }
  0xfc   :  { %6944 = vmatpush.bf16.msrb.mxu0 %v11150_v19  ;;  %v11189_v19 = vld [vmem:[#allocation2 + $0x850] sm:$0xff] }
  0xfd   :  { %6957 = vmatpush.bf16.msrb.mxu1 %v11158_v20 }
  0xfe   :  { %6970 = vmatpush.bf16.msrb.mxu2 %v11166_v21  ;;  %v11197_v21 = vld [vmem:[#allocation2 + $0x890] sm:$0xff] }
  0xff   :  { %6983 = vmatpush.bf16.msrb.mxu3 %v11174_v22  ;;  %v11205_v22 = vld [vmem:[#allocation2 + $0x8d0] sm:$0xff] }
 0x100   :  { %6945 = vmatpush.bf16.msrb.mxu0 %v11149_v28  ;;  %v61_v28 = vld [vmem:[%s11983_s0 + $0x88] sm:$0xff] }
 0x101   :  { %6958 = vmatpush.bf16.msrb.mxu1 %v11157_v29  ;;  %v1715_v38 = vunpack.c.h.b16 %v61_v28 }
 0x102   :  { %6971 = vmatpush.bf16.msrb.mxu2 %v11165_v31  ;;  %v11179_v31 = vld [vmem:[#allocation2 + $0x800] sm:$0xff] }
 0x103   :  { %6984 = vmatpush.bf16.msrb.mxu3 %v11173_v32  ;;  %v11187_v32 = vld [vmem:[#allocation2 + $0x840] sm:$0xff] }
 0x104   :  { %6946 = vmatpush.bf16.msrb.mxu0 %v11148_v33 }
 0x105   :  { %6959 = vmatpush.bf16.msrb.mxu1 %v11156_v34  ;;  %v1714_v34 = vunpack.c.l.b16 %v61_v28 }
 0x106   :  { %6972 = vmatpush.bf16.msrb.mxu2 %v11164_v35  ;;  %v11195_v35 = vld [vmem:[#allocation2 + $0x880] sm:$0xff] }
 0x107   :  { %6985 = vmatpush.bf16.msrb.mxu3 %v11172_v36  ;;  %v11203_v36 = vld [vmem:[#allocation2 + $0x8c0] sm:$0xff]  ;;  %v1810_v44 = vpack.c.b16 %v1714_v34, %v1714_v34 }
 0x108   :  { %6947 = vmatpush.bf16.msrb.mxu0 %v11147_v41  ;;  %v6741_v1 = vpop.f32.mrf.mxu0  ;;  %v11234_v41 = vld [vmem:[#allocation2 + $0x9b8] sm:$0xff] }
 0x109   :  { %6960 = vmatpush.bf16.msrb.mxu1 %v11155_v42  ;;  %v6742_v2 = vadd.f32 %v6741_v1, %v11830_v27  ;;  %v6754_v5 = vpop.f32.mrf.mxu1  ;;  %v60_v27 = vld [vmem:[%s11983_s0 + $0x80] sm:$0xff]  ;;  %v11242_v42 = vld [vmem:[#allocation2 + $0x9f8] sm:$0xff] }
 0x10a   :  { %6973 = vmatpush.bf16.msrb.mxu2 %v11163_v45  ;;  %v1712_v33 = vunpack.c.l.b16 %v60_v27  ;;  %v1713_v37 = vunpack.c.h.b16 %v60_v27  ;;  %v11230_v1 = vld [vmem:[#allocation2 + $0x998] sm:$0xff] }
 0x10b   :  { %6986 = vmatpush.bf16.msrb.mxu3 %v11171_v46  ;;  %6948 = vmatmul.bf16.vlgmr.msrb.gmra.mxu0 %v1804_v53  ;;  %v6755_v8 = vadd.f32 %v6754_v5, %v6742_v2  ;;  %v1811_v46 = vpack.c.b16 %v1715_v38, %v1715_v38  ;;  %v11232_v53 = vld [vmem:[#allocation2 + $0x9a8] sm:$0xff]  ;;  %v11238_v2 = vld [vmem:[#allocation2 + $0x9d8] sm:$0xff]  ;;  %v11257_v38 = vld [vmem:[#allocation2 + $0xa70] sm:$0xff] }
 0x10c   :  { %6992 = vmatpush.bf16.msra.mxu0 %v11186_v49  ;;  %6961 = vmatmul.bf16.vlgmr.msrb.gmra.mxu1 %v1805_v55  ;;  %v1808_v43 = vpack.c.b16 %v1712_v33, %v1712_v33  ;;  %v1809_v45 = vpack.c.b16 %v1713_v37, %v1713_v37  ;;  %v11233_v49 = vld [vmem:[#allocation2 + $0x9b0] sm:$0xff] }
 0x10d   :  { %7005 = vmatpush.bf16.msra.mxu1 %v11194_v50  ;;  %6974 = vmatmul.bf16.vlgmr.msrb.gmra.mxu2 %v1806_v54  ;;  %v11241_v50 = vld [vmem:[#allocation2 + $0x9f0] sm:$0xff]  ;;  %v11240_v54 = vld [vmem:[#allocation2 + $0x9e8] sm:$0xff] }
 0x10e   :  { %7018 = vmatpush.bf16.msra.mxu2 %v11202_v51  ;;  %6987 = vmatmul.bf16.vlgmr.msrb.gmra.mxu3 %v1807_v56  ;;  %v11216_v51 = vld [vmem:[#allocation2 + $0x928] sm:$0xff]  ;;  %v11249_v37 = vld [vmem:[#allocation2 + $0xa30] sm:$0xff] }
 0x10f   :  { %7031 = vmatpush.bf16.msra.mxu3 %v11210_v52  ;;  %v11224_v52 = vld [vmem:[#allocation2 + $0x968] sm:$0xff] }
 0x110   :  { %6993 = vmatpush.bf16.msra.mxu0 %v11185_v57  ;;  %v6767_v13 = vpop.f32.mrf.mxu2  ;;  %v6743_v16 = vpop.f32.mrf.mxu0  ;;  %v11215_v57 = vld [vmem:[#allocation2 + $0x920] sm:$0xff] }
 0x111   :  { %7006 = vmatpush.bf16.msra.mxu1 %v11193_v58  ;;  %v6768_v14 = vadd.f32 %v6767_v13, %v6755_v8  ;;  %v6780_v15 = vpop.f32.mrf.mxu3  ;;  %v6756_v20 = vpop.f32.mrf.mxu1  ;;  %v11223_v58 = vld [vmem:[#allocation2 + $0x960] sm:$0xff]  ;;  %v11213_v8 = vld [vmem:[#allocation2 + $0x910] sm:$0xff]  ;;  %v11212_v13 = vld [vmem:[#allocation2 + $0x908] sm:$0xff] }
 0x112   :  { %7019 = vmatpush.bf16.msra.mxu2 %v11201_v59  ;;  %v11236_v16 = vld [vmem:[#allocation2 + $0x9c8] sm:$0xff] }
 0x113   :  { %7032 = vmatpush.bf16.msra.mxu3 %v11209_v60  ;;  %v11839_v17 = vadd.f32 %v6780_v15, %v6768_v14  ;;  %v11231_v60 = vld [vmem:[#allocation2 + $0x9a0] sm:$0xff]  ;;  %v11220_v14 = vld [vmem:[#allocation2 + $0x948] sm:$0xff] }
 0x114   :  { %6994 = vmatpush.bf16.msra.mxu0 %v11184_v61  ;;  %v11239_v61 = vld [vmem:[#allocation2 + $0x9e0] sm:$0xff]  ;;  %v11228_v15 = vld [vmem:[#allocation2 + $0x988] sm:$0xff] }
 0x115   :  { %7007 = vmatpush.bf16.msra.mxu1 %v11192_v62 }
 0x116   :  { %7020 = vmatpush.bf16.msra.mxu2 %v11200_v63  ;;  %v11214_v63 = vld [vmem:[#allocation2 + $0x918] sm:$0xff] }
 0x117   :  { %7033 = vmatpush.bf16.msra.mxu3 %v11208_v0  ;;  %v11222_v0 = vld [vmem:[#allocation2 + $0x958] sm:$0xff] }
 0x118   :  { %6995 = vmatpush.bf16.msra.mxu0 %v11183_v3  ;;  %v6769_v29 = vpop.f32.mrf.mxu2 }
 0x119   :  { %7008 = vmatpush.bf16.msra.mxu1 %v11191_v4  ;;  %v6782_v30 = vpop.f32.mrf.mxu3  ;;  %v11250_v29 = vld [vmem:[#allocation2 + $0xa38] sm:$0xff] }
 0x11a   :  { %7021 = vmatpush.bf16.msra.mxu2 %v11199_v6  ;;  %v11258_v30 = vld [vmem:[#allocation2 + $0xa78] sm:$0xff] }
 0x11b   :  { %7034 = vmatpush.bf16.msra.mxu3 %v11207_v7 }
 0x11c   :  { %6996 = vmatpush.bf16.msra.mxu0 %v11182_v9  ;;  %v11221_v9 = vld [vmem:[#allocation2 + $0x950] sm:$0xff] }
 0x11d   :  { %7009 = vmatpush.bf16.msra.mxu1 %v11190_v10 }
 0x11e   :  { %7022 = vmatpush.bf16.msra.mxu2 %v11198_v11  ;;  %v11229_v11 = vld [vmem:[#allocation2 + $0x990] sm:$0xff] }
 0x11f   :  { %7035 = vmatpush.bf16.msra.mxu3 %v11206_v12  ;;  %v11237_v12 = vld [vmem:[#allocation2 + $0x9d0] sm:$0xff] }
 0x120   :  { %6997 = vmatpush.bf16.msra.mxu0 %v11181_v18  ;;  %v63_v18 = vld [vmem:[%s11983_s0 + $0x98] sm:$0xff] }
 0x121   :  { %7010 = vmatpush.bf16.msra.mxu1 %v11189_v19  ;;  %v1719_v28 = vunpack.c.h.b16 %v63_v18 }
 0x122   :  { %7023 = vmatpush.bf16.msra.mxu2 %v11197_v21  ;;  %v11211_v21 = vld [vmem:[#allocation2 + $0x900] sm:$0xff] }
 0x123   :  { %7036 = vmatpush.bf16.msra.mxu3 %v11205_v22  ;;  %v11219_v22 = vld [vmem:[#allocation2 + $0x940] sm:$0xff] }
 0x124   :  { %6998 = vmatpush.bf16.msra.mxu0 %v11180_v23 }
 0x125   :  { %7011 = vmatpush.bf16.msra.mxu1 %v11188_v24  ;;  %v1718_v24 = vunpack.c.l.b16 %v63_v18 }
 0x126   :  { %7024 = vmatpush.bf16.msra.mxu2 %v11196_v25  ;;  %v11227_v25 = vld [vmem:[#allocation2 + $0x980] sm:$0xff] }
 0x127   :  { %7037 = vmatpush.bf16.msra.mxu3 %v11204_v26  ;;  %v11235_v26 = vld [vmem:[#allocation2 + $0x9c0] sm:$0xff]  ;;  %v1814_v34 = vpack.c.b16 %v1718_v24, %v1718_v24 }
 0x128   :  { %6999 = vmatpush.bf16.msra.mxu0 %v11179_v31  ;;  %v6793_v55 = vpop.f32.mrf.mxu0  ;;  %v11266_v31 = vld [vmem:[#allocation2 + $0xab8] sm:$0xff] }
 0x129   :  { %7012 = vmatpush.bf16.msra.mxu1 %v11187_v32  ;;  %v6794_v56 = vadd.f32 %v6793_v55, %v11839_v17  ;;  %v6806_v59 = vpop.f32.mrf.mxu1  ;;  %v62_v17 = vld [vmem:[%s11983_s0 + $0x90] sm:$0xff]  ;;  %v11274_v32 = vld [vmem:[#allocation2 + $0xaf8] sm:$0xff] }
 0x12a   :  { %7025 = vmatpush.bf16.msra.mxu2 %v11195_v35  ;;  %v1716_v23 = vunpack.c.l.b16 %v62_v17  ;;  %v1717_v27 = vunpack.c.h.b16 %v62_v17  ;;  %v11262_v55 = vld [vmem:[#allocation2 + $0xa98] sm:$0xff] }
 0x12b   :  { %7038 = vmatpush.bf16.msra.mxu3 %v11203_v36  ;;  %7000 = vmatmul.bf16.vlgmr.msra.gmra.mxu0 %v1808_v43  ;;  %v6807_v62 = vadd.f32 %v6806_v59, %v6794_v56  ;;  %v1815_v36 = vpack.c.b16 %v1719_v28, %v1719_v28  ;;  %v11264_v43 = vld [vmem:[#allocation2 + $0xaa8] sm:$0xff]  ;;  %v11270_v56 = vld [vmem:[#allocation2 + $0xad8] sm:$0xff]  ;;  %v11289_v28 = vld [vmem:[#allocation2 + $0xb70] sm:$0xff] }
 0x12c   :  { %7044 = vmatpush.bf16.msrb.mxu0 %v11218_v39  ;;  %7013 = vmatmul.bf16.vlgmr.msra.gmra.mxu1 %v1809_v45  ;;  %v1812_v33 = vpack.c.b16 %v1716_v23, %v1716_v23  ;;  %v1813_v35 = vpack.c.b16 %v1717_v27, %v1717_v27  ;;  %v11265_v39 = vld [vmem:[#allocation2 + $0xab0] sm:$0xff] }
 0x12d   :  { %7057 = vmatpush.bf16.msrb.mxu1 %v11226_v40  ;;  %7026 = vmatmul.bf16.vlgmr.msra.gmra.mxu2 %v1810_v44  ;;  %v11273_v40 = vld [vmem:[#allocation2 + $0xaf0] sm:$0xff]  ;;  %v11272_v44 = vld [vmem:[#allocation2 + $0xae8] sm:$0xff] }
 0x12e   :  { %7070 = vmatpush.bf16.msrb.mxu2 %v11234_v41  ;;  %7039 = vmatmul.bf16.vlgmr.msra.gmra.mxu3 %v1811_v46  ;;  %v11248_v41 = vld [vmem:[#allocation2 + $0xa28] sm:$0xff]  ;;  %v11281_v27 = vld [vmem:[#allocation2 + $0xb30] sm:$0xff] }
 0x12f   :  { %7083 = vmatpush.bf16.msrb.mxu3 %v11242_v42  ;;  %v11256_v42 = vld [vmem:[#allocation2 + $0xa68] sm:$0xff] }
 0x130   :  { %7045 = vmatpush.bf16.msrb.mxu0 %v11217_v47  ;;  %v6819_v3 = vpop.f32.mrf.mxu2  ;;  %v6795_v6 = vpop.f32.mrf.mxu0  ;;  %v11247_v47 = vld [vmem:[#allocation2 + $0xa20] sm:$0xff] }
 0x131   :  { %7058 = vmatpush.bf16.msrb.mxu1 %v11225_v48  ;;  %v6820_v4 = vadd.f32 %v6819_v3, %v6807_v62  ;;  %v6832_v5 = vpop.f32.mrf.mxu3  ;;  %v6808_v10 = vpop.f32.mrf.mxu1  ;;  %v11255_v48 = vld [vmem:[#allocation2 + $0xa60] sm:$0xff]  ;;  %v11245_v62 = vld [vmem:[#allocation2 + $0xa10] sm:$0xff]  ;;  %v11244_v3 = vld [vmem:[#allocation2 + $0xa08] sm:$0xff] }
 0x132   :  { %7071 = vmatpush.bf16.msrb.mxu2 %v11233_v49  ;;  %v11268_v6 = vld [vmem:[#allocation2 + $0xac8] sm:$0xff] }
 0x133   :  { %7084 = vmatpush.bf16.msrb.mxu3 %v11241_v50  ;;  %v11848_v7 = vadd.f32 %v6832_v5, %v6820_v4  ;;  %v11263_v50 = vld [vmem:[#allocation2 + $0xaa0] sm:$0xff]  ;;  %v11252_v4 = vld [vmem:[#allocation2 + $0xa48] sm:$0xff] }
 0x134   :  { %7046 = vmatpush.bf16.msrb.mxu0 %v11216_v51  ;;  %v11271_v51 = vld [vmem:[#allocation2 + $0xae0] sm:$0xff]  ;;  %v11260_v5 = vld [vmem:[#allocation2 + $0xa88] sm:$0xff] }
 0x135   :  { %7059 = vmatpush.bf16.msrb.mxu1 %v11224_v52 }
 0x136   :  { %7072 = vmatpush.bf16.msrb.mxu2 %v11232_v53  ;;  %v11246_v53 = vld [vmem:[#allocation2 + $0xa18] sm:$0xff] }
 0x137   :  { %7085 = vmatpush.bf16.msrb.mxu3 %v11240_v54  ;;  %v11254_v54 = vld [vmem:[#allocation2 + $0xa58] sm:$0xff] }
 0x138   :  { %7047 = vmatpush.bf16.msrb.mxu0 %v11215_v57  ;;  %v6821_v19 = vpop.f32.mrf.mxu2 }
 0x139   :  { %7060 = vmatpush.bf16.msrb.mxu1 %v11223_v58  ;;  %v6834_v20 = vpop.f32.mrf.mxu3  ;;  %v11282_v19 = vld [vmem:[#allocation2 + $0xb38] sm:$0xff] }
 0x13a   :  { %7073 = vmatpush.bf16.msrb.mxu2 %v11231_v60  ;;  %v11290_v20 = vld [vmem:[#allocation2 + $0xb78] sm:$0xff] }
 0x13b   :  { %7086 = vmatpush.bf16.msrb.mxu3 %v11239_v61 }
 0x13c   :  { %7048 = vmatpush.bf16.msrb.mxu0 %v11214_v63  ;;  %v11253_v63 = vld [vmem:[#allocation2 + $0xa50] sm:$0xff] }
 0x13d   :  { %7061 = vmatpush.bf16.msrb.mxu1 %v11222_v0 }
 0x13e   :  { %7074 = vmatpush.bf16.msrb.mxu2 %v11230_v1  ;;  %v11261_v1 = vld [vmem:[#allocation2 + $0xa90] sm:$0xff] }
 0x13f   :  { %7087 = vmatpush.bf16.msrb.mxu3 %v11238_v2  ;;  %v11269_v2 = vld [vmem:[#allocation2 + $0xad0] sm:$0xff] }
 0x140   :  { %7049 = vmatpush.bf16.msrb.mxu0 %v11213_v8  ;;  %v65_v8 = vld [vmem:[%s11983_s0 + $0xa8] sm:$0xff] }
 0x141   :  { %7062 = vmatpush.bf16.msrb.mxu1 %v11221_v9  ;;  %v1723_v18 = vunpack.c.h.b16 %v65_v8 }
 0x142   :  { %7075 = vmatpush.bf16.msrb.mxu2 %v11229_v11  ;;  %v11243_v11 = vld [vmem:[#allocation2 + $0xa00] sm:$0xff] }
 0x143   :  { %7088 = vmatpush.bf16.msrb.mxu3 %v11237_v12  ;;  %v11251_v12 = vld [vmem:[#allocation2 + $0xa40] sm:$0xff] }
 0x144   :  { %7050 = vmatpush.bf16.msrb.mxu0 %v11212_v13 }
 0x145   :  { %7063 = vmatpush.bf16.msrb.mxu1 %v11220_v14  ;;  %v1722_v14 = vunpack.c.l.b16 %v65_v8 }
 0x146   :  { %7076 = vmatpush.bf16.msrb.mxu2 %v11228_v15  ;;  %v11259_v15 = vld [vmem:[#allocation2 + $0xa80] sm:$0xff] }
 0x147   :  { %7089 = vmatpush.bf16.msrb.mxu3 %v11236_v16  ;;  %v11267_v16 = vld [vmem:[#allocation2 + $0xac0] sm:$0xff]  ;;  %v1818_v24 = vpack.c.b16 %v1722_v14, %v1722_v14 }
 0x148   :  { %7051 = vmatpush.bf16.msrb.mxu0 %v11211_v21  ;;  %v6845_v45 = vpop.f32.mrf.mxu0  ;;  %v11298_v21 = vld [vmem:[#allocation2 + $0xbb8] sm:$0xff] }
 0x149   :  { %7064 = vmatpush.bf16.msrb.mxu1 %v11219_v22  ;;  %v6846_v46 = vadd.f32 %v6845_v45, %v11848_v7  ;;  %v6858_v49 = vpop.f32.mrf.mxu1  ;;  %v64_v7 = vld [vmem:[%s11983_s0 + $0xa0] sm:$0xff]  ;;  %v11306_v22 = vld [vmem:[#allocation2 + $0xbf8] sm:$0xff] }
 0x14a   :  { %7077 = vmatpush.bf16.msrb.mxu2 %v11227_v25  ;;  %v1720_v13 = vunpack.c.l.b16 %v64_v7  ;;  %v1721_v17 = vunpack.c.h.b16 %v64_v7  ;;  %v11294_v45 = vld [vmem:[#allocation2 + $0xb98] sm:$0xff] }
 0x14b   :  { %7090 = vmatpush.bf16.msrb.mxu3 %v11235_v26  ;;  %7052 = vmatmul.bf16.vlgmr.msrb.gmra.mxu0 %v1812_v33  ;;  %v6859_v52 = vadd.f32 %v6858_v49, %v6846_v46  ;;  %v1819_v26 = vpack.c.b16 %v1723_v18, %v1723_v18  ;;  %v11296_v33 = vld [vmem:[#allocation2 + $0xba8] sm:$0xff]  ;;  %v11302_v46 = vld [vmem:[#allocation2 + $0xbd8] sm:$0xff]  ;;  %v11321_v18 = vld [vmem:[#allocation2 + $0xc70] sm:$0xff] }
 0x14c   :  { %7096 = vmatpush.bf16.msra.mxu0 %v11250_v29  ;;  %7065 = vmatmul.bf16.vlgmr.msrb.gmra.mxu1 %v1813_v35  ;;  %v1816_v23 = vpack.c.b16 %v1720_v13, %v1720_v13  ;;  %v1817_v25 = vpack.c.b16 %v1721_v17, %v1721_v17  ;;  %v11297_v29 = vld [vmem:[#allocation2 + $0xbb0] sm:$0xff] }
 0x14d   :  { %7109 = vmatpush.bf16.msra.mxu1 %v11258_v30  ;;  %7078 = vmatmul.bf16.vlgmr.msrb.gmra.mxu2 %v1814_v34  ;;  %v11305_v30 = vld [vmem:[#allocation2 + $0xbf0] sm:$0xff]  ;;  %v11304_v34 = vld [vmem:[#allocation2 + $0xbe8] sm:$0xff] }
 0x14e   :  { %7122 = vmatpush.bf16.msra.mxu2 %v11266_v31  ;;  %7091 = vmatmul.bf16.vlgmr.msrb.gmra.mxu3 %v1815_v36  ;;  %v11280_v31 = vld [vmem:[#allocation2 + $0xb28] sm:$0xff]  ;;  %v11313_v17 = vld [vmem:[#allocation2 + $0xc30] sm:$0xff] }
 0x14f   :  { %7135 = vmatpush.bf16.msra.mxu3 %v11274_v32  ;;  %v11288_v32 = vld [vmem:[#allocation2 + $0xb68] sm:$0xff] }
 0x150   :  { %7097 = vmatpush.bf16.msra.mxu0 %v11249_v37  ;;  %v6871_v57 = vpop.f32.mrf.mxu2  ;;  %v6847_v60 = vpop.f32.mrf.mxu0  ;;  %v11279_v37 = vld [vmem:[#allocation2 + $0xb20] sm:$0xff] }
 0x151   :  { %7110 = vmatpush.bf16.msra.mxu1 %v11257_v38  ;;  %v6872_v58 = vadd.f32 %v6871_v57, %v6859_v52  ;;  %v6884_v59 = vpop.f32.mrf.mxu3  ;;  %v6860_v0 = vpop.f32.mrf.mxu1  ;;  %v11287_v38 = vld [vmem:[#allocation2 + $0xb60] sm:$0xff]  ;;  %v11277_v52 = vld [vmem:[#allocation2 + $0xb10] sm:$0xff]  ;;  %v11276_v57 = vld [vmem:[#allocation2 + $0xb08] sm:$0xff] }
 0x152   :  { %7123 = vmatpush.bf16.msra.mxu2 %v11265_v39  ;;  %v11300_v60 = vld [vmem:[#allocation2 + $0xbc8] sm:$0xff] }
 0x153   :  { %7136 = vmatpush.bf16.msra.mxu3 %v11273_v40  ;;  %v11857_v61 = vadd.f32 %v6884_v59, %v6872_v58  ;;  %v11295_v40 = vld [vmem:[#allocation2 + $0xba0] sm:$0xff]  ;;  %v11284_v58 = vld [vmem:[#allocation2 + $0xb48] sm:$0xff] }
 0x154   :  { %7098 = vmatpush.bf16.msra.mxu0 %v11248_v41  ;;  %v11303_v41 = vld [vmem:[#allocation2 + $0xbe0] sm:$0xff]  ;;  %v11292_v59 = vld [vmem:[#allocation2 + $0xb88] sm:$0xff] }
 0x155   :  { %7111 = vmatpush.bf16.msra.mxu1 %v11256_v42 }
 0x156   :  { %7124 = vmatpush.bf16.msra.mxu2 %v11264_v43  ;;  %v11278_v43 = vld [vmem:[#allocation2 + $0xb18] sm:$0xff] }
 0x157   :  { %7137 = vmatpush.bf16.msra.mxu3 %v11272_v44  ;;  %v11286_v44 = vld [vmem:[#allocation2 + $0xb58] sm:$0xff] }
 0x158   :  { %7099 = vmatpush.bf16.msra.mxu0 %v11247_v47  ;;  %v6873_v9 = vpop.f32.mrf.mxu2 }
 0x159   :  { %7112 = vmatpush.bf16.msra.mxu1 %v11255_v48  ;;  %v6886_v10 = vpop.f32.mrf.mxu3  ;;  %v11314_v9 = vld [vmem:[#allocation2 + $0xc38] sm:$0xff] }
 0x15a   :  { %7125 = vmatpush.bf16.msra.mxu2 %v11263_v50  ;;  %v11322_v10 = vld [vmem:[#allocation2 + $0xc78] sm:$0xff] }
 0x15b   :  { %7138 = vmatpush.bf16.msra.mxu3 %v11271_v51 }
 0x15c   :  { %7100 = vmatpush.bf16.msra.mxu0 %v11246_v53  ;;  %v11285_v53 = vld [vmem:[#allocation2 + $0xb50] sm:$0xff] }
 0x15d   :  { %7113 = vmatpush.bf16.msra.mxu1 %v11254_v54 }
 0x15e   :  { %7126 = vmatpush.bf16.msra.mxu2 %v11262_v55  ;;  %v11293_v55 = vld [vmem:[#allocation2 + $0xb90] sm:$0xff] }
 0x15f   :  { %7139 = vmatpush.bf16.msra.mxu3 %v11270_v56  ;;  %v11301_v56 = vld [vmem:[#allocation2 + $0xbd0] sm:$0xff] }
 0x160   :  { %7101 = vmatpush.bf16.msra.mxu0 %v11245_v62  ;;  %v67_v62 = vld [vmem:[%s11983_s0 + $0xb8] sm:$0xff] }
 0x161   :  { %7114 = vmatpush.bf16.msra.mxu1 %v11253_v63  ;;  %v1727_v8 = vunpack.c.h.b16 %v67_v62 }
 0x162   :  { %7127 = vmatpush.bf16.msra.mxu2 %v11261_v1  ;;  %v11275_v1 = vld [vmem:[#allocation2 + $0xb00] sm:$0xff] }
 0x163   :  { %7140 = vmatpush.bf16.msra.mxu3 %v11269_v2  ;;  %v11283_v2 = vld [vmem:[#allocation2 + $0xb40] sm:$0xff] }
 0x164   :  { %7102 = vmatpush.bf16.msra.mxu0 %v11244_v3 }
 0x165   :  { %7115 = vmatpush.bf16.msra.mxu1 %v11252_v4  ;;  %v1726_v4 = vunpack.c.l.b16 %v67_v62 }
 0x166   :  { %7128 = vmatpush.bf16.msra.mxu2 %v11260_v5  ;;  %v11291_v5 = vld [vmem:[#allocation2 + $0xb80] sm:$0xff] }
 0x167   :  { %7141 = vmatpush.bf16.msra.mxu3 %v11268_v6  ;;  %v11299_v6 = vld [vmem:[#allocation2 + $0xbc0] sm:$0xff]  ;;  %v1822_v14 = vpack.c.b16 %v1726_v4, %v1726_v4 }
 0x168   :  { %7103 = vmatpush.bf16.msra.mxu0 %v11243_v11  ;;  %v6897_v35 = vpop.f32.mrf.mxu0  ;;  %v11330_v11 = vld [vmem:[#allocation2 + $0xcb8] sm:$0xff] }
 0x169   :  { %7116 = vmatpush.bf16.msra.mxu1 %v11251_v12  ;;  %v6898_v36 = vadd.f32 %v6897_v35, %v11857_v61  ;;  %v6910_v39 = vpop.f32.mrf.mxu1  ;;  %v66_v61 = vld [vmem:[%s11983_s0 + $0xb0] sm:$0xff]  ;;  %v11338_v12 = vld [vmem:[#allocation2 + $0xcf8] sm:$0xff] }
 0x16a   :  { %7129 = vmatpush.bf16.msra.mxu2 %v11259_v15  ;;  %v1724_v3 = vunpack.c.l.b16 %v66_v61  ;;  %v1725_v7 = vunpack.c.h.b16 %v66_v61  ;;  %v11326_v35 = vld [vmem:[#allocation2 + $0xc98] sm:$0xff] }
 0x16b   :  { %7142 = vmatpush.bf16.msra.mxu3 %v11267_v16  ;;  %7104 = vmatmul.bf16.vlgmr.msra.gmra.mxu0 %v1816_v23  ;;  %v6911_v42 = vadd.f32 %v6910_v39, %v6898_v36  ;;  %v1823_v16 = vpack.c.b16 %v1727_v8, %v1727_v8  ;;  %v11328_v23 = vld [vmem:[#allocation2 + $0xca8] sm:$0xff]  ;;  %v11334_v36 = vld [vmem:[#allocation2 + $0xcd8] sm:$0xff]  ;;  %v11353_v8 = vld [vmem:[#allocation2 + $0xd70] sm:$0xff] }
 0x16c   :  { %7148 = vmatpush.bf16.msrb.mxu0 %v11282_v19  ;;  %7117 = vmatmul.bf16.vlgmr.msra.gmra.mxu1 %v1817_v25  ;;  %v1820_v13 = vpack.c.b16 %v1724_v3, %v1724_v3  ;;  %v1821_v15 = vpack.c.b16 %v1725_v7, %v1725_v7  ;;  %v11329_v19 = vld [vmem:[#allocation2 + $0xcb0] sm:$0xff] }
 0x16d   :  { %7161 = vmatpush.bf16.msrb.mxu1 %v11290_v20  ;;  %7130 = vmatmul.bf16.vlgmr.msra.gmra.mxu2 %v1818_v24  ;;  %v11337_v20 = vld [vmem:[#allocation2 + $0xcf0] sm:$0xff]  ;;  %v11336_v24 = vld [vmem:[#allocation2 + $0xce8] sm:$0xff] }
 0x16e   :  { %7174 = vmatpush.bf16.msrb.mxu2 %v11298_v21  ;;  %7143 = vmatmul.bf16.vlgmr.msra.gmra.mxu3 %v1819_v26  ;;  %v11312_v21 = vld [vmem:[#allocation2 + $0xc28] sm:$0xff]  ;;  %v11345_v7 = vld [vmem:[#allocation2 + $0xd30] sm:$0xff] }
 0x16f   :  { %7187 = vmatpush.bf16.msrb.mxu3 %v11306_v22  ;;  %v11320_v22 = vld [vmem:[#allocation2 + $0xc68] sm:$0xff] }
 0x170   :  { %7149 = vmatpush.bf16.msrb.mxu0 %v11281_v27  ;;  %v6923_v47 = vpop.f32.mrf.mxu2  ;;  %v6899_v50 = vpop.f32.mrf.mxu0  ;;  %v11311_v27 = vld [vmem:[#allocation2 + $0xc20] sm:$0xff] }
 0x171   :  { %7162 = vmatpush.bf16.msrb.mxu1 %v11289_v28  ;;  %v6924_v48 = vadd.f32 %v6923_v47, %v6911_v42  ;;  %v6936_v49 = vpop.f32.mrf.mxu3  ;;  %v6912_v54 = vpop.f32.mrf.mxu1  ;;  %v11319_v28 = vld [vmem:[#allocation2 + $0xc60] sm:$0xff]  ;;  %v11309_v42 = vld [vmem:[#allocation2 + $0xc10] sm:$0xff]  ;;  %v11308_v47 = vld [vmem:[#allocation2 + $0xc08] sm:$0xff] }
 0x172   :  { %7175 = vmatpush.bf16.msrb.mxu2 %v11297_v29  ;;  %v11332_v50 = vld [vmem:[#allocation2 + $0xcc8] sm:$0xff] }
 0x173   :  { %7188 = vmatpush.bf16.msrb.mxu3 %v11305_v30  ;;  %v11866_v51 = vadd.f32 %v6936_v49, %v6924_v48  ;;  %v11327_v30 = vld [vmem:[#allocation2 + $0xca0] sm:$0xff]  ;;  %v11316_v48 = vld [vmem:[#allocation2 + $0xc48] sm:$0xff] }
 0x174   :  { %7150 = vmatpush.bf16.msrb.mxu0 %v11280_v31  ;;  %v11335_v31 = vld [vmem:[#allocation2 + $0xce0] sm:$0xff]  ;;  %v11324_v49 = vld [vmem:[#allocation2 + $0xc88] sm:$0xff] }
 0x175   :  { %7163 = vmatpush.bf16.msrb.mxu1 %v11288_v32 }
 0x176   :  { %7176 = vmatpush.bf16.msrb.mxu2 %v11296_v33  ;;  %v11310_v33 = vld [vmem:[#allocation2 + $0xc18] sm:$0xff] }
 0x177   :  { %7189 = vmatpush.bf16.msrb.mxu3 %v11304_v34  ;;  %v11318_v34 = vld [vmem:[#allocation2 + $0xc58] sm:$0xff] }
 0x178   :  { %7151 = vmatpush.bf16.msrb.mxu0 %v11279_v37  ;;  %v6925_v63 = vpop.f32.mrf.mxu2 }
 0x179   :  { %7164 = vmatpush.bf16.msrb.mxu1 %v11287_v38  ;;  %v6938_v0 = vpop.f32.mrf.mxu3  ;;  %v11346_v63 = vld [vmem:[#allocation2 + $0xd38] sm:$0xff] }
 0x17a   :  { %7177 = vmatpush.bf16.msrb.mxu2 %v11295_v40  ;;  %v11354_v0 = vld [vmem:[#allocation2 + $0xd78] sm:$0xff] }
 0x17b   :  { %7190 = vmatpush.bf16.msrb.mxu3 %v11303_v41 }
 0x17c   :  { %7152 = vmatpush.bf16.msrb.mxu0 %v11278_v43  ;;  %v11317_v43 = vld [vmem:[#allocation2 + $0xc50] sm:$0xff] }
 0x17d   :  { %7165 = vmatpush.bf16.msrb.mxu1 %v11286_v44 }
 0x17e   :  { %7178 = vmatpush.bf16.msrb.mxu2 %v11294_v45  ;;  %v11325_v45 = vld [vmem:[#allocation2 + $0xc90] sm:$0xff] }
 0x17f   :  { %7191 = vmatpush.bf16.msrb.mxu3 %v11302_v46  ;;  %v11333_v46 = vld [vmem:[#allocation2 + $0xcd0] sm:$0xff] }
 0x180   :  { %7153 = vmatpush.bf16.msrb.mxu0 %v11277_v52  ;;  %v69_v52 = vld [vmem:[%s11983_s0 + $0xc8] sm:$0xff] }
 0x181   :  { %7166 = vmatpush.bf16.msrb.mxu1 %v11285_v53  ;;  %v1731_v62 = vunpack.c.h.b16 %v69_v52 }
 0x182   :  { %7179 = vmatpush.bf16.msrb.mxu2 %v11293_v55  ;;  %v11307_v55 = vld [vmem:[#allocation2 + $0xc00] sm:$0xff] }
 0x183   :  { %7192 = vmatpush.bf16.msrb.mxu3 %v11301_v56  ;;  %v11315_v56 = vld [vmem:[#allocation2 + $0xc40] sm:$0xff] }
 0x184   :  { %7154 = vmatpush.bf16.msrb.mxu0 %v11276_v57 }
 0x185   :  { %7167 = vmatpush.bf16.msrb.mxu1 %v11284_v58  ;;  %v1730_v58 = vunpack.c.l.b16 %v69_v52 }
 0x186   :  { %7180 = vmatpush.bf16.msrb.mxu2 %v11292_v59  ;;  %v11323_v59 = vld [vmem:[#allocation2 + $0xc80] sm:$0xff] }
 0x187   :  { %7193 = vmatpush.bf16.msrb.mxu3 %v11300_v60  ;;  %v11331_v60 = vld [vmem:[#allocation2 + $0xcc0] sm:$0xff]  ;;  %v1826_v4 = vpack.c.b16 %v1730_v58, %v1730_v58 }
 0x188   :  { %7155 = vmatpush.bf16.msrb.mxu0 %v11275_v1  ;;  %v6949_v25 = vpop.f32.mrf.mxu0  ;;  %v11362_v1 = vld [vmem:[#allocation2 + $0xdb8] sm:$0xff] }
 0x189   :  { %7168 = vmatpush.bf16.msrb.mxu1 %v11283_v2  ;;  %v6950_v26 = vadd.f32 %v6949_v25, %v11866_v51  ;;  %v6962_v29 = vpop.f32.mrf.mxu1  ;;  %v68_v51 = vld [vmem:[%s11983_s0 + $0xc0] sm:$0xff]  ;;  %v11370_v2 = vld [vmem:[#allocation2 + $0xdf8] sm:$0xff] }
 0x18a   :  { %7181 = vmatpush.bf16.msrb.mxu2 %v11291_v5  ;;  %v1728_v57 = vunpack.c.l.b16 %v68_v51  ;;  %v1729_v61 = vunpack.c.h.b16 %v68_v51  ;;  %v11358_v25 = vld [vmem:[#allocation2 + $0xd98] sm:$0xff] }
 0x18b   :  { %7194 = vmatpush.bf16.msrb.mxu3 %v11299_v6  ;;  %7156 = vmatmul.bf16.vlgmr.msrb.gmra.mxu0 %v1820_v13  ;;  %v6963_v32 = vadd.f32 %v6962_v29, %v6950_v26  ;;  %v1827_v6 = vpack.c.b16 %v1731_v62, %v1731_v62  ;;  %v11360_v13 = vld [vmem:[#allocation2 + $0xda8] sm:$0xff]  ;;  %v11366_v26 = vld [vmem:[#allocation2 + $0xdd8] sm:$0xff]  ;;  %v11385_v62 = vld [vmem:[#allocation2 + $0xe70] sm:$0xff] }
 0x18c   :  { %7200 = vmatpush.bf16.msra.mxu0 %v11314_v9  ;;  %7169 = vmatmul.bf16.vlgmr.msrb.gmra.mxu1 %v1821_v15  ;;  %v1824_v3 = vpack.c.b16 %v1728_v57, %v1728_v57  ;;  %v1825_v5 = vpack.c.b16 %v1729_v61, %v1729_v61  ;;  %v11361_v9 = vld [vmem:[#allocation2 + $0xdb0] sm:$0xff] }
 0x18d   :  { %7213 = vmatpush.bf16.msra.mxu1 %v11322_v10  ;;  %7182 = vmatmul.bf16.vlgmr.msrb.gmra.mxu2 %v1822_v14  ;;  %v11369_v10 = vld [vmem:[#allocation2 + $0xdf0] sm:$0xff]  ;;  %v11368_v14 = vld [vmem:[#allocation2 + $0xde8] sm:$0xff] }
 0x18e   :  { %7226 = vmatpush.bf16.msra.mxu2 %v11330_v11  ;;  %7195 = vmatmul.bf16.vlgmr.msrb.gmra.mxu3 %v1823_v16  ;;  %v11344_v11 = vld [vmem:[#allocation2 + $0xd28] sm:$0xff]  ;;  %v11377_v61 = vld [vmem:[#allocation2 + $0xe30] sm:$0xff] }
 0x18f   :  { %7239 = vmatpush.bf16.msra.mxu3 %v11338_v12  ;;  %v11352_v12 = vld [vmem:[#allocation2 + $0xd68] sm:$0xff] }
 0x190   :  { %7201 = vmatpush.bf16.msra.mxu0 %v11313_v17  ;;  %v6975_v37 = vpop.f32.mrf.mxu2  ;;  %v6951_v40 = vpop.f32.mrf.mxu0  ;;  %v11343_v17 = vld [vmem:[#allocation2 + $0xd20] sm:$0xff] }
 0x191   :  { %7214 = vmatpush.bf16.msra.mxu1 %v11321_v18  ;;  %v6976_v38 = vadd.f32 %v6975_v37, %v6963_v32  ;;  %v6988_v39 = vpop.f32.mrf.mxu3  ;;  %v6964_v44 = vpop.f32.mrf.mxu1  ;;  %v11351_v18 = vld [vmem:[#allocation2 + $0xd60] sm:$0xff]  ;;  %v11341_v32 = vld [vmem:[#allocation2 + $0xd10] sm:$0xff]  ;;  %v11340_v37 = vld [vmem:[#allocation2 + $0xd08] sm:$0xff] }
 0x192   :  { %7227 = vmatpush.bf16.msra.mxu2 %v11329_v19  ;;  %v11364_v40 = vld [vmem:[#allocation2 + $0xdc8] sm:$0xff] }
 0x193   :  { %7240 = vmatpush.bf16.msra.mxu3 %v11337_v20  ;;  %v11875_v41 = vadd.f32 %v6988_v39, %v6976_v38  ;;  %v11359_v20 = vld [vmem:[#allocation2 + $0xda0] sm:$0xff]  ;;  %v11348_v38 = vld [vmem:[#allocation2 + $0xd48] sm:$0xff] }
 0x194   :  { %7202 = vmatpush.bf16.msra.mxu0 %v11312_v21  ;;  %v11367_v21 = vld [vmem:[#allocation2 + $0xde0] sm:$0xff]  ;;  %v11356_v39 = vld [vmem:[#allocation2 + $0xd88] sm:$0xff] }
 0x195   :  { %7215 = vmatpush.bf16.msra.mxu1 %v11320_v22 }
 0x196   :  { %7228 = vmatpush.bf16.msra.mxu2 %v11328_v23  ;;  %v11342_v23 = vld [vmem:[#allocation2 + $0xd18] sm:$0xff] }
 0x197   :  { %7241 = vmatpush.bf16.msra.mxu3 %v11336_v24  ;;  %v11350_v24 = vld [vmem:[#allocation2 + $0xd58] sm:$0xff] }
 0x198   :  { %7203 = vmatpush.bf16.msra.mxu0 %v11311_v27  ;;  %v6977_v53 = vpop.f32.mrf.mxu2 }
 0x199   :  { %7216 = vmatpush.bf16.msra.mxu1 %v11319_v28  ;;  %v6990_v54 = vpop.f32.mrf.mxu3  ;;  %v11378_v53 = vld [vmem:[#allocation2 + $0xe38] sm:$0xff] }
 0x19a   :  { %7229 = vmatpush.bf16.msra.mxu2 %v11327_v30  ;;  %v11386_v54 = vld [vmem:[#allocation2 + $0xe78] sm:$0xff] }
 0x19b   :  { %7242 = vmatpush.bf16.msra.mxu3 %v11335_v31 }
 0x19c   :  { %7204 = vmatpush.bf16.msra.mxu0 %v11310_v33  ;;  %v11349_v33 = vld [vmem:[#allocation2 + $0xd50] sm:$0xff] }
 0x19d   :  { %7217 = vmatpush.bf16.msra.mxu1 %v11318_v34 }
 0x19e   :  { %7230 = vmatpush.bf16.msra.mxu2 %v11326_v35  ;;  %v11357_v35 = vld [vmem:[#allocation2 + $0xd90] sm:$0xff] }
 0x19f   :  { %7243 = vmatpush.bf16.msra.mxu3 %v11334_v36  ;;  %v11365_v36 = vld [vmem:[#allocation2 + $0xdd0] sm:$0xff] }
 0x1a0   :  { %7205 = vmatpush.bf16.msra.mxu0 %v11309_v42  ;;  %v71_v42 = vld [vmem:[%s11983_s0 + $0xd8] sm:$0xff] }
 0x1a1   :  { %7218 = vmatpush.bf16.msra.mxu1 %v11317_v43  ;;  %v1735_v52 = vunpack.c.h.b16 %v71_v42 }
 0x1a2   :  { %7231 = vmatpush.bf16.msra.mxu2 %v11325_v45  ;;  %v11339_v45 = vld [vmem:[#allocation2 + $0xd00] sm:$0xff] }
 0x1a3   :  { %7244 = vmatpush.bf16.msra.mxu3 %v11333_v46  ;;  %v11347_v46 = vld [vmem:[#allocation2 + $0xd40] sm:$0xff] }
 0x1a4   :  { %7206 = vmatpush.bf16.msra.mxu0 %v11308_v47 }
 0x1a5   :  { %7219 = vmatpush.bf16.msra.mxu1 %v11316_v48  ;;  %v1734_v48 = vunpack.c.l.b16 %v71_v42 }
 0x1a6   :  { %7232 = vmatpush.bf16.msra.mxu2 %v11324_v49  ;;  %v11355_v49 = vld [vmem:[#allocation2 + $0xd80] sm:$0xff] }
 0x1a7   :  { %7245 = vmatpush.bf16.msra.mxu3 %v11332_v50  ;;  %v11363_v50 = vld [vmem:[#allocation2 + $0xdc0] sm:$0xff]  ;;  %v1830_v58 = vpack.c.b16 %v1734_v48, %v1734_v48 }
 0x1a8   :  { %7207 = vmatpush.bf16.msra.mxu0 %v11307_v55  ;;  %v7001_v15 = vpop.f32.mrf.mxu0  ;;  %v11394_v55 = vld [vmem:[#allocation2 + $0xeb8] sm:$0xff] }
 0x1a9   :  { %7220 = vmatpush.bf16.msra.mxu1 %v11315_v56  ;;  %v7002_v16 = vadd.f32 %v7001_v15, %v11875_v41  ;;  %v7014_v19 = vpop.f32.mrf.mxu1  ;;  %v70_v41 = vld [vmem:[%s11983_s0 + $0xd0] sm:$0xff]  ;;  %v11402_v56 = vld [vmem:[#allocation2 + $0xef8] sm:$0xff] }
 0x1aa   :  { %7233 = vmatpush.bf16.msra.mxu2 %v11323_v59  ;;  %v1732_v47 = vunpack.c.l.b16 %v70_v41  ;;  %v1733_v51 = vunpack.c.h.b16 %v70_v41  ;;  %v11390_v15 = vld [vmem:[#allocation2 + $0xe98] sm:$0xff] }
 0x1ab   :  { %7246 = vmatpush.bf16.msra.mxu3 %v11331_v60  ;;  %7208 = vmatmul.bf16.vlgmr.msra.gmra.mxu0 %v1824_v3  ;;  %v7015_v22 = vadd.f32 %v7014_v19, %v7002_v16  ;;  %v1831_v60 = vpack.c.b16 %v1735_v52, %v1735_v52  ;;  %v11392_v3 = vld [vmem:[#allocation2 + $0xea8] sm:$0xff]  ;;  %v11398_v16 = vld [vmem:[#allocation2 + $0xed8] sm:$0xff]  ;;  %v11417_v52 = vld [vmem:[#allocation2 + $0xf70] sm:$0xff] }
 0x1ac   :  { %7252 = vmatpush.bf16.msrb.mxu0 %v11346_v63  ;;  %7221 = vmatmul.bf16.vlgmr.msra.gmra.mxu1 %v1825_v5  ;;  %v1828_v57 = vpack.c.b16 %v1732_v47, %v1732_v47  ;;  %v1829_v59 = vpack.c.b16 %v1733_v51, %v1733_v51  ;;  %v11393_v63 = vld [vmem:[#allocation2 + $0xeb0] sm:$0xff] }
 0x1ad   :  { %7265 = vmatpush.bf16.msrb.mxu1 %v11354_v0  ;;  %7234 = vmatmul.bf16.vlgmr.msra.gmra.mxu2 %v1826_v4  ;;  %v11401_v0 = vld [vmem:[#allocation2 + $0xef0] sm:$0xff]  ;;  %v11400_v4 = vld [vmem:[#allocation2 + $0xee8] sm:$0xff] }
 0x1ae   :  { %7278 = vmatpush.bf16.msrb.mxu2 %v11362_v1  ;;  %7247 = vmatmul.bf16.vlgmr.msra.gmra.mxu3 %v1827_v6  ;;  %v11376_v1 = vld [vmem:[#allocation2 + $0xe28] sm:$0xff]  ;;  %v11409_v51 = vld [vmem:[#allocation2 + $0xf30] sm:$0xff] }
 0x1af   :  { %7291 = vmatpush.bf16.msrb.mxu3 %v11370_v2  ;;  %v11384_v2 = vld [vmem:[#allocation2 + $0xe68] sm:$0xff] }
 0x1b0   :  { %7253 = vmatpush.bf16.msrb.mxu0 %v11345_v7  ;;  %v7027_v27 = vpop.f32.mrf.mxu2  ;;  %v7003_v30 = vpop.f32.mrf.mxu0  ;;  %v11375_v7 = vld [vmem:[#allocation2 + $0xe20] sm:$0xff] }
 0x1b1   :  { %7266 = vmatpush.bf16.msrb.mxu1 %v11353_v8  ;;  %v7028_v28 = vadd.f32 %v7027_v27, %v7015_v22  ;;  %v7040_v29 = vpop.f32.mrf.mxu3  ;;  %v7016_v34 = vpop.f32.mrf.mxu1  ;;  %v11383_v8 = vld [vmem:[#allocation2 + $0xe60] sm:$0xff]  ;;  %v11373_v22 = vld [vmem:[#allocation2 + $0xe10] sm:$0xff]  ;;  %v11372_v27 = vld [vmem:[#allocation2 + $0xe08] sm:$0xff] }
 0x1b2   :  { %7279 = vmatpush.bf16.msrb.mxu2 %v11361_v9  ;;  %v11396_v30 = vld [vmem:[#allocation2 + $0xec8] sm:$0xff] }
 0x1b3   :  { %7292 = vmatpush.bf16.msrb.mxu3 %v11369_v10  ;;  %v11884_v31 = vadd.f32 %v7040_v29, %v7028_v28  ;;  %v11391_v10 = vld [vmem:[#allocation2 + $0xea0] sm:$0xff]  ;;  %v11380_v28 = vld [vmem:[#allocation2 + $0xe48] sm:$0xff] }
 0x1b4   :  { %7254 = vmatpush.bf16.msrb.mxu0 %v11344_v11  ;;  %v11399_v11 = vld [vmem:[#allocation2 + $0xee0] sm:$0xff]  ;;  %v11388_v29 = vld [vmem:[#allocation2 + $0xe88] sm:$0xff] }
 0x1b5   :  { %7267 = vmatpush.bf16.msrb.mxu1 %v11352_v12 }
 0x1b6   :  { %7280 = vmatpush.bf16.msrb.mxu2 %v11360_v13  ;;  %v11374_v13 = vld [vmem:[#allocation2 + $0xe18] sm:$0xff] }
 0x1b7   :  { %7293 = vmatpush.bf16.msrb.mxu3 %v11368_v14  ;;  %v11382_v14 = vld [vmem:[#allocation2 + $0xe58] sm:$0xff] }
 0x1b8   :  { %7255 = vmatpush.bf16.msrb.mxu0 %v11343_v17  ;;  %v7029_v43 = vpop.f32.mrf.mxu2 }
 0x1b9   :  { %7268 = vmatpush.bf16.msrb.mxu1 %v11351_v18  ;;  %v7042_v44 = vpop.f32.mrf.mxu3  ;;  %v11410_v43 = vld [vmem:[#allocation2 + $0xf38] sm:$0xff] }
 0x1ba   :  { %7281 = vmatpush.bf16.msrb.mxu2 %v11359_v20  ;;  %v11418_v44 = vld [vmem:[#allocation2 + $0xf78] sm:$0xff] }
 0x1bb   :  { %7294 = vmatpush.bf16.msrb.mxu3 %v11367_v21 }
 0x1bc   :  { %7256 = vmatpush.bf16.msrb.mxu0 %v11342_v23  ;;  %v11381_v23 = vld [vmem:[#allocation2 + $0xe50] sm:$0xff] }
 0x1bd   :  { %7269 = vmatpush.bf16.msrb.mxu1 %v11350_v24 }
 0x1be   :  { %7282 = vmatpush.bf16.msrb.mxu2 %v11358_v25  ;;  %v11389_v25 = vld [vmem:[#allocation2 + $0xe90] sm:$0xff] }
 0x1bf   :  { %7295 = vmatpush.bf16.msrb.mxu3 %v11366_v26  ;;  %v11397_v26 = vld [vmem:[#allocation2 + $0xed0] sm:$0xff] }
 0x1c0   :  { %7257 = vmatpush.bf16.msrb.mxu0 %v11341_v32  ;;  %v73_v32 = vld [vmem:[%s11983_s0 + $0xe8] sm:$0xff] }
 0x1c1   :  { %7270 = vmatpush.bf16.msrb.mxu1 %v11349_v33  ;;  %v1739_v42 = vunpack.c.h.b16 %v73_v32 }
 0x1c2   :  { %7283 = vmatpush.bf16.msrb.mxu2 %v11357_v35  ;;  %v11371_v35 = vld [vmem:[#allocation2 + $0xe00] sm:$0xff] }
 0x1c3   :  { %7296 = vmatpush.bf16.msrb.mxu3 %v11365_v36  ;;  %v11379_v36 = vld [vmem:[#allocation2 + $0xe40] sm:$0xff] }
 0x1c4   :  { %7258 = vmatpush.bf16.msrb.mxu0 %v11340_v37 }
 0x1c5   :  { %7271 = vmatpush.bf16.msrb.mxu1 %v11348_v38  ;;  %v1738_v38 = vunpack.c.l.b16 %v73_v32 }
 0x1c6   :  { %7284 = vmatpush.bf16.msrb.mxu2 %v11356_v39  ;;  %v11387_v39 = vld [vmem:[#allocation2 + $0xe80] sm:$0xff] }
 0x1c7   :  { %7297 = vmatpush.bf16.msrb.mxu3 %v11364_v40  ;;  %v11395_v40 = vld [vmem:[#allocation2 + $0xec0] sm:$0xff]  ;;  %v1834_v48 = vpack.c.b16 %v1738_v38, %v1738_v38 }
 0x1c8   :  { %7259 = vmatpush.bf16.msrb.mxu0 %v11339_v45  ;;  %v7053_v5 = vpop.f32.mrf.mxu0  ;;  %v11426_v45 = vld [vmem:[#allocation2 + $0xfb8] sm:$0xff] }
 0x1c9   :  { %7272 = vmatpush.bf16.msrb.mxu1 %v11347_v46  ;;  %v7054_v6 = vadd.f32 %v7053_v5, %v11884_v31  ;;  %v7066_v9 = vpop.f32.mrf.mxu1  ;;  %v72_v31 = vld [vmem:[%s11983_s0 + $0xe0] sm:$0xff]  ;;  %v11434_v46 = vld [vmem:[#allocation2 + $0xff8] sm:$0xff] }
 0x1ca   :  { %7285 = vmatpush.bf16.msrb.mxu2 %v11355_v49  ;;  %v1736_v37 = vunpack.c.l.b16 %v72_v31  ;;  %v1737_v41 = vunpack.c.h.b16 %v72_v31  ;;  %v11422_v5 = vld [vmem:[#allocation2 + $0xf98] sm:$0xff] }
 0x1cb   :  { %7298 = vmatpush.bf16.msrb.mxu3 %v11363_v50  ;;  %7260 = vmatmul.bf16.vlgmr.msrb.gmra.mxu0 %v1828_v57  ;;  %v7067_v12 = vadd.f32 %v7066_v9, %v7054_v6  ;;  %v1835_v50 = vpack.c.b16 %v1739_v42, %v1739_v42  ;;  %v11424_v57 = vld [vmem:[#allocation2 + $0xfa8] sm:$0xff]  ;;  %v11430_v6 = vld [vmem:[#allocation2 + $0xfd8] sm:$0xff]  ;;  %v11449_v42 = vld [vmem:[#allocation2 + $0x1070] sm:$0xff] }
 0x1cc   :  { %7304 = vmatpush.bf16.msra.mxu0 %v11378_v53  ;;  %7273 = vmatmul.bf16.vlgmr.msrb.gmra.mxu1 %v1829_v59  ;;  %v1832_v47 = vpack.c.b16 %v1736_v37, %v1736_v37  ;;  %v1833_v49 = vpack.c.b16 %v1737_v41, %v1737_v41  ;;  %v11425_v53 = vld [vmem:[#allocation2 + $0xfb0] sm:$0xff] }
 0x1cd   :  { %7317 = vmatpush.bf16.msra.mxu1 %v11386_v54  ;;  %7286 = vmatmul.bf16.vlgmr.msrb.gmra.mxu2 %v1830_v58  ;;  %v11433_v54 = vld [vmem:[#allocation2 + $0xff0] sm:$0xff]  ;;  %v11432_v58 = vld [vmem:[#allocation2 + $0xfe8] sm:$0xff] }
 0x1ce   :  { %7330 = vmatpush.bf16.msra.mxu2 %v11394_v55  ;;  %7299 = vmatmul.bf16.vlgmr.msrb.gmra.mxu3 %v1831_v60  ;;  %v11408_v55 = vld [vmem:[#allocation2 + $0xf28] sm:$0xff]  ;;  %v11441_v41 = vld [vmem:[#allocation2 + $0x1030] sm:$0xff] }
 0x1cf   :  { %7343 = vmatpush.bf16.msra.mxu3 %v11402_v56  ;;  %v11416_v56 = vld [vmem:[#allocation2 + $0xf68] sm:$0xff] }
 0x1d0   :  { %7305 = vmatpush.bf16.msra.mxu0 %v11377_v61  ;;  %v7079_v17 = vpop.f32.mrf.mxu2  ;;  %v7055_v20 = vpop.f32.mrf.mxu0  ;;  %v11407_v61 = vld [vmem:[#allocation2 + $0xf20] sm:$0xff] }
 0x1d1   :  { %7318 = vmatpush.bf16.msra.mxu1 %v11385_v62  ;;  %v7080_v18 = vadd.f32 %v7079_v17, %v7067_v12  ;;  %v7092_v19 = vpop.f32.mrf.mxu3  ;;  %v7068_v24 = vpop.f32.mrf.mxu1  ;;  %v11415_v62 = vld [vmem:[#allocation2 + $0xf60] sm:$0xff]  ;;  %v11405_v12 = vld [vmem:[#allocation2 + $0xf10] sm:$0xff]  ;;  %v11404_v17 = vld [vmem:[#allocation2 + $0xf08] sm:$0xff] }
 0x1d2   :  { %7331 = vmatpush.bf16.msra.mxu2 %v11393_v63  ;;  %v11428_v20 = vld [vmem:[#allocation2 + $0xfc8] sm:$0xff] }
 0x1d3   :  { %7344 = vmatpush.bf16.msra.mxu3 %v11401_v0  ;;  %v11893_v21 = vadd.f32 %v7092_v19, %v7080_v18  ;;  %v11423_v0 = vld [vmem:[#allocation2 + $0xfa0] sm:$0xff]  ;;  %v11412_v18 = vld [vmem:[#allocation2 + $0xf48] sm:$0xff] }
 0x1d4   :  { %7306 = vmatpush.bf16.msra.mxu0 %v11376_v1  ;;  %v11431_v1 = vld [vmem:[#allocation2 + $0xfe0] sm:$0xff]  ;;  %v11420_v19 = vld [vmem:[#allocation2 + $0xf88] sm:$0xff] }
 0x1d5   :  { %7319 = vmatpush.bf16.msra.mxu1 %v11384_v2 }
 0x1d6   :  { %7332 = vmatpush.bf16.msra.mxu2 %v11392_v3  ;;  %v11406_v3 = vld [vmem:[#allocation2 + $0xf18] sm:$0xff] }
 0x1d7   :  { %7345 = vmatpush.bf16.msra.mxu3 %v11400_v4  ;;  %v11414_v4 = vld [vmem:[#allocation2 + $0xf58] sm:$0xff] }
 0x1d8   :  { %7307 = vmatpush.bf16.msra.mxu0 %v11375_v7  ;;  %v7081_v33 = vpop.f32.mrf.mxu2 }
 0x1d9   :  { %7320 = vmatpush.bf16.msra.mxu1 %v11383_v8  ;;  %v7094_v34 = vpop.f32.mrf.mxu3  ;;  %v11442_v33 = vld [vmem:[#allocation2 + $0x1038] sm:$0xff] }
 0x1da   :  { %7333 = vmatpush.bf16.msra.mxu2 %v11391_v10  ;;  %v11450_v34 = vld [vmem:[#allocation2 + $0x1078] sm:$0xff] }
 0x1db   :  { %7346 = vmatpush.bf16.msra.mxu3 %v11399_v11 }
 0x1dc   :  { %7308 = vmatpush.bf16.msra.mxu0 %v11374_v13  ;;  %v11413_v13 = vld [vmem:[#allocation2 + $0xf50] sm:$0xff] }
 0x1dd   :  { %7321 = vmatpush.bf16.msra.mxu1 %v11382_v14 }
 0x1de   :  { %7334 = vmatpush.bf16.msra.mxu2 %v11390_v15  ;;  %v11421_v15 = vld [vmem:[#allocation2 + $0xf90] sm:$0xff] }
 0x1df   :  { %7347 = vmatpush.bf16.msra.mxu3 %v11398_v16  ;;  %v11429_v16 = vld [vmem:[#allocation2 + $0xfd0] sm:$0xff] }
 0x1e0   :  { %7309 = vmatpush.bf16.msra.mxu0 %v11373_v22  ;;  %v75_v22 = vld [vmem:[%s11983_s0 + $0xf8] sm:$0xff] }
 0x1e1   :  { %7322 = vmatpush.bf16.msra.mxu1 %v11381_v23  ;;  %v1743_v32 = vunpack.c.h.b16 %v75_v22 }
 0x1e2   :  { %7335 = vmatpush.bf16.msra.mxu2 %v11389_v25  ;;  %v11403_v25 = vld [vmem:[#allocation2 + $0xf00] sm:$0xff] }
 0x1e3   :  { %7348 = vmatpush.bf16.msra.mxu3 %v11397_v26  ;;  %v11411_v26 = vld [vmem:[#allocation2 + $0xf40] sm:$0xff] }
 0x1e4   :  { %7310 = vmatpush.bf16.msra.mxu0 %v11372_v27 }
 0x1e5   :  { %7323 = vmatpush.bf16.msra.mxu1 %v11380_v28  ;;  %v1742_v28 = vunpack.c.l.b16 %v75_v22 }
 0x1e6   :  { %7336 = vmatpush.bf16.msra.mxu2 %v11388_v29  ;;  %v11419_v29 = vld [vmem:[#allocation2 + $0xf80] sm:$0xff] }
 0x1e7   :  { %7349 = vmatpush.bf16.msra.mxu3 %v11396_v30  ;;  %v11427_v30 = vld [vmem:[#allocation2 + $0xfc0] sm:$0xff]  ;;  %v1838_v38 = vpack.c.b16 %v1742_v28, %v1742_v28 }
 0x1e8   :  { %7311 = vmatpush.bf16.msra.mxu0 %v11371_v35  ;;  %v7105_v59 = vpop.f32.mrf.mxu0  ;;  %v11458_v35 = vld [vmem:[#allocation2 + $0x10b8] sm:$0xff] }
 0x1e9   :  { %7324 = vmatpush.bf16.msra.mxu1 %v11379_v36  ;;  %v7106_v60 = vadd.f32 %v7105_v59, %v11893_v21  ;;  %v7118_v63 = vpop.f32.mrf.mxu1  ;;  %v74_v21 = vld [vmem:[%s11983_s0 + $0xf0] sm:$0xff]  ;;  %v11466_v36 = vld [vmem:[#allocation2 + $0x10f8] sm:$0xff] }
 0x1ea   :  { %7337 = vmatpush.bf16.msra.mxu2 %v11387_v39  ;;  %v1740_v27 = vunpack.c.l.b16 %v74_v21  ;;  %v1741_v31 = vunpack.c.h.b16 %v74_v21  ;;  %v11454_v59 = vld [vmem:[#allocation2 + $0x1098] sm:$0xff] }
 0x1eb   :  { %7350 = vmatpush.bf16.msra.mxu3 %v11395_v40  ;;  %7312 = vmatmul.bf16.vlgmr.msra.gmra.mxu0 %v1832_v47  ;;  %v7119_v2 = vadd.f32 %v7118_v63, %v7106_v60  ;;  %v1839_v40 = vpack.c.b16 %v1743_v32, %v1743_v32  ;;  %v11456_v47 = vld [vmem:[#allocation2 + $0x10a8] sm:$0xff]  ;;  %v11462_v60 = vld [vmem:[#allocation2 + $0x10d8] sm:$0xff]  ;;  %v11481_v32 = vld [vmem:[#allocation2 + $0x1170] sm:$0xff] }
 0x1ec   :  { %7356 = vmatpush.bf16.msrb.mxu0 %v11410_v43  ;;  %7325 = vmatmul.bf16.vlgmr.msra.gmra.mxu1 %v1833_v49  ;;  %v1836_v37 = vpack.c.b16 %v1740_v27, %v1740_v27  ;;  %v1837_v39 = vpack.c.b16 %v1741_v31, %v1741_v31  ;;  %v11457_v43 = vld [vmem:[#allocation2 + $0x10b0] sm:$0xff] }
 0x1ed   :  { %7369 = vmatpush.bf16.msrb.mxu1 %v11418_v44  ;;  %7338 = vmatmul.bf16.vlgmr.msra.gmra.mxu2 %v1834_v48  ;;  %v11465_v44 = vld [vmem:[#allocation2 + $0x10f0] sm:$0xff]  ;;  %v11464_v48 = vld [vmem:[#allocation2 + $0x10e8] sm:$0xff] }
 0x1ee   :  { %7382 = vmatpush.bf16.msrb.mxu2 %v11426_v45  ;;  %7351 = vmatmul.bf16.vlgmr.msra.gmra.mxu3 %v1835_v50  ;;  %v11440_v45 = vld [vmem:[#allocation2 + $0x1028] sm:$0xff]  ;;  %v11473_v31 = vld [vmem:[#allocation2 + $0x1130] sm:$0xff] }
 0x1ef   :  { %7395 = vmatpush.bf16.msrb.mxu3 %v11434_v46  ;;  %v11448_v46 = vld [vmem:[#allocation2 + $0x1068] sm:$0xff] }
 0x1f0   :  { %7357 = vmatpush.bf16.msrb.mxu0 %v11409_v51  ;;  %v7131_v7 = vpop.f32.mrf.mxu2  ;;  %v7107_v10 = vpop.f32.mrf.mxu0  ;;  %v11439_v51 = vld [vmem:[#allocation2 + $0x1020] sm:$0xff] }
 0x1f1   :  { %7370 = vmatpush.bf16.msrb.mxu1 %v11417_v52  ;;  %v7132_v8 = vadd.f32 %v7131_v7, %v7119_v2  ;;  %v7144_v9 = vpop.f32.mrf.mxu3  ;;  %v7120_v14 = vpop.f32.mrf.mxu1  ;;  %v11447_v52 = vld [vmem:[#allocation2 + $0x1060] sm:$0xff]  ;;  %v11437_v2 = vld [vmem:[#allocation2 + $0x1010] sm:$0xff]  ;;  %v11436_v7 = vld [vmem:[#allocation2 + $0x1008] sm:$0xff] }
 0x1f2   :  { %7383 = vmatpush.bf16.msrb.mxu2 %v11425_v53  ;;  %v11460_v10 = vld [vmem:[#allocation2 + $0x10c8] sm:$0xff] }
 0x1f3   :  { %7396 = vmatpush.bf16.msrb.mxu3 %v11433_v54  ;;  %v11902_v11 = vadd.f32 %v7144_v9, %v7132_v8  ;;  %v11455_v54 = vld [vmem:[#allocation2 + $0x10a0] sm:$0xff]  ;;  %v11444_v8 = vld [vmem:[#allocation2 + $0x1048] sm:$0xff] }
 0x1f4   :  { %7358 = vmatpush.bf16.msrb.mxu0 %v11408_v55  ;;  %v11463_v55 = vld [vmem:[#allocation2 + $0x10e0] sm:$0xff]  ;;  %v11452_v9 = vld [vmem:[#allocation2 + $0x1088] sm:$0xff] }
 0x1f5   :  { %7371 = vmatpush.bf16.msrb.mxu1 %v11416_v56 }
 0x1f6   :  { %7384 = vmatpush.bf16.msrb.mxu2 %v11424_v57  ;;  %v11438_v57 = vld [vmem:[#allocation2 + $0x1018] sm:$0xff] }
 0x1f7   :  { %7397 = vmatpush.bf16.msrb.mxu3 %v11432_v58  ;;  %v11446_v58 = vld [vmem:[#allocation2 + $0x1058] sm:$0xff] }
 0x1f8   :  { %7359 = vmatpush.bf16.msrb.mxu0 %v11407_v61  ;;  %v7133_v23 = vpop.f32.mrf.mxu2 }
 0x1f9   :  { %7372 = vmatpush.bf16.msrb.mxu1 %v11415_v62  ;;  %v7146_v24 = vpop.f32.mrf.mxu3  ;;  %v11474_v23 = vld [vmem:[#allocation2 + $0x1138] sm:$0xff] }
 0x1fa   :  { %7385 = vmatpush.bf16.msrb.mxu2 %v11423_v0  ;;  %v11482_v24 = vld [vmem:[#allocation2 + $0x1178] sm:$0xff] }
 0x1fb   :  { %7398 = vmatpush.bf16.msrb.mxu3 %v11431_v1 }
 0x1fc   :  { %7360 = vmatpush.bf16.msrb.mxu0 %v11406_v3  ;;  %v11445_v3 = vld [vmem:[#allocation2 + $0x1050] sm:$0xff] }
 0x1fd   :  { %7373 = vmatpush.bf16.msrb.mxu1 %v11414_v4 }
 0x1fe   :  { %7386 = vmatpush.bf16.msrb.mxu2 %v11422_v5  ;;  %v11453_v5 = vld [vmem:[#allocation2 + $0x1090] sm:$0xff] }
 0x1ff   :  { %7399 = vmatpush.bf16.msrb.mxu3 %v11430_v6  ;;  %v11461_v6 = vld [vmem:[#allocation2 + $0x10d0] sm:$0xff] }
 0x200   :  { %7361 = vmatpush.bf16.msrb.mxu0 %v11405_v12  ;;  %v77_v12 = vld [vmem:[%s11983_s0 + $0x108] sm:$0xff] }
 0x201   :  { %7374 = vmatpush.bf16.msrb.mxu1 %v11413_v13  ;;  %v1747_v22 = vunpack.c.h.b16 %v77_v12 }
 0x202   :  { %7387 = vmatpush.bf16.msrb.mxu2 %v11421_v15  ;;  %v11435_v15 = vld [vmem:[#allocation2 + $0x1000] sm:$0xff] }
 0x203   :  { %7400 = vmatpush.bf16.msrb.mxu3 %v11429_v16  ;;  %v11443_v16 = vld [vmem:[#allocation2 + $0x1040] sm:$0xff] }
 0x204   :  { %7362 = vmatpush.bf16.msrb.mxu0 %v11404_v17 }
 0x205   :  { %7375 = vmatpush.bf16.msrb.mxu1 %v11412_v18  ;;  %v1746_v18 = vunpack.c.l.b16 %v77_v12 }
 0x206   :  { %7388 = vmatpush.bf16.msrb.mxu2 %v11420_v19  ;;  %v11451_v19 = vld [vmem:[#allocation2 + $0x1080] sm:$0xff] }
 0x207   :  { %7401 = vmatpush.bf16.msrb.mxu3 %v11428_v20  ;;  %v11459_v20 = vld [vmem:[#allocation2 + $0x10c0] sm:$0xff]  ;;  %v1842_v28 = vpack.c.b16 %v1746_v18, %v1746_v18 }
 0x208   :  { %7363 = vmatpush.bf16.msrb.mxu0 %v11403_v25  ;;  %v7157_v49 = vpop.f32.mrf.mxu0  ;;  %v11490_v25 = vld [vmem:[#allocation2 + $0x11b8] sm:$0xff] }
 0x209   :  { %7376 = vmatpush.bf16.msrb.mxu1 %v11411_v26  ;;  %v7158_v50 = vadd.f32 %v7157_v49, %v11902_v11  ;;  %v7170_v53 = vpop.f32.mrf.mxu1  ;;  %v76_v11 = vld [vmem:[%s11983_s0 + $0x100] sm:$0xff]  ;;  %v11498_v26 = vld [vmem:[#allocation2 + $0x11f8] sm:$0xff] }
 0x20a   :  { %7389 = vmatpush.bf16.msrb.mxu2 %v11419_v29  ;;  %v1744_v17 = vunpack.c.l.b16 %v76_v11  ;;  %v1745_v21 = vunpack.c.h.b16 %v76_v11  ;;  %v11486_v49 = vld [vmem:[#allocation2 + $0x1198] sm:$0xff] }
 0x20b   :  { %7402 = vmatpush.bf16.msrb.mxu3 %v11427_v30  ;;  %7364 = vmatmul.bf16.vlgmr.msrb.gmra.mxu0 %v1836_v37  ;;  %v7171_v56 = vadd.f32 %v7170_v53, %v7158_v50  ;;  %v1843_v30 = vpack.c.b16 %v1747_v22, %v1747_v22  ;;  %v11488_v37 = vld [vmem:[#allocation2 + $0x11a8] sm:$0xff]  ;;  %v11494_v50 = vld [vmem:[#allocation2 + $0x11d8] sm:$0xff]  ;;  %v11513_v22 = vld [vmem:[#allocation2 + $0x1270] sm:$0xff] }
 0x20c   :  { %7408 = vmatpush.bf16.msra.mxu0 %v11442_v33  ;;  %7377 = vmatmul.bf16.vlgmr.msrb.gmra.mxu1 %v1837_v39  ;;  %v1840_v27 = vpack.c.b16 %v1744_v17, %v1744_v17  ;;  %v1841_v29 = vpack.c.b16 %v1745_v21, %v1745_v21  ;;  %v11489_v33 = vld [vmem:[#allocation2 + $0x11b0] sm:$0xff] }
 0x20d   :  { %7421 = vmatpush.bf16.msra.mxu1 %v11450_v34  ;;  %7390 = vmatmul.bf16.vlgmr.msrb.gmra.mxu2 %v1838_v38  ;;  %v11497_v34 = vld [vmem:[#allocation2 + $0x11f0] sm:$0xff]  ;;  %v11496_v38 = vld [vmem:[#allocation2 + $0x11e8] sm:$0xff] }
 0x20e   :  { %7434 = vmatpush.bf16.msra.mxu2 %v11458_v35  ;;  %7403 = vmatmul.bf16.vlgmr.msrb.gmra.mxu3 %v1839_v40  ;;  %v11472_v35 = vld [vmem:[#allocation2 + $0x1128] sm:$0xff]  ;;  %v11505_v21 = vld [vmem:[#allocation2 + $0x1230] sm:$0xff] }
 0x20f   :  { %7447 = vmatpush.bf16.msra.mxu3 %v11466_v36  ;;  %v11480_v36 = vld [vmem:[#allocation2 + $0x1168] sm:$0xff] }
 0x210   :  { %7409 = vmatpush.bf16.msra.mxu0 %v11441_v41  ;;  %v7183_v61 = vpop.f32.mrf.mxu2  ;;  %v7159_v0 = vpop.f32.mrf.mxu0  ;;  %v11471_v41 = vld [vmem:[#allocation2 + $0x1120] sm:$0xff] }
 0x211   :  { %7422 = vmatpush.bf16.msra.mxu1 %v11449_v42  ;;  %v7184_v62 = vadd.f32 %v7183_v61, %v7171_v56  ;;  %v7196_v63 = vpop.f32.mrf.mxu3  ;;  %v7172_v4 = vpop.f32.mrf.mxu1  ;;  %v11479_v42 = vld [vmem:[#allocation2 + $0x1160] sm:$0xff]  ;;  %v11469_v56 = vld [vmem:[#allocation2 + $0x1110] sm:$0xff]  ;;  %v11468_v61 = vld [vmem:[#allocation2 + $0x1108] sm:$0xff] }
 0x212   :  { %7435 = vmatpush.bf16.msra.mxu2 %v11457_v43  ;;  %v11492_v0 = vld [vmem:[#allocation2 + $0x11c8] sm:$0xff] }
 0x213   :  { %7448 = vmatpush.bf16.msra.mxu3 %v11465_v44  ;;  %v11911_v1 = vadd.f32 %v7196_v63, %v7184_v62  ;;  %v11487_v44 = vld [vmem:[#allocation2 + $0x11a0] sm:$0xff]  ;;  %v11476_v62 = vld [vmem:[#allocation2 + $0x1148] sm:$0xff] }
 0x214   :  { %7410 = vmatpush.bf16.msra.mxu0 %v11440_v45  ;;  %v11495_v45 = vld [vmem:[#allocation2 + $0x11e0] sm:$0xff]  ;;  %v11484_v63 = vld [vmem:[#allocation2 + $0x1188] sm:$0xff] }
 0x215   :  { %7423 = vmatpush.bf16.msra.mxu1 %v11448_v46 }
 0x216   :  { %7436 = vmatpush.bf16.msra.mxu2 %v11456_v47  ;;  %v11470_v47 = vld [vmem:[#allocation2 + $0x1118] sm:$0xff] }
 0x217   :  { %7449 = vmatpush.bf16.msra.mxu3 %v11464_v48  ;;  %v11478_v48 = vld [vmem:[#allocation2 + $0x1158] sm:$0xff] }
 0x218   :  { %7411 = vmatpush.bf16.msra.mxu0 %v11439_v51  ;;  %v7185_v13 = vpop.f32.mrf.mxu2 }
 0x219   :  { %7424 = vmatpush.bf16.msra.mxu1 %v11447_v52  ;;  %v7198_v14 = vpop.f32.mrf.mxu3  ;;  %v11506_v13 = vld [vmem:[#allocation2 + $0x1238] sm:$0xff] }
 0x21a   :  { %7437 = vmatpush.bf16.msra.mxu2 %v11455_v54  ;;  %v11514_v14 = vld [vmem:[#allocation2 + $0x1278] sm:$0xff] }
 0x21b   :  { %7450 = vmatpush.bf16.msra.mxu3 %v11463_v55 }
 0x21c   :  { %7412 = vmatpush.bf16.msra.mxu0 %v11438_v57  ;;  %v11477_v57 = vld [vmem:[#allocation2 + $0x1150] sm:$0xff] }
 0x21d   :  { %7425 = vmatpush.bf16.msra.mxu1 %v11446_v58 }
 0x21e   :  { %7438 = vmatpush.bf16.msra.mxu2 %v11454_v59  ;;  %v11485_v59 = vld [vmem:[#allocation2 + $0x1190] sm:$0xff] }
 0x21f   :  { %7451 = vmatpush.bf16.msra.mxu3 %v11462_v60  ;;  %v11493_v60 = vld [vmem:[#allocation2 + $0x11d0] sm:$0xff] }
 0x220   :  { %7413 = vmatpush.bf16.msra.mxu0 %v11437_v2  ;;  %v79_v2 = vld [vmem:[%s11983_s0 + $0x118] sm:$0xff] }
 0x221   :  { %7426 = vmatpush.bf16.msra.mxu1 %v11445_v3  ;;  %v1751_v12 = vunpack.c.h.b16 %v79_v2 }
 0x222   :  { %7439 = vmatpush.bf16.msra.mxu2 %v11453_v5  ;;  %v11467_v5 = vld [vmem:[#allocation2 + $0x1100] sm:$0xff] }
 0x223   :  { %7452 = vmatpush.bf16.msra.mxu3 %v11461_v6  ;;  %v11475_v6 = vld [vmem:[#allocation2 + $0x1140] sm:$0xff] }
 0x224   :  { %7414 = vmatpush.bf16.msra.mxu0 %v11436_v7 }
 0x225   :  { %7427 = vmatpush.bf16.msra.mxu1 %v11444_v8  ;;  %v1750_v8 = vunpack.c.l.b16 %v79_v2 }
 0x226   :  { %7440 = vmatpush.bf16.msra.mxu2 %v11452_v9  ;;  %v11483_v9 = vld [vmem:[#allocation2 + $0x1180] sm:$0xff] }
 0x227   :  { %7453 = vmatpush.bf16.msra.mxu3 %v11460_v10  ;;  %v11491_v10 = vld [vmem:[#allocation2 + $0x11c0] sm:$0xff]  ;;  %v1846_v18 = vpack.c.b16 %v1750_v8, %v1750_v8 }
 0x228   :  { %7415 = vmatpush.bf16.msra.mxu0 %v11435_v15  ;;  %v7209_v39 = vpop.f32.mrf.mxu0  ;;  %v11522_v15 = vld [vmem:[#allocation2 + $0x12b8] sm:$0xff] }
 0x229   :  { %7428 = vmatpush.bf16.msra.mxu1 %v11443_v16  ;;  %v7210_v40 = vadd.f32 %v7209_v39, %v11911_v1  ;;  %v7222_v43 = vpop.f32.mrf.mxu1  ;;  %v78_v1 = vld [vmem:[%s11983_s0 + $0x110] sm:$0xff]  ;;  %v11530_v16 = vld [vmem:[#allocation2 + $0x12f8] sm:$0xff] }
 0x22a   :  { %7441 = vmatpush.bf16.msra.mxu2 %v11451_v19  ;;  %v1748_v7 = vunpack.c.l.b16 %v78_v1  ;;  %v1749_v11 = vunpack.c.h.b16 %v78_v1  ;;  %v11518_v39 = vld [vmem:[#allocation2 + $0x1298] sm:$0xff] }
 0x22b   :  { %7454 = vmatpush.bf16.msra.mxu3 %v11459_v20  ;;  %7416 = vmatmul.bf16.vlgmr.msra.gmra.mxu0 %v1840_v27  ;;  %v7223_v46 = vadd.f32 %v7222_v43, %v7210_v40  ;;  %v1847_v20 = vpack.c.b16 %v1751_v12, %v1751_v12  ;;  %v11520_v27 = vld [vmem:[#allocation2 + $0x12a8] sm:$0xff]  ;;  %v11526_v40 = vld [vmem:[#allocation2 + $0x12d8] sm:$0xff]  ;;  %v11545_v12 = vld [vmem:[#allocation2 + $0x1370] sm:$0xff] }
 0x22c   :  { %7460 = vmatpush.bf16.msrb.mxu0 %v11474_v23  ;;  %7429 = vmatmul.bf16.vlgmr.msra.gmra.mxu1 %v1841_v29  ;;  %v1844_v17 = vpack.c.b16 %v1748_v7, %v1748_v7  ;;  %v1845_v19 = vpack.c.b16 %v1749_v11, %v1749_v11  ;;  %v11521_v23 = vld [vmem:[#allocation2 + $0x12b0] sm:$0xff] }
 0x22d   :  { %7473 = vmatpush.bf16.msrb.mxu1 %v11482_v24  ;;  %7442 = vmatmul.bf16.vlgmr.msra.gmra.mxu2 %v1842_v28  ;;  %v11529_v24 = vld [vmem:[#allocation2 + $0x12f0] sm:$0xff]  ;;  %v11528_v28 = vld [vmem:[#allocation2 + $0x12e8] sm:$0xff] }
 0x22e   :  { %7486 = vmatpush.bf16.msrb.mxu2 %v11490_v25  ;;  %7455 = vmatmul.bf16.vlgmr.msra.gmra.mxu3 %v1843_v30  ;;  %v11504_v25 = vld [vmem:[#allocation2 + $0x1228] sm:$0xff]  ;;  %v11537_v11 = vld [vmem:[#allocation2 + $0x1330] sm:$0xff] }
 0x22f   :  { %7499 = vmatpush.bf16.msrb.mxu3 %v11498_v26  ;;  %v11512_v26 = vld [vmem:[#allocation2 + $0x1268] sm:$0xff] }
 0x230   :  { %7461 = vmatpush.bf16.msrb.mxu0 %v11473_v31  ;;  %v7235_v51 = vpop.f32.mrf.mxu2  ;;  %v7211_v54 = vpop.f32.mrf.mxu0  ;;  %v11503_v31 = vld [vmem:[#allocation2 + $0x1220] sm:$0xff] }
 0x231   :  { %7474 = vmatpush.bf16.msrb.mxu1 %v11481_v32  ;;  %v7236_v52 = vadd.f32 %v7235_v51, %v7223_v46  ;;  %v7248_v53 = vpop.f32.mrf.mxu3  ;;  %v7224_v58 = vpop.f32.mrf.mxu1  ;;  %v11511_v32 = vld [vmem:[#allocation2 + $0x1260] sm:$0xff]  ;;  %v11501_v46 = vld [vmem:[#allocation2 + $0x1210] sm:$0xff]  ;;  %v11500_v51 = vld [vmem:[#allocation2 + $0x1208] sm:$0xff] }
 0x232   :  { %7487 = vmatpush.bf16.msrb.mxu2 %v11489_v33  ;;  %v11524_v54 = vld [vmem:[#allocation2 + $0x12c8] sm:$0xff] }
 0x233   :  { %7500 = vmatpush.bf16.msrb.mxu3 %v11497_v34  ;;  %v11920_v55 = vadd.f32 %v7248_v53, %v7236_v52  ;;  %v11519_v34 = vld [vmem:[#allocation2 + $0x12a0] sm:$0xff]  ;;  %v11508_v52 = vld [vmem:[#allocation2 + $0x1248] sm:$0xff] }
 0x234   :  { %7462 = vmatpush.bf16.msrb.mxu0 %v11472_v35  ;;  %v11527_v35 = vld [vmem:[#allocation2 + $0x12e0] sm:$0xff]  ;;  %v11516_v53 = vld [vmem:[#allocation2 + $0x1288] sm:$0xff] }
 0x235   :  { %7475 = vmatpush.bf16.msrb.mxu1 %v11480_v36 }
 0x236   :  { %7488 = vmatpush.bf16.msrb.mxu2 %v11488_v37  ;;  %v11502_v37 = vld [vmem:[#allocation2 + $0x1218] sm:$0xff] }
 0x237   :  { %7501 = vmatpush.bf16.msrb.mxu3 %v11496_v38  ;;  %v11510_v38 = vld [vmem:[#allocation2 + $0x1258] sm:$0xff] }
 0x238   :  { %7463 = vmatpush.bf16.msrb.mxu0 %v11471_v41  ;;  %v7237_v3 = vpop.f32.mrf.mxu2 }
 0x239   :  { %7476 = vmatpush.bf16.msrb.mxu1 %v11479_v42  ;;  %v7250_v4 = vpop.f32.mrf.mxu3  ;;  %v11538_v3 = vld [vmem:[#allocation2 + $0x1338] sm:$0xff] }
 0x23a   :  { %7489 = vmatpush.bf16.msrb.mxu2 %v11487_v44  ;;  %v11546_v4 = vld [vmem:[#allocation2 + $0x1378] sm:$0xff] }
 0x23b   :  { %7502 = vmatpush.bf16.msrb.mxu3 %v11495_v45 }
 0x23c   :  { %7464 = vmatpush.bf16.msrb.mxu0 %v11470_v47  ;;  %v11509_v47 = vld [vmem:[#allocation2 + $0x1250] sm:$0xff] }
 0x23d   :  { %7477 = vmatpush.bf16.msrb.mxu1 %v11478_v48 }
 0x23e   :  { %7490 = vmatpush.bf16.msrb.mxu2 %v11486_v49  ;;  %v11517_v49 = vld [vmem:[#allocation2 + $0x1290] sm:$0xff] }
 0x23f   :  { %7503 = vmatpush.bf16.msrb.mxu3 %v11494_v50  ;;  %v11525_v50 = vld [vmem:[#allocation2 + $0x12d0] sm:$0xff] }
 0x240   :  { %7465 = vmatpush.bf16.msrb.mxu0 %v11469_v56  ;;  %v81_v56 = vld [vmem:[%s11983_s0 + $0x128] sm:$0xff] }
 0x241   :  { %7478 = vmatpush.bf16.msrb.mxu1 %v11477_v57  ;;  %v1755_v2 = vunpack.c.h.b16 %v81_v56 }
 0x242   :  { %7491 = vmatpush.bf16.msrb.mxu2 %v11485_v59  ;;  %v11499_v59 = vld [vmem:[#allocation2 + $0x1200] sm:$0xff] }
 0x243   :  { %7504 = vmatpush.bf16.msrb.mxu3 %v11493_v60  ;;  %v11507_v60 = vld [vmem:[#allocation2 + $0x1240] sm:$0xff] }
 0x244   :  { %7466 = vmatpush.bf16.msrb.mxu0 %v11468_v61 }
 0x245   :  { %7479 = vmatpush.bf16.msrb.mxu1 %v11476_v62  ;;  %v1754_v62 = vunpack.c.l.b16 %v81_v56 }
 0x246   :  { %7492 = vmatpush.bf16.msrb.mxu2 %v11484_v63  ;;  %v11515_v63 = vld [vmem:[#allocation2 + $0x1280] sm:$0xff] }
 0x247   :  { %7505 = vmatpush.bf16.msrb.mxu3 %v11492_v0  ;;  %v11523_v0 = vld [vmem:[#allocation2 + $0x12c0] sm:$0xff]  ;;  %v1850_v8 = vpack.c.b16 %v1754_v62, %v1754_v62 }
 0x248   :  { %7467 = vmatpush.bf16.msrb.mxu0 %v11467_v5  ;;  %v7261_v29 = vpop.f32.mrf.mxu0  ;;  %v11554_v5 = vld [vmem:[#allocation2 + $0x13b8] sm:$0xff] }
 0x249   :  { %7480 = vmatpush.bf16.msrb.mxu1 %v11475_v6  ;;  %v7262_v30 = vadd.f32 %v7261_v29, %v11920_v55  ;;  %v7274_v33 = vpop.f32.mrf.mxu1  ;;  %v80_v55 = vld [vmem:[%s11983_s0 + $0x120] sm:$0xff]  ;;  %v11562_v6 = vld [vmem:[#allocation2 + $0x13f8] sm:$0xff] }
 0x24a   :  { %7493 = vmatpush.bf16.msrb.mxu2 %v11483_v9  ;;  %v1752_v61 = vunpack.c.l.b16 %v80_v55  ;;  %v1753_v1 = vunpack.c.h.b16 %v80_v55  ;;  %v11550_v29 = vld [vmem:[#allocation2 + $0x1398] sm:$0xff] }
 0x24b   :  { %7506 = vmatpush.bf16.msrb.mxu3 %v11491_v10  ;;  %7468 = vmatmul.bf16.vlgmr.msrb.gmra.mxu0 %v1844_v17  ;;  %v7275_v36 = vadd.f32 %v7274_v33, %v7262_v30  ;;  %v1851_v10 = vpack.c.b16 %v1755_v2, %v1755_v2  ;;  %v11552_v17 = vld [vmem:[#allocation2 + $0x13a8] sm:$0xff]  ;;  %v11558_v30 = vld [vmem:[#allocation2 + $0x13d8] sm:$0xff]  ;;  %v11577_v2 = vld [vmem:[#allocation2 + $0x1470] sm:$0xff] }
 0x24c   :  { %7512 = vmatpush.bf16.msra.mxu0 %v11506_v13  ;;  %7481 = vmatmul.bf16.vlgmr.msrb.gmra.mxu1 %v1845_v19  ;;  %v1848_v7 = vpack.c.b16 %v1752_v61, %v1752_v61  ;;  %v1849_v9 = vpack.c.b16 %v1753_v1, %v1753_v1  ;;  %v11553_v13 = vld [vmem:[#allocation2 + $0x13b0] sm:$0xff] }
 0x24d   :  { %7525 = vmatpush.bf16.msra.mxu1 %v11514_v14  ;;  %7494 = vmatmul.bf16.vlgmr.msrb.gmra.mxu2 %v1846_v18  ;;  %v11561_v14 = vld [vmem:[#allocation2 + $0x13f0] sm:$0xff]  ;;  %v11560_v18 = vld [vmem:[#allocation2 + $0x13e8] sm:$0xff] }
 0x24e   :  { %7538 = vmatpush.bf16.msra.mxu2 %v11522_v15  ;;  %7507 = vmatmul.bf16.vlgmr.msrb.gmra.mxu3 %v1847_v20  ;;  %v11536_v15 = vld [vmem:[#allocation2 + $0x1328] sm:$0xff]  ;;  %v11569_v1 = vld [vmem:[#allocation2 + $0x1430] sm:$0xff] }
 0x24f   :  { %7551 = vmatpush.bf16.msra.mxu3 %v11530_v16  ;;  %v11544_v16 = vld [vmem:[#allocation2 + $0x1368] sm:$0xff] }
 0x250   :  { %7513 = vmatpush.bf16.msra.mxu0 %v11505_v21  ;;  %v7287_v41 = vpop.f32.mrf.mxu2  ;;  %v7263_v44 = vpop.f32.mrf.mxu0  ;;  %v11535_v21 = vld [vmem:[#allocation2 + $0x1320] sm:$0xff] }
 0x251   :  { %7526 = vmatpush.bf16.msra.mxu1 %v11513_v22  ;;  %v7288_v42 = vadd.f32 %v7287_v41, %v7275_v36  ;;  %v7300_v43 = vpop.f32.mrf.mxu3  ;;  %v7276_v48 = vpop.f32.mrf.mxu1  ;;  %v11543_v22 = vld [vmem:[#allocation2 + $0x1360] sm:$0xff]  ;;  %v11533_v36 = vld [vmem:[#allocation2 + $0x1310] sm:$0xff]  ;;  %v11532_v41 = vld [vmem:[#allocation2 + $0x1308] sm:$0xff] }
 0x252   :  { %7539 = vmatpush.bf16.msra.mxu2 %v11521_v23  ;;  %v11556_v44 = vld [vmem:[#allocation2 + $0x13c8] sm:$0xff] }
 0x253   :  { %7552 = vmatpush.bf16.msra.mxu3 %v11529_v24  ;;  %v11929_v45 = vadd.f32 %v7300_v43, %v7288_v42  ;;  %v11551_v24 = vld [vmem:[#allocation2 + $0x13a0] sm:$0xff]  ;;  %v11540_v42 = vld [vmem:[#allocation2 + $0x1348] sm:$0xff] }
 0x254   :  { %7514 = vmatpush.bf16.msra.mxu0 %v11504_v25  ;;  %v11559_v25 = vld [vmem:[#allocation2 + $0x13e0] sm:$0xff]  ;;  %v11548_v43 = vld [vmem:[#allocation2 + $0x1388] sm:$0xff] }
 0x255   :  { %7527 = vmatpush.bf16.msra.mxu1 %v11512_v26 }
 0x256   :  { %7540 = vmatpush.bf16.msra.mxu2 %v11520_v27  ;;  %v11534_v27 = vld [vmem:[#allocation2 + $0x1318] sm:$0xff] }
 0x257   :  { %7553 = vmatpush.bf16.msra.mxu3 %v11528_v28  ;;  %v11542_v28 = vld [vmem:[#allocation2 + $0x1358] sm:$0xff] }
 0x258   :  { %7515 = vmatpush.bf16.msra.mxu0 %v11503_v31  ;;  %v7289_v57 = vpop.f32.mrf.mxu2 }
 0x259   :  { %7528 = vmatpush.bf16.msra.mxu1 %v11511_v32  ;;  %v7302_v58 = vpop.f32.mrf.mxu3  ;;  %v11570_v57 = vld [vmem:[#allocation2 + $0x1438] sm:$0xff] }
 0x25a   :  { %7541 = vmatpush.bf16.msra.mxu2 %v11519_v34  ;;  %v11578_v58 = vld [vmem:[#allocation2 + $0x1478] sm:$0xff] }
 0x25b   :  { %7554 = vmatpush.bf16.msra.mxu3 %v11527_v35 }
 0x25c   :  { %7516 = vmatpush.bf16.msra.mxu0 %v11502_v37  ;;  %v11541_v37 = vld [vmem:[#allocation2 + $0x1350] sm:$0xff] }
 0x25d   :  { %7529 = vmatpush.bf16.msra.mxu1 %v11510_v38 }
 0x25e   :  { %7542 = vmatpush.bf16.msra.mxu2 %v11518_v39  ;;  %v11549_v39 = vld [vmem:[#allocation2 + $0x1390] sm:$0xff] }
 0x25f   :  { %7555 = vmatpush.bf16.msra.mxu3 %v11526_v40  ;;  %v11557_v40 = vld [vmem:[#allocation2 + $0x13d0] sm:$0xff] }
 0x260   :  { %7517 = vmatpush.bf16.msra.mxu0 %v11501_v46  ;;  %v83_v46 = vld [vmem:[%s11983_s0 + $0x138] sm:$0xff] }
 0x261   :  { %7530 = vmatpush.bf16.msra.mxu1 %v11509_v47  ;;  %v1759_v56 = vunpack.c.h.b16 %v83_v46 }
 0x262   :  { %7543 = vmatpush.bf16.msra.mxu2 %v11517_v49  ;;  %v11531_v49 = vld [vmem:[#allocation2 + $0x1300] sm:$0xff] }
 0x263   :  { %7556 = vmatpush.bf16.msra.mxu3 %v11525_v50  ;;  %v11539_v50 = vld [vmem:[#allocation2 + $0x1340] sm:$0xff] }
 0x264   :  { %7518 = vmatpush.bf16.msra.mxu0 %v11500_v51 }
 0x265   :  { %7531 = vmatpush.bf16.msra.mxu1 %v11508_v52  ;;  %v1758_v52 = vunpack.c.l.b16 %v83_v46 }
 0x266   :  { %7544 = vmatpush.bf16.msra.mxu2 %v11516_v53  ;;  %v11547_v53 = vld [vmem:[#allocation2 + $0x1380] sm:$0xff] }
 0x267   :  { %7557 = vmatpush.bf16.msra.mxu3 %v11524_v54  ;;  %v11555_v54 = vld [vmem:[#allocation2 + $0x13c0] sm:$0xff]  ;;  %v1854_v62 = vpack.c.b16 %v1758_v52, %v1758_v52 }
 0x268   :  { %7519 = vmatpush.bf16.msra.mxu0 %v11499_v59  ;;  %v7313_v19 = vpop.f32.mrf.mxu0  ;;  %v11586_v59 = vld [vmem:[#allocation2 + $0x14b8] sm:$0xff] }
 0x269   :  { %7532 = vmatpush.bf16.msra.mxu1 %v11507_v60  ;;  %v7314_v20 = vadd.f32 %v7313_v19, %v11929_v45  ;;  %v7326_v23 = vpop.f32.mrf.mxu1  ;;  %v82_v45 = vld [vmem:[%s11983_s0 + $0x130] sm:$0xff]  ;;  %v11594_v60 = vld [vmem:[#allocation2 + $0x14f8] sm:$0xff] }
 0x26a   :  { %7545 = vmatpush.bf16.msra.mxu2 %v11515_v63  ;;  %v1756_v51 = vunpack.c.l.b16 %v82_v45  ;;  %v1757_v55 = vunpack.c.h.b16 %v82_v45  ;;  %v11582_v19 = vld [vmem:[#allocation2 + $0x1498] sm:$0xff] }
 0x26b   :  { %7558 = vmatpush.bf16.msra.mxu3 %v11523_v0  ;;  %7520 = vmatmul.bf16.vlgmr.msra.gmra.mxu0 %v1848_v7  ;;  %v7327_v26 = vadd.f32 %v7326_v23, %v7314_v20  ;;  %v1855_v0 = vpack.c.b16 %v1759_v56, %v1759_v56  ;;  %v11584_v7 = vld [vmem:[#allocation2 + $0x14a8] sm:$0xff]  ;;  %v11590_v20 = vld [vmem:[#allocation2 + $0x14d8] sm:$0xff]  ;;  %v11609_v56 = vld [vmem:[#allocation2 + $0x1570] sm:$0xff] }
 0x26c   :  { %7564 = vmatpush.bf16.msrb.mxu0 %v11538_v3  ;;  %7533 = vmatmul.bf16.vlgmr.msra.gmra.mxu1 %v1849_v9  ;;  %v1852_v61 = vpack.c.b16 %v1756_v51, %v1756_v51  ;;  %v1853_v63 = vpack.c.b16 %v1757_v55, %v1757_v55  ;;  %v11585_v3 = vld [vmem:[#allocation2 + $0x14b0] sm:$0xff] }
 0x26d   :  { %7577 = vmatpush.bf16.msrb.mxu1 %v11546_v4  ;;  %7546 = vmatmul.bf16.vlgmr.msra.gmra.mxu2 %v1850_v8  ;;  %v11593_v4 = vld [vmem:[#allocation2 + $0x14f0] sm:$0xff]  ;;  %v11592_v8 = vld [vmem:[#allocation2 + $0x14e8] sm:$0xff] }
 0x26e   :  { %7590 = vmatpush.bf16.msrb.mxu2 %v11554_v5  ;;  %7559 = vmatmul.bf16.vlgmr.msra.gmra.mxu3 %v1851_v10  ;;  %v11568_v5 = vld [vmem:[#allocation2 + $0x1428] sm:$0xff]  ;;  %v11601_v55 = vld [vmem:[#allocation2 + $0x1530] sm:$0xff] }
 0x26f   :  { %7603 = vmatpush.bf16.msrb.mxu3 %v11562_v6  ;;  %v11576_v6 = vld [vmem:[#allocation2 + $0x1468] sm:$0xff] }
 0x270   :  { %7565 = vmatpush.bf16.msrb.mxu0 %v11537_v11  ;;  %v7339_v31 = vpop.f32.mrf.mxu2  ;;  %v7315_v34 = vpop.f32.mrf.mxu0  ;;  %v11567_v11 = vld [vmem:[#allocation2 + $0x1420] sm:$0xff] }
 0x271   :  { %7578 = vmatpush.bf16.msrb.mxu1 %v11545_v12  ;;  %v7340_v32 = vadd.f32 %v7339_v31, %v7327_v26  ;;  %v7352_v33 = vpop.f32.mrf.mxu3  ;;  %v7328_v38 = vpop.f32.mrf.mxu1  ;;  %v11575_v12 = vld [vmem:[#allocation2 + $0x1460] sm:$0xff]  ;;  %v11565_v26 = vld [vmem:[#allocation2 + $0x1410] sm:$0xff]  ;;  %v11564_v31 = vld [vmem:[#allocation2 + $0x1408] sm:$0xff] }
 0x272   :  { %7591 = vmatpush.bf16.msrb.mxu2 %v11553_v13  ;;  %v11588_v34 = vld [vmem:[#allocation2 + $0x14c8] sm:$0xff] }
 0x273   :  { %7604 = vmatpush.bf16.msrb.mxu3 %v11561_v14  ;;  %v11938_v35 = vadd.f32 %v7352_v33, %v7340_v32  ;;  %v11583_v14 = vld [vmem:[#allocation2 + $0x14a0] sm:$0xff]  ;;  %v11572_v32 = vld [vmem:[#allocation2 + $0x1448] sm:$0xff] }
 0x274   :  { %7566 = vmatpush.bf16.msrb.mxu0 %v11536_v15  ;;  %v11591_v15 = vld [vmem:[#allocation2 + $0x14e0] sm:$0xff]  ;;  %v11580_v33 = vld [vmem:[#allocation2 + $0x1488] sm:$0xff] }
 0x275   :  { %7579 = vmatpush.bf16.msrb.mxu1 %v11544_v16 }
 0x276   :  { %7592 = vmatpush.bf16.msrb.mxu2 %v11552_v17  ;;  %v11566_v17 = vld [vmem:[#allocation2 + $0x1418] sm:$0xff] }
 0x277   :  { %7605 = vmatpush.bf16.msrb.mxu3 %v11560_v18  ;;  %v11574_v18 = vld [vmem:[#allocation2 + $0x1458] sm:$0xff] }
 0x278   :  { %7567 = vmatpush.bf16.msrb.mxu0 %v11535_v21  ;;  %v7341_v47 = vpop.f32.mrf.mxu2 }
 0x279   :  { %7580 = vmatpush.bf16.msrb.mxu1 %v11543_v22  ;;  %v7354_v48 = vpop.f32.mrf.mxu3  ;;  %v11602_v47 = vld [vmem:[#allocation2 + $0x1538] sm:$0xff] }
 0x27a   :  { %7593 = vmatpush.bf16.msrb.mxu2 %v11551_v24  ;;  %v11610_v48 = vld [vmem:[#allocation2 + $0x1578] sm:$0xff] }
 0x27b   :  { %7606 = vmatpush.bf16.msrb.mxu3 %v11559_v25 }
 0x27c   :  { %7568 = vmatpush.bf16.msrb.mxu0 %v11534_v27  ;;  %v11573_v27 = vld [vmem:[#allocation2 + $0x1450] sm:$0xff] }
 0x27d   :  { %7581 = vmatpush.bf16.msrb.mxu1 %v11542_v28 }
 0x27e   :  { %7594 = vmatpush.bf16.msrb.mxu2 %v11550_v29  ;;  %v11581_v29 = vld [vmem:[#allocation2 + $0x1490] sm:$0xff] }
 0x27f   :  { %7607 = vmatpush.bf16.msrb.mxu3 %v11558_v30  ;;  %v11589_v30 = vld [vmem:[#allocation2 + $0x14d0] sm:$0xff] }
 0x280   :  { %7569 = vmatpush.bf16.msrb.mxu0 %v11533_v36  ;;  %v85_v36 = vld [vmem:[%s11983_s0 + $0x148] sm:$0xff] }
 0x281   :  { %7582 = vmatpush.bf16.msrb.mxu1 %v11541_v37  ;;  %v1763_v46 = vunpack.c.h.b16 %v85_v36 }
 0x282   :  { %7595 = vmatpush.bf16.msrb.mxu2 %v11549_v39  ;;  %v11563_v39 = vld [vmem:[#allocation2 + $0x1400] sm:$0xff] }
 0x283   :  { %7608 = vmatpush.bf16.msrb.mxu3 %v11557_v40  ;;  %v11571_v40 = vld [vmem:[#allocation2 + $0x1440] sm:$0xff] }
 0x284   :  { %7570 = vmatpush.bf16.msrb.mxu0 %v11532_v41 }
 0x285   :  { %7583 = vmatpush.bf16.msrb.mxu1 %v11540_v42  ;;  %v1762_v42 = vunpack.c.l.b16 %v85_v36 }
 0x286   :  { %7596 = vmatpush.bf16.msrb.mxu2 %v11548_v43  ;;  %v11579_v43 = vld [vmem:[#allocation2 + $0x1480] sm:$0xff] }
 0x287   :  { %7609 = vmatpush.bf16.msrb.mxu3 %v11556_v44  ;;  %v11587_v44 = vld [vmem:[#allocation2 + $0x14c0] sm:$0xff]  ;;  %v1858_v52 = vpack.c.b16 %v1762_v42, %v1762_v42 }
 0x288   :  { %7571 = vmatpush.bf16.msrb.mxu0 %v11531_v49  ;;  %v7365_v9 = vpop.f32.mrf.mxu0  ;;  %v11618_v49 = vld [vmem:[#allocation2 + $0x15b8] sm:$0xff] }
 0x289   :  { %7584 = vmatpush.bf16.msrb.mxu1 %v11539_v50  ;;  %v7366_v10 = vadd.f32 %v7365_v9, %v11938_v35  ;;  %v7378_v13 = vpop.f32.mrf.mxu1  ;;  %v84_v35 = vld [vmem:[%s11983_s0 + $0x140] sm:$0xff]  ;;  %v11626_v50 = vld [vmem:[#allocation2 + $0x15f8] sm:$0xff] }
 0x28a   :  { %7597 = vmatpush.bf16.msrb.mxu2 %v11547_v53  ;;  %v1760_v41 = vunpack.c.l.b16 %v84_v35  ;;  %v1761_v45 = vunpack.c.h.b16 %v84_v35  ;;  %v11614_v9 = vld [vmem:[#allocation2 + $0x1598] sm:$0xff] }
 0x28b   :  { %7610 = vmatpush.bf16.msrb.mxu3 %v11555_v54  ;;  %7572 = vmatmul.bf16.vlgmr.msrb.gmra.mxu0 %v1852_v61  ;;  %v7379_v16 = vadd.f32 %v7378_v13, %v7366_v10  ;;  %v1859_v54 = vpack.c.b16 %v1763_v46, %v1763_v46  ;;  %v11616_v61 = vld [vmem:[#allocation2 + $0x15a8] sm:$0xff]  ;;  %v11622_v10 = vld [vmem:[#allocation2 + $0x15d8] sm:$0xff]  ;;  %v11641_v46 = vld [vmem:[#allocation2 + $0x1670] sm:$0xff] }
 0x28c   :  { %7616 = vmatpush.bf16.msra.mxu0 %v11570_v57  ;;  %7585 = vmatmul.bf16.vlgmr.msrb.gmra.mxu1 %v1853_v63  ;;  %v1856_v51 = vpack.c.b16 %v1760_v41, %v1760_v41  ;;  %v1857_v53 = vpack.c.b16 %v1761_v45, %v1761_v45  ;;  %v11617_v57 = vld [vmem:[#allocation2 + $0x15b0] sm:$0xff] }
 0x28d   :  { %7629 = vmatpush.bf16.msra.mxu1 %v11578_v58  ;;  %7598 = vmatmul.bf16.vlgmr.msrb.gmra.mxu2 %v1854_v62  ;;  %v11625_v58 = vld [vmem:[#allocation2 + $0x15f0] sm:$0xff]  ;;  %v11624_v62 = vld [vmem:[#allocation2 + $0x15e8] sm:$0xff] }
 0x28e   :  { %7642 = vmatpush.bf16.msra.mxu2 %v11586_v59  ;;  %7611 = vmatmul.bf16.vlgmr.msrb.gmra.mxu3 %v1855_v0  ;;  %v11600_v59 = vld [vmem:[#allocation2 + $0x1528] sm:$0xff]  ;;  %v11633_v45 = vld [vmem:[#allocation2 + $0x1630] sm:$0xff] }
 0x28f   :  { %7655 = vmatpush.bf16.msra.mxu3 %v11594_v60  ;;  %v11608_v60 = vld [vmem:[#allocation2 + $0x1568] sm:$0xff] }
 0x290   :  { %7617 = vmatpush.bf16.msra.mxu0 %v11569_v1  ;;  %v7391_v21 = vpop.f32.mrf.mxu2  ;;  %v7367_v24 = vpop.f32.mrf.mxu0  ;;  %v11599_v1 = vld [vmem:[#allocation2 + $0x1520] sm:$0xff] }
 0x291   :  { %7630 = vmatpush.bf16.msra.mxu1 %v11577_v2  ;;  %v7392_v22 = vadd.f32 %v7391_v21, %v7379_v16  ;;  %v7404_v23 = vpop.f32.mrf.mxu3  ;;  %v7380_v28 = vpop.f32.mrf.mxu1  ;;  %v11607_v2 = vld [vmem:[#allocation2 + $0x1560] sm:$0xff]  ;;  %v11597_v16 = vld [vmem:[#allocation2 + $0x1510] sm:$0xff]  ;;  %v11596_v21 = vld [vmem:[#allocation2 + $0x1508] sm:$0xff] }
 0x292   :  { %7643 = vmatpush.bf16.msra.mxu2 %v11585_v3  ;;  %v11620_v24 = vld [vmem:[#allocation2 + $0x15c8] sm:$0xff] }
 0x293   :  { %7656 = vmatpush.bf16.msra.mxu3 %v11593_v4  ;;  %v11947_v25 = vadd.f32 %v7404_v23, %v7392_v22  ;;  %v11615_v4 = vld [vmem:[#allocation2 + $0x15a0] sm:$0xff]  ;;  %v11604_v22 = vld [vmem:[#allocation2 + $0x1548] sm:$0xff] }
 0x294   :  { %7618 = vmatpush.bf16.msra.mxu0 %v11568_v5  ;;  %v11623_v5 = vld [vmem:[#allocation2 + $0x15e0] sm:$0xff]  ;;  %v11612_v23 = vld [vmem:[#allocation2 + $0x1588] sm:$0xff] }
 0x295   :  { %7631 = vmatpush.bf16.msra.mxu1 %v11576_v6 }
 0x296   :  { %7644 = vmatpush.bf16.msra.mxu2 %v11584_v7  ;;  %v11598_v7 = vld [vmem:[#allocation2 + $0x1518] sm:$0xff] }
 0x297   :  { %7657 = vmatpush.bf16.msra.mxu3 %v11592_v8  ;;  %v11606_v8 = vld [vmem:[#allocation2 + $0x1558] sm:$0xff] }
 0x298   :  { %7619 = vmatpush.bf16.msra.mxu0 %v11567_v11  ;;  %v7393_v37 = vpop.f32.mrf.mxu2 }
 0x299   :  { %7632 = vmatpush.bf16.msra.mxu1 %v11575_v12  ;;  %v7406_v38 = vpop.f32.mrf.mxu3  ;;  %v11634_v37 = vld [vmem:[#allocation2 + $0x1638] sm:$0xff] }
 0x29a   :  { %7645 = vmatpush.bf16.msra.mxu2 %v11583_v14  ;;  %v11642_v38 = vld [vmem:[#allocation2 + $0x1678] sm:$0xff] }
 0x29b   :  { %7658 = vmatpush.bf16.msra.mxu3 %v11591_v15 }
 0x29c   :  { %7620 = vmatpush.bf16.msra.mxu0 %v11566_v17  ;;  %v11605_v17 = vld [vmem:[#allocation2 + $0x1550] sm:$0xff] }
 0x29d   :  { %7633 = vmatpush.bf16.msra.mxu1 %v11574_v18 }
 0x29e   :  { %7646 = vmatpush.bf16.msra.mxu2 %v11582_v19  ;;  %v11613_v19 = vld [vmem:[#allocation2 + $0x1590] sm:$0xff] }
 0x29f   :  { %7659 = vmatpush.bf16.msra.mxu3 %v11590_v20  ;;  %v11621_v20 = vld [vmem:[#allocation2 + $0x15d0] sm:$0xff] }
 0x2a0   :  { %7621 = vmatpush.bf16.msra.mxu0 %v11565_v26  ;;  %v87_v26 = vld [vmem:[%s11983_s0 + $0x158] sm:$0xff] }
 0x2a1   :  { %7634 = vmatpush.bf16.msra.mxu1 %v11573_v27  ;;  %v1767_v36 = vunpack.c.h.b16 %v87_v26 }
 0x2a2   :  { %7647 = vmatpush.bf16.msra.mxu2 %v11581_v29  ;;  %v11595_v29 = vld [vmem:[#allocation2 + $0x1500] sm:$0xff] }
 0x2a3   :  { %7660 = vmatpush.bf16.msra.mxu3 %v11589_v30  ;;  %v11603_v30 = vld [vmem:[#allocation2 + $0x1540] sm:$0xff] }
 0x2a4   :  { %7622 = vmatpush.bf16.msra.mxu0 %v11564_v31 }
 0x2a5   :  { %7635 = vmatpush.bf16.msra.mxu1 %v11572_v32  ;;  %v1766_v32 = vunpack.c.l.b16 %v87_v26 }
 0x2a6   :  { %7648 = vmatpush.bf16.msra.mxu2 %v11580_v33  ;;  %v11611_v33 = vld [vmem:[#allocation2 + $0x1580] sm:$0xff] }
 0x2a7   :  { %7661 = vmatpush.bf16.msra.mxu3 %v11588_v34  ;;  %v11619_v34 = vld [vmem:[#allocation2 + $0x15c0] sm:$0xff]  ;;  %v1862_v42 = vpack.c.b16 %v1766_v32, %v1766_v32 }
 0x2a8   :  { %7623 = vmatpush.bf16.msra.mxu0 %v11563_v39  ;;  %v7417_v63 = vpop.f32.mrf.mxu0  ;;  %v11650_v39 = vld [vmem:[#allocation2 + $0x16b8] sm:$0xff] }
 0x2a9   :  { %7636 = vmatpush.bf16.msra.mxu1 %v11571_v40  ;;  %v7418_v0 = vadd.f32 %v7417_v63, %v11947_v25  ;;  %v7430_v3 = vpop.f32.mrf.mxu1  ;;  %v86_v25 = vld [vmem:[%s11983_s0 + $0x150] sm:$0xff]  ;;  %v11658_v40 = vld [vmem:[#allocation2 + $0x16f8] sm:$0xff] }
 0x2aa   :  { %7649 = vmatpush.bf16.msra.mxu2 %v11579_v43  ;;  %v1764_v31 = vunpack.c.l.b16 %v86_v25  ;;  %v1765_v35 = vunpack.c.h.b16 %v86_v25  ;;  %v11646_v63 = vld [vmem:[#allocation2 + $0x1698] sm:$0xff] }
 0x2ab   :  { %7662 = vmatpush.bf16.msra.mxu3 %v11587_v44  ;;  %7624 = vmatmul.bf16.vlgmr.msra.gmra.mxu0 %v1856_v51  ;;  %v7431_v6 = vadd.f32 %v7430_v3, %v7418_v0  ;;  %v1863_v44 = vpack.c.b16 %v1767_v36, %v1767_v36  ;;  %v11648_v51 = vld [vmem:[#allocation2 + $0x16a8] sm:$0xff]  ;;  %v11654_v0 = vld [vmem:[#allocation2 + $0x16d8] sm:$0xff]  ;;  %v11673_v36 = vld [vmem:[#allocation2 + $0x1770] sm:$0xff] }
 0x2ac   :  { %7668 = vmatpush.bf16.msrb.mxu0 %v11602_v47  ;;  %7637 = vmatmul.bf16.vlgmr.msra.gmra.mxu1 %v1857_v53  ;;  %v1860_v41 = vpack.c.b16 %v1764_v31, %v1764_v31  ;;  %v1861_v43 = vpack.c.b16 %v1765_v35, %v1765_v35  ;;  %v11649_v47 = vld [vmem:[#allocation2 + $0x16b0] sm:$0xff] }
 0x2ad   :  { %7681 = vmatpush.bf16.msrb.mxu1 %v11610_v48  ;;  %7650 = vmatmul.bf16.vlgmr.msra.gmra.mxu2 %v1858_v52  ;;  %v11657_v48 = vld [vmem:[#allocation2 + $0x16f0] sm:$0xff]  ;;  %v11656_v52 = vld [vmem:[#allocation2 + $0x16e8] sm:$0xff] }
 0x2ae   :  { %7694 = vmatpush.bf16.msrb.mxu2 %v11618_v49  ;;  %7663 = vmatmul.bf16.vlgmr.msra.gmra.mxu3 %v1859_v54  ;;  %v11632_v49 = vld [vmem:[#allocation2 + $0x1628] sm:$0xff]  ;;  %v11665_v35 = vld [vmem:[#allocation2 + $0x1730] sm:$0xff] }
 0x2af   :  { %7707 = vmatpush.bf16.msrb.mxu3 %v11626_v50  ;;  %v11640_v50 = vld [vmem:[#allocation2 + $0x1668] sm:$0xff] }
 0x2b0   :  { %7669 = vmatpush.bf16.msrb.mxu0 %v11601_v55  ;;  %v7443_v11 = vpop.f32.mrf.mxu2  ;;  %v7419_v14 = vpop.f32.mrf.mxu0  ;;  %v11631_v55 = vld [vmem:[#allocation2 + $0x1620] sm:$0xff] }
 0x2b1   :  { %7682 = vmatpush.bf16.msrb.mxu1 %v11609_v56  ;;  %v7444_v12 = vadd.f32 %v7443_v11, %v7431_v6  ;;  %v7456_v13 = vpop.f32.mrf.mxu3  ;;  %v7432_v18 = vpop.f32.mrf.mxu1  ;;  %v11639_v56 = vld [vmem:[#allocation2 + $0x1660] sm:$0xff]  ;;  %v11629_v6 = vld [vmem:[#allocation2 + $0x1610] sm:$0xff]  ;;  %v11628_v11 = vld [vmem:[#allocation2 + $0x1608] sm:$0xff] }
 0x2b2   :  { %7695 = vmatpush.bf16.msrb.mxu2 %v11617_v57  ;;  %v11652_v14 = vld [vmem:[#allocation2 + $0x16c8] sm:$0xff] }
 0x2b3   :  { %7708 = vmatpush.bf16.msrb.mxu3 %v11625_v58  ;;  %v11956_v15 = vadd.f32 %v7456_v13, %v7444_v12  ;;  %v11647_v58 = vld [vmem:[#allocation2 + $0x16a0] sm:$0xff]  ;;  %v11636_v12 = vld [vmem:[#allocation2 + $0x1648] sm:$0xff] }
 0x2b4   :  { %7670 = vmatpush.bf16.msrb.mxu0 %v11600_v59  ;;  %v11655_v59 = vld [vmem:[#allocation2 + $0x16e0] sm:$0xff]  ;;  %v11644_v13 = vld [vmem:[#allocation2 + $0x1688] sm:$0xff] }
 0x2b5   :  { %7683 = vmatpush.bf16.msrb.mxu1 %v11608_v60 }
 0x2b6   :  { %7696 = vmatpush.bf16.msrb.mxu2 %v11616_v61  ;;  %v11630_v61 = vld [vmem:[#allocation2 + $0x1618] sm:$0xff] }
 0x2b7   :  { %7709 = vmatpush.bf16.msrb.mxu3 %v11624_v62  ;;  %v11638_v62 = vld [vmem:[#allocation2 + $0x1658] sm:$0xff] }
 0x2b8   :  { %7671 = vmatpush.bf16.msrb.mxu0 %v11599_v1  ;;  %v7445_v27 = vpop.f32.mrf.mxu2 }
 0x2b9   :  { %7684 = vmatpush.bf16.msrb.mxu1 %v11607_v2  ;;  %v7458_v28 = vpop.f32.mrf.mxu3  ;;  %v11666_v27 = vld [vmem:[#allocation2 + $0x1738] sm:$0xff] }
 0x2ba   :  { %7697 = vmatpush.bf16.msrb.mxu2 %v11615_v4  ;;  %v11674_v28 = vld [vmem:[#allocation2 + $0x1778] sm:$0xff] }
 0x2bb   :  { %7710 = vmatpush.bf16.msrb.mxu3 %v11623_v5 }
 0x2bc   :  { %7672 = vmatpush.bf16.msrb.mxu0 %v11598_v7  ;;  %v11637_v7 = vld [vmem:[#allocation2 + $0x1650] sm:$0xff] }
 0x2bd   :  { %7685 = vmatpush.bf16.msrb.mxu1 %v11606_v8 }
 0x2be   :  { %7698 = vmatpush.bf16.msrb.mxu2 %v11614_v9  ;;  %v11645_v9 = vld [vmem:[#allocation2 + $0x1690] sm:$0xff] }
 0x2bf   :  { %7711 = vmatpush.bf16.msrb.mxu3 %v11622_v10  ;;  %v11653_v10 = vld [vmem:[#allocation2 + $0x16d0] sm:$0xff] }
 0x2c0   :  { %7673 = vmatpush.bf16.msrb.mxu0 %v11597_v16  ;;  %v89_v16 = vld [vmem:[%s11983_s0 + $0x168] sm:$0xff] }
 0x2c1   :  { %7686 = vmatpush.bf16.msrb.mxu1 %v11605_v17  ;;  %v1771_v26 = vunpack.c.h.b16 %v89_v16 }
 0x2c2   :  { %7699 = vmatpush.bf16.msrb.mxu2 %v11613_v19  ;;  %v11627_v19 = vld [vmem:[#allocation2 + $0x1600] sm:$0xff] }
 0x2c3   :  { %7712 = vmatpush.bf16.msrb.mxu3 %v11621_v20  ;;  %v11635_v20 = vld [vmem:[#allocation2 + $0x1640] sm:$0xff] }
 0x2c4   :  { %7674 = vmatpush.bf16.msrb.mxu0 %v11596_v21 }
 0x2c5   :  { %7687 = vmatpush.bf16.msrb.mxu1 %v11604_v22  ;;  %v1770_v22 = vunpack.c.l.b16 %v89_v16  ;;  %v11683_v16 = vld [vmem:[#allocation2 + $0x17c0] sm:$0xff] }
 0x2c6   :  { %7700 = vmatpush.bf16.msrb.mxu2 %v11612_v23  ;;  %v11643_v23 = vld [vmem:[#allocation2 + $0x1680] sm:$0xff] }
 0x2c7   :  { %7713 = vmatpush.bf16.msrb.mxu3 %v11620_v24  ;;  %v11651_v24 = vld [vmem:[#allocation2 + $0x16c0] sm:$0xff]  ;;  %v1866_v32 = vpack.c.b16 %v1770_v22, %v1770_v22 }
 0x2c8   :  { %7675 = vmatpush.bf16.msrb.mxu0 %v11595_v29  ;;  %v7469_v53 = vpop.f32.mrf.mxu0  ;;  %v11682_v29 = vld [vmem:[#allocation2 + $0x17b8] sm:$0xff] }
 0x2c9   :  { %7688 = vmatpush.bf16.msrb.mxu1 %v11603_v30  ;;  %v7470_v54 = vadd.f32 %v7469_v53, %v11956_v15  ;;  %v7482_v57 = vpop.f32.mrf.mxu1  ;;  %v88_v15 = vld [vmem:[%s11983_s0 + $0x160] sm:$0xff]  ;;  %v11690_v30 = vld [vmem:[#allocation2 + $0x17f8] sm:$0xff] }
 0x2ca   :  { %7701 = vmatpush.bf16.msrb.mxu2 %v11611_v33  ;;  %v1768_v21 = vunpack.c.l.b16 %v88_v15  ;;  %v1769_v25 = vunpack.c.h.b16 %v88_v15  ;;  %v11678_v53 = vld [vmem:[#allocation2 + $0x1798] sm:$0xff]  ;;  %v11675_v15 = vld [vmem:[#allocation2 + $0x1780] sm:$0xff] }
 0x2cb   :  { %7714 = vmatpush.bf16.msrb.mxu3 %v11619_v34  ;;  %7676 = vmatmul.bf16.vlgmr.msrb.gmra.mxu0 %v1860_v41  ;;  %v7483_v60 = vadd.f32 %v7482_v57, %v7470_v54  ;;  %v1867_v34 = vpack.c.b16 %v1771_v26, %v1771_v26  ;;  %v11680_v41 = vld [vmem:[#allocation2 + $0x17a8] sm:$0xff]  ;;  %v11686_v54 = vld [vmem:[#allocation2 + $0x17d8] sm:$0xff] }
 0x2cc   :  { %7720 = vmatpush.bf16.msra.mxu0 %v11634_v37  ;;  %7689 = vmatmul.bf16.vlgmr.msrb.gmra.mxu1 %v1861_v43  ;;  %v1864_v31 = vpack.c.b16 %v1768_v21, %v1768_v21  ;;  %v1865_v33 = vpack.c.b16 %v1769_v25, %v1769_v25  ;;  %v11681_v37 = vld [vmem:[#allocation2 + $0x17b0] sm:$0xff] }
 0x2cd   :  { %7733 = vmatpush.bf16.msra.mxu1 %v11642_v38  ;;  %7702 = vmatmul.bf16.vlgmr.msrb.gmra.mxu2 %v1862_v42  ;;  %v11689_v38 = vld [vmem:[#allocation2 + $0x17f0] sm:$0xff]  ;;  %v11688_v42 = vld [vmem:[#allocation2 + $0x17e8] sm:$0xff] }
 0x2ce   :  { %7746 = vmatpush.bf16.msra.mxu2 %v11650_v39  ;;  %7715 = vmatmul.bf16.vlgmr.msrb.gmra.mxu3 %v1863_v44  ;;  %v11664_v39 = vld [vmem:[#allocation2 + $0x1728] sm:$0xff] }
 0x2cf   :  { %7759 = vmatpush.bf16.msra.mxu3 %v11658_v40  ;;  %v11672_v40 = vld [vmem:[#allocation2 + $0x1768] sm:$0xff] }
 0x2d0   :  { %7721 = vmatpush.bf16.msra.mxu0 %v11633_v45  ;;  %v7495_v1 = vpop.f32.mrf.mxu2  ;;  %v7471_v4 = vpop.f32.mrf.mxu0  ;;  %v11663_v45 = vld [vmem:[#allocation2 + $0x1720] sm:$0xff] }
 0x2d1   :  { %7734 = vmatpush.bf16.msra.mxu1 %v11641_v46  ;;  %v7496_v2 = vadd.f32 %v7495_v1, %v7483_v60  ;;  %v7508_v3 = vpop.f32.mrf.mxu3  ;;  %v7484_v8 = vpop.f32.mrf.mxu1  ;;  %v11671_v46 = vld [vmem:[#allocation2 + $0x1760] sm:$0xff]  ;;  %v11661_v60 = vld [vmem:[#allocation2 + $0x1710] sm:$0xff]  ;;  %v11660_v1 = vld [vmem:[#allocation2 + $0x1708] sm:$0xff] }
 0x2d2   :  { %7747 = vmatpush.bf16.msra.mxu2 %v11649_v47  ;;  %v11676_v4 = vld [vmem:[#allocation2 + $0x1788] sm:$0xff] }
 0x2d3   :  { %7760 = vmatpush.bf16.msra.mxu3 %v11657_v48  ;;  %v11965_v5 = vadd.f32 %v7508_v3, %v7496_v2  ;;  %v11679_v48 = vld [vmem:[#allocation2 + $0x17a0] sm:$0xff]  ;;  %v11668_v2 = vld [vmem:[#allocation2 + $0x1748] sm:$0xff]  ;;  %v90_v3 = vld [vmem:[%s11983_s0 + $0x170] sm:$0xff] }
 0x2d4   :  { %7722 = vmatpush.bf16.msra.mxu0 %v11632_v49  ;;  %v11687_v49 = vld [vmem:[#allocation2 + $0x17e0] sm:$0xff] }
 0x2d5   :  { %7735 = vmatpush.bf16.msra.mxu1 %v11640_v50 }
 0x2d6   :  { %7748 = vmatpush.bf16.msra.mxu2 %v11648_v51  ;;  %v11662_v51 = vld [vmem:[#allocation2 + $0x1718] sm:$0xff] }
 0x2d7   :  { %7761 = vmatpush.bf16.msra.mxu3 %v11656_v52  ;;  %v11670_v52 = vld [vmem:[#allocation2 + $0x1758] sm:$0xff] }
 0x2d8   :  { %7723 = vmatpush.bf16.msra.mxu0 %v11631_v55  ;;  %v7497_v17 = vpop.f32.mrf.mxu2 }
 0x2d9   :  { %7736 = vmatpush.bf16.msra.mxu1 %v11639_v56  ;;  %v7510_v18 = vpop.f32.mrf.mxu3 }
 0x2da   :  { %7749 = vmatpush.bf16.msra.mxu2 %v11647_v58 }
 0x2db   :  { %7762 = vmatpush.bf16.msra.mxu3 %v11655_v59 }
 0x2dc   :  { %7724 = vmatpush.bf16.msra.mxu0 %v11630_v61  ;;  %v11669_v61 = vld [vmem:[#allocation2 + $0x1750] sm:$0xff] }
 0x2dd   :  { %7737 = vmatpush.bf16.msra.mxu1 %v11638_v62 }
 0x2de   :  { %7750 = vmatpush.bf16.msra.mxu2 %v11646_v63  ;;  %v11677_v63 = vld [vmem:[#allocation2 + $0x1790] sm:$0xff] }
 0x2df   :  { %7763 = vmatpush.bf16.msra.mxu3 %v11654_v0  ;;  %v11685_v0 = vld [vmem:[#allocation2 + $0x17d0] sm:$0xff] }
 0x2e0   :  { %7725 = vmatpush.bf16.msra.mxu0 %v11629_v6  ;;  %v91_v6 = vld [vmem:[%s11983_s0 + $0x178] sm:$0xff] }
 0x2e1   :  { %7738 = vmatpush.bf16.msra.mxu1 %v11637_v7 }
 0x2e2   :  { %7751 = vmatpush.bf16.msra.mxu2 %v11645_v9  ;;  %v1772_v9 = vunpack.c.l.b16 %v90_v3 }
 0x2e3   :  { %7764 = vmatpush.bf16.msra.mxu3 %v11653_v10  ;;  %v1773_v10 = vunpack.c.h.b16 %v90_v3 }
 0x2e4   :  { %7726 = vmatpush.bf16.msra.mxu0 %v11628_v11  ;;  %v11659_v11 = vld [vmem:[#allocation2 + $0x1700] sm:$0xff]  ;;  %v1868_v17 = vpack.c.b16 %v1772_v9, %v1772_v9 }
 0x2e5   :  { %7739 = vmatpush.bf16.msra.mxu1 %v11636_v12  ;;  %v11667_v12 = vld [vmem:[#allocation2 + $0x1740] sm:$0xff]  ;;  %v1869_v18 = vpack.c.b16 %v1773_v10, %v1773_v10 }
 0x2e6   :  { %7752 = vmatpush.bf16.msra.mxu2 %v11644_v13  ;;  %v1774_v13 = vunpack.c.l.b16 %v91_v6 }
 0x2e7   :  { %7765 = vmatpush.bf16.msra.mxu3 %v11652_v14  ;;  %v1775_v14 = vunpack.c.h.b16 %v91_v6 }
 0x2e8   :  { %7727 = vmatpush.bf16.msra.mxu0 %v11627_v19  ;;  %v7521_v43 = vpop.f32.mrf.mxu0  ;;  %v1870_v19 = vpack.c.b16 %v1774_v13, %v1774_v13 }
 0x2e9   :  { %7740 = vmatpush.bf16.msra.mxu1 %v11635_v20  ;;  %v7522_v44 = vadd.f32 %v7521_v43, %v11965_v5  ;;  %v7534_v47 = vpop.f32.mrf.mxu1  ;;  %v11684_v5 = vld [vmem:[#allocation2 + $0x17c8] sm:$0xff]  ;;  %v1871_v20 = vpack.c.b16 %v1775_v14, %v1775_v14 }
 0x2ea   :  { %7753 = vmatpush.bf16.msra.mxu2 %v11643_v23 }
 0x2eb   :  { %7766 = vmatpush.bf16.msra.mxu3 %v11651_v24  ;;  %7728 = vmatmul.bf16.vlgmr.msra.gmra.mxu0 %v1864_v31  ;;  %v7535_v50 = vadd.f32 %v7534_v47, %v7522_v44 }
 0x2ec   :  { %7772 = vmatpush.bf16.msrb.mxu0 %v11666_v27  ;;  %7741 = vmatmul.bf16.vlgmr.msra.gmra.mxu1 %v1865_v33 }
 0x2ed   :  { %7785 = vmatpush.bf16.msrb.mxu1 %v11674_v28  ;;  %7754 = vmatmul.bf16.vlgmr.msra.gmra.mxu2 %v1866_v32 }
 0x2ee   :  { %7798 = vmatpush.bf16.msrb.mxu2 %v11682_v29  ;;  %7767 = vmatmul.bf16.vlgmr.msra.gmra.mxu3 %v1867_v34 }
 0x2ef   :  { %7811 = vmatpush.bf16.msrb.mxu3 %v11690_v30 }
 0x2f0   :  { %7773 = vmatpush.bf16.msrb.mxu0 %v11665_v35  ;;  %v7547_v55 = vpop.f32.mrf.mxu2  ;;  %v7523_v58 = vpop.f32.mrf.mxu0 }
 0x2f1   :  { %7786 = vmatpush.bf16.msrb.mxu1 %v11673_v36  ;;  %v7548_v56 = vadd.f32 %v7547_v55, %v7535_v50  ;;  %v7560_v57 = vpop.f32.mrf.mxu3  ;;  %v7536_v62 = vpop.f32.mrf.mxu1 }
 0x2f2   :  { %7799 = vmatpush.bf16.msrb.mxu2 %v11681_v37 }
 0x2f3   :  { %7812 = vmatpush.bf16.msrb.mxu3 %v11689_v38  ;;  %v7561_v59 = vadd.f32 %v7560_v57, %v7548_v56 }
 0x2f4   :  { %7774 = vmatpush.bf16.msrb.mxu0 %v11664_v39 }
 0x2f5   :  { %7787 = vmatpush.bf16.msrb.mxu1 %v11672_v40 }
 0x2f6   :  { %7800 = vmatpush.bf16.msrb.mxu2 %v11680_v41 }
 0x2f7   :  { %7813 = vmatpush.bf16.msrb.mxu3 %v11688_v42 }
 0x2f8   :  { %7775 = vmatpush.bf16.msrb.mxu0 %v11663_v45  ;;  %v7549_v7 = vpop.f32.mrf.mxu2 }
 0x2f9   :  { %7788 = vmatpush.bf16.msrb.mxu1 %v11671_v46  ;;  %v7562_v8 = vpop.f32.mrf.mxu3 }
 0x2fa   :  { %7801 = vmatpush.bf16.msrb.mxu2 %v11679_v48 }
 0x2fb   :  { %7814 = vmatpush.bf16.msrb.mxu3 %v11687_v49 }
 0x2fc   :  { %7776 = vmatpush.bf16.msrb.mxu0 %v11662_v51 }
 0x2fd   :  { %7789 = vmatpush.bf16.msrb.mxu1 %v11670_v52 }
 0x2fe   :  { %7802 = vmatpush.bf16.msrb.mxu2 %v11678_v53 }
 0x2ff   :  { %7815 = vmatpush.bf16.msrb.mxu3 %v11686_v54 }
 0x300   :  { %7777 = vmatpush.bf16.msrb.mxu0 %v11661_v60 }
 0x301   :  { %7790 = vmatpush.bf16.msrb.mxu1 %v11669_v61 }
 0x302   :  { %7803 = vmatpush.bf16.msrb.mxu2 %v11677_v63 }
 0x303   :  { %7816 = vmatpush.bf16.msrb.mxu3 %v11685_v0 }
 0x304   :  { %7778 = vmatpush.bf16.msrb.mxu0 %v11660_v1 }
 0x305   :  { %7791 = vmatpush.bf16.msrb.mxu1 %v11668_v2 }
 0x306   :  { %7804 = vmatpush.bf16.msrb.mxu2 %v11676_v4 }
 0x307   :  { %7817 = vmatpush.bf16.msrb.mxu3 %v11684_v5 }
 0x308   :  { %7779 = vmatpush.bf16.msrb.mxu0 %v11659_v11  ;;  %v7573_v21 = vpop.f32.mrf.mxu0 }
 0x309   :  { %7792 = vmatpush.bf16.msrb.mxu1 %v11667_v12  ;;  %v7574_v22 = vadd.f32 %v7573_v21, %v7561_v59  ;;  %v7586_v23 = vpop.f32.mrf.mxu1 }
 0x30a   :  { %7805 = vmatpush.bf16.msrb.mxu2 %v11675_v15 }
 0x30b   :  { %7818 = vmatpush.bf16.msrb.mxu3 %v11683_v16  ;;  %7780 = vmatmul.bf16.vlgmr.msrb.gmra.mxu0 %v1868_v17  ;;  %v7587_v24 = vadd.f32 %v7586_v23, %v7574_v22 }
 0x30c   :  { %7793 = vmatmul.bf16.vlgmr.msrb.gmra.mxu1 %v1869_v18 }
 0x30d   :  { %7806 = vmatmul.bf16.vlgmr.msrb.gmra.mxu2 %v1870_v19 }
 0x30e   :  { %7819 = vmatmul.bf16.vlgmr.msrb.gmra.mxu3 %v1871_v20 }
 0x310   :  { %v7599_v25 = vpop.f32.mrf.mxu2  ;;  %v7575_v28 = vpop.f32.mrf.mxu0 }
 0x311   :  { %v7600_v26 = vadd.f32 %v7599_v25, %v7587_v24  ;;  %v7612_v27 = vpop.f32.mrf.mxu3  ;;  %v7588_v30 = vpop.f32.mrf.mxu1 }
 0x313   :  { %v7613_v29 = vadd.f32 %v7612_v27, %v7600_v26 }
 0x318   :  { %v7601_v31 = vpop.f32.mrf.mxu2 }
 0x319   :  { %v7614_v32 = vpop.f32.mrf.mxu3 }
 0x328   :  { %v7625_v33 = vpop.f32.mrf.mxu0 }
 0x329   :  { %v7626_v34 = vadd.f32 %v7625_v33, %v7613_v29  ;;  %v7638_v35 = vpop.f32.mrf.mxu1 }
 0x32b   :  { %v7639_v36 = vadd.f32 %v7638_v35, %v7626_v34 }
 0x330   :  { %v7651_v37 = vpop.f32.mrf.mxu2  ;;  %v7627_v40 = vpop.f32.mrf.mxu0 }
 0x331   :  { %v7652_v38 = vadd.f32 %v7651_v37, %v7639_v36  ;;  %v7664_v39 = vpop.f32.mrf.mxu3  ;;  %v7640_v42 = vpop.f32.mrf.mxu1 }
 0x333   :  { %v7665_v41 = vadd.f32 %v7664_v39, %v7652_v38 }
 0x338   :  { %v7653_v43 = vpop.f32.mrf.mxu2 }
 0x339   :  { %v7666_v44 = vpop.f32.mrf.mxu3 }
 0x348   :  { %v7677_v45 = vpop.f32.mrf.mxu0 }
 0x349   :  { %v7690_v46 = vpop.f32.mrf.mxu1  ;;  %v7678_v56 = vadd.f32 %v7677_v45, %v7665_v41 }
 0x34b   :  { %v7691_v60 = vadd.f32 %v7690_v46, %v7678_v56 }
 0x350   :  { %v7703_v47 = vpop.f32.mrf.mxu2  ;;  %v7679_v49 = vpop.f32.mrf.mxu0 }
 0x351   :  { %v7716_v48 = vpop.f32.mrf.mxu3  ;;  %v7692_v50 = vpop.f32.mrf.mxu1  ;;  %v7704_v61 = vadd.f32 %v7703_v47, %v7691_v60 }
 0x353   :  { %v7717_v0 = vadd.f32 %v7716_v48, %v7704_v61 }
 0x358   :  { %v7705_v51 = vpop.f32.mrf.mxu2 }
 0x359   :  { %v7718_v52 = vpop.f32.mrf.mxu3 }
 0x368   :  { %v7729_v53 = vpop.f32.mrf.mxu0 }
 0x369   :  { %v7742_v54 = vpop.f32.mrf.mxu1  ;;  %v7730_v1 = vadd.f32 %v7729_v53, %v7717_v0 }
 0x36b   :  { %v7743_v2 = vadd.f32 %v7742_v54, %v7730_v1 }
 0x370   :  { %v7755_v55 = vpop.f32.mrf.mxu2  ;;  %v7731_v58 = vpop.f32.mrf.mxu0 }
 0x371   :  { %v7768_v57 = vpop.f32.mrf.mxu3  ;;  %v7744_v59 = vpop.f32.mrf.mxu1  ;;  %v7756_v3 = vadd.f32 %v7755_v55, %v7743_v2 }
 0x373   :  { %v7769_v4 = vadd.f32 %v7768_v57, %v7756_v3 }
 0x378   :  { %v7757_v62 = vpop.f32.mrf.mxu2 }
 0x379   :  { %v7770_v63 = vpop.f32.mrf.mxu3 }
 0x388   :  { %v7781_v5 = vpop.f32.mrf.mxu0 }
 0x389   :  { %v7794_v6 = vpop.f32.mrf.mxu1  ;;  %v7782_v7 = vadd.f32 %v7781_v5, %v7769_v4 }
 0x38b   :  { %v7795_v8 = vadd.f32 %v7794_v6, %v7782_v7 }
 0x390   :  { %v7807_v9 = vpop.f32.mrf.mxu2  ;;  %v7783_v12 = vpop.f32.mrf.mxu0 }
 0x391   :  { %v7820_v10 = vpop.f32.mrf.mxu3  ;;  %v7808_v11 = vadd.f32 %v7807_v9, %v7795_v8  ;;  %v7796_v13 = vpop.f32.mrf.mxu1 }
 0x393   :  { %v7821_v14 = vadd.f32 %v7820_v10, %v7808_v11 }
 0x395   :  { %v10922_v15 = vmul.f32 -1.442695, %v7821_v14 }
 0x397   :  { %11696 = vpow2.f32 %v10922_v15 }
 0x398   :  { %v7809_v16 = vpop.f32.mrf.mxu2 }
 0x399   :  { %v7822_v17 = vpop.f32.mrf.mxu3 }
 0x39d   :  { %v11697_v18 = vpop.eup %11696 }
 0x39e   :  { %v7827_v19 = vadd.f32 1.0, %v11697_v18 }
 0x3a0   :  { %11698 = vrcp.f32 %v7827_v19  ;;  %v7839_v23 = vand.u32 2147483648, %v7827_v19  ;;  %v7837_v25 = vand.u32 2147483647, %v7827_v19  ;;  %vm7833_vm1 = vweird.f32 %v7827_v19 }
 0x3a2   :  { %v7840_v27 = vor.u32 1.1754944e-38, %v7839_v23  ;;  %vm7838_vm3 = vcmp.eq.f32.partialorder %v7837_v25, 8.507059e+37 }
 0x3a6   :  { %v11699_v20 = vpop.eup %11698 }
 0x3a7   :  { %v7829_v21 = vmul.f32 %v11699_v20, %v7827_v19  ;;  %vm7834_vm0 = vweird.f32 %v11699_v20 }
 0x3a8   :  { %vm7835_vm2 = vmor %vm7833_vm1, %vm7834_vm0 }
 0x3a9   :  { %v7830_v22 = vsub.f32 1.0, %v7829_v21 }
 0x3ab   :  { %v7831_v24 = vmul.f32 %v11699_v20, %v7830_v22 }
 0x3ad   :  { %v7832_v26 = vadd.f32 %v11699_v20, %v7831_v24 }
 0x3af   :  { %v7836_v28 = vsel %vm7835_vm2, %v11699_v20, %v7832_v26 }
 0x3b0   :  { %v7841_v29 = vsel %vm7838_vm3, %v7840_v27, %v7836_v28 }
 0x3b1   :  { %7843 = vst [vmem:[%s11986_s3] sm:$0xff] %v7841_v29 }
 0x3b2   :  { %7848 = vsyncpa [#allocation3], 1 }
 0x3b3   :  { %7849 = vsyncpa [#allocation5], 1 }

// kernel: _mlp_forward_impl.1
= control target key start
LH: loop header
LB: loop body
LE: loop exit
PB: predicated region body
PF: predicated region fallthrough
CT: control target
= control target key end

     0   :  { %8 = vsyncpa [#allocation3], 0  ;;  %s11983_s0 = inlined_call_operand.vmem [shape: bf16[8,12288], index: 0, kind: input, shape index: {}]   ;;  %s11984_s1 = inlined_call_operand.hbm [shape: bf16[12288,128], index: 1, kind: input, shape index: {}]   ;;  %s11985_s2 = inlined_call_operand.hbm [shape: f32[1,128], index: 2, kind: input, shape index: {}]   ;;  %s11986_s3 = inlined_call_operand.vmem [shape: f32[8,128], index: 3, kind: output, shape index: {}]  }
   0x1   :  { %s16_s14 = sshll.u32 %s11984_s1, 4  ;;  %s17_s14 = int_to_ptr.hbm [resolvable:$true] %s16_s14 }
   0x2   :  { %9 = vsyncpa [#allocation5], 0  ;;  %s11752_s15 = smov [#allocation2]   ;;  %s30_s19 = sshll.u32 %s11985_s2, 4  ;;  %s31_s19 = int_to_ptr.hbm [resolvable:$true] %s30_s19 }
   0x3   :  { %s18_s16 = sshll.u32 %s11752_s15, 4  ;;  %s11753_s20 = smov 64   ;;  %s19_s16 = int_to_ptr.vmem [resolvable:$true] %s18_s16 }
   0x4   :  { %s11754_s21 = smov 4   ;;  %s11755_s22 = smov [#allocation4]  }
   0x5   :  { %24 = dma.hbm_to_vmem [thread:$0]  %s17_s14, 98304, %s19_s16, [#allocation3], %s11753_s20, %s11753_s20, %s11754_s21  }
   0x6   :  { %s32_s23 = sshll.u32 %s11755_s22, 4  ;;  %s33_s23 = int_to_ptr.vmem [resolvable:$true] %s32_s23 }
   0x7   :  { %35 = dma.hbm_to_vmem [thread:$0]  %s31_s19, 16, %s33_s23, [#allocation5]  }
   0x8   :  { %11748 = dma.done.wait [#allocation3], 98304  }
   0x9   :  { %11749 = vsyncadd [#allocation3], 4294868992 }
   0xa   :  { %11750 = dma.done.wait [#allocation5], 16  }
   0xb   :  { %11751 = vsyncadd [#allocation5], 4294967280  ;;  %v10930_v0 = vld [vmem:[#allocation2 + $0x38] sm:$0xff]  ;;  %v10929_v4 = vld [vmem:[#allocation2 + $0x30] sm:$0xff] }
   0xc   :  { %v10938_v1 = vld [vmem:[#allocation2 + $0x78] sm:$0xff]  ;;  %6576 = vmatpush.bf16.msra.mxu0 %v10930_v0  ;;  %v10937_v5 = vld [vmem:[#allocation2 + $0x70] sm:$0xff]  ;;  %v10928_v8 = vld [vmem:[#allocation2 + $0x28] sm:$0xff] }
   0xd   :  { %v10946_v2 = vld [vmem:[#allocation2 + $0xb8] sm:$0xff]  ;;  %6589 = vmatpush.bf16.msra.mxu1 %v10938_v1  ;;  %v10945_v6 = vld [vmem:[#allocation2 + $0xb0] sm:$0xff]  ;;  %v10936_v9 = vld [vmem:[#allocation2 + $0x68] sm:$0xff] }
   0xe   :  { %v10954_v3 = vld [vmem:[#allocation2 + $0xf8] sm:$0xff]  ;;  %6602 = vmatpush.bf16.msra.mxu2 %v10946_v2  ;;  %v10953_v7 = vld [vmem:[#allocation2 + $0xf0] sm:$0xff]  ;;  %v10944_v10 = vld [vmem:[#allocation2 + $0xa8] sm:$0xff] }
   0xf   :  { %6615 = vmatpush.bf16.msra.mxu3 %v10954_v3  ;;  %v10952_v11 = vld [vmem:[#allocation2 + $0xe8] sm:$0xff]  ;;  %v10927_v12 = vld [vmem:[#allocation2 + $0x20] sm:$0xff]  ;;  %v10926_v16 = vld [vmem:[#allocation2 + $0x18] sm:$0xff] }
  0x10   :  { %6577 = vmatpush.bf16.msra.mxu0 %v10929_v4  ;;  %v10935_v13 = vld [vmem:[#allocation2 + $0x60] sm:$0xff]  ;;  %v10934_v17 = vld [vmem:[#allocation2 + $0x58] sm:$0xff]  ;;  %v10925_v20 = vld [vmem:[#allocation2 + $0x10] sm:$0xff] }
  0x11   :  { %6590 = vmatpush.bf16.msra.mxu1 %v10937_v5  ;;  %v10943_v14 = vld [vmem:[#allocation2 + $0xa0] sm:$0xff]  ;;  %v10942_v18 = vld [vmem:[#allocation2 + $0x98] sm:$0xff]  ;;  %v10933_v21 = vld [vmem:[#allocation2 + $0x50] sm:$0xff] }
  0x12   :  { %6603 = vmatpush.bf16.msra.mxu2 %v10945_v6  ;;  %v10951_v15 = vld [vmem:[#allocation2 + $0xe0] sm:$0xff]  ;;  %v10950_v19 = vld [vmem:[#allocation2 + $0xd8] sm:$0xff]  ;;  %v10941_v22 = vld [vmem:[#allocation2 + $0x90] sm:$0xff] }
  0x13   :  { %6616 = vmatpush.bf16.msra.mxu3 %v10953_v7  ;;  %v10949_v23 = vld [vmem:[#allocation2 + $0xd0] sm:$0xff]  ;;  %v10924_v24 = vld [vmem:[#allocation2 + $0x8] sm:$0xff]  ;;  %v44_v29 = vld [vmem:[%s11983_s0] sm:$0xff] }
  0x14   :  { %6578 = vmatpush.bf16.msra.mxu0 %v10928_v8  ;;  %v10932_v25 = vld [vmem:[#allocation2 + $0x48] sm:$0xff]  ;;  %v10923_v30 = vld [vmem:[#allocation2] sm:$0xff]  ;;  %v1680_v33 = vunpack.c.l.b16 %v44_v29  ;;  %v1681_v37 = vunpack.c.h.b16 %v44_v29  ;;  %v10962_v38 = vld [vmem:[#allocation2 + $0x138] sm:$0xff] }
  0x15   :  { %6591 = vmatpush.bf16.msra.mxu1 %v10936_v9  ;;  %v10940_v26 = vld [vmem:[#allocation2 + $0x88] sm:$0xff]  ;;  %v10931_v31 = vld [vmem:[#allocation2 + $0x40] sm:$0xff]  ;;  %v10970_v39 = vld [vmem:[#allocation2 + $0x178] sm:$0xff] }
  0x16   :  { %6604 = vmatpush.bf16.msra.mxu2 %v10944_v10  ;;  %v10948_v27 = vld [vmem:[#allocation2 + $0xc8] sm:$0xff]  ;;  %v10939_v34 = vld [vmem:[#allocation2 + $0x80] sm:$0xff]  ;;  %v10978_v40 = vld [vmem:[#allocation2 + $0x1b8] sm:$0xff]  ;;  %v1776_v43 = vpack.c.b16 %v1680_v33, %v1680_v33  ;;  %v1777_v45 = vpack.c.b16 %v1681_v37, %v1681_v37 }
  0x17   :  { %6617 = vmatpush.bf16.msra.mxu3 %v10952_v11  ;;  %v45_v28 = vld [vmem:[%s11983_s0 + $0x8] sm:$0xff]  ;;  %v10947_v35 = vld [vmem:[#allocation2 + $0xc0] sm:$0xff]  ;;  %v10986_v41 = vld [vmem:[#allocation2 + $0x1f8] sm:$0xff] }
  0x18   :  { %6579 = vmatpush.bf16.msra.mxu0 %v10927_v12  ;;  %v1682_v32 = vunpack.c.l.b16 %v45_v28  ;;  %v1683_v36 = vunpack.c.h.b16 %v45_v28  ;;  %v10961_v46 = vld [vmem:[#allocation2 + $0x130] sm:$0xff]  ;;  %v10960_v50 = vld [vmem:[#allocation2 + $0x128] sm:$0xff]  ;;  %v10959_v54 = vld [vmem:[#allocation2 + $0x120] sm:$0xff] }
  0x19   :  { %6592 = vmatpush.bf16.msra.mxu1 %v10935_v13  ;;  %v10969_v47 = vld [vmem:[#allocation2 + $0x170] sm:$0xff]  ;;  %v10968_v51 = vld [vmem:[#allocation2 + $0x168] sm:$0xff]  ;;  %v10967_v55 = vld [vmem:[#allocation2 + $0x160] sm:$0xff] }
  0x1a   :  { %6605 = vmatpush.bf16.msra.mxu2 %v10943_v14  ;;  %v1778_v42 = vpack.c.b16 %v1682_v32, %v1682_v32  ;;  %v1779_v44 = vpack.c.b16 %v1683_v36, %v1683_v36  ;;  %v10977_v48 = vld [vmem:[#allocation2 + $0x1b0] sm:$0xff]  ;;  %v10976_v52 = vld [vmem:[#allocation2 + $0x1a8] sm:$0xff]  ;;  %v10975_v56 = vld [vmem:[#allocation2 + $0x1a0] sm:$0xff] }
  0x1b   :  { %6618 = vmatpush.bf16.msra.mxu3 %v10951_v15  ;;  %v10985_v49 = vld [vmem:[#allocation2 + $0x1f0] sm:$0xff]  ;;  %v10984_v53 = vld [vmem:[#allocation2 + $0x1e8] sm:$0xff]  ;;  %v10983_v57 = vld [vmem:[#allocation2 + $0x1e0] sm:$0xff] }
  0x1c   :  { %6580 = vmatpush.bf16.msra.mxu0 %v10926_v16  ;;  %v10958_v58 = vld [vmem:[#allocation2 + $0x118] sm:$0xff]  ;;  %v10957_v62 = vld [vmem:[#allocation2 + $0x110] sm:$0xff]  ;;  %v10956_v2 = vld [vmem:[#allocation2 + $0x108] sm:$0xff] }
  0x1d   :  { %6593 = vmatpush.bf16.msra.mxu1 %v10934_v17  ;;  %v10966_v59 = vld [vmem:[#allocation2 + $0x158] sm:$0xff]  ;;  %v10965_v63 = vld [vmem:[#allocation2 + $0x150] sm:$0xff]  ;;  %v10964_v3 = vld [vmem:[#allocation2 + $0x148] sm:$0xff] }
  0x1e   :  { %6606 = vmatpush.bf16.msra.mxu2 %v10942_v18  ;;  %v10974_v60 = vld [vmem:[#allocation2 + $0x198] sm:$0xff]  ;;  %v10973_v0 = vld [vmem:[#allocation2 + $0x190] sm:$0xff]  ;;  %v10972_v4 = vld [vmem:[#allocation2 + $0x188] sm:$0xff] }
  0x1f   :  { %6619 = vmatpush.bf16.msra.mxu3 %v10950_v19  ;;  %v10982_v61 = vld [vmem:[#allocation2 + $0x1d8] sm:$0xff]  ;;  %v10981_v1 = vld [vmem:[#allocation2 + $0x1d0] sm:$0xff]  ;;  %v10980_v5 = vld [vmem:[#allocation2 + $0x1c8] sm:$0xff] }
  0x20   :  { %6581 = vmatpush.bf16.msra.mxu0 %v10925_v20  ;;  %v47_v6 = vld [vmem:[%s11983_s0 + $0x18] sm:$0xff]  ;;  %v46_v7 = vld [vmem:[%s11983_s0 + $0x10] sm:$0xff]  ;;  %v10955_v8 = vld [vmem:[#allocation2 + $0x100] sm:$0xff] }
  0x21   :  { %6594 = vmatpush.bf16.msra.mxu1 %v10933_v21  ;;  %v10963_v9 = vld [vmem:[#allocation2 + $0x140] sm:$0xff]  ;;  %v1686_v10 = vunpack.c.l.b16 %v47_v6  ;;  %v1684_v11 = vunpack.c.l.b16 %v46_v7  ;;  %v1687_v14 = vunpack.c.h.b16 %v47_v6  ;;  %v1685_v15 = vunpack.c.h.b16 %v46_v7  ;;  %v10994_v16 = vld [vmem:[#allocation2 + $0x238] sm:$0xff]  ;;  %v10992_v28 = vld [vmem:[#allocation2 + $0x228] sm:$0xff] }
  0x22   :  { %6607 = vmatpush.bf16.msra.mxu2 %v10941_v22  ;;  %v10971_v12 = vld [vmem:[#allocation2 + $0x180] sm:$0xff]  ;;  %v11002_v17 = vld [vmem:[#allocation2 + $0x278] sm:$0xff]  ;;  %v11000_v29 = vld [vmem:[#allocation2 + $0x268] sm:$0xff] }
  0x23   :  { %6620 = vmatpush.bf16.msra.mxu3 %v10949_v23  ;;  %v10979_v13 = vld [vmem:[#allocation2 + $0x1c0] sm:$0xff]  ;;  %v11010_v18 = vld [vmem:[#allocation2 + $0x2b8] sm:$0xff]  ;;  %v1782_v20 = vpack.c.b16 %v1686_v10, %v1686_v10  ;;  %v1780_v21 = vpack.c.b16 %v1684_v11, %v1684_v11  ;;  %v1783_v22 = vpack.c.b16 %v1687_v14, %v1687_v14  ;;  %v1781_v23 = vpack.c.b16 %v1685_v15, %v1685_v15  ;;  %v11024_v6 = vld [vmem:[#allocation2 + $0x328] sm:$0xff] }
  0x24   :  { %6582 = vmatpush.bf16.msra.mxu0 %v10924_v24  ;;  %v11018_v19 = vld [vmem:[#allocation2 + $0x2f8] sm:$0xff]  ;;  %v10993_v24 = vld [vmem:[#allocation2 + $0x230] sm:$0xff]  ;;  %v10991_v32 = vld [vmem:[#allocation2 + $0x220] sm:$0xff] }
  0x25   :  { %6595 = vmatpush.bf16.msra.mxu1 %v10932_v25  ;;  %v11001_v25 = vld [vmem:[#allocation2 + $0x270] sm:$0xff]  ;;  %v10999_v33 = vld [vmem:[#allocation2 + $0x260] sm:$0xff]  ;;  %v10990_v36 = vld [vmem:[#allocation2 + $0x218] sm:$0xff] }
  0x26   :  { %6608 = vmatpush.bf16.msra.mxu2 %v10940_v26  ;;  %v11009_v26 = vld [vmem:[#allocation2 + $0x2b0] sm:$0xff]  ;;  %v10998_v37 = vld [vmem:[#allocation2 + $0x258] sm:$0xff]  ;;  %v11032_v7 = vld [vmem:[#allocation2 + $0x368] sm:$0xff] }
  0x27   :  { %6621 = vmatpush.bf16.msra.mxu3 %v10948_v27  ;;  %v11017_v27 = vld [vmem:[#allocation2 + $0x2f0] sm:$0xff]  ;;  %v11023_v10 = vld [vmem:[#allocation2 + $0x320] sm:$0xff]  ;;  %v11022_v14 = vld [vmem:[#allocation2 + $0x318] sm:$0xff] }
  0x28   :  { %6583 = vmatpush.bf16.msra.mxu0 %v10923_v30  ;;  %v11008_v30 = vld [vmem:[#allocation2 + $0x2a8] sm:$0xff]  ;;  %v11031_v11 = vld [vmem:[#allocation2 + $0x360] sm:$0xff]  ;;  %v11030_v15 = vld [vmem:[#allocation2 + $0x358] sm:$0xff] }
  0x29   :  { %6596 = vmatpush.bf16.msra.mxu1 %v10931_v31  ;;  %v11016_v31 = vld [vmem:[#allocation2 + $0x2e8] sm:$0xff] }
  0x2a   :  { %6609 = vmatpush.bf16.msra.mxu2 %v10939_v34  ;;  %v11007_v34 = vld [vmem:[#allocation2 + $0x2a0] sm:$0xff] }
  0x2b   :  { %6622 = vmatpush.bf16.msra.mxu3 %v10947_v35  ;;  %6584 = vmatmul.bf16.vlgmr.msra.gmra.mxu0 %v1776_v43  ;;  %v11015_v35 = vld [vmem:[#allocation2 + $0x2e0] sm:$0xff]  ;;  %v11013_v43 = vld [vmem:[#allocation2 + $0x2d0] sm:$0xff] }
  0x2c   :  { %6628 = vmatpush.bf16.msrb.mxu0 %v10962_v38  ;;  %6597 = vmatmul.bf16.vlgmr.msra.gmra.mxu1 %v1777_v45  ;;  %v11006_v38 = vld [vmem:[#allocation2 + $0x298] sm:$0xff]  ;;  %v10996_v45 = vld [vmem:[#allocation2 + $0x248] sm:$0xff] }
  0x2d   :  { %6641 = vmatpush.bf16.msrb.mxu1 %v10970_v39  ;;  %6610 = vmatmul.bf16.vlgmr.msra.gmra.mxu2 %v1778_v42  ;;  %v11014_v39 = vld [vmem:[#allocation2 + $0x2d8] sm:$0xff]  ;;  %v11005_v42 = vld [vmem:[#allocation2 + $0x290] sm:$0xff] }
  0x2e   :  { %6654 = vmatpush.bf16.msrb.mxu2 %v10978_v40  ;;  %6623 = vmatmul.bf16.vlgmr.msra.gmra.mxu3 %v1779_v44  ;;  %v10989_v40 = vld [vmem:[#allocation2 + $0x210] sm:$0xff]  ;;  %v10988_v44 = vld [vmem:[#allocation2 + $0x208] sm:$0xff] }
  0x2f   :  { %6667 = vmatpush.bf16.msrb.mxu3 %v10986_v41  ;;  %v10997_v41 = vld [vmem:[#allocation2 + $0x250] sm:$0xff] }
  0x30   :  { %6629 = vmatpush.bf16.msrb.mxu0 %v10961_v46  ;;  %v11004_v46 = vld [vmem:[#allocation2 + $0x288] sm:$0xff] }
  0x31   :  { %6642 = vmatpush.bf16.msrb.mxu1 %v10969_v47  ;;  %v11012_v47 = vld [vmem:[#allocation2 + $0x2c8] sm:$0xff] }
  0x32   :  { %6655 = vmatpush.bf16.msrb.mxu2 %v10977_v48  ;;  %v48_v48 = vld [vmem:[%s11983_s0 + $0x20] sm:$0xff] }
  0x33   :  { %6668 = vmatpush.bf16.msrb.mxu3 %v10985_v49  ;;  %v49_v49 = vld [vmem:[%s11983_s0 + $0x28] sm:$0xff] }
  0x34   :  { %6630 = vmatpush.bf16.msrb.mxu0 %v10960_v50  ;;  %v10987_v50 = vld [vmem:[#allocation2 + $0x200] sm:$0xff] }
  0x35   :  { %6643 = vmatpush.bf16.msrb.mxu1 %v10968_v51  ;;  %v10995_v51 = vld [vmem:[#allocation2 + $0x240] sm:$0xff] }
  0x36   :  { %6656 = vmatpush.bf16.msrb.mxu2 %v10976_v52  ;;  %v1688_v52 = vunpack.c.l.b16 %v48_v48 }
  0x37   :  { %6669 = vmatpush.bf16.msrb.mxu3 %v10984_v53  ;;  %v1690_v53 = vunpack.c.l.b16 %v49_v49 }
  0x38   :  { %6631 = vmatpush.bf16.msrb.mxu0 %v10959_v54  ;;  %v11003_v54 = vld [vmem:[#allocation2 + $0x280] sm:$0xff] }
  0x39   :  { %6644 = vmatpush.bf16.msrb.mxu1 %v10967_v55  ;;  %v11011_v55 = vld [vmem:[#allocation2 + $0x2c0] sm:$0xff] }
  0x3a   :  { %6657 = vmatpush.bf16.msrb.mxu2 %v10975_v56  ;;  %v1689_v56 = vunpack.c.h.b16 %v48_v48  ;;  %v11056_v48 = vld [vmem:[#allocation2 + $0x428] sm:$0xff] }
  0x3b   :  { %6670 = vmatpush.bf16.msrb.mxu3 %v10983_v57  ;;  %v1691_v57 = vunpack.c.h.b16 %v49_v49  ;;  %v11064_v49 = vld [vmem:[#allocation2 + $0x468] sm:$0xff] }
  0x3c   :  { %6632 = vmatpush.bf16.msrb.mxu0 %v10958_v58  ;;  %v11026_v58 = vld [vmem:[#allocation2 + $0x338] sm:$0xff] }
  0x3d   :  { %6645 = vmatpush.bf16.msrb.mxu1 %v10966_v59  ;;  %v11034_v59 = vld [vmem:[#allocation2 + $0x378] sm:$0xff] }
  0x3e   :  { %6658 = vmatpush.bf16.msrb.mxu2 %v10974_v60  ;;  %v11042_v60 = vld [vmem:[#allocation2 + $0x3b8] sm:$0xff] }
  0x3f   :  { %6671 = vmatpush.bf16.msrb.mxu3 %v10982_v61  ;;  %v11050_v61 = vld [vmem:[#allocation2 + $0x3f8] sm:$0xff] }
  0x40   :  { %6633 = vmatpush.bf16.msrb.mxu0 %v10957_v62  ;;  %v1784_v62 = vpack.c.b16 %v1688_v52, %v1688_v52  ;;  %v11055_v52 = vld [vmem:[#allocation2 + $0x420] sm:$0xff] }
  0x41   :  { %6646 = vmatpush.bf16.msrb.mxu1 %v10965_v63  ;;  %v1786_v63 = vpack.c.b16 %v1690_v53, %v1690_v53  ;;  %v11063_v53 = vld [vmem:[#allocation2 + $0x460] sm:$0xff] }
  0x42   :  { %6659 = vmatpush.bf16.msrb.mxu2 %v10973_v0  ;;  %v1785_v0 = vpack.c.b16 %v1689_v56, %v1689_v56  ;;  %v11054_v56 = vld [vmem:[#allocation2 + $0x418] sm:$0xff] }
  0x43   :  { %6672 = vmatpush.bf16.msrb.mxu3 %v10981_v1  ;;  %v1787_v1 = vpack.c.b16 %v1691_v57, %v1691_v57  ;;  %v11062_v57 = vld [vmem:[#allocation2 + $0x458] sm:$0xff] }
  0x44   :  { %6634 = vmatpush.bf16.msrb.mxu0 %v10956_v2  ;;  %v11025_v2 = vld [vmem:[#allocation2 + $0x330] sm:$0xff] }
  0x45   :  { %6647 = vmatpush.bf16.msrb.mxu1 %v10964_v3  ;;  %v11033_v3 = vld [vmem:[#allocation2 + $0x370] sm:$0xff] }
  0x46   :  { %6660 = vmatpush.bf16.msrb.mxu2 %v10972_v4  ;;  %v11041_v4 = vld [vmem:[#allocation2 + $0x3b0] sm:$0xff] }
  0x47   :  { %6673 = vmatpush.bf16.msrb.mxu3 %v10980_v5  ;;  %v11049_v5 = vld [vmem:[#allocation2 + $0x3f0] sm:$0xff] }
  0x48   :  { %6635 = vmatpush.bf16.msrb.mxu0 %v10955_v8  ;;  %v11040_v8 = vld [vmem:[#allocation2 + $0x3a8] sm:$0xff] }
  0x49   :  { %6648 = vmatpush.bf16.msrb.mxu1 %v10963_v9  ;;  %v11048_v9 = vld [vmem:[#allocation2 + $0x3e8] sm:$0xff] }
  0x4a   :  { %6661 = vmatpush.bf16.msrb.mxu2 %v10971_v12  ;;  %v11039_v12 = vld [vmem:[#allocation2 + $0x3a0] sm:$0xff] }
  0x4b   :  { %6674 = vmatpush.bf16.msrb.mxu3 %v10979_v13  ;;  %6636 = vmatmul.bf16.vlgmr.msrb.gmra.mxu0 %v1780_v21  ;;  %v11047_v13 = vld [vmem:[#allocation2 + $0x3e0] sm:$0xff]  ;;  %v11045_v21 = vld [vmem:[#allocation2 + $0x3d0] sm:$0xff] }
  0x4c   :  { %6680 = vmatpush.bf16.msra.mxu0 %v10994_v16  ;;  %6649 = vmatmul.bf16.vlgmr.msrb.gmra.mxu1 %v1781_v23  ;;  %v11038_v16 = vld [vmem:[#allocation2 + $0x398] sm:$0xff]  ;;  %v11028_v23 = vld [vmem:[#allocation2 + $0x348] sm:$0xff] }
  0x4d   :  { %6693 = vmatpush.bf16.msra.mxu1 %v11002_v17  ;;  %6662 = vmatmul.bf16.vlgmr.msrb.gmra.mxu2 %v1782_v20  ;;  %v11046_v17 = vld [vmem:[#allocation2 + $0x3d8] sm:$0xff]  ;;  %v11037_v20 = vld [vmem:[#allocation2 + $0x390] sm:$0xff] }
  0x4e   :  { %6706 = vmatpush.bf16.msra.mxu2 %v11010_v18  ;;  %6675 = vmatmul.bf16.vlgmr.msrb.gmra.mxu3 %v1783_v22  ;;  %v11021_v18 = vld [vmem:[#allocation2 + $0x310] sm:$0xff]  ;;  %v11020_v22 = vld [vmem:[#allocation2 + $0x308] sm:$0xff] }
  0x4f   :  { %6719 = vmatpush.bf16.msra.mxu3 %v11018_v19  ;;  %v11029_v19 = vld [vmem:[#allocation2 + $0x350] sm:$0xff] }
  0x50   :  { %6681 = vmatpush.bf16.msra.mxu0 %v10993_v24  ;;  %v11036_v24 = vld [vmem:[#allocation2 + $0x388] sm:$0xff] }
  0x51   :  { %6694 = vmatpush.bf16.msra.mxu1 %v11001_v25  ;;  %v11044_v25 = vld [vmem:[#allocation2 + $0x3c8] sm:$0xff] }
  0x52   :  { %6707 = vmatpush.bf16.msra.mxu2 %v11009_v26  ;;  %v50_v26 = vld [vmem:[%s11983_s0 + $0x30] sm:$0xff] }
  0x53   :  { %6720 = vmatpush.bf16.msra.mxu3 %v11017_v27  ;;  %v51_v27 = vld [vmem:[%s11983_s0 + $0x38] sm:$0xff] }
  0x54   :  { %6682 = vmatpush.bf16.msra.mxu0 %v10992_v28  ;;  %v11019_v28 = vld [vmem:[#allocation2 + $0x300] sm:$0xff] }
  0x55   :  { %6695 = vmatpush.bf16.msra.mxu1 %v11000_v29  ;;  %v11027_v29 = vld [vmem:[#allocation2 + $0x340] sm:$0xff] }
  0x56   :  { %6708 = vmatpush.bf16.msra.mxu2 %v11008_v30  ;;  %v1692_v30 = vunpack.c.l.b16 %v50_v26 }
  0x57   :  { %6721 = vmatpush.bf16.msra.mxu3 %v11016_v31  ;;  %v1694_v31 = vunpack.c.l.b16 %v51_v27 }
  0x58   :  { %6683 = vmatpush.bf16.msra.mxu0 %v10991_v32  ;;  %v11035_v32 = vld [vmem:[#allocation2 + $0x380] sm:$0xff] }
  0x59   :  { %6696 = vmatpush.bf16.msra.mxu1 %v10999_v33  ;;  %v11043_v33 = vld [vmem:[#allocation2 + $0x3c0] sm:$0xff] }
  0x5a   :  { %6709 = vmatpush.bf16.msra.mxu2 %v11007_v34  ;;  %v1693_v34 = vunpack.c.h.b16 %v50_v26  ;;  %v11088_v26 = vld [vmem:[#allocation2 + $0x528] sm:$0xff] }
  0x5b   :  { %6722 = vmatpush.bf16.msra.mxu3 %v11015_v35  ;;  %v1695_v35 = vunpack.c.h.b16 %v51_v27  ;;  %v11096_v27 = vld [vmem:[#allocation2 + $0x568] sm:$0xff] }
  0x5c   :  { %6684 = vmatpush.bf16.msra.mxu0 %v10990_v36  ;;  %v11058_v36 = vld [vmem:[#allocation2 + $0x438] sm:$0xff] }
  0x5d   :  { %6697 = vmatpush.bf16.msra.mxu1 %v10998_v37  ;;  %v11066_v37 = vld [vmem:[#allocation2 + $0x478] sm:$0xff] }
  0x5e   :  { %6710 = vmatpush.bf16.msra.mxu2 %v11006_v38  ;;  %v11074_v38 = vld [vmem:[#allocation2 + $0x4b8] sm:$0xff] }
  0x5f   :  { %6723 = vmatpush.bf16.msra.mxu3 %v11014_v39  ;;  %v11082_v39 = vld [vmem:[#allocation2 + $0x4f8] sm:$0xff] }
  0x60   :  { %6685 = vmatpush.bf16.msra.mxu0 %v10989_v40  ;;  %v1788_v40 = vpack.c.b16 %v1692_v30, %v1692_v30  ;;  %v11112_v30 = vld [vmem:[#allocation2 + $0x5e8] sm:$0xff] }
  0x61   :  { %6698 = vmatpush.bf16.msra.mxu1 %v10997_v41  ;;  %v1790_v41 = vpack.c.b16 %v1694_v31, %v1694_v31 }
  0x62   :  { %6711 = vmatpush.bf16.msra.mxu2 %v11005_v42  ;;  %v1789_v42 = vpack.c.b16 %v1693_v34, %v1693_v34 }
  0x63   :  { %6724 = vmatpush.bf16.msra.mxu3 %v11013_v43  ;;  %v1791_v43 = vpack.c.b16 %v1695_v35, %v1695_v35 }
  0x64   :  { %6686 = vmatpush.bf16.msra.mxu0 %v10988_v44  ;;  %v11057_v44 = vld [vmem:[#allocation2 + $0x430] sm:$0xff] }
  0x65   :  { %6699 = vmatpush.bf16.msra.mxu1 %v10996_v45  ;;  %v11065_v45 = vld [vmem:[#allocation2 + $0x470] sm:$0xff] }
  0x66   :  { %6712 = vmatpush.bf16.msra.mxu2 %v11004_v46  ;;  %v11073_v46 = vld [vmem:[#allocation2 + $0x4b0] sm:$0xff] }
  0x67   :  { %6725 = vmatpush.bf16.msra.mxu3 %v11012_v47  ;;  %v11081_v47 = vld [vmem:[#allocation2 + $0x4f0] sm:$0xff] }
  0x68   :  { %6687 = vmatpush.bf16.msra.mxu0 %v10987_v50  ;;  %v11072_v50 = vld [vmem:[#allocation2 + $0x4a8] sm:$0xff] }
  0x69   :  { %6700 = vmatpush.bf16.msra.mxu1 %v10995_v51  ;;  %v11080_v51 = vld [vmem:[#allocation2 + $0x4e8] sm:$0xff] }
  0x6a   :  { %6713 = vmatpush.bf16.msra.mxu2 %v11003_v54  ;;  %v11071_v54 = vld [vmem:[#allocation2 + $0x4a0] sm:$0xff] }
  0x6b   :  { %6726 = vmatpush.bf16.msra.mxu3 %v11011_v55  ;;  %6688 = vmatmul.bf16.vlgmr.msra.gmra.mxu0 %v1784_v62  ;;  %v11079_v55 = vld [vmem:[#allocation2 + $0x4e0] sm:$0xff]  ;;  %v11069_v62 = vld [vmem:[#allocation2 + $0x490] sm:$0xff] }
  0x6c   :  { %6732 = vmatpush.bf16.msrb.mxu0 %v11026_v58  ;;  %6701 = vmatmul.bf16.vlgmr.msra.gmra.mxu1 %v1785_v0  ;;  %v11070_v58 = vld [vmem:[#allocation2 + $0x498] sm:$0xff]  ;;  %v11052_v0 = vld [vmem:[#allocation2 + $0x408] sm:$0xff] }
  0x6d   :  { %6745 = vmatpush.bf16.msrb.mxu1 %v11034_v59  ;;  %6714 = vmatmul.bf16.vlgmr.msra.gmra.mxu2 %v1786_v63  ;;  %v11078_v59 = vld [vmem:[#allocation2 + $0x4d8] sm:$0xff]  ;;  %v11077_v63 = vld [vmem:[#allocation2 + $0x4d0] sm:$0xff] }
  0x6e   :  { %6758 = vmatpush.bf16.msrb.mxu2 %v11042_v60  ;;  %6727 = vmatmul.bf16.vlgmr.msra.gmra.mxu3 %v1787_v1  ;;  %v11053_v60 = vld [vmem:[#allocation2 + $0x410] sm:$0xff]  ;;  %v11060_v1 = vld [vmem:[#allocation2 + $0x448] sm:$0xff] }
  0x6f   :  { %6771 = vmatpush.bf16.msrb.mxu3 %v11050_v61  ;;  %v11061_v61 = vld [vmem:[#allocation2 + $0x450] sm:$0xff] }
  0x70   :  { %6733 = vmatpush.bf16.msrb.mxu0 %v11025_v2  ;;  %v11068_v2 = vld [vmem:[#allocation2 + $0x488] sm:$0xff] }
  0x71   :  { %6746 = vmatpush.bf16.msrb.mxu1 %v11033_v3  ;;  %v11076_v3 = vld [vmem:[#allocation2 + $0x4c8] sm:$0xff] }
  0x72   :  { %6759 = vmatpush.bf16.msrb.mxu2 %v11041_v4  ;;  %v52_v4 = vld [vmem:[%s11983_s0 + $0x40] sm:$0xff] }
  0x73   :  { %6772 = vmatpush.bf16.msrb.mxu3 %v11049_v5  ;;  %v53_v5 = vld [vmem:[%s11983_s0 + $0x48] sm:$0xff] }
  0x74   :  { %6734 = vmatpush.bf16.msrb.mxu0 %v11024_v6  ;;  %v11051_v6 = vld [vmem:[#allocation2 + $0x400] sm:$0xff] }
  0x75   :  { %6747 = vmatpush.bf16.msrb.mxu1 %v11032_v7  ;;  %v11059_v7 = vld [vmem:[#allocation2 + $0x440] sm:$0xff] }
  0x76   :  { %6760 = vmatpush.bf16.msrb.mxu2 %v11040_v8  ;;  %v1696_v8 = vunpack.c.l.b16 %v52_v4 }
  0x77   :  { %6773 = vmatpush.bf16.msrb.mxu3 %v11048_v9  ;;  %v1698_v9 = vunpack.c.l.b16 %v53_v5 }
  0x78   :  { %6735 = vmatpush.bf16.msrb.mxu0 %v11023_v10  ;;  %v11067_v10 = vld [vmem:[#allocation2 + $0x480] sm:$0xff] }
  0x79   :  { %6748 = vmatpush.bf16.msrb.mxu1 %v11031_v11  ;;  %v11075_v11 = vld [vmem:[#allocation2 + $0x4c0] sm:$0xff] }
  0x7a   :  { %6761 = vmatpush.bf16.msrb.mxu2 %v11039_v12  ;;  %v1697_v12 = vunpack.c.h.b16 %v52_v4 }
  0x7b   :  { %6774 = vmatpush.bf16.msrb.mxu3 %v11047_v13  ;;  %v1699_v13 = vunpack.c.h.b16 %v53_v5  ;;  %v11122_v5 = vld [vmem:[#allocation2 + $0x638] sm:$0xff] }
  0x7c   :  { %6736 = vmatpush.bf16.msrb.mxu0 %v11022_v14  ;;  %v11090_v14 = vld [vmem:[#allocation2 + $0x538] sm:$0xff] }
  0x7d   :  { %6749 = vmatpush.bf16.msrb.mxu1 %v11030_v15  ;;  %v11098_v15 = vld [vmem:[#allocation2 + $0x578] sm:$0xff] }
  0x7e   :  { %6762 = vmatpush.bf16.msrb.mxu2 %v11038_v16  ;;  %v11106_v16 = vld [vmem:[#allocation2 + $0x5b8] sm:$0xff] }
  0x7f   :  { %6775 = vmatpush.bf16.msrb.mxu3 %v11046_v17  ;;  %v11114_v17 = vld [vmem:[#allocation2 + $0x5f8] sm:$0xff] }
  0x80   :  { %6737 = vmatpush.bf16.msrb.mxu0 %v11021_v18  ;;  %v1792_v18 = vpack.c.b16 %v1696_v8, %v1696_v8  ;;  %v11146_v8 = vld [vmem:[#allocation2 + $0x6f8] sm:$0xff] }
  0x81   :  { %6750 = vmatpush.bf16.msrb.mxu1 %v11029_v19  ;;  %v1794_v19 = vpack.c.b16 %v1698_v9, %v1698_v9 }
  0x82   :  { %6763 = vmatpush.bf16.msrb.mxu2 %v11037_v20  ;;  %v1793_v20 = vpack.c.b16 %v1697_v12, %v1697_v12 }
  0x83   :  { %6776 = vmatpush.bf16.msrb.mxu3 %v11045_v21  ;;  %v1795_v21 = vpack.c.b16 %v1699_v13, %v1699_v13  ;;  %v11121_v13 = vld [vmem:[#allocation2 + $0x630] sm:$0xff] }
  0x84   :  { %6738 = vmatpush.bf16.msrb.mxu0 %v11020_v22  ;;  %v11089_v22 = vld [vmem:[#allocation2 + $0x530] sm:$0xff] }
  0x85   :  { %6751 = vmatpush.bf16.msrb.mxu1 %v11028_v23  ;;  %v11097_v23 = vld [vmem:[#allocation2 + $0x570] sm:$0xff] }
  0x86   :  { %6764 = vmatpush.bf16.msrb.mxu2 %v11036_v24  ;;  %v11105_v24 = vld [vmem:[#allocation2 + $0x5b0] sm:$0xff] }
  0x87   :  { %6777 = vmatpush.bf16.msrb.mxu3 %v11044_v25  ;;  %v11113_v25 = vld [vmem:[#allocation2 + $0x5f0] sm:$0xff] }
  0x88   :  { %6739 = vmatpush.bf16.msrb.mxu0 %v11019_v28  ;;  %v11695_v28 = vld [vmem:[#allocation4] ss:$0 sm:$0xff] }
  0x89   :  { %6752 = vmatpush.bf16.msrb.mxu1 %v11027_v29  ;;  %v11104_v29 = vld [vmem:[#allocation2 + $0x5a8] sm:$0xff] }
  0x8a   :  { %6765 = vmatpush.bf16.msrb.mxu2 %v11035_v32  ;;  %v11087_v32 = vld [vmem:[#allocation2 + $0x520] sm:$0xff] }
  0x8b   :  { %6778 = vmatpush.bf16.msrb.mxu3 %v11043_v33  ;;  %6740 = vmatmul.bf16.vlgmr.msrb.gmra.mxu0 %v1788_v40  ;;  %v11095_v33 = vld [vmem:[#allocation2 + $0x560] sm:$0xff]  ;;  %v11094_v40 = vld [vmem:[#allocation2 + $0x558] sm:$0xff] }
  0x8c   :  { %6784 = vmatpush.bf16.msra.mxu0 %v11058_v36  ;;  %6753 = vmatmul.bf16.vlgmr.msrb.gmra.mxu1 %v1789_v42  ;;  %v11103_v36 = vld [vmem:[#allocation2 + $0x5a0] sm:$0xff]  ;;  %v11110_v42 = vld [vmem:[#allocation2 + $0x5d8] sm:$0xff] }
  0x8d   :  { %6797 = vmatpush.bf16.msra.mxu1 %v11066_v37  ;;  %6766 = vmatmul.bf16.vlgmr.msrb.gmra.mxu2 %v1790_v41  ;;  %v11111_v37 = vld [vmem:[#allocation2 + $0x5e0] sm:$0xff]  ;;  %v11102_v41 = vld [vmem:[#allocation2 + $0x598] sm:$0xff] }
  0x8e   :  { %6810 = vmatpush.bf16.msra.mxu2 %v11074_v38  ;;  %6779 = vmatmul.bf16.vlgmr.msrb.gmra.mxu3 %v1791_v43 }
  0x8f   :  { %6823 = vmatpush.bf16.msra.mxu3 %v11082_v39  ;;  %v11086_v39 = vld [vmem:[#allocation2 + $0x518] sm:$0xff] }
  0x90   :  { %6785 = vmatpush.bf16.msra.mxu0 %v11057_v44 }
  0x91   :  { %6798 = vmatpush.bf16.msra.mxu1 %v11065_v45 }
  0x92   :  { %6811 = vmatpush.bf16.msra.mxu2 %v11073_v46 }
  0x93   :  { %6824 = vmatpush.bf16.msra.mxu3 %v11081_v47  ;;  %v11085_v47 = vld [vmem:[#allocation2 + $0x510] sm:$0xff] }
  0x94   :  { %6786 = vmatpush.bf16.msra.mxu0 %v11056_v48  ;;  %v11093_v48 = vld [vmem:[#allocation2 + $0x550] sm:$0xff] }
  0x95   :  { %6799 = vmatpush.bf16.msra.mxu1 %v11064_v49 }
  0x96   :  { %6812 = vmatpush.bf16.msra.mxu2 %v11072_v50 }
  0x97   :  { %6825 = vmatpush.bf16.msra.mxu3 %v11080_v51  ;;  %v11101_v51 = vld [vmem:[#allocation2 + $0x590] sm:$0xff] }
  0x98   :  { %6787 = vmatpush.bf16.msra.mxu0 %v11055_v52  ;;  %v11109_v52 = vld [vmem:[#allocation2 + $0x5d0] sm:$0xff] }
  0x99   :  { %6800 = vmatpush.bf16.msra.mxu1 %v11063_v53  ;;  %v11084_v53 = vld [vmem:[#allocation2 + $0x508] sm:$0xff] }
  0x9a   :  { %6813 = vmatpush.bf16.msra.mxu2 %v11071_v54  ;;  %v11092_v54 = vld [vmem:[#allocation2 + $0x548] sm:$0xff] }
  0x9b   :  { %6826 = vmatpush.bf16.msra.mxu3 %v11079_v55  ;;  %v11100_v55 = vld [vmem:[#allocation2 + $0x588] sm:$0xff] }
  0x9c   :  { %6788 = vmatpush.bf16.msra.mxu0 %v11054_v56  ;;  %v11108_v56 = vld [vmem:[#allocation2 + $0x5c8] sm:$0xff] }
  0x9d   :  { %6801 = vmatpush.bf16.msra.mxu1 %v11062_v57  ;;  %v54_v57 = vld [vmem:[%s11983_s0 + $0x50] sm:$0xff] }
  0x9e   :  { %6814 = vmatpush.bf16.msra.mxu2 %v11070_v58  ;;  %v55_v58 = vld [vmem:[%s11983_s0 + $0x58] sm:$0xff] }
  0x9f   :  { %6827 = vmatpush.bf16.msra.mxu3 %v11078_v59  ;;  %v1703_v4 = vunpack.c.h.b16 %v55_v58 }
  0xa0   :  { %6789 = vmatpush.bf16.msra.mxu0 %v11053_v60 }
  0xa1   :  { %6802 = vmatpush.bf16.msra.mxu1 %v11061_v61  ;;  %v11083_v61 = vld [vmem:[#allocation2 + $0x500] sm:$0xff]  ;;  %v1799_v12 = vpack.c.b16 %v1703_v4, %v1703_v4  ;;  %v11161_v4 = vld [vmem:[#allocation2 + $0x770] sm:$0xff] }
  0xa2   :  { %6815 = vmatpush.bf16.msra.mxu2 %v11069_v62  ;;  %v11091_v62 = vld [vmem:[#allocation2 + $0x540] sm:$0xff] }
  0xa3   :  { %6828 = vmatpush.bf16.msra.mxu3 %v11077_v63  ;;  %v1700_v63 = vunpack.c.l.b16 %v54_v57 }
  0xa4   :  { %6790 = vmatpush.bf16.msra.mxu0 %v11052_v0  ;;  %v1702_v0 = vunpack.c.l.b16 %v55_v58 }
  0xa5   :  { %6803 = vmatpush.bf16.msra.mxu1 %v11060_v1  ;;  %v11099_v1 = vld [vmem:[#allocation2 + $0x580] sm:$0xff]  ;;  %v1796_v9 = vpack.c.b16 %v1700_v63, %v1700_v63 }
  0xa6   :  { %6816 = vmatpush.bf16.msra.mxu2 %v11068_v2  ;;  %v11107_v2 = vld [vmem:[#allocation2 + $0x5c0] sm:$0xff] }
  0xa7   :  { %6829 = vmatpush.bf16.msra.mxu3 %v11076_v3  ;;  %v1701_v3 = vunpack.c.h.b16 %v54_v57 }
  0xa8   :  { %6791 = vmatpush.bf16.msra.mxu0 %v11051_v6  ;;  %v6585_v31 = vpop.f32.mrf.mxu0  ;;  %v11130_v6 = vld [vmem:[#allocation2 + $0x678] sm:$0xff] }
  0xa9   :  { %6804 = vmatpush.bf16.msra.mxu1 %v11059_v7  ;;  %v6586_v34 = vadd.f32 %v11695_v28, %v6585_v31  ;;  %v6598_v35 = vpop.f32.mrf.mxu1  ;;  %v11138_v7 = vld [vmem:[#allocation2 + $0x6b8] sm:$0xff] }
  0xaa   :  { %6817 = vmatpush.bf16.msra.mxu2 %v11067_v10  ;;  %v1798_v10 = vpack.c.b16 %v1702_v0, %v1702_v0  ;;  %v11134_v31 = vld [vmem:[#allocation2 + $0x698] sm:$0xff] }
  0xab   :  { %6830 = vmatpush.bf16.msra.mxu3 %v11075_v11  ;;  %6792 = vmatmul.bf16.vlgmr.msra.gmra.mxu0 %v1792_v18  ;;  %v6599_v38 = vadd.f32 %v6598_v35, %v6586_v34  ;;  %v1797_v11 = vpack.c.b16 %v1701_v3, %v1701_v3  ;;  %v11128_v18 = vld [vmem:[#allocation2 + $0x668] sm:$0xff]  ;;  %v11153_v3 = vld [vmem:[#allocation2 + $0x730] sm:$0xff] }
  0xac   :  { %6836 = vmatpush.bf16.msrb.mxu0 %v11090_v14  ;;  %6805 = vmatmul.bf16.vlgmr.msra.gmra.mxu1 %v1793_v20  ;;  %v11129_v14 = vld [vmem:[#allocation2 + $0x670] sm:$0xff]  ;;  %v11144_v20 = vld [vmem:[#allocation2 + $0x6e8] sm:$0xff] }
  0xad   :  { %6849 = vmatpush.bf16.msrb.mxu1 %v11098_v15  ;;  %6818 = vmatmul.bf16.vlgmr.msra.gmra.mxu2 %v1794_v19  ;;  %v11137_v15 = vld [vmem:[#allocation2 + $0x6b0] sm:$0xff]  ;;  %v11136_v19 = vld [vmem:[#allocation2 + $0x6a8] sm:$0xff] }
  0xae   :  { %6862 = vmatpush.bf16.msrb.mxu2 %v11106_v16  ;;  %6831 = vmatmul.bf16.vlgmr.msra.gmra.mxu3 %v1795_v21  ;;  %v11145_v16 = vld [vmem:[#allocation2 + $0x6f0] sm:$0xff] }
  0xaf   :  { %6875 = vmatpush.bf16.msrb.mxu3 %v11114_v17  ;;  %v11120_v17 = vld [vmem:[#allocation2 + $0x628] sm:$0xff] }
  0xb0   :  { %6837 = vmatpush.bf16.msrb.mxu0 %v11089_v22  ;;  %v6611_v43 = vpop.f32.mrf.mxu2  ;;  %v6587_v46 = vpop.f32.mrf.mxu0  ;;  %v11119_v22 = vld [vmem:[#allocation2 + $0x620] sm:$0xff] }
  0xb1   :  { %6850 = vmatpush.bf16.msrb.mxu1 %v11097_v23  ;;  %v6612_v44 = vadd.f32 %v6611_v43, %v6599_v38  ;;  %v6624_v45 = vpop.f32.mrf.mxu3  ;;  %v6600_v50 = vpop.f32.mrf.mxu1  ;;  %v11127_v23 = vld [vmem:[#allocation2 + $0x660] sm:$0xff]  ;;  %v11125_v38 = vld [vmem:[#allocation2 + $0x650] sm:$0xff]  ;;  %v11116_v43 = vld [vmem:[#allocation2 + $0x608] sm:$0xff] }
  0xb2   :  { %6863 = vmatpush.bf16.msrb.mxu2 %v11105_v24  ;;  %v11140_v46 = vld [vmem:[#allocation2 + $0x6c8] sm:$0xff] }
  0xb3   :  { %6876 = vmatpush.bf16.msrb.mxu3 %v11113_v25  ;;  %v11812_v49 = vadd.f32 %v6624_v45, %v6612_v44  ;;  %v11124_v44 = vld [vmem:[#allocation2 + $0x648] sm:$0xff] }
  0xb4   :  { %6838 = vmatpush.bf16.msrb.mxu0 %v11088_v26  ;;  %v11135_v26 = vld [vmem:[#allocation2 + $0x6a0] sm:$0xff]  ;;  %v11132_v45 = vld [vmem:[#allocation2 + $0x688] sm:$0xff] }
  0xb5   :  { %6851 = vmatpush.bf16.msrb.mxu1 %v11096_v27  ;;  %v11143_v27 = vld [vmem:[#allocation2 + $0x6e0] sm:$0xff] }
  0xb6   :  { %6864 = vmatpush.bf16.msrb.mxu2 %v11104_v29  ;;  %v11118_v29 = vld [vmem:[#allocation2 + $0x618] sm:$0xff] }
  0xb7   :  { %6877 = vmatpush.bf16.msrb.mxu3 %v11112_v30  ;;  %v11126_v30 = vld [vmem:[#allocation2 + $0x658] sm:$0xff] }
  0xb8   :  { %6839 = vmatpush.bf16.msrb.mxu0 %v11087_v32  ;;  %v6613_v59 = vpop.f32.mrf.mxu2  ;;  %v11142_v32 = vld [vmem:[#allocation2 + $0x6d8] sm:$0xff] }
  0xb9   :  { %6852 = vmatpush.bf16.msrb.mxu1 %v11095_v33  ;;  %v6626_v60 = vpop.f32.mrf.mxu3  ;;  %v11154_v59 = vld [vmem:[#allocation2 + $0x738] sm:$0xff] }
  0xba   :  { %6865 = vmatpush.bf16.msrb.mxu2 %v11103_v36  ;;  %v11162_v60 = vld [vmem:[#allocation2 + $0x778] sm:$0xff] }
  0xbb   :  { %6878 = vmatpush.bf16.msrb.mxu3 %v11111_v37  ;;  %v11117_v37 = vld [vmem:[#allocation2 + $0x610] sm:$0xff] }
  0xbc   :  { %6840 = vmatpush.bf16.msrb.mxu0 %v11086_v39 }
  0xbd   :  { %6853 = vmatpush.bf16.msrb.mxu1 %v11094_v40 }
  0xbe   :  { %6866 = vmatpush.bf16.msrb.mxu2 %v11102_v41  ;;  %v11133_v41 = vld [vmem:[#allocation2 + $0x690] sm:$0xff] }
  0xbf   :  { %6879 = vmatpush.bf16.msrb.mxu3 %v11110_v42  ;;  %v11141_v42 = vld [vmem:[#allocation2 + $0x6d0] sm:$0xff] }
  0xc0   :  { %6841 = vmatpush.bf16.msrb.mxu0 %v11085_v47  ;;  %v56_v47 = vld [vmem:[%s11983_s0 + $0x60] sm:$0xff] }
  0xc1   :  { %6854 = vmatpush.bf16.msrb.mxu1 %v11093_v48  ;;  %v57_v48 = vld [vmem:[%s11983_s0 + $0x68] sm:$0xff]  ;;  %v1705_v57 = vunpack.c.h.b16 %v56_v47 }
  0xc2   :  { %6867 = vmatpush.bf16.msrb.mxu2 %v11101_v51  ;;  %v11115_v51 = vld [vmem:[#allocation2 + $0x600] sm:$0xff]  ;;  %v1707_v58 = vunpack.c.h.b16 %v57_v48 }
  0xc3   :  { %6880 = vmatpush.bf16.msrb.mxu3 %v11109_v52  ;;  %v11123_v52 = vld [vmem:[#allocation2 + $0x640] sm:$0xff] }
  0xc4   :  { %6842 = vmatpush.bf16.msrb.mxu0 %v11084_v53  ;;  %v1704_v53 = vunpack.c.l.b16 %v56_v47 }
  0xc5   :  { %6855 = vmatpush.bf16.msrb.mxu1 %v11092_v54  ;;  %v1706_v54 = vunpack.c.l.b16 %v57_v48 }
  0xc6   :  { %6868 = vmatpush.bf16.msrb.mxu2 %v11100_v55  ;;  %v11131_v55 = vld [vmem:[#allocation2 + $0x680] sm:$0xff]  ;;  %v1800_v63 = vpack.c.b16 %v1704_v53, %v1704_v53 }
  0xc7   :  { %6881 = vmatpush.bf16.msrb.mxu3 %v11108_v56  ;;  %v11139_v56 = vld [vmem:[#allocation2 + $0x6c0] sm:$0xff]  ;;  %v1802_v0 = vpack.c.b16 %v1706_v54, %v1706_v54 }
  0xc8   :  { %6843 = vmatpush.bf16.msrb.mxu0 %v11083_v61  ;;  %v6637_v21 = vpop.f32.mrf.mxu0  ;;  %v11170_v61 = vld [vmem:[#allocation2 + $0x7b8] sm:$0xff] }
  0xc9   :  { %6856 = vmatpush.bf16.msrb.mxu1 %v11091_v62  ;;  %v6638_v24 = vadd.f32 %v6637_v21, %v11812_v49  ;;  %v6650_v25 = vpop.f32.mrf.mxu1  ;;  %v11178_v62 = vld [vmem:[#allocation2 + $0x7f8] sm:$0xff] }
  0xca   :  { %6869 = vmatpush.bf16.msrb.mxu2 %v11099_v1  ;;  %v1801_v1 = vpack.c.b16 %v1705_v57, %v1705_v57  ;;  %v11166_v21 = vld [vmem:[#allocation2 + $0x798] sm:$0xff]  ;;  %v11185_v57 = vld [vmem:[#allocation2 + $0x830] sm:$0xff] }
  0xcb   :  { %6882 = vmatpush.bf16.msrb.mxu3 %v11107_v2  ;;  %6844 = vmatmul.bf16.vlgmr.msrb.gmra.mxu0 %v1796_v9  ;;  %v6651_v28 = vadd.f32 %v6650_v25, %v6638_v24  ;;  %v1803_v2 = vpack.c.b16 %v1707_v58, %v1707_v58  ;;  %v11168_v9 = vld [vmem:[#allocation2 + $0x7a8] sm:$0xff]  ;;  %v11193_v58 = vld [vmem:[#allocation2 + $0x870] sm:$0xff] }
  0xcc   :  { %6888 = vmatpush.bf16.msra.mxu0 %v11122_v5  ;;  %6857 = vmatmul.bf16.vlgmr.msrb.gmra.mxu1 %v1797_v11  ;;  %v11169_v5 = vld [vmem:[#allocation2 + $0x7b0] sm:$0xff] }
  0xcd   :  { %6901 = vmatpush.bf16.msra.mxu1 %v11130_v6  ;;  %6870 = vmatmul.bf16.vlgmr.msrb.gmra.mxu2 %v1798_v10  ;;  %v11177_v6 = vld [vmem:[#allocation2 + $0x7f0] sm:$0xff]  ;;  %v11176_v10 = vld [vmem:[#allocation2 + $0x7e8] sm:$0xff] }
  0xce   :  { %6914 = vmatpush.bf16.msra.mxu2 %v11138_v7  ;;  %6883 = vmatmul.bf16.vlgmr.msrb.gmra.mxu3 %v1799_v12  ;;  %v11152_v7 = vld [vmem:[#allocation2 + $0x728] sm:$0xff] }
  0xcf   :  { %6927 = vmatpush.bf16.msra.mxu3 %v11146_v8  ;;  %v11160_v8 = vld [vmem:[#allocation2 + $0x768] sm:$0xff] }
  0xd0   :  { %6889 = vmatpush.bf16.msra.mxu0 %v11121_v13  ;;  %v6663_v33 = vpop.f32.mrf.mxu2  ;;  %v6639_v36 = vpop.f32.mrf.mxu0  ;;  %v11151_v13 = vld [vmem:[#allocation2 + $0x720] sm:$0xff] }
  0xd1   :  { %6902 = vmatpush.bf16.msra.mxu1 %v11129_v14  ;;  %v6664_v34 = vadd.f32 %v6663_v33, %v6651_v28  ;;  %v6676_v35 = vpop.f32.mrf.mxu3  ;;  %v6652_v40 = vpop.f32.mrf.mxu1  ;;  %v11159_v14 = vld [vmem:[#allocation2 + $0x760] sm:$0xff]  ;;  %v11149_v28 = vld [vmem:[#allocation2 + $0x710] sm:$0xff]  ;;  %v11148_v33 = vld [vmem:[#allocation2 + $0x708] sm:$0xff] }
  0xd2   :  { %6915 = vmatpush.bf16.msra.mxu2 %v11137_v15  ;;  %v11172_v36 = vld [vmem:[#allocation2 + $0x7c8] sm:$0xff] }
  0xd3   :  { %6928 = vmatpush.bf16.msra.mxu3 %v11145_v16  ;;  %v11821_v39 = vadd.f32 %v6676_v35, %v6664_v34  ;;  %v11167_v16 = vld [vmem:[#allocation2 + $0x7a0] sm:$0xff]  ;;  %v11156_v34 = vld [vmem:[#allocation2 + $0x748] sm:$0xff] }
  0xd4   :  { %6890 = vmatpush.bf16.msra.mxu0 %v11120_v17  ;;  %v11175_v17 = vld [vmem:[#allocation2 + $0x7e0] sm:$0xff]  ;;  %v11164_v35 = vld [vmem:[#allocation2 + $0x788] sm:$0xff] }
  0xd5   :  { %6903 = vmatpush.bf16.msra.mxu1 %v11128_v18 }
  0xd6   :  { %6916 = vmatpush.bf16.msra.mxu2 %v11136_v19  ;;  %v11150_v19 = vld [vmem:[#allocation2 + $0x718] sm:$0xff] }
  0xd7   :  { %6929 = vmatpush.bf16.msra.mxu3 %v11144_v20  ;;  %v11158_v20 = vld [vmem:[#allocation2 + $0x758] sm:$0xff] }
  0xd8   :  { %6891 = vmatpush.bf16.msra.mxu0 %v11119_v22  ;;  %v6665_v49 = vpop.f32.mrf.mxu2  ;;  %v11174_v22 = vld [vmem:[#allocation2 + $0x7d8] sm:$0xff] }
  0xd9   :  { %6904 = vmatpush.bf16.msra.mxu1 %v11127_v23  ;;  %v6678_v50 = vpop.f32.mrf.mxu3  ;;  %v11186_v49 = vld [vmem:[#allocation2 + $0x838] sm:$0xff] }
  0xda   :  { %6917 = vmatpush.bf16.msra.mxu2 %v11135_v26  ;;  %v11194_v50 = vld [vmem:[#allocation2 + $0x878] sm:$0xff] }
  0xdb   :  { %6930 = vmatpush.bf16.msra.mxu3 %v11143_v27 }
  0xdc   :  { %6892 = vmatpush.bf16.msra.mxu0 %v11118_v29  ;;  %v11157_v29 = vld [vmem:[#allocation2 + $0x750] sm:$0xff] }
  0xdd   :  { %6905 = vmatpush.bf16.msra.mxu1 %v11126_v30 }
  0xde   :  { %6918 = vmatpush.bf16.msra.mxu2 %v11134_v31  ;;  %v11165_v31 = vld [vmem:[#allocation2 + $0x790] sm:$0xff] }
  0xdf   :  { %6931 = vmatpush.bf16.msra.mxu3 %v11142_v32  ;;  %v11173_v32 = vld [vmem:[#allocation2 + $0x7d0] sm:$0xff] }
  0xe0   :  { %6893 = vmatpush.bf16.msra.mxu0 %v11117_v37  ;;  %v58_v37 = vld [vmem:[%s11983_s0 + $0x70] sm:$0xff] }
  0xe1   :  { %6906 = vmatpush.bf16.msra.mxu1 %v11125_v38  ;;  %v59_v38 = vld [vmem:[%s11983_s0 + $0x78] sm:$0xff]  ;;  %v1709_v47 = vunpack.c.h.b16 %v58_v37 }
  0xe2   :  { %6919 = vmatpush.bf16.msra.mxu2 %v11133_v41  ;;  %v11147_v41 = vld [vmem:[#allocation2 + $0x700] sm:$0xff]  ;;  %v1711_v48 = vunpack.c.h.b16 %v59_v38 }
  0xe3   :  { %6932 = vmatpush.bf16.msra.mxu3 %v11141_v42  ;;  %v11155_v42 = vld [vmem:[#allocation2 + $0x740] sm:$0xff] }
  0xe4   :  { %6894 = vmatpush.bf16.msra.mxu0 %v11116_v43  ;;  %v1708_v43 = vunpack.c.l.b16 %v58_v37 }
  0xe5   :  { %6907 = vmatpush.bf16.msra.mxu1 %v11124_v44  ;;  %v1710_v44 = vunpack.c.l.b16 %v59_v38 }
  0xe6   :  { %6920 = vmatpush.bf16.msra.mxu2 %v11132_v45  ;;  %v11163_v45 = vld [vmem:[#allocation2 + $0x780] sm:$0xff]  ;;  %v1804_v53 = vpack.c.b16 %v1708_v43, %v1708_v43 }
  0xe7   :  { %6933 = vmatpush.bf16.msra.mxu3 %v11140_v46  ;;  %v11171_v46 = vld [vmem:[#allocation2 + $0x7c0] sm:$0xff]  ;;  %v1806_v54 = vpack.c.b16 %v1710_v44, %v1710_v44 }
  0xe8   :  { %6895 = vmatpush.bf16.msra.mxu0 %v11115_v51  ;;  %v6689_v11 = vpop.f32.mrf.mxu0  ;;  %v11202_v51 = vld [vmem:[#allocation2 + $0x8b8] sm:$0xff] }
  0xe9   :  { %6908 = vmatpush.bf16.msra.mxu1 %v11123_v52  ;;  %v6690_v12 = vadd.f32 %v6689_v11, %v11821_v39  ;;  %v6702_v15 = vpop.f32.mrf.mxu1  ;;  %v11210_v52 = vld [vmem:[#allocation2 + $0x8f8] sm:$0xff] }
  0xea   :  { %6921 = vmatpush.bf16.msra.mxu2 %v11131_v55  ;;  %v1805_v55 = vpack.c.b16 %v1709_v47, %v1709_v47  ;;  %v11198_v11 = vld [vmem:[#allocation2 + $0x898] sm:$0xff]  ;;  %v11217_v47 = vld [vmem:[#allocation2 + $0x930] sm:$0xff] }
  0xeb   :  { %6934 = vmatpush.bf16.msra.mxu3 %v11139_v56  ;;  %6896 = vmatmul.bf16.vlgmr.msra.gmra.mxu0 %v1800_v63  ;;  %v6703_v18 = vadd.f32 %v6702_v15, %v6690_v12  ;;  %v1807_v56 = vpack.c.b16 %v1711_v48, %v1711_v48  ;;  %v11200_v63 = vld [vmem:[#allocation2 + $0x8a8] sm:$0xff]  ;;  %v11206_v12 = vld [vmem:[#allocation2 + $0x8d8] sm:$0xff]  ;;  %v11225_v48 = vld [vmem:[#allocation2 + $0x970] sm:$0xff] }
  0xec   :  { %6940 = vmatpush.bf16.msrb.mxu0 %v11154_v59  ;;  %6909 = vmatmul.bf16.vlgmr.msra.gmra.mxu1 %v1801_v1  ;;  %v11201_v59 = vld [vmem:[#allocation2 + $0x8b0] sm:$0xff] }
  0xed   :  { %6953 = vmatpush.bf16.msrb.mxu1 %v11162_v60  ;;  %6922 = vmatmul.bf16.vlgmr.msra.gmra.mxu2 %v1802_v0  ;;  %v11209_v60 = vld [vmem:[#allocation2 + $0x8f0] sm:$0xff]  ;;  %v11208_v0 = vld [vmem:[#allocation2 + $0x8e8] sm:$0xff] }
  0xee   :  { %6966 = vmatpush.bf16.msrb.mxu2 %v11170_v61  ;;  %6935 = vmatmul.bf16.vlgmr.msra.gmra.mxu3 %v1803_v2  ;;  %v11184_v61 = vld [vmem:[#allocation2 + $0x828] sm:$0xff] }
  0xef   :  { %6979 = vmatpush.bf16.msrb.mxu3 %v11178_v62  ;;  %v11192_v62 = vld [vmem:[#allocation2 + $0x868] sm:$0xff] }
  0xf0   :  { %6941 = vmatpush.bf16.msrb.mxu0 %v11153_v3  ;;  %v6715_v23 = vpop.f32.mrf.mxu2  ;;  %v6691_v26 = vpop.f32.mrf.mxu0  ;;  %v11183_v3 = vld [vmem:[#allocation2 + $0x820] sm:$0xff] }
  0xf1   :  { %6954 = vmatpush.bf16.msrb.mxu1 %v11161_v4  ;;  %v6716_v24 = vadd.f32 %v6715_v23, %v6703_v18  ;;  %v6728_v25 = vpop.f32.mrf.mxu3  ;;  %v6704_v30 = vpop.f32.mrf.mxu1  ;;  %v11191_v4 = vld [vmem:[#allocation2 + $0x860] sm:$0xff]  ;;  %v11181_v18 = vld [vmem:[#allocation2 + $0x810] sm:$0xff]  ;;  %v11180_v23 = vld [vmem:[#allocation2 + $0x808] sm:$0xff] }
  0xf2   :  { %6967 = vmatpush.bf16.msrb.mxu2 %v11169_v5  ;;  %v11204_v26 = vld [vmem:[#allocation2 + $0x8c8] sm:$0xff] }
  0xf3   :  { %6980 = vmatpush.bf16.msrb.mxu3 %v11177_v6  ;;  %v11830_v27 = vadd.f32 %v6728_v25, %v6716_v24  ;;  %v11199_v6 = vld [vmem:[#allocation2 + $0x8a0] sm:$0xff]  ;;  %v11188_v24 = vld [vmem:[#allocation2 + $0x848] sm:$0xff] }
  0xf4   :  { %6942 = vmatpush.bf16.msrb.mxu0 %v11152_v7  ;;  %v11207_v7 = vld [vmem:[#allocation2 + $0x8e0] sm:$0xff]  ;;  %v11196_v25 = vld [vmem:[#allocation2 + $0x888] sm:$0xff] }
  0xf5   :  { %6955 = vmatpush.bf16.msrb.mxu1 %v11160_v8 }
  0xf6   :  { %6968 = vmatpush.bf16.msrb.mxu2 %v11168_v9  ;;  %v11182_v9 = vld [vmem:[#allocation2 + $0x818] sm:$0xff] }
  0xf7   :  { %6981 = vmatpush.bf16.msrb.mxu3 %v11176_v10  ;;  %v11190_v10 = vld [vmem:[#allocation2 + $0x858] sm:$0xff] }
  0xf8   :  { %6943 = vmatpush.bf16.msrb.mxu0 %v11151_v13  ;;  %v6717_v39 = vpop.f32.mrf.mxu2 }
  0xf9   :  { %6956 = vmatpush.bf16.msrb.mxu1 %v11159_v14  ;;  %v6730_v40 = vpop.f32.mrf.mxu3  ;;  %v11218_v39 = vld [vmem:[#allocation2 + $0x938] sm:$0xff] }
  0xfa   :  { %6969 = vmatpush.bf16.msrb.mxu2 %v11167_v16  ;;  %v11226_v40 = vld [vmem:[#allocation2 + $0x978] sm:$0xff] }
  0xfb   :  { %6982 = vmatpush.bf16.msrb.mxu3 %v11175_v17 }
  0xfc   :  { %6944 = vmatpush.bf16.msrb.mxu0 %v11150_v19  ;;  %v11189_v19 = vld [vmem:[#allocation2 + $0x850] sm:$0xff] }
  0xfd   :  { %6957 = vmatpush.bf16.msrb.mxu1 %v11158_v20 }
  0xfe   :  { %6970 = vmatpush.bf16.msrb.mxu2 %v11166_v21  ;;  %v11197_v21 = vld [vmem:[#allocation2 + $0x890] sm:$0xff] }
  0xff   :  { %6983 = vmatpush.bf16.msrb.mxu3 %v11174_v22  ;;  %v11205_v22 = vld [vmem:[#allocation2 + $0x8d0] sm:$0xff] }
 0x100   :  { %6945 = vmatpush.bf16.msrb.mxu0 %v11149_v28  ;;  %v61_v28 = vld [vmem:[%s11983_s0 + $0x88] sm:$0xff] }
 0x101   :  { %6958 = vmatpush.bf16.msrb.mxu1 %v11157_v29  ;;  %v1715_v38 = vunpack.c.h.b16 %v61_v28 }
 0x102   :  { %6971 = vmatpush.bf16.msrb.mxu2 %v11165_v31  ;;  %v11179_v31 = vld [vmem:[#allocation2 + $0x800] sm:$0xff] }
 0x103   :  { %6984 = vmatpush.bf16.msrb.mxu3 %v11173_v32  ;;  %v11187_v32 = vld [vmem:[#allocation2 + $0x840] sm:$0xff] }
 0x104   :  { %6946 = vmatpush.bf16.msrb.mxu0 %v11148_v33 }
 0x105   :  { %6959 = vmatpush.bf16.msrb.mxu1 %v11156_v34  ;;  %v1714_v34 = vunpack.c.l.b16 %v61_v28 }
 0x106   :  { %6972 = vmatpush.bf16.msrb.mxu2 %v11164_v35  ;;  %v11195_v35 = vld [vmem:[#allocation2 + $0x880] sm:$0xff] }
 0x107   :  { %6985 = vmatpush.bf16.msrb.mxu3 %v11172_v36  ;;  %v11203_v36 = vld [vmem:[#allocation2 + $0x8c0] sm:$0xff]  ;;  %v1810_v44 = vpack.c.b16 %v1714_v34, %v1714_v34 }
 0x108   :  { %6947 = vmatpush.bf16.msrb.mxu0 %v11147_v41  ;;  %v6741_v1 = vpop.f32.mrf.mxu0  ;;  %v11234_v41 = vld [vmem:[#allocation2 + $0x9b8] sm:$0xff] }
 0x109   :  { %6960 = vmatpush.bf16.msrb.mxu1 %v11155_v42  ;;  %v6742_v2 = vadd.f32 %v6741_v1, %v11830_v27  ;;  %v6754_v5 = vpop.f32.mrf.mxu1  ;;  %v60_v27 = vld [vmem:[%s11983_s0 + $0x80] sm:$0xff]  ;;  %v11242_v42 = vld [vmem:[#allocation2 + $0x9f8] sm:$0xff] }
 0x10a   :  { %6973 = vmatpush.bf16.msrb.mxu2 %v11163_v45  ;;  %v1712_v33 = vunpack.c.l.b16 %v60_v27  ;;  %v1713_v37 = vunpack.c.h.b16 %v60_v27  ;;  %v11230_v1 = vld [vmem:[#allocation2 + $0x998] sm:$0xff] }
 0x10b   :  { %6986 = vmatpush.bf16.msrb.mxu3 %v11171_v46  ;;  %6948 = vmatmul.bf16.vlgmr.msrb.gmra.mxu0 %v1804_v53  ;;  %v6755_v8 = vadd.f32 %v6754_v5, %v6742_v2  ;;  %v1811_v46 = vpack.c.b16 %v1715_v38, %v1715_v38  ;;  %v11232_v53 = vld [vmem:[#allocation2 + $0x9a8] sm:$0xff]  ;;  %v11238_v2 = vld [vmem:[#allocation2 + $0x9d8] sm:$0xff]  ;;  %v11257_v38 = vld [vmem:[#allocation2 + $0xa70] sm:$0xff] }
 0x10c   :  { %6992 = vmatpush.bf16.msra.mxu0 %v11186_v49  ;;  %6961 = vmatmul.bf16.vlgmr.msrb.gmra.mxu1 %v1805_v55  ;;  %v1808_v43 = vpack.c.b16 %v1712_v33, %v1712_v33  ;;  %v1809_v45 = vpack.c.b16 %v1713_v37, %v1713_v37  ;;  %v11233_v49 = vld [vmem:[#allocation2 + $0x9b0] sm:$0xff] }
 0x10d   :  { %7005 = vmatpush.bf16.msra.mxu1 %v11194_v50  ;;  %6974 = vmatmul.bf16.vlgmr.msrb.gmra.mxu2 %v1806_v54  ;;  %v11241_v50 = vld [vmem:[#allocation2 + $0x9f0] sm:$0xff]  ;;  %v11240_v54 = vld [vmem:[#allocation2 + $0x9e8] sm:$0xff] }
 0x10e   :  { %7018 = vmatpush.bf16.msra.mxu2 %v11202_v51  ;;  %6987 = vmatmul.bf16.vlgmr.msrb.gmra.mxu3 %v1807_v56  ;;  %v11216_v51 = vld [vmem:[#allocation2 + $0x928] sm:$0xff]  ;;  %v11249_v37 = vld [vmem:[#allocation2 + $0xa30] sm:$0xff] }
 0x10f   :  { %7031 = vmatpush.bf16.msra.mxu3 %v11210_v52  ;;  %v11224_v52 = vld [vmem:[#allocation2 + $0x968] sm:$0xff] }
 0x110   :  { %6993 = vmatpush.bf16.msra.mxu0 %v11185_v57  ;;  %v6767_v13 = vpop.f32.mrf.mxu2  ;;  %v6743_v16 = vpop.f32.mrf.mxu0  ;;  %v11215_v57 = vld [vmem:[#allocation2 + $0x920] sm:$0xff] }
 0x111   :  { %7006 = vmatpush.bf16.msra.mxu1 %v11193_v58  ;;  %v6768_v14 = vadd.f32 %v6767_v13, %v6755_v8  ;;  %v6780_v15 = vpop.f32.mrf.mxu3  ;;  %v6756_v20 = vpop.f32.mrf.mxu1  ;;  %v11223_v58 = vld [vmem:[#allocation2 + $0x960] sm:$0xff]  ;;  %v11213_v8 = vld [vmem:[#allocation2 + $0x910] sm:$0xff]  ;;  %v11212_v13 = vld [vmem:[#allocation2 + $0x908] sm:$0xff] }
 0x112   :  { %7019 = vmatpush.bf16.msra.mxu2 %v11201_v59  ;;  %v11236_v16 = vld [vmem:[#allocation2 + $0x9c8] sm:$0xff] }
 0x113   :  { %7032 = vmatpush.bf16.msra.mxu3 %v11209_v60  ;;  %v11839_v17 = vadd.f32 %v6780_v15, %v6768_v14  ;;  %v11231_v60 = vld [vmem:[#allocation2 + $0x9a0] sm:$0xff]  ;;  %v11220_v14 = vld [vmem:[#allocation2 + $0x948] sm:$0xff] }
 0x114   :  { %6994 = vmatpush.bf16.msra.mxu0 %v11184_v61  ;;  %v11239_v61 = vld [vmem:[#allocation2 + $0x9e0] sm:$0xff]  ;;  %v11228_v15 = vld [vmem:[#allocation2 + $0x988] sm:$0xff] }
 0x115   :  { %7007 = vmatpush.bf16.msra.mxu1 %v11192_v62 }
 0x116   :  { %7020 = vmatpush.bf16.msra.mxu2 %v11200_v63  ;;  %v11214_v63 = vld [vmem:[#allocation2 + $0x918] sm:$0xff] }
 0x117   :  { %7033 = vmatpush.bf16.msra.mxu3 %v11208_v0  ;;  %v11222_v0 = vld [vmem:[#allocation2 + $0x958] sm:$0xff] }
 0x118   :  { %6995 = vmatpush.bf16.msra.mxu0 %v11183_v3  ;;  %v6769_v29 = vpop.f32.mrf.mxu2 }
 0x119   :  { %7008 = vmatpush.bf16.msra.mxu1 %v11191_v4  ;;  %v6782_v30 = vpop.f32.mrf.mxu3  ;;  %v11250_v29 = vld [vmem:[#allocation2 + $0xa38] sm:$0xff] }
 0x11a   :  { %7021 = vmatpush.bf16.msra.mxu2 %v11199_v6  ;;  %v11258_v30 = vld [vmem:[#allocation2 + $0xa78] sm:$0xff] }
 0x11b   :  { %7034 = vmatpush.bf16.msra.mxu3 %v11207_v7 }
 0x11c   :  { %6996 = vmatpush.bf16.msra.mxu0 %v11182_v9  ;;  %v11221_v9 = vld [vmem:[#allocation2 + $0x950] sm:$0xff] }
 0x11d   :  { %7009 = vmatpush.bf16.msra.mxu1 %v11190_v10 }
 0x11e   :  { %7022 = vmatpush.bf16.msra.mxu2 %v11198_v11  ;;  %v11229_v11 = vld [vmem:[#allocation2 + $0x990] sm:$0xff] }
 0x11f   :  { %7035 = vmatpush.bf16.msra.mxu3 %v11206_v12  ;;  %v11237_v12 = vld [vmem:[#allocation2 + $0x9d0] sm:$0xff] }
 0x120   :  { %6997 = vmatpush.bf16.msra.mxu0 %v11181_v18  ;;  %v63_v18 = vld [vmem:[%s11983_s0 + $0x98] sm:$0xff] }
 0x121   :  { %7010 = vmatpush.bf16.msra.mxu1 %v11189_v19  ;;  %v1719_v28 = vunpack.c.h.b16 %v63_v18 }
 0x122   :  { %7023 = vmatpush.bf16.msra.mxu2 %v11197_v21  ;;  %v11211_v21 = vld [vmem:[#allocation2 + $0x900] sm:$0xff] }
 0x123   :  { %7036 = vmatpush.bf16.msra.mxu3 %v11205_v22  ;;  %v11219_v22 = vld [vmem:[#allocation2 + $0x940] sm:$0xff] }
 0x124   :  { %6998 = vmatpush.bf16.msra.mxu0 %v11180_v23 }
 0x125   :  { %7011 = vmatpush.bf16.msra.mxu1 %v11188_v24  ;;  %v1718_v24 = vunpack.c.l.b16 %v63_v18 }
 0x126   :  { %7024 = vmatpush.bf16.msra.mxu2 %v11196_v25  ;;  %v11227_v25 = vld [vmem:[#allocation2 + $0x980] sm:$0xff] }
 0x127   :  { %7037 = vmatpush.bf16.msra.mxu3 %v11204_v26  ;;  %v11235_v26 = vld [vmem:[#allocation2 + $0x9c0] sm:$0xff]  ;;  %v1814_v34 = vpack.c.b16 %v1718_v24, %v1718_v24 }
 0x128   :  { %6999 = vmatpush.bf16.msra.mxu0 %v11179_v31  ;;  %v6793_v55 = vpop.f32.mrf.mxu0  ;;  %v11266_v31 = vld [vmem:[#allocation2 + $0xab8] sm:$0xff] }
 0x129   :  { %7012 = vmatpush.bf16.msra.mxu1 %v11187_v32  ;;  %v6794_v56 = vadd.f32 %v6793_v55, %v11839_v17  ;;  %v6806_v59 = vpop.f32.mrf.mxu1  ;;  %v62_v17 = vld [vmem:[%s11983_s0 + $0x90] sm:$0xff]  ;;  %v11274_v32 = vld [vmem:[#allocation2 + $0xaf8] sm:$0xff] }
 0x12a   :  { %7025 = vmatpush.bf16.msra.mxu2 %v11195_v35  ;;  %v1716_v23 = vunpack.c.l.b16 %v62_v17  ;;  %v1717_v27 = vunpack.c.h.b16 %v62_v17  ;;  %v11262_v55 = vld [vmem:[#allocation2 + $0xa98] sm:$0xff] }
 0x12b   :  { %7038 = vmatpush.bf16.msra.mxu3 %v11203_v36  ;;  %7000 = vmatmul.bf16.vlgmr.msra.gmra.mxu0 %v1808_v43  ;;  %v6807_v62 = vadd.f32 %v6806_v59, %v6794_v56  ;;  %v1815_v36 = vpack.c.b16 %v1719_v28, %v1719_v28  ;;  %v11264_v43 = vld [vmem:[#allocation2 + $0xaa8] sm:$0xff]  ;;  %v11270_v56 = vld [vmem:[#allocation2 + $0xad8] sm:$0xff]  ;;  %v11289_v28 = vld [vmem:[#allocation2 + $0xb70] sm:$0xff] }
 0x12c   :  { %7044 = vmatpush.bf16.msrb.mxu0 %v11218_v39  ;;  %7013 = vmatmul.bf16.vlgmr.msra.gmra.mxu1 %v1809_v45  ;;  %v1812_v33 = vpack.c.b16 %v1716_v23, %v1716_v23  ;;  %v1813_v35 = vpack.c.b16 %v1717_v27, %v1717_v27  ;;  %v11265_v39 = vld [vmem:[#allocation2 + $0xab0] sm:$0xff] }
 0x12d   :  { %7057 = vmatpush.bf16.msrb.mxu1 %v11226_v40  ;;  %7026 = vmatmul.bf16.vlgmr.msra.gmra.mxu2 %v1810_v44  ;;  %v11273_v40 = vld [vmem:[#allocation2 + $0xaf0] sm:$0xff]  ;;  %v11272_v44 = vld [vmem:[#allocation2 + $0xae8] sm:$0xff] }
 0x12e   :  { %7070 = vmatpush.bf16.msrb.mxu2 %v11234_v41  ;;  %7039 = vmatmul.bf16.vlgmr.msra.gmra.mxu3 %v1811_v46  ;;  %v11248_v41 = vld [vmem:[#allocation2 + $0xa28] sm:$0xff]  ;;  %v11281_v27 = vld [vmem:[#allocation2 + $0xb30] sm:$0xff] }
 0x12f   :  { %7083 = vmatpush.bf16.msrb.mxu3 %v11242_v42  ;;  %v11256_v42 = vld [vmem:[#allocation2 + $0xa68] sm:$0xff] }
 0x130   :  { %7045 = vmatpush.bf16.msrb.mxu0 %v11217_v47  ;;  %v6819_v3 = vpop.f32.mrf.mxu2  ;;  %v6795_v6 = vpop.f32.mrf.mxu0  ;;  %v11247_v47 = vld [vmem:[#allocation2 + $0xa20] sm:$0xff] }
 0x131   :  { %7058 = vmatpush.bf16.msrb.mxu1 %v11225_v48  ;;  %v6820_v4 = vadd.f32 %v6819_v3, %v6807_v62  ;;  %v6832_v5 = vpop.f32.mrf.mxu3  ;;  %v6808_v10 = vpop.f32.mrf.mxu1  ;;  %v11255_v48 = vld [vmem:[#allocation2 + $0xa60] sm:$0xff]  ;;  %v11245_v62 = vld [vmem:[#allocation2 + $0xa10] sm:$0xff]  ;;  %v11244_v3 = vld [vmem:[#allocation2 + $0xa08] sm:$0xff] }
 0x132   :  { %7071 = vmatpush.bf16.msrb.mxu2 %v11233_v49  ;;  %v11268_v6 = vld [vmem:[#allocation2 + $0xac8] sm:$0xff] }
 0x133   :  { %7084 = vmatpush.bf16.msrb.mxu3 %v11241_v50  ;;  %v11848_v7 = vadd.f32 %v6832_v5, %v6820_v4  ;;  %v11263_v50 = vld [vmem:[#allocation2 + $0xaa0] sm:$0xff]  ;;  %v11252_v4 = vld [vmem:[#allocation2 + $0xa48] sm:$0xff] }
 0x134   :  { %7046 = vmatpush.bf16.msrb.mxu0 %v11216_v51  ;;  %v11271_v51 = vld [vmem:[#allocation2 + $0xae0] sm:$0xff]  ;;  %v11260_v5 = vld [vmem:[#allocation2 + $0xa88] sm:$0xff] }
 0x135   :  { %7059 = vmatpush.bf16.msrb.mxu1 %v11224_v52 }
 0x136   :  { %7072 = vmatpush.bf16.msrb.mxu2 %v11232_v53  ;;  %v11246_v53 = vld [vmem:[#allocation2 + $0xa18] sm:$0xff] }
 0x137   :  { %7085 = vmatpush.bf16.msrb.mxu3 %v11240_v54  ;;  %v11254_v54 = vld [vmem:[#allocation2 + $0xa58] sm:$0xff] }
 0x138   :  { %7047 = vmatpush.bf16.msrb.mxu0 %v11215_v57  ;;  %v6821_v19 = vpop.f32.mrf.mxu2 }
 0x139   :  { %7060 = vmatpush.bf16.msrb.mxu1 %v11223_v58  ;;  %v6834_v20 = vpop.f32.mrf.mxu3  ;;  %v11282_v19 = vld [vmem:[#allocation2 + $0xb38] sm:$0xff] }
 0x13a   :  { %7073 = vmatpush.bf16.msrb.mxu2 %v11231_v60  ;;  %v11290_v20 = vld [vmem:[#allocation2 + $0xb78] sm:$0xff] }
 0x13b   :  { %7086 = vmatpush.bf16.msrb.mxu3 %v11239_v61 }
 0x13c   :  { %7048 = vmatpush.bf16.msrb.mxu0 %v11214_v63  ;;  %v11253_v63 = vld [vmem:[#allocation2 + $0xa50] sm:$0xff] }
 0x13d   :  { %7061 = vmatpush.bf16.msrb.mxu1 %v11222_v0 }
 0x13e   :  { %7074 = vmatpush.bf16.msrb.mxu2 %v11230_v1  ;;  %v11261_v1 = vld [vmem:[#allocation2 + $0xa90] sm:$0xff] }
 0x13f   :  { %7087 = vmatpush.bf16.msrb.mxu3 %v11238_v2  ;;  %v11269_v2 = vld [vmem:[#allocation2 + $0xad0] sm:$0xff] }
 0x140   :  { %7049 = vmatpush.bf16.msrb.mxu0 %v11213_v8  ;;  %v65_v8 = vld [vmem:[%s11983_s0 + $0xa8] sm:$0xff] }
 0x141   :  { %7062 = vmatpush.bf16.msrb.mxu1 %v11221_v9  ;;  %v1723_v18 = vunpack.c.h.b16 %v65_v8 }
 0x142   :  { %7075 = vmatpush.bf16.msrb.mxu2 %v11229_v11  ;;  %v11243_v11 = vld [vmem:[#allocation2 + $0xa00] sm:$0xff] }
 0x143   :  { %7088 = vmatpush.bf16.msrb.mxu3 %v11237_v12  ;;  %v11251_v12 = vld [vmem:[#allocation2 + $0xa40] sm:$0xff] }
 0x144   :  { %7050 = vmatpush.bf16.msrb.mxu0 %v11212_v13 }
 0x145   :  { %7063 = vmatpush.bf16.msrb.mxu1 %v11220_v14  ;;  %v1722_v14 = vunpack.c.l.b16 %v65_v8 }
 0x146   :  { %7076 = vmatpush.bf16.msrb.mxu2 %v11228_v15  ;;  %v11259_v15 = vld [vmem:[#allocation2 + $0xa80] sm:$0xff] }
 0x147   :  { %7089 = vmatpush.bf16.msrb.mxu3 %v11236_v16  ;;  %v11267_v16 = vld [vmem:[#allocation2 + $0xac0] sm:$0xff]  ;;  %v1818_v24 = vpack.c.b16 %v1722_v14, %v1722_v14 }
 0x148   :  { %7051 = vmatpush.bf16.msrb.mxu0 %v11211_v21  ;;  %v6845_v45 = vpop.f32.mrf.mxu0  ;;  %v11298_v21 = vld [vmem:[#allocation2 + $0xbb8] sm:$0xff] }
 0x149   :  { %7064 = vmatpush.bf16.msrb.mxu1 %v11219_v22  ;;  %v6846_v46 = vadd.f32 %v6845_v45, %v11848_v7  ;;  %v6858_v49 = vpop.f32.mrf.mxu1  ;;  %v64_v7 = vld [vmem:[%s11983_s0 + $0xa0] sm:$0xff]  ;;  %v11306_v22 = vld [vmem:[#allocation2 + $0xbf8] sm:$0xff] }
 0x14a   :  { %7077 = vmatpush.bf16.msrb.mxu2 %v11227_v25  ;;  %v1720_v13 = vunpack.c.l.b16 %v64_v7  ;;  %v1721_v17 = vunpack.c.h.b16 %v64_v7  ;;  %v11294_v45 = vld [vmem:[#allocation2 + $0xb98] sm:$0xff] }
 0x14b   :  { %7090 = vmatpush.bf16.msrb.mxu3 %v11235_v26  ;;  %7052 = vmatmul.bf16.vlgmr.msrb.gmra.mxu0 %v1812_v33  ;;  %v6859_v52 = vadd.f32 %v6858_v49, %v6846_v46  ;;  %v1819_v26 = vpack.c.b16 %v1723_v18, %v1723_v18  ;;  %v11296_v33 = vld [vmem:[#allocation2 + $0xba8] sm:$0xff]  ;;  %v11302_v46 = vld [vmem:[#allocation2 + $0xbd8] sm:$0xff]  ;;  %v11321_v18 = vld [vmem:[#allocation2 + $0xc70] sm:$0xff] }
 0x14c   :  { %7096 = vmatpush.bf16.msra.mxu0 %v11250_v29  ;;  %7065 = vmatmul.bf16.vlgmr.msrb.gmra.mxu1 %v1813_v35  ;;  %v1816_v23 = vpack.c.b16 %v1720_v13, %v1720_v13  ;;  %v1817_v25 = vpack.c.b16 %v1721_v17, %v1721_v17  ;;  %v11297_v29 = vld [vmem:[#allocation2 + $0xbb0] sm:$0xff] }
 0x14d   :  { %7109 = vmatpush.bf16.msra.mxu1 %v11258_v30  ;;  %7078 = vmatmul.bf16.vlgmr.msrb.gmra.mxu2 %v1814_v34  ;;  %v11305_v30 = vld [vmem:[#allocation2 + $0xbf0] sm:$0xff]  ;;  %v11304_v34 = vld [vmem:[#allocation2 + $0xbe8] sm:$0xff] }
 0x14e   :  { %7122 = vmatpush.bf16.msra.mxu2 %v11266_v31  ;;  %7091 = vmatmul.bf16.vlgmr.msrb.gmra.mxu3 %v1815_v36  ;;  %v11280_v31 = vld [vmem:[#allocation2 + $0xb28] sm:$0xff]  ;;  %v11313_v17 = vld [vmem:[#allocation2 + $0xc30] sm:$0xff] }
 0x14f   :  { %7135 = vmatpush.bf16.msra.mxu3 %v11274_v32  ;;  %v11288_v32 = vld [vmem:[#allocation2 + $0xb68] sm:$0xff] }
 0x150   :  { %7097 = vmatpush.bf16.msra.mxu0 %v11249_v37  ;;  %v6871_v57 = vpop.f32.mrf.mxu2  ;;  %v6847_v60 = vpop.f32.mrf.mxu0  ;;  %v11279_v37 = vld [vmem:[#allocation2 + $0xb20] sm:$0xff] }
 0x151   :  { %7110 = vmatpush.bf16.msra.mxu1 %v11257_v38  ;;  %v6872_v58 = vadd.f32 %v6871_v57, %v6859_v52  ;;  %v6884_v59 = vpop.f32.mrf.mxu3  ;;  %v6860_v0 = vpop.f32.mrf.mxu1  ;;  %v11287_v38 = vld [vmem:[#allocation2 + $0xb60] sm:$0xff]  ;;  %v11277_v52 = vld [vmem:[#allocation2 + $0xb10] sm:$0xff]  ;;  %v11276_v57 = vld [vmem:[#allocation2 + $0xb08] sm:$0xff] }
 0x152   :  { %7123 = vmatpush.bf16.msra.mxu2 %v11265_v39  ;;  %v11300_v60 = vld [vmem:[#allocation2 + $0xbc8] sm:$0xff] }
 0x153   :  { %7136 = vmatpush.bf16.msra.mxu3 %v11273_v40  ;;  %v11857_v61 = vadd.f32 %v6884_v59, %v6872_v58  ;;  %v11295_v40 = vld [vmem:[#allocation2 + $0xba0] sm:$0xff]  ;;  %v11284_v58 = vld [vmem:[#allocation2 + $0xb48] sm:$0xff] }
 0x154   :  { %7098 = vmatpush.bf16.msra.mxu0 %v11248_v41  ;;  %v11303_v41 = vld [vmem:[#allocation2 + $0xbe0] sm:$0xff]  ;;  %v11292_v59 = vld [vmem:[#allocation2 + $0xb88] sm:$0xff] }
 0x155   :  { %7111 = vmatpush.bf16.msra.mxu1 %v11256_v42 }
 0x156   :  { %7124 = vmatpush.bf16.msra.mxu2 %v11264_v43  ;;  %v11278_v43 = vld [vmem:[#allocation2 + $0xb18] sm:$0xff] }
 0x157   :  { %7137 = vmatpush.bf16.msra.mxu3 %v11272_v44  ;;  %v11286_v44 = vld [vmem:[#allocation2 + $0xb58] sm:$0xff] }
 0x158   :  { %7099 = vmatpush.bf16.msra.mxu0 %v11247_v47  ;;  %v6873_v9 = vpop.f32.mrf.mxu2 }
 0x159   :  { %7112 = vmatpush.bf16.msra.mxu1 %v11255_v48  ;;  %v6886_v10 = vpop.f32.mrf.mxu3  ;;  %v11314_v9 = vld [vmem:[#allocation2 + $0xc38] sm:$0xff] }
 0x15a   :  { %7125 = vmatpush.bf16.msra.mxu2 %v11263_v50  ;;  %v11322_v10 = vld [vmem:[#allocation2 + $0xc78] sm:$0xff] }
 0x15b   :  { %7138 = vmatpush.bf16.msra.mxu3 %v11271_v51 }
 0x15c   :  { %7100 = vmatpush.bf16.msra.mxu0 %v11246_v53  ;;  %v11285_v53 = vld [vmem:[#allocation2 + $0xb50] sm:$0xff] }
 0x15d   :  { %7113 = vmatpush.bf16.msra.mxu1 %v11254_v54 }
 0x15e   :  { %7126 = vmatpush.bf16.msra.mxu2 %v11262_v55  ;;  %v11293_v55 = vld [vmem:[#allocation2 + $0xb90] sm:$0xff] }
 0x15f   :  { %7139 = vmatpush.bf16.msra.mxu3 %v11270_v56  ;;  %v11301_v56 = vld [vmem:[#allocation2 + $0xbd0] sm:$0xff] }
 0x160   :  { %7101 = vmatpush.bf16.msra.mxu0 %v11245_v62  ;;  %v67_v62 = vld [vmem:[%s11983_s0 + $0xb8] sm:$0xff] }
 0x161   :  { %7114 = vmatpush.bf16.msra.mxu1 %v11253_v63  ;;  %v1727_v8 = vunpack.c.h.b16 %v67_v62 }
 0x162   :  { %7127 = vmatpush.bf16.msra.mxu2 %v11261_v1  ;;  %v11275_v1 = vld [vmem:[#allocation2 + $0xb00] sm:$0xff] }
 0x163   :  { %7140 = vmatpush.bf16.msra.mxu3 %v11269_v2  ;;  %v11283_v2 = vld [vmem:[#allocation2 + $0xb40] sm:$0xff] }
 0x164   :  { %7102 = vmatpush.bf16.msra.mxu0 %v11244_v3 }
 0x165   :  { %7115 = vmatpush.bf16.msra.mxu1 %v11252_v4  ;;  %v1726_v4 = vunpack.c.l.b16 %v67_v62 }
 0x166   :  { %7128 = vmatpush.bf16.msra.mxu2 %v11260_v5  ;;  %v11291_v5 = vld [vmem:[#allocation2 + $0xb80] sm:$0xff] }
 0x167   :  { %7141 = vmatpush.bf16.msra.mxu3 %v11268_v6  ;;  %v11299_v6 = vld [vmem:[#allocation2 + $0xbc0] sm:$0xff]  ;;  %v1822_v14 = vpack.c.b16 %v1726_v4, %v1726_v4 }
 0x168   :  { %7103 = vmatpush.bf16.msra.mxu0 %v11243_v11  ;;  %v6897_v35 = vpop.f32.mrf.mxu0  ;;  %v11330_v11 = vld [vmem:[#allocation2 + $0xcb8] sm:$0xff] }
 0x169   :  { %7116 = vmatpush.bf16.msra.mxu1 %v11251_v12  ;;  %v6898_v36 = vadd.f32 %v6897_v35, %v11857_v61  ;;  %v6910_v39 = vpop.f32.mrf.mxu1  ;;  %v66_v61 = vld [vmem:[%s11983_s0 + $0xb0] sm:$0xff]  ;;  %v11338_v12 = vld [vmem:[#allocation2 + $0xcf8] sm:$0xff] }
 0x16a   :  { %7129 = vmatpush.bf16.msra.mxu2 %v11259_v15  ;;  %v1724_v3 = vunpack.c.l.b16 %v66_v61  ;;  %v1725_v7 = vunpack.c.h.b16 %v66_v61  ;;  %v11326_v35 = vld [vmem:[#allocation2 + $0xc98] sm:$0xff] }
 0x16b   :  { %7142 = vmatpush.bf16.msra.mxu3 %v11267_v16  ;;  %7104 = vmatmul.bf16.vlgmr.msra.gmra.mxu0 %v1816_v23  ;;  %v6911_v42 = vadd.f32 %v6910_v39, %v6898_v36  ;;  %v1823_v16 = vpack.c.b16 %v1727_v8, %v1727_v8  ;;  %v11328_v23 = vld [vmem:[#allocation2 + $0xca8] sm:$0xff]  ;;  %v11334_v36 = vld [vmem:[#allocation2 + $0xcd8] sm:$0xff]  ;;  %v11353_v8 = vld [vmem:[#allocation2 + $0xd70] sm:$0xff] }
 0x16c   :  { %7148 = vmatpush.bf16.msrb.mxu0 %v11282_v19  ;;  %7117 = vmatmul.bf16.vlgmr.msra.gmra.mxu1 %v1817_v25  ;;  %v1820_v13 = vpack.c.b16 %v1724_v3, %v1724_v3  ;;  %v1821_v15 = vpack.c.b16 %v1725_v7, %v1725_v7  ;;  %v11329_v19 = vld [vmem:[#allocation2 + $0xcb0] sm:$0xff] }
 0x16d   :  { %7161 = vmatpush.bf16.msrb.mxu1 %v11290_v20  ;;  %7130 = vmatmul.bf16.vlgmr.msra.gmra.mxu2 %v1818_v24  ;;  %v11337_v20 = vld [vmem:[#allocation2 + $0xcf0] sm:$0xff]  ;;  %v11336_v24 = vld [vmem:[#allocation2 + $0xce8] sm:$0xff] }
 0x16e   :  { %7174 = vmatpush.bf16.msrb.mxu2 %v11298_v21  ;;  %7143 = vmatmul.bf16.vlgmr.msra.gmra.mxu3 %v1819_v26  ;;  %v11312_v21 = vld [vmem:[#allocation2 + $0xc28] sm:$0xff]  ;;  %v11345_v7 = vld [vmem:[#allocation2 + $0xd30] sm:$0xff] }
 0x16f   :  { %7187 = vmatpush.bf16.msrb.mxu3 %v11306_v22  ;;  %v11320_v22 = vld [vmem:[#allocation2 + $0xc68] sm:$0xff] }
 0x170   :  { %7149 = vmatpush.bf16.msrb.mxu0 %v11281_v27  ;;  %v6923_v47 = vpop.f32.mrf.mxu2  ;;  %v6899_v50 = vpop.f32.mrf.mxu0  ;;  %v11311_v27 = vld [vmem:[#allocation2 + $0xc20] sm:$0xff] }
 0x171   :  { %7162 = vmatpush.bf16.msrb.mxu1 %v11289_v28  ;;  %v6924_v48 = vadd.f32 %v6923_v47, %v6911_v42  ;;  %v6936_v49 = vpop.f32.mrf.mxu3  ;;  %v6912_v54 = vpop.f32.mrf.mxu1  ;;  %v11319_v28 = vld [vmem:[#allocation2 + $0xc60] sm:$0xff]  ;;  %v11309_v42 = vld [vmem:[#allocation2 + $0xc10] sm:$0xff]  ;;  %v11308_v47 = vld [vmem:[#allocation2 + $0xc08] sm:$0xff] }
 0x172   :  { %7175 = vmatpush.bf16.msrb.mxu2 %v11297_v29  ;;  %v11332_v50 = vld [vmem:[#allocation2 + $0xcc8] sm:$0xff] }
 0x173   :  { %7188 = vmatpush.bf16.msrb.mxu3 %v11305_v30  ;;  %v11866_v51 = vadd.f32 %v6936_v49, %v6924_v48  ;;  %v11327_v30 = vld [vmem:[#allocation2 + $0xca0] sm:$0xff]  ;;  %v11316_v48 = vld [vmem:[#allocation2 + $0xc48] sm:$0xff] }
 0x174   :  { %7150 = vmatpush.bf16.msrb.mxu0 %v11280_v31  ;;  %v11335_v31 = vld [vmem:[#allocation2 + $0xce0] sm:$0xff]  ;;  %v11324_v49 = vld [vmem:[#allocation2 + $0xc88] sm:$0xff] }
 0x175   :  { %7163 = vmatpush.bf16.msrb.mxu1 %v11288_v32 }
 0x176   :  { %7176 = vmatpush.bf16.msrb.mxu2 %v11296_v33  ;;  %v11310_v33 = vld [vmem:[#allocation2 + $0xc18] sm:$0xff] }
 0x177   :  { %7189 = vmatpush.bf16.msrb.mxu3 %v11304_v34  ;;  %v11318_v34 = vld [vmem:[#allocation2 + $0xc58] sm:$0xff] }
 0x178   :  { %7151 = vmatpush.bf16.msrb.mxu0 %v11279_v37  ;;  %v6925_v63 = vpop.f32.mrf.mxu2 }
 0x179   :  { %7164 = vmatpush.bf16.msrb.mxu1 %v11287_v38  ;;  %v6938_v0 = vpop.f32.mrf.mxu3  ;;  %v11346_v63 = vld [vmem:[#allocation2 + $0xd38] sm:$0xff] }
 0x17a   :  { %7177 = vmatpush.bf16.msrb.mxu2 %v11295_v40  ;;  %v11354_v0 = vld [vmem:[#allocation2 + $0xd78] sm:$0xff] }
 0x17b   :  { %7190 = vmatpush.bf16.msrb.mxu3 %v11303_v41 }
 0x17c   :  { %7152 = vmatpush.bf16.msrb.mxu0 %v11278_v43  ;;  %v11317_v43 = vld [vmem:[#allocation2 + $0xc50] sm:$0xff] }
 0x17d   :  { %7165 = vmatpush.bf16.msrb.mxu1 %v11286_v44 }
 0x17e   :  { %7178 = vmatpush.bf16.msrb.mxu2 %v11294_v45  ;;  %v11325_v45 = vld [vmem:[#allocation2 + $0xc90] sm:$0xff] }
 0x17f   :  { %7191 = vmatpush.bf16.msrb.mxu3 %v11302_v46  ;;  %v11333_v46 = vld [vmem:[#allocation2 + $0xcd0] sm:$0xff] }
 0x180   :  { %7153 = vmatpush.bf16.msrb.mxu0 %v11277_v52  ;;  %v69_v52 = vld [vmem:[%s11983_s0 + $0xc8] sm:$0xff] }
 0x181   :  { %7166 = vmatpush.bf16.msrb.mxu1 %v11285_v53  ;;  %v1731_v62 = vunpack.c.h.b16 %v69_v52 }
 0x182   :  { %7179 = vmatpush.bf16.msrb.mxu2 %v11293_v55  ;;  %v11307_v55 = vld [vmem:[#allocation2 + $0xc00] sm:$0xff] }
 0x183   :  { %7192 = vmatpush.bf16.msrb.mxu3 %v11301_v56  ;;  %v11315_v56 = vld [vmem:[#allocation2 + $0xc40] sm:$0xff] }
 0x184   :  { %7154 = vmatpush.bf16.msrb.mxu0 %v11276_v57 }
 0x185   :  { %7167 = vmatpush.bf16.msrb.mxu1 %v11284_v58  ;;  %v1730_v58 = vunpack.c.l.b16 %v69_v52 }
 0x186   :  { %7180 = vmatpush.bf16.msrb.mxu2 %v11292_v59  ;;  %v11323_v59 = vld [vmem:[#allocation2 + $0xc80] sm:$0xff] }
 0x187   :  { %7193 = vmatpush.bf16.msrb.mxu3 %v11300_v60  ;;  %v11331_v60 = vld [vmem:[#allocation2 + $0xcc0] sm:$0xff]  ;;  %v1826_v4 = vpack.c.b16 %v1730_v58, %v1730_v58 }
 0x188   :  { %7155 = vmatpush.bf16.msrb.mxu0 %v11275_v1  ;;  %v6949_v25 = vpop.f32.mrf.mxu0  ;;  %v11362_v1 = vld [vmem:[#allocation2 + $0xdb8] sm:$0xff] }
 0x189   :  { %7168 = vmatpush.bf16.msrb.mxu1 %v11283_v2  ;;  %v6950_v26 = vadd.f32 %v6949_v25, %v11866_v51  ;;  %v6962_v29 = vpop.f32.mrf.mxu1  ;;  %v68_v51 = vld [vmem:[%s11983_s0 + $0xc0] sm:$0xff]  ;;  %v11370_v2 = vld [vmem:[#allocation2 + $0xdf8] sm:$0xff] }
 0x18a   :  { %7181 = vmatpush.bf16.msrb.mxu2 %v11291_v5  ;;  %v1728_v57 = vunpack.c.l.b16 %v68_v51  ;;  %v1729_v61 = vunpack.c.h.b16 %v68_v51  ;;  %v11358_v25 = vld [vmem:[#allocation2 + $0xd98] sm:$0xff] }
 0x18b   :  { %7194 = vmatpush.bf16.msrb.mxu3 %v11299_v6  ;;  %7156 = vmatmul.bf16.vlgmr.msrb.gmra.mxu0 %v1820_v13  ;;  %v6963_v32 = vadd.f32 %v6962_v29, %v6950_v26  ;;  %v1827_v6 = vpack.c.b16 %v1731_v62, %v1731_v62  ;;  %v11360_v13 = vld [vmem:[#allocation2 + $0xda8] sm:$0xff]  ;;  %v11366_v26 = vld [vmem:[#allocation2 + $0xdd8] sm:$0xff]  ;;  %v11385_v62 = vld [vmem:[#allocation2 + $0xe70] sm:$0xff] }
 0x18c   :  { %7200 = vmatpush.bf16.msra.mxu0 %v11314_v9  ;;  %7169 = vmatmul.bf16.vlgmr.msrb.gmra.mxu1 %v1821_v15  ;;  %v1824_v3 = vpack.c.b16 %v1728_v57, %v1728_v57  ;;  %v1825_v5 = vpack.c.b16 %v1729_v61, %v1729_v61  ;;  %v11361_v9 = vld [vmem:[#allocation2 + $0xdb0] sm:$0xff] }
 0x18d   :  { %7213 = vmatpush.bf16.msra.mxu1 %v11322_v10  ;;  %7182 = vmatmul.bf16.vlgmr.msrb.gmra.mxu2 %v1822_v14  ;;  %v11369_v10 = vld [vmem:[#allocation2 + $0xdf0] sm:$0xff]  ;;  %v11368_v14 = vld [vmem:[#allocation2 + $0xde8] sm:$0xff] }
 0x18e   :  { %7226 = vmatpush.bf16.msra.mxu2 %v11330_v11  ;;  %7195 = vmatmul.bf16.vlgmr.msrb.gmra.mxu3 %v1823_v16  ;;  %v11344_v11 = vld [vmem:[#allocation2 + $0xd28] sm:$0xff]  ;;  %v11377_v61 = vld [vmem:[#allocation2 + $0xe30] sm:$0xff] }
 0x18f   :  { %7239 = vmatpush.bf16.msra.mxu3 %v11338_v12  ;;  %v11352_v12 = vld [vmem:[#allocation2 + $0xd68] sm:$0xff] }
 0x190   :  { %7201 = vmatpush.bf16.msra.mxu0 %v11313_v17  ;;  %v6975_v37 = vpop.f32.mrf.mxu2  ;;  %v6951_v40 = vpop.f32.mrf.mxu0  ;;  %v11343_v17 = vld [vmem:[#allocation2 + $0xd20] sm:$0xff] }
 0x191   :  { %7214 = vmatpush.bf16.msra.mxu1 %v11321_v18  ;;  %v6976_v38 = vadd.f32 %v6975_v37, %v6963_v32  ;;  %v6988_v39 = vpop.f32.mrf.mxu3  ;;  %v6964_v44 = vpop.f32.mrf.mxu1  ;;  %v11351_v18 = vld [vmem:[#allocation2 + $0xd60] sm:$0xff]  ;;  %v11341_v32 = vld [vmem:[#allocation2 + $0xd10] sm:$0xff]  ;;  %v11340_v37 = vld [vmem:[#allocation2 + $0xd08] sm:$0xff] }
 0x192   :  { %7227 = vmatpush.bf16.msra.mxu2 %v11329_v19  ;;  %v11364_v40 = vld [vmem:[#allocation2 + $0xdc8] sm:$0xff] }
 0x193   :  { %7240 = vmatpush.bf16.msra.mxu3 %v11337_v20  ;;  %v11875_v41 = vadd.f32 %v6988_v39, %v6976_v38  ;;  %v11359_v20 = vld [vmem:[#allocation2 + $0xda0] sm:$0xff]  ;;  %v11348_v38 = vld [vmem:[#allocation2 + $0xd48] sm:$0xff] }
 0x194   :  { %7202 = vmatpush.bf16.msra.mxu0 %v11312_v21  ;;  %v11367_v21 = vld [vmem:[#allocation2 + $0xde0] sm:$0xff]  ;;  %v11356_v39 = vld [vmem:[#allocation2 + $0xd88] sm:$0xff] }
 0x195   :  { %7215 = vmatpush.bf16.msra.mxu1 %v11320_v22 }
 0x196   :  { %7228 = vmatpush.bf16.msra.mxu2 %v11328_v23  ;;  %v11342_v23 = vld [vmem:[#allocation2 + $0xd18] sm:$0xff] }
 0x197   :  { %7241 = vmatpush.bf16.msra.mxu3 %v11336_v24  ;;  %v11350_v24 = vld [vmem:[#allocation2 + $0xd58] sm:$0xff] }
 0x198   :  { %7203 = vmatpush.bf16.msra.mxu0 %v11311_v27  ;;  %v6977_v53 = vpop.f32.mrf.mxu2 }
 0x199   :  { %7216 = vmatpush.bf16.msra.mxu1 %v11319_v28  ;;  %v6990_v54 = vpop.f32.mrf.mxu3  ;;  %v11378_v53 = vld [vmem:[#allocation2 + $0xe38] sm:$0xff] }
 0x19a   :  { %7229 = vmatpush.bf16.msra.mxu2 %v11327_v30  ;;  %v11386_v54 = vld [vmem:[#allocation2 + $0xe78] sm:$0xff] }
 0x19b   :  { %7242 = vmatpush.bf16.msra.mxu3 %v11335_v31 }
 0x19c   :  { %7204 = vmatpush.bf16.msra.mxu0 %v11310_v33  ;;  %v11349_v33 = vld [vmem:[#allocation2 + $0xd50] sm:$0xff] }
 0x19d   :  { %7217 = vmatpush.bf16.msra.mxu1 %v11318_v34 }
 0x19e   :  { %7230 = vmatpush.bf16.msra.mxu2 %v11326_v35  ;;  %v11357_v35 = vld [vmem:[#allocation2 + $0xd90] sm:$0xff] }
 0x19f   :  { %7243 = vmatpush.bf16.msra.mxu3 %v11334_v36  ;;  %v11365_v36 = vld [vmem:[#allocation2 + $0xdd0] sm:$0xff] }
 0x1a0   :  { %7205 = vmatpush.bf16.msra.mxu0 %v11309_v42  ;;  %v71_v42 = vld [vmem:[%s11983_s0 + $0xd8] sm:$0xff] }
 0x1a1   :  { %7218 = vmatpush.bf16.msra.mxu1 %v11317_v43  ;;  %v1735_v52 = vunpack.c.h.b16 %v71_v42 }
 0x1a2   :  { %7231 = vmatpush.bf16.msra.mxu2 %v11325_v45  ;;  %v11339_v45 = vld [vmem:[#allocation2 + $0xd00] sm:$0xff] }
 0x1a3   :  { %7244 = vmatpush.bf16.msra.mxu3 %v11333_v46  ;;  %v11347_v46 = vld [vmem:[#allocation2 + $0xd40] sm:$0xff] }
 0x1a4   :  { %7206 = vmatpush.bf16.msra.mxu0 %v11308_v47 }
 0x1a5   :  { %7219 = vmatpush.bf16.msra.mxu1 %v11316_v48  ;;  %v1734_v48 = vunpack.c.l.b16 %v71_v42 }
 0x1a6   :  { %7232 = vmatpush.bf16.msra.mxu2 %v11324_v49  ;;  %v11355_v49 = vld [vmem:[#allocation2 + $0xd80] sm:$0xff] }
 0x1a7   :  { %7245 = vmatpush.bf16.msra.mxu3 %v11332_v50  ;;  %v11363_v50 = vld [vmem:[#allocation2 + $0xdc0] sm:$0xff]  ;;  %v1830_v58 = vpack.c.b16 %v1734_v48, %v1734_v48 }
 0x1a8   :  { %7207 = vmatpush.bf16.msra.mxu0 %v11307_v55  ;;  %v7001_v15 = vpop.f32.mrf.mxu0  ;;  %v11394_v55 = vld [vmem:[#allocation2 + $0xeb8] sm:$0xff] }
 0x1a9   :  { %7220 = vmatpush.bf16.msra.mxu1 %v11315_v56  ;;  %v7002_v16 = vadd.f32 %v7001_v15, %v11875_v41  ;;  %v7014_v19 = vpop.f32.mrf.mxu1  ;;  %v70_v41 = vld [vmem:[%s11983_s0 + $0xd0] sm:$0xff]  ;;  %v11402_v56 = vld [vmem:[#allocation2 + $0xef8] sm:$0xff] }
 0x1aa   :  { %7233 = vmatpush.bf16.msra.mxu2 %v11323_v59  ;;  %v1732_v47 = vunpack.c.l.b16 %v70_v41  ;;  %v1733_v51 = vunpack.c.h.b16 %v70_v41  ;;  %v11390_v15 = vld [vmem:[#allocation2 + $0xe98] sm:$0xff] }
 0x1ab   :  { %7246 = vmatpush.bf16.msra.mxu3 %v11331_v60  ;;  %7208 = vmatmul.bf16.vlgmr.msra.gmra.mxu0 %v1824_v3  ;;  %v7015_v22 = vadd.f32 %v7014_v19, %v7002_v16  ;;  %v1831_v60 = vpack.c.b16 %v1735_v52, %v1735_v52  ;;  %v11392_v3 = vld [vmem:[#allocation2 + $0xea8] sm:$0xff]  ;;  %v11398_v16 = vld [vmem:[#allocation2 + $0xed8] sm:$0xff]  ;;  %v11417_v52 = vld [vmem:[#allocation2 + $0xf70] sm:$0xff] }
 0x1ac   :  { %7252 = vmatpush.bf16.msrb.mxu0 %v11346_v63  ;;  %7221 = vmatmul.bf16.vlgmr.msra.gmra.mxu1 %v1825_v5  ;;  %v1828_v57 = vpack.c.b16 %v1732_v47, %v1732_v47  ;;  %v1829_v59 = vpack.c.b16 %v1733_v51, %v1733_v51  ;;  %v11393_v63 = vld [vmem:[#allocation2 + $0xeb0] sm:$0xff] }
 0x1ad   :  { %7265 = vmatpush.bf16.msrb.mxu1 %v11354_v0  ;;  %7234 = vmatmul.bf16.vlgmr.msra.gmra.mxu2 %v1826_v4  ;;  %v11401_v0 = vld [vmem:[#allocation2 + $0xef0] sm:$0xff]  ;;  %v11400_v4 = vld [vmem:[#allocation2 + $0xee8] sm:$0xff] }
 0x1ae   :  { %7278 = vmatpush.bf16.msrb.mxu2 %v11362_v1  ;;  %7247 = vmatmul.bf16.vlgmr.msra.gmra.mxu3 %v1827_v6  ;;  %v11376_v1 = vld [vmem:[#allocation2 + $0xe28] sm:$0xff]  ;;  %v11409_v51 = vld [vmem:[#allocation2 + $0xf30] sm:$0xff] }
 0x1af   :  { %7291 = vmatpush.bf16.msrb.mxu3 %v11370_v2  ;;  %v11384_v2 = vld [vmem:[#allocation2 + $0xe68] sm:$0xff] }
 0x1b0   :  { %7253 = vmatpush.bf16.msrb.mxu0 %v11345_v7  ;;  %v7027_v27 = vpop.f32.mrf.mxu2  ;;  %v7003_v30 = vpop.f32.mrf.mxu0  ;;  %v11375_v7 = vld [vmem:[#allocation2 + $0xe20] sm:$0xff] }
 0x1b1   :  { %7266 = vmatpush.bf16.msrb.mxu1 %v11353_v8  ;;  %v7028_v28 = vadd.f32 %v7027_v27, %v7015_v22  ;;  %v7040_v29 = vpop.f32.mrf.mxu3  ;;  %v7016_v34 = vpop.f32.mrf.mxu1  ;;  %v11383_v8 = vld [vmem:[#allocation2 + $0xe60] sm:$0xff]  ;;  %v11373_v22 = vld [vmem:[#allocation2 + $0xe10] sm:$0xff]  ;;  %v11372_v27 = vld [vmem:[#allocation2 + $0xe08] sm:$0xff] }
 0x1b2   :  { %7279 = vmatpush.bf16.msrb.mxu2 %v11361_v9  ;;  %v11396_v30 = vld [vmem:[#allocation2 + $0xec8] sm:$0xff] }
 0x1b3   :  { %7292 = vmatpush.bf16.msrb.mxu3 %v11369_v10  ;;  %v11884_v31 = vadd.f32 %v7040_v29, %v7028_v28  ;;  %v11391_v10 = vld [vmem:[#allocation2 + $0xea0] sm:$0xff]  ;;  %v11380_v28 = vld [vmem:[#allocation2 + $0xe48] sm:$0xff] }
 0x1b4   :  { %7254 = vmatpush.bf16.msrb.mxu0 %v11344_v11  ;;  %v11399_v11 = vld [vmem:[#allocation2 + $0xee0] sm:$0xff]  ;;  %v11388_v29 = vld [vmem:[#allocation2 + $0xe88] sm:$0xff] }
 0x1b5   :  { %7267 = vmatpush.bf16.msrb.mxu1 %v11352_v12 }
 0x1b6   :  { %7280 = vmatpush.bf16.msrb.mxu2 %v11360_v13  ;;  %v11374_v13 = vld [vmem:[#allocation2 + $0xe18] sm:$0xff] }
 0x1b7   :  { %7293 = vmatpush.bf16.msrb.mxu3 %v11368_v14  ;;  %v11382_v14 = vld [vmem:[#allocation2 + $0xe58] sm:$0xff] }
 0x1b8   :  { %7255 = vmatpush.bf16.msrb.mxu0 %v11343_v17  ;;  %v7029_v43 = vpop.f32.mrf.mxu2 }
 0x1b9   :  { %7268 = vmatpush.bf16.msrb.mxu1 %v11351_v18  ;;  %v7042_v44 = vpop.f32.mrf.mxu3  ;;  %v11410_v43 = vld [vmem:[#allocation2 + $0xf38] sm:$0xff] }
 0x1ba   :  { %7281 = vmatpush.bf16.msrb.mxu2 %v11359_v20  ;;  %v11418_v44 = vld [vmem:[#allocation2 + $0xf78] sm:$0xff] }
 0x1bb   :  { %7294 = vmatpush.bf16.msrb.mxu3 %v11367_v21 }
 0x1bc   :  { %7256 = vmatpush.bf16.msrb.mxu0 %v11342_v23  ;;  %v11381_v23 = vld [vmem:[#allocation2 + $0xe50] sm:$0xff] }
 0x1bd   :  { %7269 = vmatpush.bf16.msrb.mxu1 %v11350_v24 }
 0x1be   :  { %7282 = vmatpush.bf16.msrb.mxu2 %v11358_v25  ;;  %v11389_v25 = vld [vmem:[#allocation2 + $0xe90] sm:$0xff] }
 0x1bf   :  { %7295 = vmatpush.bf16.msrb.mxu3 %v11366_v26  ;;  %v11397_v26 = vld [vmem:[#allocation2 + $0xed0] sm:$0xff] }
 0x1c0   :  { %7257 = vmatpush.bf16.msrb.mxu0 %v11341_v32  ;;  %v73_v32 = vld [vmem:[%s11983_s0 + $0xe8] sm:$0xff] }
 0x1c1   :  { %7270 = vmatpush.bf16.msrb.mxu1 %v11349_v33  ;;  %v1739_v42 = vunpack.c.h.b16 %v73_v32 }
 0x1c2   :  { %7283 = vmatpush.bf16.msrb.mxu2 %v11357_v35  ;;  %v11371_v35 = vld [vmem:[#allocation2 + $0xe00] sm:$0xff] }
 0x1c3   :  { %7296 = vmatpush.bf16.msrb.mxu3 %v11365_v36  ;;  %v11379_v36 = vld [vmem:[#allocation2 + $0xe40] sm:$0xff] }
 0x1c4   :  { %7258 = vmatpush.bf16.msrb.mxu0 %v11340_v37 }
 0x1c5   :  { %7271 = vmatpush.bf16.msrb.mxu1 %v11348_v38  ;;  %v1738_v38 = vunpack.c.l.b16 %v73_v32 }
 0x1c6   :  { %7284 = vmatpush.bf16.msrb.mxu2 %v11356_v39  ;;  %v11387_v39 = vld [vmem:[#allocation2 + $0xe80] sm:$0xff] }
 0x1c7   :  { %7297 = vmatpush.bf16.msrb.mxu3 %v11364_v40  ;;  %v11395_v40 = vld [vmem:[#allocation2 + $0xec0] sm:$0xff]  ;;  %v1834_v48 = vpack.c.b16 %v1738_v38, %v1738_v38 }
 0x1c8   :  { %7259 = vmatpush.bf16.msrb.mxu0 %v11339_v45  ;;  %v7053_v5 = vpop.f32.mrf.mxu0  ;;  %v11426_v45 = vld [vmem:[#allocation2 + $0xfb8] sm:$0xff] }
 0x1c9   :  { %7272 = vmatpush.bf16.msrb.mxu1 %v11347_v46  ;;  %v7054_v6 = vadd.f32 %v7053_v5, %v11884_v31  ;;  %v7066_v9 = vpop.f32.mrf.mxu1  ;;  %v72_v31 = vld [vmem:[%s11983_s0 + $0xe0] sm:$0xff]  ;;  %v11434_v46 = vld [vmem:[#allocation2 + $0xff8] sm:$0xff] }
 0x1ca   :  { %7285 = vmatpush.bf16.msrb.mxu2 %v11355_v49  ;;  %v1736_v37 = vunpack.c.l.b16 %v72_v31  ;;  %v1737_v41 = vunpack.c.h.b16 %v72_v31  ;;  %v11422_v5 = vld [vmem:[#allocation2 + $0xf98] sm:$0xff] }
 0x1cb   :  { %7298 = vmatpush.bf16.msrb.mxu3 %v11363_v50  ;;  %7260 = vmatmul.bf16.vlgmr.msrb.gmra.mxu0 %v1828_v57  ;;  %v7067_v12 = vadd.f32 %v7066_v9, %v7054_v6  ;;  %v1835_v50 = vpack.c.b16 %v1739_v42, %v1739_v42  ;;  %v11424_v57 = vld [vmem:[#allocation2 + $0xfa8] sm:$0xff]  ;;  %v11430_v6 = vld [vmem:[#allocation2 + $0xfd8] sm:$0xff]  ;;  %v11449_v42 = vld [vmem:[#allocation2 + $0x1070] sm:$0xff] }
 0x1cc   :  { %7304 = vmatpush.bf16.msra.mxu0 %v11378_v53  ;;  %7273 = vmatmul.bf16.vlgmr.msrb.gmra.mxu1 %v1829_v59  ;;  %v1832_v47 = vpack.c.b16 %v1736_v37, %v1736_v37  ;;  %v1833_v49 = vpack.c.b16 %v1737_v41, %v1737_v41  ;;  %v11425_v53 = vld [vmem:[#allocation2 + $0xfb0] sm:$0xff] }
 0x1cd   :  { %7317 = vmatpush.bf16.msra.mxu1 %v11386_v54  ;;  %7286 = vmatmul.bf16.vlgmr.msrb.gmra.mxu2 %v1830_v58  ;;  %v11433_v54 = vld [vmem:[#allocation2 + $0xff0] sm:$0xff]  ;;  %v11432_v58 = vld [vmem:[#allocation2 + $0xfe8] sm:$0xff] }
 0x1ce   :  { %7330 = vmatpush.bf16.msra.mxu2 %v11394_v55  ;;  %7299 = vmatmul.bf16.vlgmr.msrb.gmra.mxu3 %v1831_v60  ;;  %v11408_v55 = vld [vmem:[#allocation2 + $0xf28] sm:$0xff]  ;;  %v11441_v41 = vld [vmem:[#allocation2 + $0x1030] sm:$0xff] }
 0x1cf   :  { %7343 = vmatpush.bf16.msra.mxu3 %v11402_v56  ;;  %v11416_v56 = vld [vmem:[#allocation2 + $0xf68] sm:$0xff] }
 0x1d0   :  { %7305 = vmatpush.bf16.msra.mxu0 %v11377_v61  ;;  %v7079_v17 = vpop.f32.mrf.mxu2  ;;  %v7055_v20 = vpop.f32.mrf.mxu0  ;;  %v11407_v61 = vld [vmem:[#allocation2 + $0xf20] sm:$0xff] }
 0x1d1   :  { %7318 = vmatpush.bf16.msra.mxu1 %v11385_v62  ;;  %v7080_v18 = vadd.f32 %v7079_v17, %v7067_v12  ;;  %v7092_v19 = vpop.f32.mrf.mxu3  ;;  %v7068_v24 = vpop.f32.mrf.mxu1  ;;  %v11415_v62 = vld [vmem:[#allocation2 + $0xf60] sm:$0xff]  ;;  %v11405_v12 = vld [vmem:[#allocation2 + $0xf10] sm:$0xff]  ;;  %v11404_v17 = vld [vmem:[#allocation2 + $0xf08] sm:$0xff] }
 0x1d2   :  { %7331 = vmatpush.bf16.msra.mxu2 %v11393_v63  ;;  %v11428_v20 = vld [vmem:[#allocation2 + $0xfc8] sm:$0xff] }
 0x1d3   :  { %7344 = vmatpush.bf16.msra.mxu3 %v11401_v0  ;;  %v11893_v21 = vadd.f32 %v7092_v19, %v7080_v18  ;;  %v11423_v0 = vld [vmem:[#allocation2 + $0xfa0] sm:$0xff]  ;;  %v11412_v18 = vld [vmem:[#allocation2 + $0xf48] sm:$0xff] }
 0x1d4   :  { %7306 = vmatpush.bf16.msra.mxu0 %v11376_v1  ;;  %v11431_v1 = vld [vmem:[#allocation2 + $0xfe0] sm:$0xff]  ;;  %v11420_v19 = vld [vmem:[#allocation2 + $0xf88] sm:$0xff] }
 0x1d5   :  { %7319 = vmatpush.bf16.msra.mxu1 %v11384_v2 }
 0x1d6   :  { %7332 = vmatpush.bf16.msra.mxu2 %v11392_v3  ;;  %v11406_v3 = vld [vmem:[#allocation2 + $0xf18] sm:$0xff] }
 0x1d7   :  { %7345 = vmatpush.bf16.msra.mxu3 %v11400_v4  ;;  %v11414_v4 = vld [vmem:[#allocation2 + $0xf58] sm:$0xff] }
 0x1d8   :  { %7307 = vmatpush.bf16.msra.mxu0 %v11375_v7  ;;  %v7081_v33 = vpop.f32.mrf.mxu2 }
 0x1d9   :  { %7320 = vmatpush.bf16.msra.mxu1 %v11383_v8  ;;  %v7094_v34 = vpop.f32.mrf.mxu3  ;;  %v11442_v33 = vld [vmem:[#allocation2 + $0x1038] sm:$0xff] }
 0x1da   :  { %7333 = vmatpush.bf16.msra.mxu2 %v11391_v10  ;;  %v11450_v34 = vld [vmem:[#allocation2 + $0x1078] sm:$0xff] }
 0x1db   :  { %7346 = vmatpush.bf16.msra.mxu3 %v11399_v11 }
 0x1dc   :  { %7308 = vmatpush.bf16.msra.mxu0 %v11374_v13  ;;  %v11413_v13 = vld [vmem:[#allocation2 + $0xf50] sm:$0xff] }
 0x1dd   :  { %7321 = vmatpush.bf16.msra.mxu1 %v11382_v14 }
 0x1de   :  { %7334 = vmatpush.bf16.msra.mxu2 %v11390_v15  ;;  %v11421_v15 = vld [vmem:[#allocation2 + $0xf90] sm:$0xff] }
 0x1df   :  { %7347 = vmatpush.bf16.msra.mxu3 %v11398_v16  ;;  %v11429_v16 = vld [vmem:[#allocation2 + $0xfd0] sm:$0xff] }
 0x1e0   :  { %7309 = vmatpush.bf16.msra.mxu0 %v11373_v22  ;;  %v75_v22 = vld [vmem:[%s11983_s0 + $0xf8] sm:$0xff] }
 0x1e1   :  { %7322 = vmatpush.bf16.msra.mxu1 %v11381_v23  ;;  %v1743_v32 = vunpack.c.h.b16 %v75_v22 }
 0x1e2   :  { %7335 = vmatpush.bf16.msra.mxu2 %v11389_v25  ;;  %v11403_v25 = vld [vmem:[#allocation2 + $0xf00] sm:$0xff] }
 0x1e3   :  { %7348 = vmatpush.bf16.msra.mxu3 %v11397_v26  ;;  %v11411_v26 = vld [vmem:[#allocation2 + $0xf40] sm:$0xff] }
 0x1e4   :  { %7310 = vmatpush.bf16.msra.mxu0 %v11372_v27 }
 0x1e5   :  { %7323 = vmatpush.bf16.msra.mxu1 %v11380_v28  ;;  %v1742_v28 = vunpack.c.l.b16 %v75_v22 }
 0x1e6   :  { %7336 = vmatpush.bf16.msra.mxu2 %v11388_v29  ;;  %v11419_v29 = vld [vmem:[#allocation2 + $0xf80] sm:$0xff] }
 0x1e7   :  { %7349 = vmatpush.bf16.msra.mxu3 %v11396_v30  ;;  %v11427_v30 = vld [vmem:[#allocation2 + $0xfc0] sm:$0xff]  ;;  %v1838_v38 = vpack.c.b16 %v1742_v28, %v1742_v28 }
 0x1e8   :  { %7311 = vmatpush.bf16.msra.mxu0 %v11371_v35  ;;  %v7105_v59 = vpop.f32.mrf.mxu0  ;;  %v11458_v35 = vld [vmem:[#allocation2 + $0x10b8] sm:$0xff] }
 0x1e9   :  { %7324 = vmatpush.bf16.msra.mxu1 %v11379_v36  ;;  %v7106_v60 = vadd.f32 %v7105_v59, %v11893_v21  ;;  %v7118_v63 = vpop.f32.mrf.mxu1  ;;  %v74_v21 = vld [vmem:[%s11983_s0 + $0xf0] sm:$0xff]  ;;  %v11466_v36 = vld [vmem:[#allocation2 + $0x10f8] sm:$0xff] }
 0x1ea   :  { %7337 = vmatpush.bf16.msra.mxu2 %v11387_v39  ;;  %v1740_v27 = vunpack.c.l.b16 %v74_v21  ;;  %v1741_v31 = vunpack.c.h.b16 %v74_v21  ;;  %v11454_v59 = vld [vmem:[#allocation2 + $0x1098] sm:$0xff] }
 0x1eb   :  { %7350 = vmatpush.bf16.msra.mxu3 %v11395_v40  ;;  %7312 = vmatmul.bf16.vlgmr.msra.gmra.mxu0 %v1832_v47  ;;  %v7119_v2 = vadd.f32 %v7118_v63, %v7106_v60  ;;  %v1839_v40 = vpack.c.b16 %v1743_v32, %v1743_v32  ;;  %v11456_v47 = vld [vmem:[#allocation2 + $0x10a8] sm:$0xff]  ;;  %v11462_v60 = vld [vmem:[#allocation2 + $0x10d8] sm:$0xff]  ;;  %v11481_v32 = vld [vmem:[#allocation2 + $0x1170] sm:$0xff] }
 0x1ec   :  { %7356 = vmatpush.bf16.msrb.mxu0 %v11410_v43  ;;  %7325 = vmatmul.bf16.vlgmr.msra.gmra.mxu1 %v1833_v49  ;;  %v1836_v37 = vpack.c.b16 %v1740_v27, %v1740_v27  ;;  %v1837_v39 = vpack.c.b16 %v1741_v31, %v1741_v31  ;;  %v11457_v43 = vld [vmem:[#allocation2 + $0x10b0] sm:$0xff] }
 0x1ed   :  { %7369 = vmatpush.bf16.msrb.mxu1 %v11418_v44  ;;  %7338 = vmatmul.bf16.vlgmr.msra.gmra.mxu2 %v1834_v48  ;;  %v11465_v44 = vld [vmem:[#allocation2 + $0x10f0] sm:$0xff]  ;;  %v11464_v48 = vld [vmem:[#allocation2 + $0x10e8] sm:$0xff] }
 0x1ee   :  { %7382 = vmatpush.bf16.msrb.mxu2 %v11426_v45  ;;  %7351 = vmatmul.bf16.vlgmr.msra.gmra.mxu3 %v1835_v50  ;;  %v11440_v45 = vld [vmem:[#allocation2 + $0x1028] sm:$0xff]  ;;  %v11473_v31 = vld [vmem:[#allocation2 + $0x1130] sm:$0xff] }
 0x1ef   :  { %7395 = vmatpush.bf16.msrb.mxu3 %v11434_v46  ;;  %v11448_v46 = vld [vmem:[#allocation2 + $0x1068] sm:$0xff] }
 0x1f0   :  { %7357 = vmatpush.bf16.msrb.mxu0 %v11409_v51  ;;  %v7131_v7 = vpop.f32.mrf.mxu2  ;;  %v7107_v10 = vpop.f32.mrf.mxu0  ;;  %v11439_v51 = vld [vmem:[#allocation2 + $0x1020] sm:$0xff] }
 0x1f1   :  { %7370 = vmatpush.bf16.msrb.mxu1 %v11417_v52  ;;  %v7132_v8 = vadd.f32 %v7131_v7, %v7119_v2  ;;  %v7144_v9 = vpop.f32.mrf.mxu3  ;;  %v7120_v14 = vpop.f32.mrf.mxu1  ;;  %v11447_v52 = vld [vmem:[#allocation2 + $0x1060] sm:$0xff]  ;;  %v11437_v2 = vld [vmem:[#allocation2 + $0x1010] sm:$0xff]  ;;  %v11436_v7 = vld [vmem:[#allocation2 + $0x1008] sm:$0xff] }
 0x1f2   :  { %7383 = vmatpush.bf16.msrb.mxu2 %v11425_v53  ;;  %v11460_v10 = vld [vmem:[#allocation2 + $0x10c8] sm:$0xff] }
 0x1f3   :  { %7396 = vmatpush.bf16.msrb.mxu3 %v11433_v54  ;;  %v11902_v11 = vadd.f32 %v7144_v9, %v7132_v8  ;;  %v11455_v54 = vld [vmem:[#allocation2 + $0x10a0] sm:$0xff]  ;;  %v11444_v8 = vld [vmem:[#allocation2 + $0x1048] sm:$0xff] }
 0x1f4   :  { %7358 = vmatpush.bf16.msrb.mxu0 %v11408_v55  ;;  %v11463_v55 = vld [vmem:[#allocation2 + $0x10e0] sm:$0xff]  ;;  %v11452_v9 = vld [vmem:[#allocation2 + $0x1088] sm:$0xff] }
 0x1f5   :  { %7371 = vmatpush.bf16.msrb.mxu1 %v11416_v56 }
 0x1f6   :  { %7384 = vmatpush.bf16.msrb.mxu2 %v11424_v57  ;;  %v11438_v57 = vld [vmem:[#allocation2 + $0x1018] sm:$0xff] }
 0x1f7   :  { %7397 = vmatpush.bf16.msrb.mxu3 %v11432_v58  ;;  %v11446_v58 = vld [vmem:[#allocation2 + $0x1058] sm:$0xff] }
 0x1f8   :  { %7359 = vmatpush.bf16.msrb.mxu0 %v11407_v61  ;;  %v7133_v23 = vpop.f32.mrf.mxu2 }
 0x1f9   :  { %7372 = vmatpush.bf16.msrb.mxu1 %v11415_v62  ;;  %v7146_v24 = vpop.f32.mrf.mxu3  ;;  %v11474_v23 = vld [vmem:[#allocation2 + $0x1138] sm:$0xff] }
 0x1fa   :  { %7385 = vmatpush.bf16.msrb.mxu2 %v11423_v0  ;;  %v11482_v24 = vld [vmem:[#allocation2 + $0x1178] sm:$0xff] }
 0x1fb   :  { %7398 = vmatpush.bf16.msrb.mxu3 %v11431_v1 }
 0x1fc   :  { %7360 = vmatpush.bf16.msrb.mxu0 %v11406_v3  ;;  %v11445_v3 = vld [vmem:[#allocation2 + $0x1050] sm:$0xff] }
 0x1fd   :  { %7373 = vmatpush.bf16.msrb.mxu1 %v11414_v4 }
 0x1fe   :  { %7386 = vmatpush.bf16.msrb.mxu2 %v11422_v5  ;;  %v11453_v5 = vld [vmem:[#allocation2 + $0x1090] sm:$0xff] }
 0x1ff   :  { %7399 = vmatpush.bf16.msrb.mxu3 %v11430_v6  ;;  %v11461_v6 = vld [vmem:[#allocation2 + $0x10d0] sm:$0xff] }
 0x200   :  { %7361 = vmatpush.bf16.msrb.mxu0 %v11405_v12  ;;  %v77_v12 = vld [vmem:[%s11983_s0 + $0x108] sm:$0xff] }
 0x201   :  { %7374 = vmatpush.bf16.msrb.mxu1 %v11413_v13  ;;  %v1747_v22 = vunpack.c.h.b16 %v77_v12 }
 0x202   :  { %7387 = vmatpush.bf16.msrb.mxu2 %v11421_v15  ;;  %v11435_v15 = vld [vmem:[#allocation2 + $0x1000] sm:$0xff] }
 0x203   :  { %7400 = vmatpush.bf16.msrb.mxu3 %v11429_v16  ;;  %v11443_v16 = vld [vmem:[#allocation2 + $0x1040] sm:$0xff] }
 0x204   :  { %7362 = vmatpush.bf16.msrb.mxu0 %v11404_v17 }
 0x205   :  { %7375 = vmatpush.bf16.msrb.mxu1 %v11412_v18  ;;  %v1746_v18 = vunpack.c.l.b16 %v77_v12 }
 0x206   :  { %7388 = vmatpush.bf16.msrb.mxu2 %v11420_v19  ;;  %v11451_v19 = vld [vmem:[#allocation2 + $0x1080] sm:$0xff] }
 0x207   :  { %7401 = vmatpush.bf16.msrb.mxu3 %v11428_v20  ;;  %v11459_v20 = vld [vmem:[#allocation2 + $0x10c0] sm:$0xff]  ;;  %v1842_v28 = vpack.c.b16 %v1746_v18, %v1746_v18 }
 0x208   :  { %7363 = vmatpush.bf16.msrb.mxu0 %v11403_v25  ;;  %v7157_v49 = vpop.f32.mrf.mxu0  ;;  %v11490_v25 = vld [vmem:[#allocation2 + $0x11b8] sm:$0xff] }
 0x209   :  { %7376 = vmatpush.bf16.msrb.mxu1 %v11411_v26  ;;  %v7158_v50 = vadd.f32 %v7157_v49, %v11902_v11  ;;  %v7170_v53 = vpop.f32.mrf.mxu1  ;;  %v76_v11 = vld [vmem:[%s11983_s0 + $0x100] sm:$0xff]  ;;  %v11498_v26 = vld [vmem:[#allocation2 + $0x11f8] sm:$0xff] }
 0x20a   :  { %7389 = vmatpush.bf16.msrb.mxu2 %v11419_v29  ;;  %v1744_v17 = vunpack.c.l.b16 %v76_v11  ;;  %v1745_v21 = vunpack.c.h.b16 %v76_v11  ;;  %v11486_v49 = vld [vmem:[#allocation2 + $0x1198] sm:$0xff] }
 0x20b   :  { %7402 = vmatpush.bf16.msrb.mxu3 %v11427_v30  ;;  %7364 = vmatmul.bf16.vlgmr.msrb.gmra.mxu0 %v1836_v37  ;;  %v7171_v56 = vadd.f32 %v7170_v53, %v7158_v50  ;;  %v1843_v30 = vpack.c.b16 %v1747_v22, %v1747_v22  ;;  %v11488_v37 = vld [vmem:[#allocation2 + $0x11a8] sm:$0xff]  ;;  %v11494_v50 = vld [vmem:[#allocation2 + $0x11d8] sm:$0xff]  ;;  %v11513_v22 = vld [vmem:[#allocation2 + $0x1270] sm:$0xff] }
 0x20c   :  { %7408 = vmatpush.bf16.msra.mxu0 %v11442_v33  ;;  %7377 = vmatmul.bf16.vlgmr.msrb.gmra.mxu1 %v1837_v39  ;;  %v1840_v27 = vpack.c.b16 %v1744_v17, %v1744_v17  ;;  %v1841_v29 = vpack.c.b16 %v1745_v21, %v1745_v21  ;;  %v11489_v33 = vld [vmem:[#allocation2 + $0x11b0] sm:$0xff] }
 0x20d   :  { %7421 = vmatpush.bf16.msra.mxu1 %v11450_v34  ;;  %7390 = vmatmul.bf16.vlgmr.msrb.gmra.mxu2 %v1838_v38  ;;  %v11497_v34 = vld [vmem:[#allocation2 + $0x11f0] sm:$0xff]  ;;  %v11496_v38 = vld [vmem:[#allocation2 + $0x11e8] sm:$0xff] }
 0x20e   :  { %7434 = vmatpush.bf16.msra.mxu2 %v11458_v35  ;;  %7403 = vmatmul.bf16.vlgmr.msrb.gmra.mxu3 %v1839_v40  ;;  %v11472_v35 = vld [vmem:[#allocation2 + $0x1128] sm:$0xff]  ;;  %v11505_v21 = vld [vmem:[#allocation2 + $0x1230] sm:$0xff] }
 0x20f   :  { %7447 = vmatpush.bf16.msra.mxu3 %v11466_v36  ;;  %v11480_v36 = vld [vmem:[#allocation2 + $0x1168] sm:$0xff] }
 0x210   :  { %7409 = vmatpush.bf16.msra.mxu0 %v11441_v41  ;;  %v7183_v61 = vpop.f32.mrf.mxu2  ;;  %v7159_v0 = vpop.f32.mrf.mxu0  ;;  %v11471_v41 = vld [vmem:[#allocation2 + $0x1120] sm:$0xff] }
 0x211   :  { %7422 = vmatpush.bf16.msra.mxu1 %v11449_v42  ;;  %v7184_v62 = vadd.f32 %v7183_v61, %v7171_v56  ;;  %v7196_v63 = vpop.f32.mrf.mxu3  ;;  %v7172_v4 = vpop.f32.mrf.mxu1  ;;  %v11479_v42 = vld [vmem:[#allocation2 + $0x1160] sm:$0xff]  ;;  %v11469_v56 = vld [vmem:[#allocation2 + $0x1110] sm:$0xff]  ;;  %v11468_v61 = vld [vmem:[#allocation2 + $0x1108] sm:$0xff] }
 0x212   :  { %7435 = vmatpush.bf16.msra.mxu2 %v11457_v43  ;;  %v11492_v0 = vld [vmem:[#allocation2 + $0x11c8] sm:$0xff] }
 0x213   :  { %7448 = vmatpush.bf16.msra.mxu3 %v11465_v44  ;;  %v11911_v1 = vadd.f32 %v7196_v63, %v7184_v62  ;;  %v11487_v44 = vld [vmem:[#allocation2 + $0x11a0] sm:$0xff]  ;;  %v11476_v62 = vld [vmem:[#allocation2 + $0x1148] sm:$0xff] }
 0x214   :  { %7410 = vmatpush.bf16.msra.mxu0 %v11440_v45  ;;  %v11495_v45 = vld [vmem:[#allocation2 + $0x11e0] sm:$0xff]  ;;  %v11484_v63 = vld [vmem:[#allocation2 + $0x1188] sm:$0xff] }
 0x215   :  { %7423 = vmatpush.bf16.msra.mxu1 %v11448_v46 }
 0x216   :  { %7436 = vmatpush.bf16.msra.mxu2 %v11456_v47  ;;  %v11470_v47 = vld [vmem:[#allocation2 + $0x1118] sm:$0xff] }
 0x217   :  { %7449 = vmatpush.bf16.msra.mxu3 %v11464_v48  ;;  %v11478_v48 = vld [vmem:[#allocation2 + $0x1158] sm:$0xff] }
 0x218   :  { %7411 = vmatpush.bf16.msra.mxu0 %v11439_v51  ;;  %v7185_v13 = vpop.f32.mrf.mxu2 }
 0x219   :  { %7424 = vmatpush.bf16.msra.mxu1 %v11447_v52  ;;  %v7198_v14 = vpop.f32.mrf.mxu3  ;;  %v11506_v13 = vld [vmem:[#allocation2 + $0x1238] sm:$0xff] }
 0x21a   :  { %7437 = vmatpush.bf16.msra.mxu2 %v11455_v54  ;;  %v11514_v14 = vld [vmem:[#allocation2 + $0x1278] sm:$0xff] }
 0x21b   :  { %7450 = vmatpush.bf16.msra.mxu3 %v11463_v55 }
 0x21c   :  { %7412 = vmatpush.bf16.msra.mxu0 %v11438_v57  ;;  %v11477_v57 = vld [vmem:[#allocation2 + $0x1150] sm:$0xff] }
 0x21d   :  { %7425 = vmatpush.bf16.msra.mxu1 %v11446_v58 }
 0x21e   :  { %7438 = vmatpush.bf16.msra.mxu2 %v11454_v59  ;;  %v11485_v59 = vld [vmem:[#allocation2 + $0x1190] sm:$0xff] }
 0x21f   :  { %7451 = vmatpush.bf16.msra.mxu3 %v11462_v60  ;;  %v11493_v60 = vld [vmem:[#allocation2 + $0x11d0] sm:$0xff] }
 0x220   :  { %7413 = vmatpush.bf16.msra.mxu0 %v11437_v2  ;;  %v79_v2 = vld [vmem:[%s11983_s0 + $0x118] sm:$0xff] }
 0x221   :  { %7426 = vmatpush.bf16.msra.mxu1 %v11445_v3  ;;  %v1751_v12 = vunpack.c.h.b16 %v79_v2 }
 0x222   :  { %7439 = vmatpush.bf16.msra.mxu2 %v11453_v5  ;;  %v11467_v5 = vld [vmem:[#allocation2 + $0x1100] sm:$0xff] }
 0x223   :  { %7452 = vmatpush.bf16.msra.mxu3 %v11461_v6  ;;  %v11475_v6 = vld [vmem:[#allocation2 + $0x1140] sm:$0xff] }
 0x224   :  { %7414 = vmatpush.bf16.msra.mxu0 %v11436_v7 }
 0x225   :  { %7427 = vmatpush.bf16.msra.mxu1 %v11444_v8  ;;  %v1750_v8 = vunpack.c.l.b16 %v79_v2 }
 0x226   :  { %7440 = vmatpush.bf16.msra.mxu2 %v11452_v9  ;;  %v11483_v9 = vld [vmem:[#allocation2 + $0x1180] sm:$0xff] }
 0x227   :  { %7453 = vmatpush.bf16.msra.mxu3 %v11460_v10  ;;  %v11491_v10 = vld [vmem:[#allocation2 + $0x11c0] sm:$0xff]  ;;  %v1846_v18 = vpack.c.b16 %v1750_v8, %v1750_v8 }
 0x228   :  { %7415 = vmatpush.bf16.msra.mxu0 %v11435_v15  ;;  %v7209_v39 = vpop.f32.mrf.mxu0  ;;  %v11522_v15 = vld [vmem:[#allocation2 + $0x12b8] sm:$0xff] }
 0x229   :  { %7428 = vmatpush.bf16.msra.mxu1 %v11443_v16  ;;  %v7210_v40 = vadd.f32 %v7209_v39, %v11911_v1  ;;  %v7222_v43 = vpop.f32.mrf.mxu1  ;;  %v78_v1 = vld [vmem:[%s11983_s0 + $0x110] sm:$0xff]  ;;  %v11530_v16 = vld [vmem:[#allocation2 + $0x12f8] sm:$0xff] }
 0x22a   :  { %7441 = vmatpush.bf16.msra.mxu2 %v11451_v19  ;;  %v1748_v7 = vunpack.c.l.b16 %v78_v1  ;;  %v1749_v11 = vunpack.c.h.b16 %v78_v1  ;;  %v11518_v39 = vld [vmem:[#allocation2 + $0x1298] sm:$0xff] }
 0x22b   :  { %7454 = vmatpush.bf16.msra.mxu3 %v11459_v20  ;;  %7416 = vmatmul.bf16.vlgmr.msra.gmra.mxu0 %v1840_v27  ;;  %v7223_v46 = vadd.f32 %v7222_v43, %v7210_v40  ;;  %v1847_v20 = vpack.c.b16 %v1751_v12, %v1751_v12  ;;  %v11520_v27 = vld [vmem:[#allocation2 + $0x12a8] sm:$0xff]  ;;  %v11526_v40 = vld [vmem:[#allocation2 + $0x12d8] sm:$0xff]  ;;  %v11545_v12 = vld [vmem:[#allocation2 + $0x1370] sm:$0xff] }
 0x22c   :  { %7460 = vmatpush.bf16.msrb.mxu0 %v11474_v23  ;;  %7429 = vmatmul.bf16.vlgmr.msra.gmra.mxu1 %v1841_v29  ;;  %v1844_v17 = vpack.c.b16 %v1748_v7, %v1748_v7  ;;  %v1845_v19 = vpack.c.b16 %v1749_v11, %v1749_v11  ;;  %v11521_v23 = vld [vmem:[#allocation2 + $0x12b0] sm:$0xff] }
 0x22d   :  { %7473 = vmatpush.bf16.msrb.mxu1 %v11482_v24  ;;  %7442 = vmatmul.bf16.vlgmr.msra.gmra.mxu2 %v1842_v28  ;;  %v11529_v24 = vld [vmem:[#allocation2 + $0x12f0] sm:$0xff]  ;;  %v11528_v28 = vld [vmem:[#allocation2 + $0x12e8] sm:$0xff] }
 0x22e   :  { %7486 = vmatpush.bf16.msrb.mxu2 %v11490_v25  ;;  %7455 = vmatmul.bf16.vlgmr.msra.gmra.mxu3 %v1843_v30  ;;  %v11504_v25 = vld [vmem:[#allocation2 + $0x1228] sm:$0xff]  ;;  %v11537_v11 = vld [vmem:[#allocation2 + $0x1330] sm:$0xff] }
 0x22f   :  { %7499 = vmatpush.bf16.msrb.mxu3 %v11498_v26  ;;  %v11512_v26 = vld [vmem:[#allocation2 + $0x1268] sm:$0xff] }
 0x230   :  { %7461 = vmatpush.bf16.msrb.mxu0 %v11473_v31  ;;  %v7235_v51 = vpop.f32.mrf.mxu2  ;;  %v7211_v54 = vpop.f32.mrf.mxu0  ;;  %v11503_v31 = vld [vmem:[#allocation2 + $0x1220] sm:$0xff] }
 0x231   :  { %7474 = vmatpush.bf16.msrb.mxu1 %v11481_v32  ;;  %v7236_v52 = vadd.f32 %v7235_v51, %v7223_v46  ;;  %v7248_v53 = vpop.f32.mrf.mxu3  ;;  %v7224_v58 = vpop.f32.mrf.mxu1  ;;  %v11511_v32 = vld [vmem:[#allocation2 + $0x1260] sm:$0xff]  ;;  %v11501_v46 = vld [vmem:[#allocation2 + $0x1210] sm:$0xff]  ;;  %v11500_v51 = vld [vmem:[#allocation2 + $0x1208] sm:$0xff] }
 0x232   :  { %7487 = vmatpush.bf16.msrb.mxu2 %v11489_v33  ;;  %v11524_v54 = vld [vmem:[#allocation2 + $0x12c8] sm:$0xff] }
 0x233   :  { %7500 = vmatpush.bf16.msrb.mxu3 %v11497_v34  ;;  %v11920_v55 = vadd.f32 %v7248_v53, %v7236_v52  ;;  %v11519_v34 = vld [vmem:[#allocation2 + $0x12a0] sm:$0xff]  ;;  %v11508_v52 = vld [vmem:[#allocation2 + $0x1248] sm:$0xff] }
 0x234   :  { %7462 = vmatpush.bf16.msrb.mxu0 %v11472_v35  ;;  %v11527_v35 = vld [vmem:[#allocation2 + $0x12e0] sm:$0xff]  ;;  %v11516_v53 = vld [vmem:[#allocation2 + $0x1288] sm:$0xff] }
 0x235   :  { %7475 = vmatpush.bf16.msrb.mxu1 %v11480_v36 }
 0x236   :  { %7488 = vmatpush.bf16.msrb.mxu2 %v11488_v37  ;;  %v11502_v37 = vld [vmem:[#allocation2 + $0x1218] sm:$0xff] }
 0x237   :  { %7501 = vmatpush.bf16.msrb.mxu3 %v11496_v38  ;;  %v11510_v38 = vld [vmem:[#allocation2 + $0x1258] sm:$0xff] }
 0x238   :  { %7463 = vmatpush.bf16.msrb.mxu0 %v11471_v41  ;;  %v7237_v3 = vpop.f32.mrf.mxu2 }
 0x239   :  { %7476 = vmatpush.bf16.msrb.mxu1 %v11479_v42  ;;  %v7250_v4 = vpop.f32.mrf.mxu3  ;;  %v11538_v3 = vld [vmem:[#allocation2 + $0x1338] sm:$0xff] }
 0x23a   :  { %7489 = vmatpush.bf16.msrb.mxu2 %v11487_v44  ;;  %v11546_v4 = vld [vmem:[#allocation2 + $0x1378] sm:$0xff] }
 0x23b   :  { %7502 = vmatpush.bf16.msrb.mxu3 %v11495_v45 }
 0x23c   :  { %7464 = vmatpush.bf16.msrb.mxu0 %v11470_v47  ;;  %v11509_v47 = vld [vmem:[#allocation2 + $0x1250] sm:$0xff] }
 0x23d   :  { %7477 = vmatpush.bf16.msrb.mxu1 %v11478_v48 }
 0x23e   :  { %7490 = vmatpush.bf16.msrb.mxu2 %v11486_v49  ;;  %v11517_v49 = vld [vmem:[#allocation2 + $0x1290] sm:$0xff] }
 0x23f   :  { %7503 = vmatpush.bf16.msrb.mxu3 %v11494_v50  ;;  %v11525_v50 = vld [vmem:[#allocation2 + $0x12d0] sm:$0xff] }
 0x240   :  { %7465 = vmatpush.bf16.msrb.mxu0 %v11469_v56  ;;  %v81_v56 = vld [vmem:[%s11983_s0 + $0x128] sm:$0xff] }
 0x241   :  { %7478 = vmatpush.bf16.msrb.mxu1 %v11477_v57  ;;  %v1755_v2 = vunpack.c.h.b16 %v81_v56 }
 0x242   :  { %7491 = vmatpush.bf16.msrb.mxu2 %v11485_v59  ;;  %v11499_v59 = vld [vmem:[#allocation2 + $0x1200] sm:$0xff] }
 0x243   :  { %7504 = vmatpush.bf16.msrb.mxu3 %v11493_v60  ;;  %v11507_v60 = vld [vmem:[#allocation2 + $0x1240] sm:$0xff] }
 0x244   :  { %7466 = vmatpush.bf16.msrb.mxu0 %v11468_v61 }
 0x245   :  { %7479 = vmatpush.bf16.msrb.mxu1 %v11476_v62  ;;  %v1754_v62 = vunpack.c.l.b16 %v81_v56 }
 0x246   :  { %7492 = vmatpush.bf16.msrb.mxu2 %v11484_v63  ;;  %v11515_v63 = vld [vmem:[#allocation2 + $0x1280] sm:$0xff] }
 0x247   :  { %7505 = vmatpush.bf16.msrb.mxu3 %v11492_v0  ;;  %v11523_v0 = vld [vmem:[#allocation2 + $0x12c0] sm:$0xff]  ;;  %v1850_v8 = vpack.c.b16 %v1754_v62, %v1754_v62 }
 0x248   :  { %7467 = vmatpush.bf16.msrb.mxu0 %v11467_v5  ;;  %v7261_v29 = vpop.f32.mrf.mxu0  ;;  %v11554_v5 = vld [vmem:[#allocation2 + $0x13b8] sm:$0xff] }
 0x249   :  { %7480 = vmatpush.bf16.msrb.mxu1 %v11475_v6  ;;  %v7262_v30 = vadd.f32 %v7261_v29, %v11920_v55  ;;  %v7274_v33 = vpop.f32.mrf.mxu1  ;;  %v80_v55 = vld [vmem:[%s11983_s0 + $0x120] sm:$0xff]  ;;  %v11562_v6 = vld [vmem:[#allocation2 + $0x13f8] sm:$0xff] }
 0x24a   :  { %7493 = vmatpush.bf16.msrb.mxu2 %v11483_v9  ;;  %v1752_v61 = vunpack.c.l.b16 %v80_v55  ;;  %v1753_v1 = vunpack.c.h.b16 %v80_v55  ;;  %v11550_v29 = vld [vmem:[#allocation2 + $0x1398] sm:$0xff] }
 0x24b   :  { %7506 = vmatpush.bf16.msrb.mxu3 %v11491_v10  ;;  %7468 = vmatmul.bf16.vlgmr.msrb.gmra.mxu0 %v1844_v17  ;;  %v7275_v36 = vadd.f32 %v7274_v33, %v7262_v30  ;;  %v1851_v10 = vpack.c.b16 %v1755_v2, %v1755_v2  ;;  %v11552_v17 = vld [vmem:[#allocation2 + $0x13a8] sm:$0xff]  ;;  %v11558_v30 = vld [vmem:[#allocation2 + $0x13d8] sm:$0xff]  ;;  %v11577_v2 = vld [vmem:[#allocation2 + $0x1470] sm:$0xff] }
 0x24c   :  { %7512 = vmatpush.bf16.msra.mxu0 %v11506_v13  ;;  %7481 = vmatmul.bf16.vlgmr.msrb.gmra.mxu1 %v1845_v19  ;;  %v1848_v7 = vpack.c.b16 %v1752_v61, %v1752_v61  ;;  %v1849_v9 = vpack.c.b16 %v1753_v1, %v1753_v1  ;;  %v11553_v13 = vld [vmem:[#allocation2 + $0x13b0] sm:$0xff] }
 0x24d   :  { %7525 = vmatpush.bf16.msra.mxu1 %v11514_v14  ;;  %7494 = vmatmul.bf16.vlgmr.msrb.gmra.mxu2 %v1846_v18  ;;  %v11561_v14 = vld [vmem:[#allocation2 + $0x13f0] sm:$0xff]  ;;  %v11560_v18 = vld [vmem:[#allocation2 + $0x13e8] sm:$0xff] }
 0x24e   :  { %7538 = vmatpush.bf16.msra.mxu2 %v11522_v15  ;;  %7507 = vmatmul.bf16.vlgmr.msrb.gmra.mxu3 %v1847_v20  ;;  %v11536_v15 = vld [vmem:[#allocation2 + $0x1328] sm:$0xff]  ;;  %v11569_v1 = vld [vmem:[#allocation2 + $0x1430] sm:$0xff] }
 0x24f   :  { %7551 = vmatpush.bf16.msra.mxu3 %v11530_v16  ;;  %v11544_v16 = vld [vmem:[#allocation2 + $0x1368] sm:$0xff] }
 0x250   :  { %7513 = vmatpush.bf16.msra.mxu0 %v11505_v21  ;;  %v7287_v41 = vpop.f32.mrf.mxu2  ;;  %v7263_v44 = vpop.f32.mrf.mxu0  ;;  %v11535_v21 = vld [vmem:[#allocation2 + $0x1320] sm:$0xff] }
 0x251   :  { %7526 = vmatpush.bf16.msra.mxu1 %v11513_v22  ;;  %v7288_v42 = vadd.f32 %v7287_v41, %v7275_v36  ;;  %v7300_v43 = vpop.f32.mrf.mxu3  ;;  %v7276_v48 = vpop.f32.mrf.mxu1  ;;  %v11543_v22 = vld [vmem:[#allocation2 + $0x1360] sm:$0xff]  ;;  %v11533_v36 = vld [vmem:[#allocation2 + $0x1310] sm:$0xff]  ;;  %v11532_v41 = vld [vmem:[#allocation2 + $0x1308] sm:$0xff] }
 0x252   :  { %7539 = vmatpush.bf16.msra.mxu2 %v11521_v23  ;;  %v11556_v44 = vld [vmem:[#allocation2 + $0x13c8] sm:$0xff] }
 0x253   :  { %7552 = vmatpush.bf16.msra.mxu3 %v11529_v24  ;;  %v11929_v45 = vadd.f32 %v7300_v43, %v7288_v42  ;;  %v11551_v24 = vld [vmem:[#allocation2 + $0x13a0] sm:$0xff]  ;;  %v11540_v42 = vld [vmem:[#allocation2 + $0x1348] sm:$0xff] }
 0x254   :  { %7514 = vmatpush.bf16.msra.mxu0 %v11504_v25  ;;  %v11559_v25 = vld [vmem:[#allocation2 + $0x13e0] sm:$0xff]  ;;  %v11548_v43 = vld [vmem:[#allocation2 + $0x1388] sm:$0xff] }
 0x255   :  { %7527 = vmatpush.bf16.msra.mxu1 %v11512_v26 }
 0x256   :  { %7540 = vmatpush.bf16.msra.mxu2 %v11520_v27  ;;  %v11534_v27 = vld [vmem:[#allocation2 + $0x1318] sm:$0xff] }
 0x257   :  { %7553 = vmatpush.bf16.msra.mxu3 %v11528_v28  ;;  %v11542_v28 = vld [vmem:[#allocation2 + $0x1358] sm:$0xff] }
 0x258   :  { %7515 = vmatpush.bf16.msra.mxu0 %v11503_v31  ;;  %v7289_v57 = vpop.f32.mrf.mxu2 }
 0x259   :  { %7528 = vmatpush.bf16.msra.mxu1 %v11511_v32  ;;  %v7302_v58 = vpop.f32.mrf.mxu3  ;;  %v11570_v57 = vld [vmem:[#allocation2 + $0x1438] sm:$0xff] }
 0x25a   :  { %7541 = vmatpush.bf16.msra.mxu2 %v11519_v34  ;;  %v11578_v58 = vld [vmem:[#allocation2 + $0x1478] sm:$0xff] }
 0x25b   :  { %7554 = vmatpush.bf16.msra.mxu3 %v11527_v35 }
 0x25c   :  { %7516 = vmatpush.bf16.msra.mxu0 %v11502_v37  ;;  %v11541_v37 = vld [vmem:[#allocation2 + $0x1350] sm:$0xff] }
 0x25d   :  { %7529 = vmatpush.bf16.msra.mxu1 %v11510_v38 }
 0x25e   :  { %7542 = vmatpush.bf16.msra.mxu2 %v11518_v39  ;;  %v11549_v39 = vld [vmem:[#allocation2 + $0x1390] sm:$0xff] }
 0x25f   :  { %7555 = vmatpush.bf16.msra.mxu3 %v11526_v40  ;;  %v11557_v40 = vld [vmem:[#allocation2 + $0x13d0] sm:$0xff] }
 0x260   :  { %7517 = vmatpush.bf16.msra.mxu0 %v11501_v46  ;;  %v83_v46 = vld [vmem:[%s11983_s0 + $0x138] sm:$0xff] }
 0x261   :  { %7530 = vmatpush.bf16.msra.mxu1 %v11509_v47  ;;  %v1759_v56 = vunpack.c.h.b16 %v83_v46 }
 0x262   :  { %7543 = vmatpush.bf16.msra.mxu2 %v11517_v49  ;;  %v11531_v49 = vld [vmem:[#allocation2 + $0x1300] sm:$0xff] }
 0x263   :  { %7556 = vmatpush.bf16.msra.mxu3 %v11525_v50  ;;  %v11539_v50 = vld [vmem:[#allocation2 + $0x1340] sm:$0xff] }
 0x264   :  { %7518 = vmatpush.bf16.msra.mxu0 %v11500_v51 }
 0x265   :  { %7531 = vmatpush.bf16.msra.mxu1 %v11508_v52  ;;  %v1758_v52 = vunpack.c.l.b16 %v83_v46 }
 0x266   :  { %7544 = vmatpush.bf16.msra.mxu2 %v11516_v53  ;;  %v11547_v53 = vld [vmem:[#allocation2 + $0x1380] sm:$0xff] }
 0x267   :  { %7557 = vmatpush.bf16.msra.mxu3 %v11524_v54  ;;  %v11555_v54 = vld [vmem:[#allocation2 + $0x13c0] sm:$0xff]  ;;  %v1854_v62 = vpack.c.b16 %v1758_v52, %v1758_v52 }
 0x268   :  { %7519 = vmatpush.bf16.msra.mxu0 %v11499_v59  ;;  %v7313_v19 = vpop.f32.mrf.mxu0  ;;  %v11586_v59 = vld [vmem:[#allocation2 + $0x14b8] sm:$0xff] }
 0x269   :  { %7532 = vmatpush.bf16.msra.mxu1 %v11507_v60  ;;  %v7314_v20 = vadd.f32 %v7313_v19, %v11929_v45  ;;  %v7326_v23 = vpop.f32.mrf.mxu1  ;;  %v82_v45 = vld [vmem:[%s11983_s0 + $0x130] sm:$0xff]  ;;  %v11594_v60 = vld [vmem:[#allocation2 + $0x14f8] sm:$0xff] }
 0x26a   :  { %7545 = vmatpush.bf16.msra.mxu2 %v11515_v63  ;;  %v1756_v51 = vunpack.c.l.b16 %v82_v45  ;;  %v1757_v55 = vunpack.c.h.b16 %v82_v45  ;;  %v11582_v19 = vld [vmem:[#allocation2 + $0x1498] sm:$0xff] }
 0x26b   :  { %7558 = vmatpush.bf16.msra.mxu3 %v11523_v0  ;;  %7520 = vmatmul.bf16.vlgmr.msra.gmra.mxu0 %v1848_v7  ;;  %v7327_v26 = vadd.f32 %v7326_v23, %v7314_v20  ;;  %v1855_v0 = vpack.c.b16 %v1759_v56, %v1759_v56  ;;  %v11584_v7 = vld [vmem:[#allocation2 + $0x14a8] sm:$0xff]  ;;  %v11590_v20 = vld [vmem:[#allocation2 + $0x14d8] sm:$0xff]  ;;  %v11609_v56 = vld [vmem:[#allocation2 + $0x1570] sm:$0xff] }
 0x26c   :  { %7564 = vmatpush.bf16.msrb.mxu0 %v11538_v3  ;;  %7533 = vmatmul.bf16.vlgmr.msra.gmra.mxu1 %v1849_v9  ;;  %v1852_v61 = vpack.c.b16 %v1756_v51, %v1756_v51  ;;  %v1853_v63 = vpack.c.b16 %v1757_v55, %v1757_v55  ;;  %v11585_v3 = vld [vmem:[#allocation2 + $0x14b0] sm:$0xff] }
 0x26d   :  { %7577 = vmatpush.bf16.msrb.mxu1 %v11546_v4  ;;  %7546 = vmatmul.bf16.vlgmr.msra.gmra.mxu2 %v1850_v8  ;;  %v11593_v4 = vld [vmem:[#allocation2 + $0x14f0] sm:$0xff]  ;;  %v11592_v8 = vld [vmem:[#allocation2 + $0x14e8] sm:$0xff] }
 0x26e   :  { %7590 = vmatpush.bf16.msrb.mxu2 %v11554_v5  ;;  %7559 = vmatmul.bf16.vlgmr.msra.gmra.mxu3 %v1851_v10  ;;  %v11568_v5 = vld [vmem:[#allocation2 + $0x1428] sm:$0xff]  ;;  %v11601_v55 = vld [vmem:[#allocation2 + $0x1530] sm:$0xff] }
 0x26f   :  { %7603 = vmatpush.bf16.msrb.mxu3 %v11562_v6  ;;  %v11576_v6 = vld [vmem:[#allocation2 + $0x1468] sm:$0xff] }
 0x270   :  { %7565 = vmatpush.bf16.msrb.mxu0 %v11537_v11  ;;  %v7339_v31 = vpop.f32.mrf.mxu2  ;;  %v7315_v34 = vpop.f32.mrf.mxu0  ;;  %v11567_v11 = vld [vmem:[#allocation2 + $0x1420] sm:$0xff] }
 0x271   :  { %7578 = vmatpush.bf16.msrb.mxu1 %v11545_v12  ;;  %v7340_v32 = vadd.f32 %v7339_v31, %v7327_v26  ;;  %v7352_v33 = vpop.f32.mrf.mxu3  ;;  %v7328_v38 = vpop.f32.mrf.mxu1  ;;  %v11575_v12 = vld [vmem:[#allocation2 + $0x1460] sm:$0xff]  ;;  %v11565_v26 = vld [vmem:[#allocation2 + $0x1410] sm:$0xff]  ;;  %v11564_v31 = vld [vmem:[#allocation2 + $0x1408] sm:$0xff] }
 0x272   :  { %7591 = vmatpush.bf16.msrb.mxu2 %v11553_v13  ;;  %v11588_v34 = vld [vmem:[#allocation2 + $0x14c8] sm:$0xff] }
 0x273   :  { %7604 = vmatpush.bf16.msrb.mxu3 %v11561_v14  ;;  %v11938_v35 = vadd.f32 %v7352_v33, %v7340_v32  ;;  %v11583_v14 = vld [vmem:[#allocation2 + $0x14a0] sm:$0xff]  ;;  %v11572_v32 = vld [vmem:[#allocation2 + $0x1448] sm:$0xff] }
 0x274   :  { %7566 = vmatpush.bf16.msrb.mxu0 %v11536_v15  ;;  %v11591_v15 = vld [vmem:[#allocation2 + $0x14e0] sm:$0xff]  ;;  %v11580_v33 = vld [vmem:[#allocation2 + $0x1488] sm:$0xff] }
 0x275   :  { %7579 = vmatpush.bf16.msrb.mxu1 %v11544_v16 }
 0x276   :  { %7592 = vmatpush.bf16.msrb.mxu2 %v11552_v17  ;;  %v11566_v17 = vld [vmem:[#allocation2 + $0x1418] sm:$0xff] }
 0x277   :  { %7605 = vmatpush.bf16.msrb.mxu3 %v11560_v18  ;;  %v11574_v18 = vld [vmem:[#allocation2 + $0x1458] sm:$0xff] }
 0x278   :  { %7567 = vmatpush.bf16.msrb.mxu0 %v11535_v21  ;;  %v7341_v47 = vpop.f32.mrf.mxu2 }
 0x279   :  { %7580 = vmatpush.bf16.msrb.mxu1 %v11543_v22  ;;  %v7354_v48 = vpop.f32.mrf.mxu3  ;;  %v11602_v47 = vld [vmem:[#allocation2 + $0x1538] sm:$0xff] }
 0x27a   :  { %7593 = vmatpush.bf16.msrb.mxu2 %v11551_v24  ;;  %v11610_v48 = vld [vmem:[#allocation2 + $0x1578] sm:$0xff] }
 0x27b   :  { %7606 = vmatpush.bf16.msrb.mxu3 %v11559_v25 }
 0x27c   :  { %7568 = vmatpush.bf16.msrb.mxu0 %v11534_v27  ;;  %v11573_v27 = vld [vmem:[#allocation2 + $0x1450] sm:$0xff] }
 0x27d   :  { %7581 = vmatpush.bf16.msrb.mxu1 %v11542_v28 }
 0x27e   :  { %7594 = vmatpush.bf16.msrb.mxu2 %v11550_v29  ;;  %v11581_v29 = vld [vmem:[#allocation2 + $0x1490] sm:$0xff] }
 0x27f   :  { %7607 = vmatpush.bf16.msrb.mxu3 %v11558_v30  ;;  %v11589_v30 = vld [vmem:[#allocation2 + $0x14d0] sm:$0xff] }
 0x280   :  { %7569 = vmatpush.bf16.msrb.mxu0 %v11533_v36  ;;  %v85_v36 = vld [vmem:[%s11983_s0 + $0x148] sm:$0xff] }
 0x281   :  { %7582 = vmatpush.bf16.msrb.mxu1 %v11541_v37  ;;  %v1763_v46 = vunpack.c.h.b16 %v85_v36 }
 0x282   :  { %7595 = vmatpush.bf16.msrb.mxu2 %v11549_v39  ;;  %v11563_v39 = vld [vmem:[#allocation2 + $0x1400] sm:$0xff] }
 0x283   :  { %7608 = vmatpush.bf16.msrb.mxu3 %v11557_v40  ;;  %v11571_v40 = vld [vmem:[#allocation2 + $0x1440] sm:$0xff] }
 0x284   :  { %7570 = vmatpush.bf16.msrb.mxu0 %v11532_v41 }
 0x285   :  { %7583 = vmatpush.bf16.msrb.mxu1 %v11540_v42  ;;  %v1762_v42 = vunpack.c.l.b16 %v85_v36 }
 0x286   :  { %7596 = vmatpush.bf16.msrb.mxu2 %v11548_v43  ;;  %v11579_v43 = vld [vmem:[#allocation2 + $0x1480] sm:$0xff] }
 0x287   :  { %7609 = vmatpush.bf16.msrb.mxu3 %v11556_v44  ;;  %v11587_v44 = vld [vmem:[#allocation2 + $0x14c0] sm:$0xff]  ;;  %v1858_v52 = vpack.c.b16 %v1762_v42, %v1762_v42 }
 0x288   :  { %7571 = vmatpush.bf16.msrb.mxu0 %v11531_v49  ;;  %v7365_v9 = vpop.f32.mrf.mxu0  ;;  %v11618_v49 = vld [vmem:[#allocation2 + $0x15b8] sm:$0xff] }
 0x289   :  { %7584 = vmatpush.bf16.msrb.mxu1 %v11539_v50  ;;  %v7366_v10 = vadd.f32 %v7365_v9, %v11938_v35  ;;  %v7378_v13 = vpop.f32.mrf.mxu1  ;;  %v84_v35 = vld [vmem:[%s11983_s0 + $0x140] sm:$0xff]  ;;  %v11626_v50 = vld [vmem:[#allocation2 + $0x15f8] sm:$0xff] }
 0x28a   :  { %7597 = vmatpush.bf16.msrb.mxu2 %v11547_v53  ;;  %v1760_v41 = vunpack.c.l.b16 %v84_v35  ;;  %v1761_v45 = vunpack.c.h.b16 %v84_v35  ;;  %v11614_v9 = vld [vmem:[#allocation2 + $0x1598] sm:$0xff] }
 0x28b   :  { %7610 = vmatpush.bf16.msrb.mxu3 %v11555_v54  ;;  %7572 = vmatmul.bf16.vlgmr.msrb.gmra.mxu0 %v1852_v61  ;;  %v7379_v16 = vadd.f32 %v7378_v13, %v7366_v10  ;;  %v1859_v54 = vpack.c.b16 %v1763_v46, %v1763_v46  ;;  %v11616_v61 = vld [vmem:[#allocation2 + $0x15a8] sm:$0xff]  ;;  %v11622_v10 = vld [vmem:[#allocation2 + $0x15d8] sm:$0xff]  ;;  %v11641_v46 = vld [vmem:[#allocation2 + $0x1670] sm:$0xff] }
 0x28c   :  { %7616 = vmatpush.bf16.msra.mxu0 %v11570_v57  ;;  %7585 = vmatmul.bf16.vlgmr.msrb.gmra.mxu1 %v1853_v63  ;;  %v1856_v51 = vpack.c.b16 %v1760_v41, %v1760_v41  ;;  %v1857_v53 = vpack.c.b16 %v1761_v45, %v1761_v45  ;;  %v11617_v57 = vld [vmem:[#allocation2 + $0x15b0] sm:$0xff] }
 0x28d   :  { %7629 = vmatpush.bf16.msra.mxu1 %v11578_v58  ;;  %7598 = vmatmul.bf16.vlgmr.msrb.gmra.mxu2 %v1854_v62  ;;  %v11625_v58 = vld [vmem:[#allocation2 + $0x15f0] sm:$0xff]  ;;  %v11624_v62 = vld [vmem:[#allocation2 + $0x15e8] sm:$0xff] }
 0x28e   :  { %7642 = vmatpush.bf16.msra.mxu2 %v11586_v59  ;;  %7611 = vmatmul.bf16.vlgmr.msrb.gmra.mxu3 %v1855_v0  ;;  %v11600_v59 = vld [vmem:[#allocation2 + $0x1528] sm:$0xff]  ;;  %v11633_v45 = vld [vmem:[#allocation2 + $0x1630] sm:$0xff] }
 0x28f   :  { %7655 = vmatpush.bf16.msra.mxu3 %v11594_v60  ;;  %v11608_v60 = vld [vmem:[#allocation2 + $0x1568] sm:$0xff] }
 0x290   :  { %7617 = vmatpush.bf16.msra.mxu0 %v11569_v1  ;;  %v7391_v21 = vpop.f32.mrf.mxu2  ;;  %v7367_v24 = vpop.f32.mrf.mxu0  ;;  %v11599_v1 = vld [vmem:[#allocation2 + $0x1520] sm:$0xff] }
 0x291   :  { %7630 = vmatpush.bf16.msra.mxu1 %v11577_v2  ;;  %v7392_v22 = vadd.f32 %v7391_v21, %v7379_v16  ;;  %v7404_v23 = vpop.f32.mrf.mxu3  ;;  %v7380_v28 = vpop.f32.mrf.mxu1  ;;  %v11607_v2 = vld [vmem:[#allocation2 + $0x1560] sm:$0xff]  ;;  %v11597_v16 = vld [vmem:[#allocation2 + $0x1510] sm:$0xff]  ;;  %v11596_v21 = vld [vmem:[#allocation2 + $0x1508] sm:$0xff] }
 0x292   :  { %7643 = vmatpush.bf16.msra.mxu2 %v11585_v3  ;;  %v11620_v24 = vld [vmem:[#allocation2 + $0x15c8] sm:$0xff] }
 0x293   :  { %7656 = vmatpush.bf16.msra.mxu3 %v11593_v4  ;;  %v11947_v25 = vadd.f32 %v7404_v23, %v7392_v22  ;;  %v11615_v4 = vld [vmem:[#allocation2 + $0x15a0] sm:$0xff]  ;;  %v11604_v22 = vld [vmem:[#allocation2 + $0x1548] sm:$0xff] }
 0x294   :  { %7618 = vmatpush.bf16.msra.mxu0 %v11568_v5  ;;  %v11623_v5 = vld [vmem:[#allocation2 + $0x15e0] sm:$0xff]  ;;  %v11612_v23 = vld [vmem:[#allocation2 + $0x1588] sm:$0xff] }
 0x295   :  { %7631 = vmatpush.bf16.msra.mxu1 %v11576_v6 }
 0x296   :  { %7644 = vmatpush.bf16.msra.mxu2 %v11584_v7  ;;  %v11598_v7 = vld [vmem:[#allocation2 + $0x1518] sm:$0xff] }
 0x297   :  { %7657 = vmatpush.bf16.msra.mxu3 %v11592_v8  ;;  %v11606_v8 = vld [vmem:[#allocation2 + $0x1558] sm:$0xff] }
 0x298   :  { %7619 = vmatpush.bf16.msra.mxu0 %v11567_v11  ;;  %v7393_v37 = vpop.f32.mrf.mxu2 }
 0x299   :  { %7632 = vmatpush.bf16.msra.mxu1 %v11575_v12  ;;  %v7406_v38 = vpop.f32.mrf.mxu3  ;;  %v11634_v37 = vld [vmem:[#allocation2 + $0x1638] sm:$0xff] }
 0x29a   :  { %7645 = vmatpush.bf16.msra.mxu2 %v11583_v14  ;;  %v11642_v38 = vld [vmem:[#allocation2 + $0x1678] sm:$0xff] }
 0x29b   :  { %7658 = vmatpush.bf16.msra.mxu3 %v11591_v15 }
 0x29c   :  { %7620 = vmatpush.bf16.msra.mxu0 %v11566_v17  ;;  %v11605_v17 = vld [vmem:[#allocation2 + $0x1550] sm:$0xff] }
 0x29d   :  { %7633 = vmatpush.bf16.msra.mxu1 %v11574_v18 }
 0x29e   :  { %7646 = vmatpush.bf16.msra.mxu2 %v11582_v19  ;;  %v11613_v19 = vld [vmem:[#allocation2 + $0x1590] sm:$0xff] }
 0x29f   :  { %7659 = vmatpush.bf16.msra.mxu3 %v11590_v20  ;;  %v11621_v20 = vld [vmem:[#allocation2 + $0x15d0] sm:$0xff] }
 0x2a0   :  { %7621 = vmatpush.bf16.msra.mxu0 %v11565_v26  ;;  %v87_v26 = vld [vmem:[%s11983_s0 + $0x158] sm:$0xff] }
 0x2a1   :  { %7634 = vmatpush.bf16.msra.mxu1 %v11573_v27  ;;  %v1767_v36 = vunpack.c.h.b16 %v87_v26 }
 0x2a2   :  { %7647 = vmatpush.bf16.msra.mxu2 %v11581_v29  ;;  %v11595_v29 = vld [vmem:[#allocation2 + $0x1500] sm:$0xff] }
 0x2a3   :  { %7660 = vmatpush.bf16.msra.mxu3 %v11589_v30  ;;  %v11603_v30 = vld [vmem:[#allocation2 + $0x1540] sm:$0xff] }
 0x2a4   :  { %7622 = vmatpush.bf16.msra.mxu0 %v11564_v31 }
 0x2a5   :  { %7635 = vmatpush.bf16.msra.mxu1 %v11572_v32  ;;  %v1766_v32 = vunpack.c.l.b16 %v87_v26 }
 0x2a6   :  { %7648 = vmatpush.bf16.msra.mxu2 %v11580_v33  ;;  %v11611_v33 = vld [vmem:[#allocation2 + $0x1580] sm:$0xff] }
 0x2a7   :  { %7661 = vmatpush.bf16.msra.mxu3 %v11588_v34  ;;  %v11619_v34 = vld [vmem:[#allocation2 + $0x15c0] sm:$0xff]  ;;  %v1862_v42 = vpack.c.b16 %v1766_v32, %v1766_v32 }
 0x2a8   :  { %7623 = vmatpush.bf16.msra.mxu0 %v11563_v39  ;;  %v7417_v63 = vpop.f32.mrf.mxu0  ;;  %v11650_v39 = vld [vmem:[#allocation2 + $0x16b8] sm:$0xff] }
 0x2a9   :  { %7636 = vmatpush.bf16.msra.mxu1 %v11571_v40  ;;  %v7418_v0 = vadd.f32 %v7417_v63, %v11947_v25  ;;  %v7430_v3 = vpop.f32.mrf.mxu1  ;;  %v86_v25 = vld [vmem:[%s11983_s0 + $0x150] sm:$0xff]  ;;  %v11658_v40 = vld [vmem:[#allocation2 + $0x16f8] sm:$0xff] }
 0x2aa   :  { %7649 = vmatpush.bf16.msra.mxu2 %v11579_v43  ;;  %v1764_v31 = vunpack.c.l.b16 %v86_v25  ;;  %v1765_v35 = vunpack.c.h.b16 %v86_v25  ;;  %v11646_v63 = vld [vmem:[#allocation2 + $0x1698] sm:$0xff] }
 0x2ab   :  { %7662 = vmatpush.bf16.msra.mxu3 %v11587_v44  ;;  %7624 = vmatmul.bf16.vlgmr.msra.gmra.mxu0 %v1856_v51  ;;  %v7431_v6 = vadd.f32 %v7430_v3, %v7418_v0  ;;  %v1863_v44 = vpack.c.b16 %v1767_v36, %v1767_v36  ;;  %v11648_v51 = vld [vmem:[#allocation2 + $0x16a8] sm:$0xff]  ;;  %v11654_v0 = vld [vmem:[#allocation2 + $0x16d8] sm:$0xff]  ;;  %v11673_v36 = vld [vmem:[#allocation2 + $0x1770] sm:$0xff] }
 0x2ac   :  { %7668 = vmatpush.bf16.msrb.mxu0 %v11602_v47  ;;  %7637 = vmatmul.bf16.vlgmr.msra.gmra.mxu1 %v1857_v53  ;;  %v1860_v41 = vpack.c.b16 %v1764_v31, %v1764_v31  ;;  %v1861_v43 = vpack.c.b16 %v1765_v35, %v1765_v35  ;;  %v11649_v47 = vld [vmem:[#allocation2 + $0x16b0] sm:$0xff] }
 0x2ad   :  { %7681 = vmatpush.bf16.msrb.mxu1 %v11610_v48  ;;  %7650 = vmatmul.bf16.vlgmr.msra.gmra.mxu2 %v1858_v52  ;;  %v11657_v48 = vld [vmem:[#allocation2 + $0x16f0] sm:$0xff]  ;;  %v11656_v52 = vld [vmem:[#allocation2 + $0x16e8] sm:$0xff] }
 0x2ae   :  { %7694 = vmatpush.bf16.msrb.mxu2 %v11618_v49  ;;  %7663 = vmatmul.bf16.vlgmr.msra.gmra.mxu3 %v1859_v54  ;;  %v11632_v49 = vld [vmem:[#allocation2 + $0x1628] sm:$0xff]  ;;  %v11665_v35 = vld [vmem:[#allocation2 + $0x1730] sm:$0xff] }
 0x2af   :  { %7707 = vmatpush.bf16.msrb.mxu3 %v11626_v50  ;;  %v11640_v50 = vld [vmem:[#allocation2 + $0x1668] sm:$0xff] }
 0x2b0   :  { %7669 = vmatpush.bf16.msrb.mxu0 %v11601_v55  ;;  %v7443_v11 = vpop.f32.mrf.mxu2  ;;  %v7419_v14 = vpop.f32.mrf.mxu0  ;;  %v11631_v55 = vld [vmem:[#allocation2 + $0x1620] sm:$0xff] }
 0x2b1   :  { %7682 = vmatpush.bf16.msrb.mxu1 %v11609_v56  ;;  %v7444_v12 = vadd.f32 %v7443_v11, %v7431_v6  ;;  %v7456_v13 = vpop.f32.mrf.mxu3  ;;  %v7432_v18 = vpop.f32.mrf.mxu1  ;;  %v11639_v56 = vld [vmem:[#allocation2 + $0x1660] sm:$0xff]  ;;  %v11629_v6 = vld [vmem:[#allocation2 + $0x1610] sm:$0xff]  ;;  %v11628_v11 = vld [vmem:[#allocation2 + $0x1608] sm:$0xff] }
 0x2b2   :  { %7695 = vmatpush.bf16.msrb.mxu2 %v11617_v57  ;;  %v11652_v14 = vld [vmem:[#allocation2 + $0x16c8] sm:$0xff] }
 0x2b3   :  { %7708 = vmatpush.bf16.msrb.mxu3 %v11625_v58  ;;  %v11956_v15 = vadd.f32 %v7456_v13, %v7444_v12  ;;  %v11647_v58 = vld [vmem:[#allocation2 + $0x16a0] sm:$0xff]  ;;  %v11636_v12 = vld [vmem:[#allocation2 + $0x1648] sm:$0xff] }
 0x2b4   :  { %7670 = vmatpush.bf16.msrb.mxu0 %v11600_v59  ;;  %v11655_v59 = vld [vmem:[#allocation2 + $0x16e0] sm:$0xff]  ;;  %v11644_v13 = vld [vmem:[#allocation2 + $0x1688] sm:$0xff] }
 0x2b5   :  { %7683 = vmatpush.bf16.msrb.mxu1 %v11608_v60 }
 0x2b6   :  { %7696 = vmatpush.bf16.msrb.mxu2 %v11616_v61  ;;  %v11630_v61 = vld [vmem:[#allocation2 + $0x1618] sm:$0xff] }
 0x2b7   :  { %7709 = vmatpush.bf16.msrb.mxu3 %v11624_v62  ;;  %v11638_v62 = vld [vmem:[#allocation2 + $0x1658] sm:$0xff] }
 0x2b8   :  { %7671 = vmatpush.bf16.msrb.mxu0 %v11599_v1  ;;  %v7445_v27 = vpop.f32.mrf.mxu2 }
 0x2b9   :  { %7684 = vmatpush.bf16.msrb.mxu1 %v11607_v2  ;;  %v7458_v28 = vpop.f32.mrf.mxu3  ;;  %v11666_v27 = vld [vmem:[#allocation2 + $0x1738] sm:$0xff] }
 0x2ba   :  { %7697 = vmatpush.bf16.msrb.mxu2 %v11615_v4  ;;  %v11674_v28 = vld [vmem:[#allocation2 + $0x1778] sm:$0xff] }
 0x2bb   :  { %7710 = vmatpush.bf16.msrb.mxu3 %v11623_v5 }
 0x2bc   :  { %7672 = vmatpush.bf16.msrb.mxu0 %v11598_v7  ;;  %v11637_v7 = vld [vmem:[#allocation2 + $0x1650] sm:$0xff] }
 0x2bd   :  { %7685 = vmatpush.bf16.msrb.mxu1 %v11606_v8 }
 0x2be   :  { %7698 = vmatpush.bf16.msrb.mxu2 %v11614_v9  ;;  %v11645_v9 = vld [vmem:[#allocation2 + $0x1690] sm:$0xff] }
 0x2bf   :  { %7711 = vmatpush.bf16.msrb.mxu3 %v11622_v10  ;;  %v11653_v10 = vld [vmem:[#allocation2 + $0x16d0] sm:$0xff] }
 0x2c0   :  { %7673 = vmatpush.bf16.msrb.mxu0 %v11597_v16  ;;  %v89_v16 = vld [vmem:[%s11983_s0 + $0x168] sm:$0xff] }
 0x2c1   :  { %7686 = vmatpush.bf16.msrb.mxu1 %v11605_v17  ;;  %v1771_v26 = vunpack.c.h.b16 %v89_v16 }
 0x2c2   :  { %7699 = vmatpush.bf16.msrb.mxu2 %v11613_v19  ;;  %v11627_v19 = vld [vmem:[#allocation2 + $0x1600] sm:$0xff] }
 0x2c3   :  { %7712 = vmatpush.bf16.msrb.mxu3 %v11621_v20  ;;  %v11635_v20 = vld [vmem:[#allocation2 + $0x1640] sm:$0xff] }
 0x2c4   :  { %7674 = vmatpush.bf16.msrb.mxu0 %v11596_v21 }
 0x2c5   :  { %7687 = vmatpush.bf16.msrb.mxu1 %v11604_v22  ;;  %v1770_v22 = vunpack.c.l.b16 %v89_v16  ;;  %v11683_v16 = vld [vmem:[#allocation2 + $0x17c0] sm:$0xff] }
 0x2c6   :  { %7700 = vmatpush.bf16.msrb.mxu2 %v11612_v23  ;;  %v11643_v23 = vld [vmem:[#allocation2 + $0x1680] sm:$0xff] }
 0x2c7   :  { %7713 = vmatpush.bf16.msrb.mxu3 %v11620_v24  ;;  %v11651_v24 = vld [vmem:[#allocation2 + $0x16c0] sm:$0xff]  ;;  %v1866_v32 = vpack.c.b16 %v1770_v22, %v1770_v22 }
 0x2c8   :  { %7675 = vmatpush.bf16.msrb.mxu0 %v11595_v29  ;;  %v7469_v53 = vpop.f32.mrf.mxu0  ;;  %v11682_v29 = vld [vmem:[#allocation2 + $0x17b8] sm:$0xff] }
 0x2c9   :  { %7688 = vmatpush.bf16.msrb.mxu1 %v11603_v30  ;;  %v7470_v54 = vadd.f32 %v7469_v53, %v11956_v15  ;;  %v7482_v57 = vpop.f32.mrf.mxu1  ;;  %v88_v15 = vld [vmem:[%s11983_s0 + $0x160] sm:$0xff]  ;;  %v11690_v30 = vld [vmem:[#allocation2 + $0x17f8] sm:$0xff] }
 0x2ca   :  { %7701 = vmatpush.bf16.msrb.mxu2 %v11611_v33  ;;  %v1768_v21 = vunpack.c.l.b16 %v88_v15  ;;  %v1769_v25 = vunpack.c.h.b16 %v88_v15  ;;  %v11678_v53 = vld [vmem:[#allocation2 + $0x1798] sm:$0xff]  ;;  %v11675_v15 = vld [vmem:[#allocation2 + $0x1780] sm:$0xff] }
 0x2cb   :  { %7714 = vmatpush.bf16.msrb.mxu3 %v11619_v34  ;;  %7676 = vmatmul.bf16.vlgmr.msrb.gmra.mxu0 %v1860_v41  ;;  %v7483_v60 = vadd.f32 %v7482_v57, %v7470_v54  ;;  %v1867_v34 = vpack.c.b16 %v1771_v26, %v1771_v26  ;;  %v11680_v41 = vld [vmem:[#allocation2 + $0x17a8] sm:$0xff]  ;;  %v11686_v54 = vld [vmem:[#allocation2 + $0x17d8] sm:$0xff] }
 0x2cc   :  { %7720 = vmatpush.bf16.msra.mxu0 %v11634_v37  ;;  %7689 = vmatmul.bf16.vlgmr.msrb.gmra.mxu1 %v1861_v43  ;;  %v1864_v31 = vpack.c.b16 %v1768_v21, %v1768_v21  ;;  %v1865_v33 = vpack.c.b16 %v1769_v25, %v1769_v25  ;;  %v11681_v37 = vld [vmem:[#allocation2 + $0x17b0] sm:$0xff] }
 0x2cd   :  { %7733 = vmatpush.bf16.msra.mxu1 %v11642_v38  ;;  %7702 = vmatmul.bf16.vlgmr.msrb.gmra.mxu2 %v1862_v42  ;;  %v11689_v38 = vld [vmem:[#allocation2 + $0x17f0] sm:$0xff]  ;;  %v11688_v42 = vld [vmem:[#allocation2 + $0x17e8] sm:$0xff] }
 0x2ce   :  { %7746 = vmatpush.bf16.msra.mxu2 %v11650_v39  ;;  %7715 = vmatmul.bf16.vlgmr.msrb.gmra.mxu3 %v1863_v44  ;;  %v11664_v39 = vld [vmem:[#allocation2 + $0x1728] sm:$0xff] }
 0x2cf   :  { %7759 = vmatpush.bf16.msra.mxu3 %v11658_v40  ;;  %v11672_v40 = vld [vmem:[#allocation2 + $0x1768] sm:$0xff] }
 0x2d0   :  { %7721 = vmatpush.bf16.msra.mxu0 %v11633_v45  ;;  %v7495_v1 = vpop.f32.mrf.mxu2  ;;  %v7471_v4 = vpop.f32.mrf.mxu0  ;;  %v11663_v45 = vld [vmem:[#allocation2 + $0x1720] sm:$0xff] }
 0x2d1   :  { %7734 = vmatpush.bf16.msra.mxu1 %v11641_v46  ;;  %v7496_v2 = vadd.f32 %v7495_v1, %v7483_v60  ;;  %v7508_v3 = vpop.f32.mrf.mxu3  ;;  %v7484_v8 = vpop.f32.mrf.mxu1  ;;  %v11671_v46 = vld [vmem:[#allocation2 + $0x1760] sm:$0xff]  ;;  %v11661_v60 = vld [vmem:[#allocation2 + $0x1710] sm:$0xff]  ;;  %v11660_v1 = vld [vmem:[#allocation2 + $0x1708] sm:$0xff] }
 0x2d2   :  { %7747 = vmatpush.bf16.msra.mxu2 %v11649_v47  ;;  %v11676_v4 = vld [vmem:[#allocation2 + $0x1788] sm:$0xff] }
 0x2d3   :  { %7760 = vmatpush.bf16.msra.mxu3 %v11657_v48  ;;  %v11965_v5 = vadd.f32 %v7508_v3, %v7496_v2  ;;  %v11679_v48 = vld [vmem:[#allocation2 + $0x17a0] sm:$0xff]  ;;  %v11668_v2 = vld [vmem:[#allocation2 + $0x1748] sm:$0xff]  ;;  %v90_v3 = vld [vmem:[%s11983_s0 + $0x170] sm:$0xff] }
 0x2d4   :  { %7722 = vmatpush.bf16.msra.mxu0 %v11632_v49  ;;  %v11687_v49 = vld [vmem:[#allocation2 + $0x17e0] sm:$0xff] }
 0x2d5   :  { %7735 = vmatpush.bf16.msra.mxu1 %v11640_v50 }
 0x2d6   :  { %7748 = vmatpush.bf16.msra.mxu2 %v11648_v51  ;;  %v11662_v51 = vld [vmem:[#allocation2 + $0x1718] sm:$0xff] }
 0x2d7   :  { %7761 = vmatpush.bf16.msra.mxu3 %v11656_v52  ;;  %v11670_v52 = vld [vmem:[#allocation2 + $0x1758] sm:$0xff] }
 0x2d8   :  { %7723 = vmatpush.bf16.msra.mxu0 %v11631_v55  ;;  %v7497_v17 = vpop.f32.mrf.mxu2 }
 0x2d9   :  { %7736 = vmatpush.bf16.msra.mxu1 %v11639_v56  ;;  %v7510_v18 = vpop.f32.mrf.mxu3 }
 0x2da   :  { %7749 = vmatpush.bf16.msra.mxu2 %v11647_v58 }
 0x2db   :  { %7762 = vmatpush.bf16.msra.mxu3 %v11655_v59 }
 0x2dc   :  { %7724 = vmatpush.bf16.msra.mxu0 %v11630_v61  ;;  %v11669_v61 = vld [vmem:[#allocation2 + $0x1750] sm:$0xff] }
 0x2dd   :  { %7737 = vmatpush.bf16.msra.mxu1 %v11638_v62 }
 0x2de   :  { %7750 = vmatpush.bf16.msra.mxu2 %v11646_v63  ;;  %v11677_v63 = vld [vmem:[#allocation2 + $0x1790] sm:$0xff] }
 0x2df   :  { %7763 = vmatpush.bf16.msra.mxu3 %v11654_v0  ;;  %v11685_v0 = vld [vmem:[#allocation2 + $0x17d0] sm:$0xff] }
 0x2e0   :  { %7725 = vmatpush.bf16.msra.mxu0 %v11629_v6  ;;  %v91_v6 = vld [vmem:[%s11983_s0 + $0x178] sm:$0xff] }
 0x2e1   :  { %7738 = vmatpush.bf16.msra.mxu1 %v11637_v7 }
 0x2e2   :  { %7751 = vmatpush.bf16.msra.mxu2 %v11645_v9  ;;  %v1772_v9 = vunpack.c.l.b16 %v90_v3 }
 0x2e3   :  { %7764 = vmatpush.bf16.msra.mxu3 %v11653_v10  ;;  %v1773_v10 = vunpack.c.h.b16 %v90_v3 }
 0x2e4   :  { %7726 = vmatpush.bf16.msra.mxu0 %v11628_v11  ;;  %v11659_v11 = vld [vmem:[#allocation2 + $0x1700] sm:$0xff]  ;;  %v1868_v17 = vpack.c.b16 %v1772_v9, %v1772_v9 }
 0x2e5   :  { %7739 = vmatpush.bf16.msra.mxu1 %v11636_v12  ;;  %v11667_v12 = vld [vmem:[#allocation2 + $0x1740] sm:$0xff]  ;;  %v1869_v18 = vpack.c.b16 %v1773_v10, %v1773_v10 }
 0x2e6   :  { %7752 = vmatpush.bf16.msra.mxu2 %v11644_v13  ;;  %v1774_v13 = vunpack.c.l.b16 %v91_v6 }
 0x2e7   :  { %7765 = vmatpush.bf16.msra.mxu3 %v11652_v14  ;;  %v1775_v14 = vunpack.c.h.b16 %v91_v6 }
 0x2e8   :  { %7727 = vmatpush.bf16.msra.mxu0 %v11627_v19  ;;  %v7521_v43 = vpop.f32.mrf.mxu0  ;;  %v1870_v19 = vpack.c.b16 %v1774_v13, %v1774_v13 }
 0x2e9   :  { %7740 = vmatpush.bf16.msra.mxu1 %v11635_v20  ;;  %v7522_v44 = vadd.f32 %v7521_v43, %v11965_v5  ;;  %v7534_v47 = vpop.f32.mrf.mxu1  ;;  %v11684_v5 = vld [vmem:[#allocation2 + $0x17c8] sm:$0xff]  ;;  %v1871_v20 = vpack.c.b16 %v1775_v14, %v1775_v14 }
 0x2ea   :  { %7753 = vmatpush.bf16.msra.mxu2 %v11643_v23 }
 0x2eb   :  { %7766 = vmatpush.bf16.msra.mxu3 %v11651_v24  ;;  %7728 = vmatmul.bf16.vlgmr.msra.gmra.mxu0 %v1864_v31  ;;  %v7535_v50 = vadd.f32 %v7534_v47, %v7522_v44 }
 0x2ec   :  { %7772 = vmatpush.bf16.msrb.mxu0 %v11666_v27  ;;  %7741 = vmatmul.bf16.vlgmr.msra.gmra.mxu1 %v1865_v33 }
 0x2ed   :  { %7785 = vmatpush.bf16.msrb.mxu1 %v11674_v28  ;;  %7754 = vmatmul.bf16.vlgmr.msra.gmra.mxu2 %v1866_v32 }
 0x2ee   :  { %7798 = vmatpush.bf16.msrb.mxu2 %v11682_v29  ;;  %7767 = vmatmul.bf16.vlgmr.msra.gmra.mxu3 %v1867_v34 }
 0x2ef   :  { %7811 = vmatpush.bf16.msrb.mxu3 %v11690_v30 }
 0x2f0   :  { %7773 = vmatpush.bf16.msrb.mxu0 %v11665_v35  ;;  %v7547_v55 = vpop.f32.mrf.mxu2  ;;  %v7523_v58 = vpop.f32.mrf.mxu0 }
 0x2f1   :  { %7786 = vmatpush.bf16.msrb.mxu1 %v11673_v36  ;;  %v7548_v56 = vadd.f32 %v7547_v55, %v7535_v50  ;;  %v7560_v57 = vpop.f32.mrf.mxu3  ;;  %v7536_v62 = vpop.f32.mrf.mxu1 }
 0x2f2   :  { %7799 = vmatpush.bf16.msrb.mxu2 %v11681_v37 }
 0x2f3   :  { %7812 = vmatpush.bf16.msrb.mxu3 %v11689_v38  ;;  %v7561_v59 = vadd.f32 %v7560_v57, %v7548_v56 }
 0x2f4   :  { %7774 = vmatpush.bf16.msrb.mxu0 %v11664_v39 }
 0x2f5   :  { %7787 = vmatpush.bf16.msrb.mxu1 %v11672_v40 }
 0x2f6   :  { %7800 = vmatpush.bf16.msrb.mxu2 %v11680_v41 }
 0x2f7   :  { %7813 = vmatpush.bf16.msrb.mxu3 %v11688_v42 }
 0x2f8   :  { %7775 = vmatpush.bf16.msrb.mxu0 %v11663_v45  ;;  %v7549_v7 = vpop.f32.mrf.mxu2 }
 0x2f9   :  { %7788 = vmatpush.bf16.msrb.mxu1 %v11671_v46  ;;  %v7562_v8 = vpop.f32.mrf.mxu3 }
 0x2fa   :  { %7801 = vmatpush.bf16.msrb.mxu2 %v11679_v48 }
 0x2fb   :  { %7814 = vmatpush.bf16.msrb.mxu3 %v11687_v49 }
 0x2fc   :  { %7776 = vmatpush.bf16.msrb.mxu0 %v11662_v51 }
 0x2fd   :  { %7789 = vmatpush.bf16.msrb.mxu1 %v11670_v52 }
 0x2fe   :  { %7802 = vmatpush.bf16.msrb.mxu2 %v11678_v53 }
 0x2ff   :  { %7815 = vmatpush.bf16.msrb.mxu3 %v11686_v54 }
 0x300   :  { %7777 = vmatpush.bf16.msrb.mxu0 %v11661_v60 }
 0x301   :  { %7790 = vmatpush.bf16.msrb.mxu1 %v11669_v61 }
 0x302   :  { %7803 = vmatpush.bf16.msrb.mxu2 %v11677_v63 }
 0x303   :  { %7816 = vmatpush.bf16.msrb.mxu3 %v11685_v0 }
 0x304   :  { %7778 = vmatpush.bf16.msrb.mxu0 %v11660_v1 }
 0x305   :  { %7791 = vmatpush.bf16.msrb.mxu1 %v11668_v2 }
 0x306   :  { %7804 = vmatpush.bf16.msrb.mxu2 %v11676_v4 }
 0x307   :  { %7817 = vmatpush.bf16.msrb.mxu3 %v11684_v5 }
 0x308   :  { %7779 = vmatpush.bf16.msrb.mxu0 %v11659_v11  ;;  %v7573_v21 = vpop.f32.mrf.mxu0 }
 0x309   :  { %7792 = vmatpush.bf16.msrb.mxu1 %v11667_v12  ;;  %v7574_v22 = vadd.f32 %v7573_v21, %v7561_v59  ;;  %v7586_v23 = vpop.f32.mrf.mxu1 }
 0x30a   :  { %7805 = vmatpush.bf16.msrb.mxu2 %v11675_v15 }
 0x30b   :  { %7818 = vmatpush.bf16.msrb.mxu3 %v11683_v16  ;;  %7780 = vmatmul.bf16.vlgmr.msrb.gmra.mxu0 %v1868_v17  ;;  %v7587_v24 = vadd.f32 %v7586_v23, %v7574_v22 }
 0x30c   :  { %7793 = vmatmul.bf16.vlgmr.msrb.gmra.mxu1 %v1869_v18 }
 0x30d   :  { %7806 = vmatmul.bf16.vlgmr.msrb.gmra.mxu2 %v1870_v19 }
 0x30e   :  { %7819 = vmatmul.bf16.vlgmr.msrb.gmra.mxu3 %v1871_v20 }
 0x310   :  { %v7599_v25 = vpop.f32.mrf.mxu2  ;;  %v7575_v28 = vpop.f32.mrf.mxu0 }
 0x311   :  { %v7600_v26 = vadd.f32 %v7599_v25, %v7587_v24  ;;  %v7612_v27 = vpop.f32.mrf.mxu3  ;;  %v7588_v30 = vpop.f32.mrf.mxu1 }
 0x313   :  { %v7613_v29 = vadd.f32 %v7612_v27, %v7600_v26 }
 0x318   :  { %v7601_v31 = vpop.f32.mrf.mxu2 }
 0x319   :  { %v7614_v32 = vpop.f32.mrf.mxu3 }
 0x328   :  { %v7625_v33 = vpop.f32.mrf.mxu0 }
 0x329   :  { %v7626_v34 = vadd.f32 %v7625_v33, %v7613_v29  ;;  %v7638_v35 = vpop.f32.mrf.mxu1 }
 0x32b   :  { %v7639_v36 = vadd.f32 %v7638_v35, %v7626_v34 }
 0x330   :  { %v7651_v37 = vpop.f32.mrf.mxu2  ;;  %v7627_v40 = vpop.f32.mrf.mxu0 }
 0x331   :  { %v7652_v38 = vadd.f32 %v7651_v37, %v7639_v36  ;;  %v7664_v39 = vpop.f32.mrf.mxu3  ;;  %v7640_v42 = vpop.f32.mrf.mxu1 }
 0x333   :  { %v7665_v41 = vadd.f32 %v7664_v39, %v7652_v38 }
 0x338   :  { %v7653_v43 = vpop.f32.mrf.mxu2 }
 0x339   :  { %v7666_v44 = vpop.f32.mrf.mxu3 }
 0x348   :  { %v7677_v45 = vpop.f32.mrf.mxu0 }
 0x349   :  { %v7690_v46 = vpop.f32.mrf.mxu1  ;;  %v7678_v56 = vadd.f32 %v7677_v45, %v7665_v41 }
 0x34b   :  { %v7691_v60 = vadd.f32 %v7690_v46, %v7678_v56 }
 0x350   :  { %v7703_v47 = vpop.f32.mrf.mxu2  ;;  %v7679_v49 = vpop.f32.mrf.mxu0 }
 0x351   :  { %v7716_v48 = vpop.f32.mrf.mxu3  ;;  %v7692_v50 = vpop.f32.mrf.mxu1  ;;  %v7704_v61 = vadd.f32 %v7703_v47, %v7691_v60 }
 0x353   :  { %v7717_v0 = vadd.f32 %v7716_v48, %v7704_v61 }
 0x358   :  { %v7705_v51 = vpop.f32.mrf.mxu2 }
 0x359   :  { %v7718_v52 = vpop.f32.mrf.mxu3 }
 0x368   :  { %v7729_v53 = vpop.f32.mrf.mxu0 }
 0x369   :  { %v7742_v54 = vpop.f32.mrf.mxu1  ;;  %v7730_v1 = vadd.f32 %v7729_v53, %v7717_v0 }
 0x36b   :  { %v7743_v2 = vadd.f32 %v7742_v54, %v7730_v1 }
 0x370   :  { %v7755_v55 = vpop.f32.mrf.mxu2  ;;  %v7731_v58 = vpop.f32.mrf.mxu0 }
 0x371   :  { %v7768_v57 = vpop.f32.mrf.mxu3  ;;  %v7744_v59 = vpop.f32.mrf.mxu1  ;;  %v7756_v3 = vadd.f32 %v7755_v55, %v7743_v2 }
 0x373   :  { %v7769_v4 = vadd.f32 %v7768_v57, %v7756_v3 }
 0x378   :  { %v7757_v62 = vpop.f32.mrf.mxu2 }
 0x379   :  { %v7770_v63 = vpop.f32.mrf.mxu3 }
 0x388   :  { %v7781_v5 = vpop.f32.mrf.mxu0 }
 0x389   :  { %v7794_v6 = vpop.f32.mrf.mxu1  ;;  %v7782_v7 = vadd.f32 %v7781_v5, %v7769_v4 }
 0x38b   :  { %v7795_v8 = vadd.f32 %v7794_v6, %v7782_v7 }
 0x390   :  { %v7807_v9 = vpop.f32.mrf.mxu2  ;;  %v7783_v12 = vpop.f32.mrf.mxu0 }
 0x391   :  { %v7820_v10 = vpop.f32.mrf.mxu3  ;;  %v7808_v11 = vadd.f32 %v7807_v9, %v7795_v8  ;;  %v7796_v13 = vpop.f32.mrf.mxu1 }
 0x393   :  { %v7821_v14 = vadd.f32 %v7820_v10, %v7808_v11 }
 0x395   :  { %v10922_v15 = vmul.f32 -1.442695, %v7821_v14 }
 0x397   :  { %11696 = vpow2.f32 %v10922_v15 }
 0x398   :  { %v7809_v16 = vpop.f32.mrf.mxu2 }
 0x399   :  { %v7822_v17 = vpop.f32.mrf.mxu3 }
 0x39d   :  { %v11697_v18 = vpop.eup %11696 }
 0x39e   :  { %v7827_v19 = vadd.f32 1.0, %v11697_v18 }
 0x3a0   :  { %11698 = vrcp.f32 %v7827_v19  ;;  %v7839_v23 = vand.u32 2147483648, %v7827_v19  ;;  %v7837_v25 = vand.u32 2147483647, %v7827_v19  ;;  %vm7833_vm1 = vweird.f32 %v7827_v19 }
 0x3a2   :  { %v7840_v27 = vor.u32 1.1754944e-38, %v7839_v23  ;;  %vm7838_vm3 = vcmp.eq.f32.partialorder %v7837_v25, 8.507059e+37 }
 0x3a6   :  { %v11699_v20 = vpop.eup %11698 }
 0x3a7   :  { %v7829_v21 = vmul.f32 %v11699_v20, %v7827_v19  ;;  %vm7834_vm0 = vweird.f32 %v11699_v20 }
 0x3a8   :  { %vm7835_vm2 = vmor %vm7833_vm1, %vm7834_vm0 }
 0x3a9   :  { %v7830_v22 = vsub.f32 1.0, %v7829_v21 }
 0x3ab   :  { %v7831_v24 = vmul.f32 %v11699_v20, %v7830_v22 }
 0x3ad   :  { %v7832_v26 = vadd.f32 %v11699_v20, %v7831_v24 }
 0x3af   :  { %v7836_v28 = vsel %vm7835_vm2, %v11699_v20, %v7832_v26 }
 0x3b0   :  { %v7841_v29 = vsel %vm7838_vm3, %v7840_v27, %v7836_v28 }
 0x3b1   :  { %7843 = vst [vmem:[%s11986_s3] sm:$0xff] %v7841_v29 }
 0x3b2   :  { %7848 = vsyncpa [#allocation3], 1 }
 0x3b3   :  { %7849 = vsyncpa [#allocation5], 1 }

</bundles_post_ra>
